<compile_context>
chip_gen: v5e
topology: v5e:2x2
jax: 0.10.0
libtpu: 0.0.40
codegen_flags: <defaults>
</compile_context>

<pallas_src>
import math

import jax
import jax.numpy as jnp
from jax.experimental import pallas as pl
from jax.experimental.pallas import tpu as pltpu


# ------------------------------ model hyper-params (small, synthetic) ----------------
B = 2              # batch
T_AUDIO = 128      # raw audio length
K1, K2 = 4, 2      # conv kernel == stride (so conv == blocked matmul)
C_FEAT = 128       # conv feature dim (real wav2vec2 uses 512)
H = 128            # hidden_size (real wav2vec2 uses 768)
NUM_HEADS = 4
DH = H // NUM_HEADS
FFN = 4 * H
NUM_LAYERS = 2     # shared transformer depth (wav2vec2-base uses 12)
POS_K = 3          # positional-conv kernel (real wav2vec2 uses 128, groups=16)
NUM_CLASSES = 2
CLS_PAD = 128      # classifier output padded to a full lane width
T_SEQ = T_AUDIO // (K1 * K2)   # encoder sequence length (16)
BT = B * T_SEQ                 # batch folded into matmul M dimension (32)
LN_EPS = 1e-5


# ------------------------------ small in-kernel helpers ------------------------------

def _gelu(x):
    # exact (erf) GELU, matching torch.nn.GELU / HF "gelu"
    return 0.5 * x * (1.0 + jax.lax.erf(x * (1.0 / math.sqrt(2.0))))


def _ln(x, g, b):
    mu = jnp.mean(x, axis=-1, keepdims=True)
    var = jnp.mean(jnp.square(x - mu), axis=-1, keepdims=True)
    return (x - mu) * jax.lax.rsqrt(var + LN_EPS) * g + b


def _mm(x, w):
    # bf16 operands, f32 accumulation on the MXU.
    return jnp.dot(x.astype(jnp.bfloat16), w.astype(jnp.bfloat16),
                   preferred_element_type=jnp.float32)


# ------------------------------ kernel 1: prolog --------------------------------------
# Both feature branches + shared projection + post_norm(fused concat) + fusion linear
# + positional conv + residual + encoder LayerNorm, all in one ungridded call with
# every intermediate resident in VMEM.
# TODO(synk): real wav2vec2 uses 7 bias-free conv layers with GroupNorm on the first,
# and a pos_conv with kernel=128, groups=16, weight norm.

def _prolog_kernel(pcs_ref, psv_ref, c1w_ref, c2w0_ref, c2w1_ref, fpw_ref, bvec_ref,
                   spw_ref, fw_ref, posw_ref, fvec_ref, o_ref):
    fv = fvec_ref[...]                                  # (9, 2H) packed fusion vectors

    # ---- per-branch feature extractor + feature projection (branch loop is static) --
    branch_out = []
    for br, pref in enumerate((pcs_ref, psv_ref)):
        bv = bvec_ref[br]                               # (5, C) packed branch vectors
        patches = pref[...]                             # (2*BT, K1): [even rows; odd rows]
        h = _gelu(_mm(patches, c1w_ref[br]) + bv[0:1, :])      # conv1 + GELU, one matmul
        h_e, h_o = h[:BT], h[BT:]                       # conv1 taps t=2k / t=2k+1
        h2 = _gelu(_mm(h_e, c2w0_ref[br]) + _mm(h_o, c2w1_ref[br]) + bv[1:2, :])  # conv2
        hn = _ln(h2, bv[2:3, :], bv[3:4, :])            # feature_projection LayerNorm
        branch_out.append(_mm(hn, fpw_ref[br]) + bv[4:5, :])   # feature_projection Linear
    x_cs, x_sv = branch_out                             # each (BT, H)

    # ---- shared_projection + layer_norm (weights shared across branches) ------------
    spw = spw_ref[...]
    spb, sg, sb = fv[0:1, :H], fv[1:2, :H], fv[2:3, :H]
    p_cs = _ln(_mm(x_cs, spw) + spb, sg, sb)
    p_sv = _ln(_mm(x_sv, spw) + spb, sg, sb)

    # ---- post_norm over the concatenation [p_cs, p_sv] (width 2H), not materialized -
    two_h = 2.0 * H
    mu = (jnp.sum(p_cs, -1, keepdims=True) + jnp.sum(p_sv, -1, keepdims=True)) / two_h
    var = (jnp.sum(jnp.square(p_cs - mu), -1, keepdims=True)
           + jnp.sum(jnp.square(p_sv - mu), -1, keepdims=True)) / two_h
    inv = jax.lax.rsqrt(var + LN_EPS)
    png, pnb = fv[7:8, :], fv[8:9, :]                   # (1, 2H)
    n_cs = (p_cs - mu) * inv * png[:, :H] + pnb[:, :H]
    n_sv = (p_sv - mu) * inv * png[:, H:] + pnb[:, H:]

    # ---- fusion Linear (2H -> H); dropout = identity (eval) --------------------------
    fw = fw_ref[...]                                    # (2H, H)
    fused = _mm(n_cs, fw[:H]) + _mm(n_sv, fw[H:]) + fv[3:4, :H]   # (BT, H)

    # ---- positional conv (K=3, same padding) via sublane roll + boundary zero-mask --
    row = jax.lax.broadcasted_iota(jnp.int32, (BT, 1), 0)
    t_pos = row % T_SEQ
    f_prev = jnp.where(t_pos == 0, 0.0, pltpu.roll(fused, 1, 0))            # x[t-1]
    f_next = jnp.where(t_pos == T_SEQ - 1, 0.0, pltpu.roll(fused, BT - 1, 0))  # x[t+1]
    pos = (_mm(f_prev, posw_ref[0]) + _mm(fused, posw_ref[1])
           + _mm(f_next, posw_ref[2]) + fv[4:5, :H])
    pos = _gelu(pos)

    # ---- residual + encoder LayerNorm ------------------------------------------------
    o_ref[...] = _ln(fused + pos, fv[5:6, :H], fv[6:7, :H])


def prolog(p_cs, p_sv, p):
    return pl.pallas_call(
        _prolog_kernel,
        out_shape=jax.ShapeDtypeStruct((BT, H), jnp.float32),
    )(p_cs, p_sv,
      p["br_conv1_w"], p["br_conv2_w0"], p["br_conv2_w1"], p["br_fp_w"], p["br_vecs"],
      p["shared_proj_w"], p["fusion_w"], p["pos_conv_w"], p["fus_vecs"])


# ------------------------------ kernel 2: layer-gridded encoder + classifier ----------
# grid=(NUM_LAYERS,), "arbitrary": per-layer weights stream through VMEM (auto double-
# buffered), the (B*T, H) activation persists in a VMEM scratch across grid steps, and
# the mean-pool + classifier runs under pl.when on the last step.
# TODO(synk): at real wav2vec2 sizes (H=768), budget VMEM explicitly on v7x (64 MiB)
# via vmem_limit_bytes / pl.Buffered(1) on the constant-index weights.

def _encoder_kernel(x0_ref, wqkv_ref, wo_ref, w1_ref, w2_ref, lvec_ref,
                    clsw_ref, clsv_ref, o_ref, x_scr):
    layer = pl.program_id(0)

    @pl.when(layer == 0)
    def _():
        x_scr[...] = x0_ref[...]

    x = x_scr[...]                                      # (BT, H) residual stream
    lv = lvec_ref[0]                                    # (8, FFN) packed layer vectors
    scale = 1.0 / math.sqrt(DH)

    # ---- fused QKV projection: one (BT, H) @ (H, 3H) matmul --------------------------
    qkv = _mm(x, wqkv_ref[0]) + lv[0:1, :3 * H]         # (BT, 3H)
    q = qkv[:, :H] * scale
    k = qkv[:, H:2 * H]
    v = qkv[:, 2 * H:]

    # ---- per-head attention (lane slices; heads statically unrolled) -----------------
    ctx_heads = []
    for h in range(NUM_HEADS):
        sl = slice(h * DH, (h + 1) * DH)
        qh = q[:, sl].reshape(B, T_SEQ, DH).astype(jnp.bfloat16)
        kh = k[:, sl].reshape(B, T_SEQ, DH).astype(jnp.bfloat16)
        vh = v[:, sl].reshape(B, T_SEQ, DH).astype(jnp.bfloat16)
        s = jnp.einsum("bqd,bkd->bqk", qh, kh, preferred_element_type=jnp.float32)
        s = s - jnp.max(s, axis=-1, keepdims=True)
        pr = jnp.exp(s)
        pr = pr * pl.reciprocal(jnp.sum(pr, axis=-1, keepdims=True), approx=True)
        ch = jnp.einsum("bqk,bkd->bqd", pr.astype(jnp.bfloat16), vh,
                        preferred_element_type=jnp.float32)
        ctx_heads.append(ch.reshape(BT, DH))
    ctx = jnp.concatenate(ctx_heads, axis=-1)           # (BT, H) lane-concatenated

    # ---- output projection + add&LN + FFN + add&LN (post-norm, wav2vec2-base) --------
    attn = _mm(ctx, wo_ref[0]) + lv[1:2, :H]
    x1 = _ln(x + attn, lv[2:3, :H], lv[3:4, :H])
    ff = _gelu(_mm(x1, w1_ref[0]) + lv[4:5, :])
    ff = _mm(ff, w2_ref[0]) + lv[5:6, :H]
    x2 = _ln(x1 + ff, lv[6:7, :H], lv[7:8, :H])
    x_scr[...] = x2

    # ---- last layer: mean-pool over time + classifier (LN -> Linear), lane-padded ----
    @pl.when(layer == NUM_LAYERS - 1)
    def _():
        pooled = jnp.mean(x2.reshape(B, T_SEQ, H), axis=1)        # (B, H)
        n = _ln(pooled, clsv_ref[0:1, :], clsv_ref[1:2, :])       # classifier LayerNorm
        o_ref[...] = _mm(n, clsw_ref[...]) + clsv_ref[2:3, :]     # classifier Linear


def encoder_and_classify(x0, p):
    def lay(shape):
        return pl.BlockSpec((1,) + shape, lambda l, _s=shape: (l,) + (0,) * len(_s))

    def rep(shape):
        return pl.BlockSpec(shape, lambda l, _s=shape: (0,) * len(_s))

    return pl.pallas_call(
        _encoder_kernel,
        grid=(NUM_LAYERS,),
        in_specs=[
            rep((BT, H)),           # x0 (used on step 0 only)
            lay((H, 3 * H)),        # wqkv
            lay((H, H)),            # wo
            lay((H, FFN)),          # ffn up
            lay((FFN, H)),          # ffn down
            lay((8, FFN)),          # packed per-layer bias/LN vectors
            rep((H, CLS_PAD)),      # classifier weight (lane-padded)
            rep((3, CLS_PAD)),      # packed classifier vectors
        ],
        out_specs=pl.BlockSpec((B, CLS_PAD), lambda l: (0, 0)),
        out_shape=jax.ShapeDtypeStruct((B, CLS_PAD), jnp.float32),
        scratch_shapes=[pltpu.VMEM((BT, H), jnp.float32)],
        compiler_params=pltpu.CompilerParams(dimension_semantics=("arbitrary",)),
    )(x0, p["wqkv"], p["wo"], p["ff_w1"], p["ff_w2"], p["layer_vecs"],
      p["cls_w"], p["cls_vecs"])


# ------------------------------ parameters --------------------------------------------
# Matmul weights in bf16 (MXU-native); packed bias / LN vectors in f32.
# TODO(synk): no checkpoint loading; weights are synthetic (torch Conv1d (C,C,K) weight
# layouts would need a K-major transpose matching the im2col ordering used here).

def init_params(key):
    keys = iter(jax.random.split(key, 32))

    def nrm(shape, scale=0.02):
        return (scale * jax.random.normal(next(keys), shape, jnp.float32)).astype(jnp.bfloat16)

    p = {}
    # feature branches, stacked on a leading branch axis (0 = cs, 1 = sv)
    p["br_conv1_w"] = nrm((2, K1, C_FEAT))
    p["br_conv2_w0"] = nrm((2, C_FEAT, C_FEAT))
    p["br_conv2_w1"] = nrm((2, C_FEAT, C_FEAT))
    p["br_fp_w"] = nrm((2, C_FEAT, H))
    # packed per-branch vectors: [conv1_b, conv2_b, fp_ln_g, fp_ln_b, fp_b]
    br_vec = jnp.zeros((5, C_FEAT), jnp.float32).at[2].set(1.0)
    p["br_vecs"] = jnp.stack([br_vec, br_vec])

    # fusion stage
    p["shared_proj_w"] = nrm((H, H))
    p["fusion_w"] = nrm((2 * H, H))
    p["pos_conv_w"] = nrm((POS_K, H, H))
    # packed: [shared_proj_b, shared_ln_g, shared_ln_b, fusion_b, pos_conv_b,
    #          enc_ln_g, enc_ln_b, post_ln_g(2H), post_ln_b(2H)]
    fus = jnp.zeros((9, 2 * H), jnp.float32)
    fus = fus.at[1, :H].set(1.0).at[5, :H].set(1.0).at[7, :].set(1.0)
    p["fus_vecs"] = fus

    # transformer layers, stacked on a leading layer axis
    p["wqkv"] = nrm((NUM_LAYERS, H, 3 * H))
    p["wo"] = nrm((NUM_LAYERS, H, H))
    p["ff_w1"] = nrm((NUM_LAYERS, H, FFN))
    p["ff_w2"] = nrm((NUM_LAYERS, FFN, H))
    # packed: [bqkv(3H), bo, ln1_g, ln1_b, ff_b1(FFN), ff_b2, ln2_g, ln2_b]
    lv = jnp.zeros((NUM_LAYERS, 8, FFN), jnp.float32)
    lv = lv.at[:, 2, :H].set(1.0).at[:, 6, :H].set(1.0)
    p["layer_vecs"] = lv

    # classifier (output lane-padded to CLS_PAD, sliced in the wrapper)
    clsw = jnp.zeros((H, CLS_PAD), jnp.float32)
    clsw = clsw.at[:, :NUM_CLASSES].set(
        0.02 * jax.random.normal(next(keys), (H, NUM_CLASSES), jnp.float32))
    p["cls_w"] = clsw.astype(jnp.bfloat16)
    cv = jnp.zeros((3, CLS_PAD), jnp.float32).at[0, :H].set(1.0)   # [cls_ln_g, cls_ln_b, cls_b]
    p["cls_vecs"] = cv
    return p


# ------------------------------ forward pass ------------------------------------------
# TODO(synk): fusion_method='attention' branch of the PyTorch module is not implemented
# (the module default used here is 'concate').

def _conv_patches(x):
    # im2col for both conv layers: rows = [even conv1 patches ; odd conv1 patches]
    xr = x.reshape(B, T_SEQ, K2, K1)
    xe = xr[:, :, 0, :].reshape(BT, K1)
    xo = xr[:, :, 1, :].reshape(BT, K1)
    return jnp.concatenate([xe, xo], axis=0)            # (2*BT, K1)


def model_forward(p, input_values_cs, input_values_sv):
    x_cs = input_values_cs[:, 0, :]                     # .squeeze(1)
    x_sv = input_values_sv[:, 0, :]
    x0 = prolog(_conv_patches(x_cs), _conv_patches(x_sv), p)   # (B*T, H)
    logits_padded = encoder_and_classify(x0, p)                # (B, CLS_PAD)
    return logits_padded[:, :NUM_CLASSES]


# ------------------------------ main ---------------------------------------------------

if __name__ == "__main__":
    key = jax.random.PRNGKey(0)
    k_p, k_cs, k_sv = jax.random.split(key, 3)
    params = init_params(k_p)
    input_values_cs = jax.random.normal(k_cs, (B, 1, T_AUDIO), jnp.float32)
    input_values_sv = jax.random.normal(k_sv, (B, 1, T_AUDIO), jnp.float32)

    logits = jax.jit(model_forward)(params, input_values_cs, input_values_sv)
    logits = jax.block_until_ready(logits)

    assert logits.shape == (B, NUM_CLASSES), logits.shape
    assert bool(jnp.all(jnp.isfinite(logits)))
    print("KERNEL_OK")
</pallas_src>

<mosaic_0001>
module attributes {stable_mosaic.version = 11 : i64} {
  func.func @_prolog_kernel(%arg0: memref<64x4xf32, #tpu.memory_space<vmem>>, %arg1: memref<64x4xf32, #tpu.memory_space<vmem>>, %arg2: memref<2x4x128xbf16, #tpu.memory_space<vmem>>, %arg3: memref<2x128x128xbf16, #tpu.memory_space<vmem>>, %arg4: memref<2x128x128xbf16, #tpu.memory_space<vmem>>, %arg5: memref<2x128x128xbf16, #tpu.memory_space<vmem>>, %arg6: memref<2x5x128xf32, #tpu.memory_space<vmem>>, %arg7: memref<128x128xbf16, #tpu.memory_space<vmem>>, %arg8: memref<256x128xbf16, #tpu.memory_space<vmem>>, %arg9: memref<3x128x128xbf16, #tpu.memory_space<vmem>>, %arg10: memref<9x256xf32, #tpu.memory_space<vmem>>, %arg11: memref<32x128xf32, #tpu.memory_space<vmem>>) attributes {dimension_semantics = [], scalar_prefetch = 0 : i64, scratch_operands = 0 : i64, tpu.core_type = #tpu.core_type<tc>} {
    %c0 = arith.constant 0 : index
    %c0_0 = arith.constant 0 : index
    %0 = vector.load %arg10[%c0, %c0_0] : memref<9x256xf32, #tpu.memory_space<vmem>>, vector<9x256xf32>
    %c0_1 = arith.constant 0 : index
    %c0_2 = arith.constant 0 : index
    %c0_3 = arith.constant 0 : index
    %1 = vector.load %arg6[%c0_1, %c0_2, %c0_3] : memref<2x5x128xf32, #tpu.memory_space<vmem>>, vector<1x5x128xf32>
    %2 = vector.shape_cast %1 : vector<1x5x128xf32> to vector<5x128xf32>
    %c0_4 = arith.constant 0 : index
    %c0_5 = arith.constant 0 : index
    %3 = vector.load %arg0[%c0_4, %c0_5] : memref<64x4xf32, #tpu.memory_space<vmem>>, vector<64x4xf32>
    %c0_6 = arith.constant 0 : index
    %c0_7 = arith.constant 0 : index
    %c0_8 = arith.constant 0 : index
    %4 = vector.load %arg2[%c0_6, %c0_7, %c0_8] : memref<2x4x128xbf16, #tpu.memory_space<vmem>>, vector<1x4x128xbf16>
    %5 = vector.shape_cast %4 : vector<1x4x128xbf16> to vector<4x128xbf16>
    %6 = arith.truncf %3 : vector<64x4xf32> to vector<64x4xbf16>
    %cst = arith.constant dense<0.000000e+00> : vector<64x128xf32>
    %7 = tpu.matmul %6, %5, %cst {dimension_numbers = #tpu.dot_dimension_numbers<[1], [0], [0], [1], [0, 0, 1, 1], [], []>} : vector<64x4xbf16>, vector<4x128xbf16>, vector<64x128xf32> -> vector<64x128xf32>
    %8 = vector.extract_strided_slice %2 {offsets = [0, 0], sizes = [1, 128], strides = [1, 1]} : vector<5x128xf32> to vector<1x128xf32>
    %9 = vector.broadcast %8 : vector<1x128xf32> to vector<64x128xf32>
    %10 = arith.addf %7, %9 : vector<64x128xf32>
    %cst_9 = arith.constant 5.000000e-01 : f32
    %11 = vector.broadcast %cst_9 : f32 to vector<64x128xf32>
    %12 = arith.mulf %11, %10 : vector<64x128xf32>
    %cst_10 = arith.constant 0.707106769 : f32
    %13 = vector.broadcast %cst_10 : f32 to vector<64x128xf32>
    %14 = arith.mulf %10, %13 : vector<64x128xf32>
    %15 = math.erf %14 : vector<64x128xf32>
    %cst_11 = arith.constant 1.000000e+00 : f32
    %16 = vector.broadcast %cst_11 : f32 to vector<64x128xf32>
    %17 = arith.addf %16, %15 : vector<64x128xf32>
    %18 = arith.mulf %12, %17 : vector<64x128xf32>
    %19 = vector.extract_strided_slice %18 {offsets = [0, 0], sizes = [32, 128], strides = [1, 1]} : vector<64x128xf32> to vector<32x128xf32>
    %20 = vector.extract_strided_slice %18 {offsets = [32, 0], sizes = [32, 128], strides = [1, 1]} : vector<64x128xf32> to vector<32x128xf32>
    %c0_12 = arith.constant 0 : index
    %c0_13 = arith.constant 0 : index
    %c0_14 = arith.constant 0 : index
    %21 = vector.load %arg3[%c0_12, %c0_13, %c0_14] : memref<2x128x128xbf16, #tpu.memory_space<vmem>>, vector<1x128x128xbf16>
    %22 = vector.shape_cast %21 : vector<1x128x128xbf16> to vector<128x128xbf16>
    %23 = arith.truncf %19 : vector<32x128xf32> to vector<32x128xbf16>
    %cst_15 = arith.constant dense<0.000000e+00> : vector<32x128xf32>
    %24 = tpu.matmul %23, %22, %cst_15 {dimension_numbers = #tpu.dot_dimension_numbers<[1], [0], [0], [1], [0, 0, 1, 1], [], []>} : vector<32x128xbf16>, vector<128x128xbf16>, vector<32x128xf32> -> vector<32x128xf32>
    %c0_16 = arith.constant 0 : index
    %c0_17 = arith.constant 0 : index
    %c0_18 = arith.constant 0 : index
    %25 = vector.load %arg4[%c0_16, %c0_17, %c0_18] : memref<2x128x128xbf16, #tpu.memory_space<vmem>>, vector<1x128x128xbf16>
    %26 = vector.shape_cast %25 : vector<1x128x128xbf16> to vector<128x128xbf16>
    %27 = arith.truncf %20 : vector<32x128xf32> to vector<32x128xbf16>
    %cst_19 = arith.constant dense<0.000000e+00> : vector<32x128xf32>
    %28 = tpu.matmul %27, %26, %cst_19 {dimension_numbers = #tpu.dot_dimension_numbers<[1], [0], [0], [1], [0, 0, 1, 1], [], []>} : vector<32x128xbf16>, vector<128x128xbf16>, vector<32x128xf32> -> vector<32x128xf32>
    %29 = arith.addf %24, %28 : vector<32x128xf32>
    %30 = vector.extract_strided_slice %2 {offsets = [1, 0], sizes = [1, 128], strides = [1, 1]} : vector<5x128xf32> to vector<1x128xf32>
    %31 = vector.broadcast %30 : vector<1x128xf32> to vector<32x128xf32>
    %32 = arith.addf %29, %31 : vector<32x128xf32>
    %cst_20 = arith.constant 5.000000e-01 : f32
    %33 = vector.broadcast %cst_20 : f32 to vector<32x128xf32>
    %34 = arith.mulf %33, %32 : vector<32x128xf32>
    %cst_21 = arith.constant 0.707106769 : f32
    %35 = vector.broadcast %cst_21 : f32 to vector<32x128xf32>
    %36 = arith.mulf %32, %35 : vector<32x128xf32>
    %37 = math.erf %36 : vector<32x128xf32>
    %cst_22 = arith.constant 1.000000e+00 : f32
    %38 = vector.broadcast %cst_22 : f32 to vector<32x128xf32>
    %39 = arith.addf %38, %37 : vector<32x128xf32>
    %40 = arith.mulf %34, %39 : vector<32x128xf32>
    %41 = vector.extract_strided_slice %2 {offsets = [2, 0], sizes = [1, 128], strides = [1, 1]} : vector<5x128xf32> to vector<1x128xf32>
    %42 = vector.extract_strided_slice %2 {offsets = [3, 0], sizes = [1, 128], strides = [1, 1]} : vector<5x128xf32> to vector<1x128xf32>
    %cst_23 = arith.constant dense<0.000000e+00> : vector<32xf32>
    %43 = vector.multi_reduction <add>, %40, %cst_23 [1] : vector<32x128xf32> to vector<32xf32>
    %44 = vector.shape_cast %43 : vector<32xf32> to vector<32x1xf32>
    %cst_24 = arith.constant 1.280000e+02 : f32
    %45 = vector.broadcast %cst_24 : f32 to vector<32x1xf32>
    %46 = arith.divf %44, %45 : vector<32x1xf32>
    %47 = vector.broadcast %46 : vector<32x1xf32> to vector<32x128xf32>
    %48 = arith.subf %40, %47 : vector<32x128xf32>
    %49 = arith.mulf %48, %48 : vector<32x128xf32>
    %cst_25 = arith.constant dense<0.000000e+00> : vector<32xf32>
    %50 = vector.multi_reduction <add>, %49, %cst_25 [1] : vector<32x128xf32> to vector<32xf32>
    %51 = vector.shape_cast %50 : vector<32xf32> to vector<32x1xf32>
    %cst_26 = arith.constant 1.280000e+02 : f32
    %52 = vector.broadcast %cst_26 : f32 to vector<32x1xf32>
    %53 = arith.divf %51, %52 : vector<32x1xf32>
    %54 = vector.broadcast %46 : vector<32x1xf32> to vector<32x128xf32>
    %55 = arith.subf %40, %54 : vector<32x128xf32>
    %cst_27 = arith.constant 9.99999974E-6 : f32
    %56 = vector.broadcast %cst_27 : f32 to vector<32x1xf32>
    %57 = arith.addf %53, %56 : vector<32x1xf32>
    %58 = math.rsqrt %57 : vector<32x1xf32>
    %59 = vector.broadcast %58 : vector<32x1xf32> to vector<32x128xf32>
    %60 = arith.mulf %55, %59 : vector<32x128xf32>
    %61 = vector.broadcast %41 : vector<1x128xf32> to vector<32x128xf32>
    %62 = arith.mulf %60, %61 : vector<32x128xf32>
    %63 = vector.broadcast %42 : vector<1x128xf32> to vector<32x128xf32>
    %64 = arith.addf %62, %63 : vector<32x128xf32>
    %c0_28 = arith.constant 0 : index
    %c0_29 = arith.constant 0 : index
    %c0_30 = arith.constant 0 : index
    %65 = vector.load %arg5[%c0_28, %c0_29, %c0_30] : memref<2x128x128xbf16, #tpu.memory_space<vmem>>, vector<1x128x128xbf16>
    %66 = vector.shape_cast %65 : vector<1x128x128xbf16> to vector<128x128xbf16>
    %67 = arith.truncf %64 : vector<32x128xf32> to vector<32x128xbf16>
    %cst_31 = arith.constant dense<0.000000e+00> : vector<32x128xf32>
    %68 = tpu.matmul %67, %66, %cst_31 {dimension_numbers = #tpu.dot_dimension_numbers<[1], [0], [0], [1], [0, 0, 1, 1], [], []>} : vector<32x128xbf16>, vector<128x128xbf16>, vector<32x128xf32> -> vector<32x128xf32>
    %69 = vector.extract_strided_slice %2 {offsets = [4, 0], sizes = [1, 128], strides = [1, 1]} : vector<5x128xf32> to vector<1x128xf32>
    %70 = vector.broadcast %69 : vector<1x128xf32> to vector<32x128xf32>
    %71 = arith.addf %68, %70 : vector<32x128xf32>
    %c1 = arith.constant 1 : index
    %c0_32 = arith.constant 0 : index
    %c0_33 = arith.constant 0 : index
    %72 = vector.load %arg6[%c1, %c0_32, %c0_33] : memref<2x5x128xf32, #tpu.memory_space<vmem>>, vector<1x5x128xf32>
    %73 = vector.shape_cast %72 : vector<1x5x128xf32> to vector<5x128xf32>
    %c0_34 = arith.constant 0 : index
    %c0_35 = arith.constant 0 : index
    %74 = vector.load %arg1[%c0_34, %c0_35] : memref<64x4xf32, #tpu.memory_space<vmem>>, vector<64x4xf32>
    %c1_36 = arith.constant 1 : index
    %c0_37 = arith.constant 0 : index
    %c0_38 = arith.constant 0 : index
    %75 = vector.load %arg2[%c1_36, %c0_37, %c0_38] : memref<2x4x128xbf16, #tpu.memory_space<vmem>>, vector<1x4x128xbf16>
    %76 = vector.shape_cast %75 : vector<1x4x128xbf16> to vector<4x128xbf16>
    %77 = arith.truncf %74 : vector<64x4xf32> to vector<64x4xbf16>
    %cst_39 = arith.constant dense<0.000000e+00> : vector<64x128xf32>
    %78 = tpu.matmul %77, %76, %cst_39 {dimension_numbers = #tpu.dot_dimension_numbers<[1], [0], [0], [1], [0, 0, 1, 1], [], []>} : vector<64x4xbf16>, vector<4x128xbf16>, vector<64x128xf32> -> vector<64x128xf32>
    %79 = vector.extract_strided_slice %73 {offsets = [0, 0], sizes = [1, 128], strides = [1, 1]} : vector<5x128xf32> to vector<1x128xf32>
    %80 = vector.broadcast %79 : vector<1x128xf32> to vector<64x128xf32>
    %81 = arith.addf %78, %80 : vector<64x128xf32>
    %cst_40 = arith.constant 5.000000e-01 : f32
    %82 = vector.broadcast %cst_40 : f32 to vector<64x128xf32>
    %83 = arith.mulf %82, %81 : vector<64x128xf32>
    %cst_41 = arith.constant 0.707106769 : f32
    %84 = vector.broadcast %cst_41 : f32 to vector<64x128xf32>
    %85 = arith.mulf %81, %84 : vector<64x128xf32>
    %86 = math.erf %85 : vector<64x128xf32>
    %cst_42 = arith.constant 1.000000e+00 : f32
    %87 = vector.broadcast %cst_42 : f32 to vector<64x128xf32>
    %88 = arith.addf %87, %86 : vector<64x128xf32>
    %89 = arith.mulf %83, %88 : vector<64x128xf32>
    %90 = vector.extract_strided_slice %89 {offsets = [0, 0], sizes = [32, 128], strides = [1, 1]} : vector<64x128xf32> to vector<32x128xf32>
    %91 = vector.extract_strided_slice %89 {offsets = [32, 0], sizes = [32, 128], strides = [1, 1]} : vector<64x128xf32> to vector<32x128xf32>
    %c1_43 = arith.constant 1 : index
    %c0_44 = arith.constant 0 : index
    %c0_45 = arith.constant 0 : index
    %92 = vector.load %arg3[%c1_43, %c0_44, %c0_45] : memref<2x128x128xbf16, #tpu.memory_space<vmem>>, vector<1x128x128xbf16>
    %93 = vector.shape_cast %92 : vector<1x128x128xbf16> to vector<128x128xbf16>
    %94 = arith.truncf %90 : vector<32x128xf32> to vector<32x128xbf16>
    %cst_46 = arith.constant dense<0.000000e+00> : vector<32x128xf32>
    %95 = tpu.matmul %94, %93, %cst_46 {dimension_numbers = #tpu.dot_dimension_numbers<[1], [0], [0], [1], [0, 0, 1, 1], [], []>} : vector<32x128xbf16>, vector<128x128xbf16>, vector<32x128xf32> -> vector<32x128xf32>
    %c1_47 = arith.constant 1 : index
    %c0_48 = arith.constant 0 : index
    %c0_49 = arith.constant 0 : index
    %96 = vector.load %arg4[%c1_47, %c0_48, %c0_49] : memref<2x128x128xbf16, #tpu.memory_space<vmem>>, vector<1x128x128xbf16>
    %97 = vector.shape_cast %96 : vector<1x128x128xbf16> to vector<128x128xbf16>
    %98 = arith.truncf %91 : vector<32x128xf32> to vector<32x128xbf16>
    %cst_50 = arith.constant dense<0.000000e+00> : vector<32x128xf32>
    %99 = tpu.matmul %98, %97, %cst_50 {dimension_numbers = #tpu.dot_dimension_numbers<[1], [0], [0], [1], [0, 0, 1, 1], [], []>} : vector<32x128xbf16>, vector<128x128xbf16>, vector<32x128xf32> -> vector<32x128xf32>
    %100 = arith.addf %95, %99 : vector<32x128xf32>
    %101 = vector.extract_strided_slice %73 {offsets = [1, 0], sizes = [1, 128], strides = [1, 1]} : vector<5x128xf32> to vector<1x128xf32>
    %102 = vector.broadcast %101 : vector<1x128xf32> to vector<32x128xf32>
    %103 = arith.addf %100, %102 : vector<32x128xf32>
    %cst_51 = arith.constant 5.000000e-01 : f32
    %104 = vector.broadcast %cst_51 : f32 to vector<32x128xf32>
    %105 = arith.mulf %104, %103 : vector<32x128xf32>
    %cst_52 = arith.constant 0.707106769 : f32
    %106 = vector.broadcast %cst_52 : f32 to vector<32x128xf32>
    %107 = arith.mulf %103, %106 : vector<32x128xf32>
    %108 = math.erf %107 : vector<32x128xf32>
    %cst_53 = arith.constant 1.000000e+00 : f32
    %109 = vector.broadcast %cst_53 : f32 to vector<32x128xf32>
    %110 = arith.addf %109, %108 : vector<32x128xf32>
    %111 = arith.mulf %105, %110 : vector<32x128xf32>
    %112 = vector.extract_strided_slice %73 {offsets = [2, 0], sizes = [1, 128], strides = [1, 1]} : vector<5x128xf32> to vector<1x128xf32>
    %113 = vector.extract_strided_slice %73 {offsets = [3, 0], sizes = [1, 128], strides = [1, 1]} : vector<5x128xf32> to vector<1x128xf32>
    %cst_54 = arith.constant dense<0.000000e+00> : vector<32xf32>
    %114 = vector.multi_reduction <add>, %111, %cst_54 [1] : vector<32x128xf32> to vector<32xf32>
    %115 = vector.shape_cast %114 : vector<32xf32> to vector<32x1xf32>
    %cst_55 = arith.constant 1.280000e+02 : f32
    %116 = vector.broadcast %cst_55 : f32 to vector<32x1xf32>
    %117 = arith.divf %115, %116 : vector<32x1xf32>
    %118 = vector.broadcast %117 : vector<32x1xf32> to vector<32x128xf32>
    %119 = arith.subf %111, %118 : vector<32x128xf32>
    %120 = arith.mulf %119, %119 : vector<32x128xf32>
    %cst_56 = arith.constant dense<0.000000e+00> : vector<32xf32>
    %121 = vector.multi_reduction <add>, %120, %cst_56 [1] : vector<32x128xf32> to vector<32xf32>
    %122 = vector.shape_cast %121 : vector<32xf32> to vector<32x1xf32>
    %cst_57 = arith.constant 1.280000e+02 : f32
    %123 = vector.broadcast %cst_57 : f32 to vector<32x1xf32>
    %124 = arith.divf %122, %123 : vector<32x1xf32>
    %125 = vector.broadcast %117 : vector<32x1xf32> to vector<32x128xf32>
    %126 = arith.subf %111, %125 : vector<32x128xf32>
    %cst_58 = arith.constant 9.99999974E-6 : f32
    %127 = vector.broadcast %cst_58 : f32 to vector<32x1xf32>
    %128 = arith.addf %124, %127 : vector<32x1xf32>
    %129 = math.rsqrt %128 : vector<32x1xf32>
    %130 = vector.broadcast %129 : vector<32x1xf32> to vector<32x128xf32>
    %131 = arith.mulf %126, %130 : vector<32x128xf32>
    %132 = vector.broadcast %112 : vector<1x128xf32> to vector<32x128xf32>
    %133 = arith.mulf %131, %132 : vector<32x128xf32>
    %134 = vector.broadcast %113 : vector<1x128xf32> to vector<32x128xf32>
    %135 = arith.addf %133, %134 : vector<32x128xf32>
    %c1_59 = arith.constant 1 : index
    %c0_60 = arith.constant 0 : index
    %c0_61 = arith.constant 0 : index
    %136 = vector.load %arg5[%c1_59, %c0_60, %c0_61] : memref<2x128x128xbf16, #tpu.memory_space<vmem>>, vector<1x128x128xbf16>
    %137 = vector.shape_cast %136 : vector<1x128x128xbf16> to vector<128x128xbf16>
    %138 = arith.truncf %135 : vector<32x128xf32> to vector<32x128xbf16>
    %cst_62 = arith.constant dense<0.000000e+00> : vector<32x128xf32>
    %139 = tpu.matmul %138, %137, %cst_62 {dimension_numbers = #tpu.dot_dimension_numbers<[1], [0], [0], [1], [0, 0, 1, 1], [], []>} : vector<32x128xbf16>, vector<128x128xbf16>, vector<32x128xf32> -> vector<32x128xf32>
    %140 = vector.extract_strided_slice %73 {offsets = [4, 0], sizes = [1, 128], strides = [1, 1]} : vector<5x128xf32> to vector<1x128xf32>
    %141 = vector.broadcast %140 : vector<1x128xf32> to vector<32x128xf32>
    %142 = arith.addf %139, %141 : vector<32x128xf32>
    %c0_63 = arith.constant 0 : index
    %c0_64 = arith.constant 0 : index
    %143 = vector.load %arg7[%c0_63, %c0_64] : memref<128x128xbf16, #tpu.memory_space<vmem>>, vector<128x128xbf16>
    %144 = vector.extract_strided_slice %0 {offsets = [0, 0], sizes = [1, 128], strides = [1, 1]} : vector<9x256xf32> to vector<1x128xf32>
    %145 = vector.extract_strided_slice %0 {offsets = [1, 0], sizes = [1, 128], strides = [1, 1]} : vector<9x256xf32> to vector<1x128xf32>
    %146 = vector.extract_strided_slice %0 {offsets = [2, 0], sizes = [1, 128], strides = [1, 1]} : vector<9x256xf32> to vector<1x128xf32>
    %147 = arith.truncf %71 : vector<32x128xf32> to vector<32x128xbf16>
    %cst_65 = arith.constant dense<0.000000e+00> : vector<32x128xf32>
    %148 = tpu.matmul %147, %143, %cst_65 {dimension_numbers = #tpu.dot_dimension_numbers<[1], [0], [0], [1], [0, 0, 1, 1], [], []>} : vector<32x128xbf16>, vector<128x128xbf16>, vector<32x128xf32> -> vector<32x128xf32>
    %149 = vector.broadcast %144 : vector<1x128xf32> to vector<32x128xf32>
    %150 = arith.addf %148, %149 : vector<32x128xf32>
    %cst_66 = arith.constant dense<0.000000e+00> : vector<32xf32>
    %151 = vector.multi_reduction <add>, %150, %cst_66 [1] : vector<32x128xf32> to vector<32xf32>
    %152 = vector.shape_cast %151 : vector<32xf32> to vector<32x1xf32>
    %cst_67 = arith.constant 1.280000e+02 : f32
    %153 = vector.broadcast %cst_67 : f32 to vector<32x1xf32>
    %154 = arith.divf %152, %153 : vector<32x1xf32>
    %155 = vector.broadcast %154 : vector<32x1xf32> to vector<32x128xf32>
    %156 = arith.subf %150, %155 : vector<32x128xf32>
    %157 = arith.mulf %156, %156 : vector<32x128xf32>
    %cst_68 = arith.constant dense<0.000000e+00> : vector<32xf32>
    %158 = vector.multi_reduction <add>, %157, %cst_68 [1] : vector<32x128xf32> to vector<32xf32>
    %159 = vector.shape_cast %158 : vector<32xf32> to vector<32x1xf32>
    %cst_69 = arith.constant 1.280000e+02 : f32
    %160 = vector.broadcast %cst_69 : f32 to vector<32x1xf32>
    %161 = arith.divf %159, %160 : vector<32x1xf32>
    %162 = vector.broadcast %154 : vector<32x1xf32> to vector<32x128xf32>
    %163 = arith.subf %150, %162 : vector<32x128xf32>
    %cst_70 = arith.constant 9.99999974E-6 : f32
    %164 = vector.broadcast %cst_70 : f32 to vector<32x1xf32>
    %165 = arith.addf %161, %164 : vector<32x1xf32>
    %166 = math.rsqrt %165 : vector<32x1xf32>
    %167 = vector.broadcast %166 : vector<32x1xf32> to vector<32x128xf32>
    %168 = arith.mulf %163, %167 : vector<32x128xf32>
    %169 = vector.broadcast %145 : vector<1x128xf32> to vector<32x128xf32>
    %170 = arith.mulf %168, %169 : vector<32x128xf32>
    %171 = vector.broadcast %146 : vector<1x128xf32> to vector<32x128xf32>
    %172 = arith.addf %170, %171 : vector<32x128xf32>
    %173 = arith.truncf %142 : vector<32x128xf32> to vector<32x128xbf16>
    %cst_71 = arith.constant dense<0.000000e+00> : vector<32x128xf32>
    %174 = tpu.matmul %173, %143, %cst_71 {dimension_numbers = #tpu.dot_dimension_numbers<[1], [0], [0], [1], [0, 0, 1, 1], [], []>} : vector<32x128xbf16>, vector<128x128xbf16>, vector<32x128xf32> -> vector<32x128xf32>
    %175 = vector.broadcast %144 : vector<1x128xf32> to vector<32x128xf32>
    %176 = arith.addf %174, %175 : vector<32x128xf32>
    %cst_72 = arith.constant dense<0.000000e+00> : vector<32xf32>
    %177 = vector.multi_reduction <add>, %176, %cst_72 [1] : vector<32x128xf32> to vector<32xf32>
    %178 = vector.shape_cast %177 : vector<32xf32> to vector<32x1xf32>
    %cst_73 = arith.constant 1.280000e+02 : f32
    %179 = vector.broadcast %cst_73 : f32 to vector<32x1xf32>
    %180 = arith.divf %178, %179 : vector<32x1xf32>
    %181 = vector.broadcast %180 : vector<32x1xf32> to vector<32x128xf32>
    %182 = arith.subf %176, %181 : vector<32x128xf32>
    %183 = arith.mulf %182, %182 : vector<32x128xf32>
    %cst_74 = arith.constant dense<0.000000e+00> : vector<32xf32>
    %184 = vector.multi_reduction <add>, %183, %cst_74 [1] : vector<32x128xf32> to vector<32xf32>
    %185 = vector.shape_cast %184 : vector<32xf32> to vector<32x1xf32>
    %cst_75 = arith.constant 1.280000e+02 : f32
    %186 = vector.broadcast %cst_75 : f32 to vector<32x1xf32>
    %187 = arith.divf %185, %186 : vector<32x1xf32>
    %188 = vector.broadcast %180 : vector<32x1xf32> to vector<32x128xf32>
    %189 = arith.subf %176, %188 : vector<32x128xf32>
    %cst_76 = arith.constant 9.99999974E-6 : f32
    %190 = vector.broadcast %cst_76 : f32 to vector<32x1xf32>
    %191 = arith.addf %187, %190 : vector<32x1xf32>
    %192 = math.rsqrt %191 : vector<32x1xf32>
    %193 = vector.broadcast %192 : vector<32x1xf32> to vector<32x128xf32>
    %194 = arith.mulf %189, %193 : vector<32x128xf32>
    %195 = vector.broadcast %145 : vector<1x128xf32> to vector<32x128xf32>
    %196 = arith.mulf %194, %195 : vector<32x128xf32>
    %197 = vector.broadcast %146 : vector<1x128xf32> to vector<32x128xf32>
    %198 = arith.addf %196, %197 : vector<32x128xf32>
    %cst_77 = arith.constant dense<0.000000e+00> : vector<32xf32>
    %199 = vector.multi_reduction <add>, %172, %cst_77 [1] : vector<32x128xf32> to vector<32xf32>
    %200 = vector.shape_cast %199 : vector<32xf32> to vector<32x1xf32>
    %cst_78 = arith.constant dense<0.000000e+00> : vector<32xf32>
    %201 = vector.multi_reduction <add>, %198, %cst_78 [1] : vector<32x128xf32> to vector<32xf32>
    %202 = vector.shape_cast %201 : vector<32xf32> to vector<32x1xf32>
    %203 = arith.addf %200, %202 : vector<32x1xf32>
    %cst_79 = arith.constant 2.560000e+02 : f32
    %204 = vector.broadcast %cst_79 : f32 to vector<32x1xf32>
    %205 = arith.divf %203, %204 : vector<32x1xf32>
    %206 = vector.broadcast %205 : vector<32x1xf32> to vector<32x128xf32>
    %207 = arith.subf %172, %206 : vector<32x128xf32>
    %208 = arith.mulf %207, %207 : vector<32x128xf32>
    %cst_80 = arith.constant dense<0.000000e+00> : vector<32xf32>
    %209 = vector.multi_reduction <add>, %208, %cst_80 [1] : vector<32x128xf32> to vector<32xf32>
    %210 = vector.shape_cast %209 : vector<32xf32> to vector<32x1xf32>
    %211 = vector.broadcast %205 : vector<32x1xf32> to vector<32x128xf32>
    %212 = arith.subf %198, %211 : vector<32x128xf32>
    %213 = arith.mulf %212, %212 : vector<32x128xf32>
    %cst_81 = arith.constant dense<0.000000e+00> : vector<32xf32>
    %214 = vector.multi_reduction <add>, %213, %cst_81 [1] : vector<32x128xf32> to vector<32xf32>
    %215 = vector.shape_cast %214 : vector<32xf32> to vector<32x1xf32>
    %216 = arith.addf %210, %215 : vector<32x1xf32>
    %cst_82 = arith.constant 2.560000e+02 : f32
    %217 = vector.broadcast %cst_82 : f32 to vector<32x1xf32>
    %218 = arith.divf %216, %217 : vector<32x1xf32>
    %cst_83 = arith.constant 9.99999974E-6 : f32
    %219 = vector.broadcast %cst_83 : f32 to vector<32x1xf32>
    %220 = arith.addf %218, %219 : vector<32x1xf32>
    %221 = math.rsqrt %220 : vector<32x1xf32>
    %222 = vector.extract_strided_slice %0 {offsets = [7, 0], sizes = [1, 256], strides = [1, 1]} : vector<9x256xf32> to vector<1x256xf32>
    %223 = vector.extract_strided_slice %0 {offsets = [8, 0], sizes = [1, 256], strides = [1, 1]} : vector<9x256xf32> to vector<1x256xf32>
    %224 = vector.broadcast %205 : vector<32x1xf32> to vector<32x128xf32>
    %225 = arith.subf %172, %224 : vector<32x128xf32>
    %226 = vector.broadcast %221 : vector<32x1xf32> to vector<32x128xf32>
    %227 = arith.mulf %225, %226 : vector<32x128xf32>
    %228 = vector.extract_strided_slice %222 {offsets = [0, 0], sizes = [1, 128], strides = [1, 1]} : vector<1x256xf32> to vector<1x128xf32>
    %229 = vector.broadcast %228 : vector<1x128xf32> to vector<32x128xf32>
    %230 = arith.mulf %227, %229 : vector<32x128xf32>
    %231 = vector.extract_strided_slice %223 {offsets = [0, 0], sizes = [1, 128], strides = [1, 1]} : vector<1x256xf32> to vector<1x128xf32>
    %232 = vector.broadcast %231 : vector<1x128xf32> to vector<32x128xf32>
    %233 = arith.addf %230, %232 : vector<32x128xf32>
    %234 = vector.broadcast %205 : vector<32x1xf32> to vector<32x128xf32>
    %235 = arith.subf %198, %234 : vector<32x128xf32>
    %236 = vector.broadcast %221 : vector<32x1xf32> to vector<32x128xf32>
    %237 = arith.mulf %235, %236 : vector<32x128xf32>
    %238 = vector.extract_strided_slice %222 {offsets = [0, 128], sizes = [1, 128], strides = [1, 1]} : vector<1x256xf32> to vector<1x128xf32>
    %239 = vector.broadcast %238 : vector<1x128xf32> to vector<32x128xf32>
    %240 = arith.mulf %237, %239 : vector<32x128xf32>
    %241 = vector.extract_strided_slice %223 {offsets = [0, 128], sizes = [1, 128], strides = [1, 1]} : vector<1x256xf32> to vector<1x128xf32>
    %242 = vector.broadcast %241 : vector<1x128xf32> to vector<32x128xf32>
    %243 = arith.addf %240, %242 : vector<32x128xf32>
    %c0_84 = arith.constant 0 : index
    %c0_85 = arith.constant 0 : index
    %244 = vector.load %arg8[%c0_84, %c0_85] : memref<256x128xbf16, #tpu.memory_space<vmem>>, vector<256x128xbf16>
    %245 = vector.extract_strided_slice %244 {offsets = [0, 0], sizes = [128, 128], strides = [1, 1]} : vector<256x128xbf16> to vector<128x128xbf16>
    %246 = arith.truncf %233 : vector<32x128xf32> to vector<32x128xbf16>
    %cst_86 = arith.constant dense<0.000000e+00> : vector<32x128xf32>
    %247 = tpu.matmul %246, %245, %cst_86 {dimension_numbers = #tpu.dot_dimension_numbers<[1], [0], [0], [1], [0, 0, 1, 1], [], []>} : vector<32x128xbf16>, vector<128x128xbf16>, vector<32x128xf32> -> vector<32x128xf32>
    %248 = vector.extract_strided_slice %244 {offsets = [128, 0], sizes = [128, 128], strides = [1, 1]} : vector<256x128xbf16> to vector<128x128xbf16>
    %249 = arith.truncf %243 : vector<32x128xf32> to vector<32x128xbf16>
    %cst_87 = arith.constant dense<0.000000e+00> : vector<32x128xf32>
    %250 = tpu.matmul %249, %248, %cst_87 {dimension_numbers = #tpu.dot_dimension_numbers<[1], [0], [0], [1], [0, 0, 1, 1], [], []>} : vector<32x128xbf16>, vector<128x128xbf16>, vector<32x128xf32> -> vector<32x128xf32>
    %251 = arith.addf %247, %250 : vector<32x128xf32>
    %252 = vector.extract_strided_slice %0 {offsets = [3, 0], sizes = [1, 128], strides = [1, 1]} : vector<9x256xf32> to vector<1x128xf32>
    %253 = vector.broadcast %252 : vector<1x128xf32> to vector<32x128xf32>
    %254 = arith.addf %251, %253 : vector<32x128xf32>
    %255 = tpu.iota {dimensions = array<i32: 0>} : vector<32x1xi32>
    %c16_i32 = arith.constant 16 : i32
    %c0_i32 = arith.constant 0 : i32
    %256 = arith.cmpi eq, %c16_i32, %c0_i32 : i32
    %c1_i32 = arith.constant 1 : i32
    %257 = arith.select %256, %c1_i32, %c16_i32 : i32
    %258 = vector.broadcast %257 : i32 to vector<32x1xi32>
    %259 = arith.remsi %255, %258 : vector<32x1xi32>
    %c0_i32_88 = arith.constant 0 : i32
    %260 = vector.broadcast %c0_i32_88 : i32 to vector<32x1xi32>
    %261 = arith.cmpi ne, %259, %260 : vector<32x1xi32>
    %c0_i32_89 = arith.constant 0 : i32
    %262 = vector.broadcast %c0_i32_89 : i32 to vector<32x1xi32>
    %263 = arith.cmpi slt, %259, %262 : vector<32x1xi32>
    %c0_i32_90 = arith.constant 0 : i32
    %264 = arith.cmpi slt, %257, %c0_i32_90 : i32
    %265 = vector.broadcast %264 : i1 to vector<32x1xi1>
    %266 = vector.broadcast %265 : vector<32x1xi1> to vector<32x1xi1>
    %267 = arith.xori %263, %266 : vector<32x1xi1>
    %268 = arith.andi %267, %261 : vector<32x1xi1>
    %269 = vector.broadcast %257 : i32 to vector<32x1xi32>
    %270 = arith.addi %259, %269 : vector<32x1xi32>
    %271 = arith.select %268, %270, %259 : vector<32x1xi1>, vector<32x1xi32>
    %c0_i32_91 = arith.constant 0 : i32
    %272 = vector.broadcast %c0_i32_91 : i32 to vector<32x1xi32>
    %273 = arith.cmpi eq, %271, %272 : vector<32x1xi32>
    %c1_i32_92 = arith.constant 1 : i32
    %274 = tpu.dynamic_rotate %254 by %c1_i32_92 dim 0 : vector<32x128xf32>, i32 -> vector<32x128xf32>
    %cst_93 = arith.constant 0.000000e+00 : f32
    %275 = vector.shape_cast %273 : vector<32x1xi1> to vector<32x1xi1>
    %276 = vector.broadcast %275 : vector<32x1xi1> to vector<32x128xi1>
    %277 = vector.broadcast %cst_93 : f32 to vector<32x128xf32>
    %278 = arith.select %276, %277, %274 : vector<32x128xi1>, vector<32x128xf32>
    %c15_i32 = arith.constant 15 : i32
    %279 = vector.broadcast %c15_i32 : i32 to vector<32x1xi32>
    %280 = arith.cmpi eq, %271, %279 : vector<32x1xi32>
    %c31_i32 = arith.constant 31 : i32
    %281 = tpu.dynamic_rotate %254 by %c31_i32 dim 0 : vector<32x128xf32>, i32 -> vector<32x128xf32>
    %cst_94 = arith.constant 0.000000e+00 : f32
    %282 = vector.shape_cast %280 : vector<32x1xi1> to vector<32x1xi1>
    %283 = vector.broadcast %282 : vector<32x1xi1> to vector<32x128xi1>
    %284 = vector.broadcast %cst_94 : f32 to vector<32x128xf32>
    %285 = arith.select %283, %284, %281 : vector<32x128xi1>, vector<32x128xf32>
    %c0_95 = arith.constant 0 : index
    %c0_96 = arith.constant 0 : index
    %c0_97 = arith.constant 0 : index
    %286 = vector.load %arg9[%c0_95, %c0_96, %c0_97] : memref<3x128x128xbf16, #tpu.memory_space<vmem>>, vector<1x128x128xbf16>
    %287 = vector.shape_cast %286 : vector<1x128x128xbf16> to vector<128x128xbf16>
    %288 = arith.truncf %278 : vector<32x128xf32> to vector<32x128xbf16>
    %cst_98 = arith.constant dense<0.000000e+00> : vector<32x128xf32>
    %289 = tpu.matmul %288, %287, %cst_98 {dimension_numbers = #tpu.dot_dimension_numbers<[1], [0], [0], [1], [0, 0, 1, 1], [], []>} : vector<32x128xbf16>, vector<128x128xbf16>, vector<32x128xf32> -> vector<32x128xf32>
    %c1_99 = arith.constant 1 : index
    %c0_100 = arith.constant 0 : index
    %c0_101 = arith.constant 0 : index
    %290 = vector.load %arg9[%c1_99, %c0_100, %c0_101] : memref<3x128x128xbf16, #tpu.memory_space<vmem>>, vector<1x128x128xbf16>
    %291 = vector.shape_cast %290 : vector<1x128x128xbf16> to vector<128x128xbf16>
    %292 = arith.truncf %254 : vector<32x128xf32> to vector<32x128xbf16>
    %cst_102 = arith.constant dense<0.000000e+00> : vector<32x128xf32>
    %293 = tpu.matmul %292, %291, %cst_102 {dimension_numbers = #tpu.dot_dimension_numbers<[1], [0], [0], [1], [0, 0, 1, 1], [], []>} : vector<32x128xbf16>, vector<128x128xbf16>, vector<32x128xf32> -> vector<32x128xf32>
    %294 = arith.addf %289, %293 : vector<32x128xf32>
    %c2 = arith.constant 2 : index
    %c0_103 = arith.constant 0 : index
    %c0_104 = arith.constant 0 : index
    %295 = vector.load %arg9[%c2, %c0_103, %c0_104] : memref<3x128x128xbf16, #tpu.memory_space<vmem>>, vector<1x128x128xbf16>
    %296 = vector.shape_cast %295 : vector<1x128x128xbf16> to vector<128x128xbf16>
    %297 = arith.truncf %285 : vector<32x128xf32> to vector<32x128xbf16>
    %cst_105 = arith.constant dense<0.000000e+00> : vector<32x128xf32>
    %298 = tpu.matmul %297, %296, %cst_105 {dimension_numbers = #tpu.dot_dimension_numbers<[1], [0], [0], [1], [0, 0, 1, 1], [], []>} : vector<32x128xbf16>, vector<128x128xbf16>, vector<32x128xf32> -> vector<32x128xf32>
    %299 = arith.addf %294, %298 : vector<32x128xf32>
    %300 = vector.extract_strided_slice %0 {offsets = [4, 0], sizes = [1, 128], strides = [1, 1]} : vector<9x256xf32> to vector<1x128xf32>
    %301 = vector.broadcast %300 : vector<1x128xf32> to vector<32x128xf32>
    %302 = arith.addf %299, %301 : vector<32x128xf32>
    %cst_106 = arith.constant 5.000000e-01 : f32
    %303 = vector.broadcast %cst_106 : f32 to vector<32x128xf32>
    %304 = arith.mulf %303, %302 : vector<32x128xf32>
    %cst_107 = arith.constant 0.707106769 : f32
    %305 = vector.broadcast %cst_107 : f32 to vector<32x128xf32>
    %306 = arith.mulf %302, %305 : vector<32x128xf32>
    %307 = math.erf %306 : vector<32x128xf32>
    %cst_108 = arith.constant 1.000000e+00 : f32
    %308 = vector.broadcast %cst_108 : f32 to vector<32x128xf32>
    %309 = arith.addf %308, %307 : vector<32x128xf32>
    %310 = arith.mulf %304, %309 : vector<32x128xf32>
    %311 = arith.addf %254, %310 : vector<32x128xf32>
    %312 = vector.extract_strided_slice %0 {offsets = [5, 0], sizes = [1, 128], strides = [1, 1]} : vector<9x256xf32> to vector<1x128xf32>
    %313 = vector.extract_strided_slice %0 {offsets = [6, 0], sizes = [1, 128], strides = [1, 1]} : vector<9x256xf32> to vector<1x128xf32>
    %cst_109 = arith.constant dense<0.000000e+00> : vector<32xf32>
    %314 = vector.multi_reduction <add>, %311, %cst_109 [1] : vector<32x128xf32> to vector<32xf32>
    %315 = vector.shape_cast %314 : vector<32xf32> to vector<32x1xf32>
    %cst_110 = arith.constant 1.280000e+02 : f32
    %316 = vector.broadcast %cst_110 : f32 to vector<32x1xf32>
    %317 = arith.divf %315, %316 : vector<32x1xf32>
    %318 = vector.broadcast %317 : vector<32x1xf32> to vector<32x128xf32>
    %319 = arith.subf %311, %318 : vector<32x128xf32>
    %320 = arith.mulf %319, %319 : vector<32x128xf32>
    %cst_111 = arith.constant dense<0.000000e+00> : vector<32xf32>
    %321 = vector.multi_reduction <add>, %320, %cst_111 [1] : vector<32x128xf32> to vector<32xf32>
    %322 = vector.shape_cast %321 : vector<32xf32> to vector<32x1xf32>
    %cst_112 = arith.constant 1.280000e+02 : f32
    %323 = vector.broadcast %cst_112 : f32 to vector<32x1xf32>
    %324 = arith.divf %322, %323 : vector<32x1xf32>
    %325 = vector.broadcast %317 : vector<32x1xf32> to vector<32x128xf32>
    %326 = arith.subf %311, %325 : vector<32x128xf32>
    %cst_113 = arith.constant 9.99999974E-6 : f32
    %327 = vector.broadcast %cst_113 : f32 to vector<32x1xf32>
    %328 = arith.addf %324, %327 : vector<32x1xf32>
    %329 = math.rsqrt %328 : vector<32x1xf32>
    %330 = vector.broadcast %329 : vector<32x1xf32> to vector<32x128xf32>
    %331 = arith.mulf %326, %330 : vector<32x128xf32>
    %332 = vector.broadcast %312 : vector<1x128xf32> to vector<32x128xf32>
    %333 = arith.mulf %331, %332 : vector<32x128xf32>
    %334 = vector.broadcast %313 : vector<1x128xf32> to vector<32x128xf32>
    %335 = arith.addf %333, %334 : vector<32x128xf32>
    %c0_114 = arith.constant 0 : index
    %c0_115 = arith.constant 0 : index
    %336 = vector.load %arg11[%c0_114, %c0_115] : memref<32x128xf32, #tpu.memory_space<vmem>>, vector<32x128xf32>
    tpu.vector_store %arg11[%c0_114, %c0_115], %335 {strides = array<i32>} : memref<32x128xf32, #tpu.memory_space<vmem>>, vector<32x128xf32>,
    return
  }
}

module attributes {stable_mosaic.version = 11 : i64} {
  func.func @_encoder_kernel(%arg0: i32, %arg1: memref<32x128xf32, #tpu.memory_space<vmem>>, %arg2: memref<1x128x384xbf16, #tpu.memory_space<vmem>>, %arg3: memref<1x128x128xbf16, #tpu.memory_space<vmem>>, %arg4: memref<1x128x512xbf16, #tpu.memory_space<vmem>>, %arg5: memref<1x512x128xbf16, #tpu.memory_space<vmem>>, %arg6: memref<1x8x512xf32, #tpu.memory_space<vmem>>, %arg7: memref<128x128xbf16, #tpu.memory_space<vmem>>, %arg8: memref<3x128xf32, #tpu.memory_space<vmem>>, %arg9: memref<2x128xf32, #tpu.memory_space<vmem>>, %arg10: memref<32x128xf32, #tpu.memory_space<vmem>>) attributes {dimension_semantics = [#tpu.dimension_semantics<arbitrary>], iteration_bounds = array<i64: 2>, scalar_prefetch = 0 : i64, scratch_operands = 1 : i64, tpu.core_type = #tpu.core_type<tc>, window_params = [{pipeline_mode = #tpu.pipeline_mode<synchronous>, transform_indices = @transform_0, window_bounds = array<i64: 32, 128>}, {transform_indices = @transform_1, window_bounds = array<i64: 1, 128, 384>}, {transform_indices = @transform_2, window_bounds = array<i64: 1, 128, 128>}, {transform_indices = @transform_3, window_bounds = array<i64: 1, 128, 512>}, {transform_indices = @transform_4, window_bounds = array<i64: 1, 512, 128>}, {transform_indices = @transform_5, window_bounds = array<i64: 1, 8, 512>}, {pipeline_mode = #tpu.pipeline_mode<synchronous>, transform_indices = @transform_6, window_bounds = array<i64: 128, 128>}, {pipeline_mode = #tpu.pipeline_mode<synchronous>, transform_indices = @transform_7, window_bounds = array<i64: 3, 128>}, {pipeline_mode = #tpu.pipeline_mode<synchronous>, transform_indices = @transform_8, window_bounds = array<i64: 2, 128>}]} {
    %c0_i32 = arith.constant 0 : i32
    %0 = arith.cmpi eq, %arg0, %c0_i32 : i32
    %1 = arith.extui %0 : i1 to i32
    %c0_i32_0 = arith.constant 0 : i32
    %2 = arith.cmpi ne, %1, %c0_i32_0 : i32
    scf.if %2 {
      %c0_53 = arith.constant 0 : index
      %c0_54 = arith.constant 0 : index
      %194 = vector.load %arg1[%c0_53, %c0_54] : memref<32x128xf32, #tpu.memory_space<vmem>>, vector<32x128xf32>
      %c0_55 = arith.constant 0 : index
      %c0_56 = arith.constant 0 : index
      %195 = vector.load %arg10[%c0_55, %c0_56] : memref<32x128xf32, #tpu.memory_space<vmem>>, vector<32x128xf32>
      tpu.vector_store %arg10[%c0_55, %c0_56], %194 {strides = array<i32>} : memref<32x128xf32, #tpu.memory_space<vmem>>, vector<32x128xf32>,
    } else {
    }
    %c0 = arith.constant 0 : index
    %c0_1 = arith.constant 0 : index
    %3 = vector.load %arg10[%c0, %c0_1] : memref<32x128xf32, #tpu.memory_space<vmem>>, vector<32x128xf32>
    %c0_2 = arith.constant 0 : index
    %c0_3 = arith.constant 0 : index
    %c0_4 = arith.constant 0 : index
    %4 = vector.load %arg6[%c0_2, %c0_3, %c0_4] : memref<1x8x512xf32, #tpu.memory_space<vmem>>, vector<1x8x512xf32>
    %5 = vector.shape_cast %4 : vector<1x8x512xf32> to vector<8x512xf32>
    %c0_5 = arith.constant 0 : index
    %c0_6 = arith.constant 0 : index
    %c0_7 = arith.constant 0 : index
    %6 = vector.load %arg2[%c0_5, %c0_6, %c0_7] : memref<1x128x384xbf16, #tpu.memory_space<vmem>>, vector<1x128x384xbf16>
    %7 = vector.shape_cast %6 : vector<1x128x384xbf16> to vector<128x384xbf16>
    %8 = arith.truncf %3 : vector<32x128xf32> to vector<32x128xbf16>
    %cst = arith.constant dense<0.000000e+00> : vector<32x384xf32>
    %9 = tpu.matmul %8, %7, %cst {dimension_numbers = #tpu.dot_dimension_numbers<[1], [0], [0], [1], [0, 0, 1, 1], [], []>} : vector<32x128xbf16>, vector<128x384xbf16>, vector<32x384xf32> -> vector<32x384xf32>
    %10 = vector.extract_strided_slice %5 {offsets = [0, 0], sizes = [1, 384], strides = [1, 1]} : vector<8x512xf32> to vector<1x384xf32>
    %11 = vector.broadcast %10 : vector<1x384xf32> to vector<32x384xf32>
    %12 = arith.addf %9, %11 : vector<32x384xf32>
    %13 = vector.extract_strided_slice %12 {offsets = [0, 0], sizes = [32, 128], strides = [1, 1]} : vector<32x384xf32> to vector<32x128xf32>
    %cst_8 = arith.constant 0.176776692 : f32
    %14 = vector.broadcast %cst_8 : f32 to vector<32x128xf32>
    %15 = arith.mulf %13, %14 : vector<32x128xf32>
    %16 = vector.extract_strided_slice %12 {offsets = [0, 128], sizes = [32, 128], strides = [1, 1]} : vector<32x384xf32> to vector<32x128xf32>
    %17 = vector.extract_strided_slice %12 {offsets = [0, 256], sizes = [32, 128], strides = [1, 1]} : vector<32x384xf32> to vector<32x128xf32>
    %18 = vector.extract_strided_slice %15 {offsets = [0, 0], sizes = [32, 32], strides = [1, 1]} : vector<32x128xf32> to vector<32x32xf32>
    %19 = vector.shape_cast %18 : vector<32x32xf32> to vector<2x16x32xf32>
    %20 = arith.truncf %19 : vector<2x16x32xf32> to vector<2x16x32xbf16>
    %21 = vector.extract_strided_slice %16 {offsets = [0, 0], sizes = [32, 32], strides = [1, 1]} : vector<32x128xf32> to vector<32x32xf32>
    %22 = vector.shape_cast %21 : vector<32x32xf32> to vector<2x16x32xf32>
    %23 = arith.truncf %22 : vector<2x16x32xf32> to vector<2x16x32xbf16>
    %24 = vector.extract_strided_slice %17 {offsets = [0, 0], sizes = [32, 32], strides = [1, 1]} : vector<32x128xf32> to vector<32x32xf32>
    %25 = vector.shape_cast %24 : vector<32x32xf32> to vector<2x16x32xf32>
    %26 = arith.truncf %25 : vector<2x16x32xf32> to vector<2x16x32xbf16>
    "tpu.trace_start"() <{level = 10 : i32, message = "bqd,bkd->bqk"}> : () -> ()
    %cst_9 = arith.constant dense<0.000000e+00> : vector<2x16x16xf32>
    %27 = tpu.matmul %20, %23, %cst_9 {dimension_numbers = #tpu.dot_dimension_numbers<[2], [2], [1], [1], [0, 0, 0, 1, 1, 1], [0], [0]>} : vector<2x16x32xbf16>, vector<2x16x32xbf16>, vector<2x16x16xf32> -> vector<2x16x16xf32>
    "tpu.trace_stop"() : () -> ()
    %cst_10 = arith.constant dense<0xFF800000> : vector<2x16xf32>
    %28 = vector.multi_reduction <maximumf>, %27, %cst_10 [2] : vector<2x16x16xf32> to vector<2x16xf32>
    %29 = vector.shape_cast %28 : vector<2x16xf32> to vector<2x16x1xf32>
    %30 = vector.broadcast %29 : vector<2x16x1xf32> to vector<2x16x16xf32>
    %31 = arith.subf %27, %30 : vector<2x16x16xf32>
    %32 = math.exp %31 : vector<2x16x16xf32>
    %cst_11 = arith.constant dense<0.000000e+00> : vector<2x16xf32>
    %33 = vector.multi_reduction <add>, %32, %cst_11 [2] : vector<2x16x16xf32> to vector<2x16xf32>
    %34 = vector.shape_cast %33 : vector<2x16xf32> to vector<2x16x1xf32>
    %35 = tpu.reciprocal %34 {approx = true} : vector<2x16x1xf32> -> vector<2x16x1xf32>
    %36 = vector.broadcast %35 : vector<2x16x1xf32> to vector<2x16x16xf32>
    %37 = arith.mulf %32, %36 : vector<2x16x16xf32>
    %38 = arith.truncf %37 : vector<2x16x16xf32> to vector<2x16x16xbf16>
    "tpu.trace_start"() <{level = 10 : i32, message = "bqk,bkd->bqd"}> : () -> ()
    %cst_12 = arith.constant dense<0.000000e+00> : vector<2x16x32xf32>
    %39 = tpu.matmul %38, %26, %cst_12 {dimension_numbers = #tpu.dot_dimension_numbers<[2], [1], [1], [2], [0, 0, 0, 1, 1, 2], [0], [0]>} : vector<2x16x16xbf16>, vector<2x16x32xbf16>, vector<2x16x32xf32> -> vector<2x16x32xf32>
    "tpu.trace_stop"() : () -> ()
    %40 = vector.shape_cast %39 : vector<2x16x32xf32> to vector<32x32xf32>
    %41 = vector.extract_strided_slice %15 {offsets = [0, 32], sizes = [32, 32], strides = [1, 1]} : vector<32x128xf32> to vector<32x32xf32>
    %42 = vector.shape_cast %41 : vector<32x32xf32> to vector<2x16x32xf32>
    %43 = arith.truncf %42 : vector<2x16x32xf32> to vector<2x16x32xbf16>
    %44 = vector.extract_strided_slice %16 {offsets = [0, 32], sizes = [32, 32], strides = [1, 1]} : vector<32x128xf32> to vector<32x32xf32>
    %45 = vector.shape_cast %44 : vector<32x32xf32> to vector<2x16x32xf32>
    %46 = arith.truncf %45 : vector<2x16x32xf32> to vector<2x16x32xbf16>
    %47 = vector.extract_strided_slice %17 {offsets = [0, 32], sizes = [32, 32], strides = [1, 1]} : vector<32x128xf32> to vector<32x32xf32>
    %48 = vector.shape_cast %47 : vector<32x32xf32> to vector<2x16x32xf32>
    %49 = arith.truncf %48 : vector<2x16x32xf32> to vector<2x16x32xbf16>
    "tpu.trace_start"() <{level = 10 : i32, message = "bqd,bkd->bqk"}> : () -> ()
    %cst_13 = arith.constant dense<0.000000e+00> : vector<2x16x16xf32>
    %50 = tpu.matmul %43, %46, %cst_13 {dimension_numbers = #tpu.dot_dimension_numbers<[2], [2], [1], [1], [0, 0, 0, 1, 1, 1], [0], [0]>} : vector<2x16x32xbf16>, vector<2x16x32xbf16>, vector<2x16x16xf32> -> vector<2x16x16xf32>
    "tpu.trace_stop"() : () -> ()
    %cst_14 = arith.constant dense<0xFF800000> : vector<2x16xf32>
    %51 = vector.multi_reduction <maximumf>, %50, %cst_14 [2] : vector<2x16x16xf32> to vector<2x16xf32>
    %52 = vector.shape_cast %51 : vector<2x16xf32> to vector<2x16x1xf32>
    %53 = vector.broadcast %52 : vector<2x16x1xf32> to vector<2x16x16xf32>
    %54 = arith.subf %50, %53 : vector<2x16x16xf32>
    %55 = math.exp %54 : vector<2x16x16xf32>
    %cst_15 = arith.constant dense<0.000000e+00> : vector<2x16xf32>
    %56 = vector.multi_reduction <add>, %55, %cst_15 [2] : vector<2x16x16xf32> to vector<2x16xf32>
    %57 = vector.shape_cast %56 : vector<2x16xf32> to vector<2x16x1xf32>
    %58 = tpu.reciprocal %57 {approx = true} : vector<2x16x1xf32> -> vector<2x16x1xf32>
    %59 = vector.broadcast %58 : vector<2x16x1xf32> to vector<2x16x16xf32>
    %60 = arith.mulf %55, %59 : vector<2x16x16xf32>
    %61 = arith.truncf %60 : vector<2x16x16xf32> to vector<2x16x16xbf16>
    "tpu.trace_start"() <{level = 10 : i32, message = "bqk,bkd->bqd"}> : () -> ()
    %cst_16 = arith.constant dense<0.000000e+00> : vector<2x16x32xf32>
    %62 = tpu.matmul %61, %49, %cst_16 {dimension_numbers = #tpu.dot_dimension_numbers<[2], [1], [1], [2], [0, 0, 0, 1, 1, 2], [0], [0]>} : vector<2x16x16xbf16>, vector<2x16x32xbf16>, vector<2x16x32xf32> -> vector<2x16x32xf32>
    "tpu.trace_stop"() : () -> ()
    %63 = vector.shape_cast %62 : vector<2x16x32xf32> to vector<32x32xf32>
    %64 = vector.extract_strided_slice %15 {offsets = [0, 64], sizes = [32, 32], strides = [1, 1]} : vector<32x128xf32> to vector<32x32xf32>
    %65 = vector.shape_cast %64 : vector<32x32xf32> to vector<2x16x32xf32>
    %66 = arith.truncf %65 : vector<2x16x32xf32> to vector<2x16x32xbf16>
    %67 = vector.extract_strided_slice %16 {offsets = [0, 64], sizes = [32, 32], strides = [1, 1]} : vector<32x128xf32> to vector<32x32xf32>
    %68 = vector.shape_cast %67 : vector<32x32xf32> to vector<2x16x32xf32>
    %69 = arith.truncf %68 : vector<2x16x32xf32> to vector<2x16x32xbf16>
    %70 = vector.extract_strided_slice %17 {offsets = [0, 64], sizes = [32, 32], strides = [1, 1]} : vector<32x128xf32> to vector<32x32xf32>
    %71 = vector.shape_cast %70 : vector<32x32xf32> to vector<2x16x32xf32>
    %72 = arith.truncf %71 : vector<2x16x32xf32> to vector<2x16x32xbf16>
    "tpu.trace_start"() <{level = 10 : i32, message = "bqd,bkd->bqk"}> : () -> ()
    %cst_17 = arith.constant dense<0.000000e+00> : vector<2x16x16xf32>
    %73 = tpu.matmul %66, %69, %cst_17 {dimension_numbers = #tpu.dot_dimension_numbers<[2], [2], [1], [1], [0, 0, 0, 1, 1, 1], [0], [0]>} : vector<2x16x32xbf16>, vector<2x16x32xbf16>, vector<2x16x16xf32> -> vector<2x16x16xf32>
    "tpu.trace_stop"() : () -> ()
    %cst_18 = arith.constant dense<0xFF800000> : vector<2x16xf32>
    %74 = vector.multi_reduction <maximumf>, %73, %cst_18 [2] : vector<2x16x16xf32> to vector<2x16xf32>
    %75 = vector.shape_cast %74 : vector<2x16xf32> to vector<2x16x1xf32>
    %76 = vector.broadcast %75 : vector<2x16x1xf32> to vector<2x16x16xf32>
    %77 = arith.subf %73, %76 : vector<2x16x16xf32>
    %78 = math.exp %77 : vector<2x16x16xf32>
    %cst_19 = arith.constant dense<0.000000e+00> : vector<2x16xf32>
    %79 = vector.multi_reduction <add>, %78, %cst_19 [2] : vector<2x16x16xf32> to vector<2x16xf32>
    %80 = vector.shape_cast %79 : vector<2x16xf32> to vector<2x16x1xf32>
    %81 = tpu.reciprocal %80 {approx = true} : vector<2x16x1xf32> -> vector<2x16x1xf32>
    %82 = vector.broadcast %81 : vector<2x16x1xf32> to vector<2x16x16xf32>
    %83 = arith.mulf %78, %82 : vector<2x16x16xf32>
    %84 = arith.truncf %83 : vector<2x16x16xf32> to vector<2x16x16xbf16>
    "tpu.trace_start"() <{level = 10 : i32, message = "bqk,bkd->bqd"}> : () -> ()
    %cst_20 = arith.constant dense<0.000000e+00> : vector<2x16x32xf32>
    %85 = tpu.matmul %84, %72, %cst_20 {dimension_numbers = #tpu.dot_dimension_numbers<[2], [1], [1], [2], [0, 0, 0, 1, 1, 2], [0], [0]>} : vector<2x16x16xbf16>, vector<2x16x32xbf16>, vector<2x16x32xf32> -> vector<2x16x32xf32>
    "tpu.trace_stop"() : () -> ()
    %86 = vector.shape_cast %85 : vector<2x16x32xf32> to vector<32x32xf32>
    %87 = vector.extract_strided_slice %15 {offsets = [0, 96], sizes = [32, 32], strides = [1, 1]} : vector<32x128xf32> to vector<32x32xf32>
    %88 = vector.shape_cast %87 : vector<32x32xf32> to vector<2x16x32xf32>
    %89 = arith.truncf %88 : vector<2x16x32xf32> to vector<2x16x32xbf16>
    %90 = vector.extract_strided_slice %16 {offsets = [0, 96], sizes = [32, 32], strides = [1, 1]} : vector<32x128xf32> to vector<32x32xf32>
    %91 = vector.shape_cast %90 : vector<32x32xf32> to vector<2x16x32xf32>
    %92 = arith.truncf %91 : vector<2x16x32xf32> to vector<2x16x32xbf16>
    %93 = vector.extract_strided_slice %17 {offsets = [0, 96], sizes = [32, 32], strides = [1, 1]} : vector<32x128xf32> to vector<32x32xf32>
    %94 = vector.shape_cast %93 : vector<32x32xf32> to vector<2x16x32xf32>
    %95 = arith.truncf %94 : vector<2x16x32xf32> to vector<2x16x32xbf16>
    "tpu.trace_start"() <{level = 10 : i32, message = "bqd,bkd->bqk"}> : () -> ()
    %cst_21 = arith.constant dense<0.000000e+00> : vector<2x16x16xf32>
    %96 = tpu.matmul %89, %92, %cst_21 {dimension_numbers = #tpu.dot_dimension_numbers<[2], [2], [1], [1], [0, 0, 0, 1, 1, 1], [0], [0]>} : vector<2x16x32xbf16>, vector<2x16x32xbf16>, vector<2x16x16xf32> -> vector<2x16x16xf32>
    "tpu.trace_stop"() : () -> ()
    %cst_22 = arith.constant dense<0xFF800000> : vector<2x16xf32>
    %97 = vector.multi_reduction <maximumf>, %96, %cst_22 [2] : vector<2x16x16xf32> to vector<2x16xf32>
    %98 = vector.shape_cast %97 : vector<2x16xf32> to vector<2x16x1xf32>
    %99 = vector.broadcast %98 : vector<2x16x1xf32> to vector<2x16x16xf32>
    %100 = arith.subf %96, %99 : vector<2x16x16xf32>
    %101 = math.exp %100 : vector<2x16x16xf32>
    %cst_23 = arith.constant dense<0.000000e+00> : vector<2x16xf32>
    %102 = vector.multi_reduction <add>, %101, %cst_23 [2] : vector<2x16x16xf32> to vector<2x16xf32>
    %103 = vector.shape_cast %102 : vector<2x16xf32> to vector<2x16x1xf32>
    %104 = tpu.reciprocal %103 {approx = true} : vector<2x16x1xf32> -> vector<2x16x1xf32>
    %105 = vector.broadcast %104 : vector<2x16x1xf32> to vector<2x16x16xf32>
    %106 = arith.mulf %101, %105 : vector<2x16x16xf32>
    %107 = arith.truncf %106 : vector<2x16x16xf32> to vector<2x16x16xbf16>
    "tpu.trace_start"() <{level = 10 : i32, message = "bqk,bkd->bqd"}> : () -> ()
    %cst_24 = arith.constant dense<0.000000e+00> : vector<2x16x32xf32>
    %108 = tpu.matmul %107, %95, %cst_24 {dimension_numbers = #tpu.dot_dimension_numbers<[2], [1], [1], [2], [0, 0, 0, 1, 1, 2], [0], [0]>} : vector<2x16x16xbf16>, vector<2x16x32xbf16>, vector<2x16x32xf32> -> vector<2x16x32xf32>
    "tpu.trace_stop"() : () -> ()
    %109 = vector.shape_cast %108 : vector<2x16x32xf32> to vector<32x32xf32>
    %110 = tpu.concatenate %40, %63, %86, %109 in 1 : vector<32x32xf32>, vector<32x32xf32>, vector<32x32xf32>, vector<32x32xf32> -> vector<32x128xf32>
    %c0_25 = arith.constant 0 : index
    %c0_26 = arith.constant 0 : index
    %c0_27 = arith.constant 0 : index
    %111 = vector.load %arg3[%c0_25, %c0_26, %c0_27] : memref<1x128x128xbf16, #tpu.memory_space<vmem>>, vector<1x128x128xbf16>
    %112 = vector.shape_cast %111 : vector<1x128x128xbf16> to vector<128x128xbf16>
    %113 = arith.truncf %110 : vector<32x128xf32> to vector<32x128xbf16>
    %cst_28 = arith.constant dense<0.000000e+00> : vector<32x128xf32>
    %114 = tpu.matmul %113, %112, %cst_28 {dimension_numbers = #tpu.dot_dimension_numbers<[1], [0], [0], [1], [0, 0, 1, 1], [], []>} : vector<32x128xbf16>, vector<128x128xbf16>, vector<32x128xf32> -> vector<32x128xf32>
    %115 = vector.extract_strided_slice %5 {offsets = [1, 0], sizes = [1, 128], strides = [1, 1]} : vector<8x512xf32> to vector<1x128xf32>
    %116 = vector.broadcast %115 : vector<1x128xf32> to vector<32x128xf32>
    %117 = arith.addf %114, %116 : vector<32x128xf32>
    %118 = arith.addf %3, %117 : vector<32x128xf32>
    %119 = vector.extract_strided_slice %5 {offsets = [2, 0], sizes = [1, 128], strides = [1, 1]} : vector<8x512xf32> to vector<1x128xf32>
    %120 = vector.extract_strided_slice %5 {offsets = [3, 0], sizes = [1, 128], strides = [1, 1]} : vector<8x512xf32> to vector<1x128xf32>
    %cst_29 = arith.constant dense<0.000000e+00> : vector<32xf32>
    %121 = vector.multi_reduction <add>, %118, %cst_29 [1] : vector<32x128xf32> to vector<32xf32>
    %122 = vector.shape_cast %121 : vector<32xf32> to vector<32x1xf32>
    %cst_30 = arith.constant 1.280000e+02 : f32
    %123 = vector.broadcast %cst_30 : f32 to vector<32x1xf32>
    %124 = arith.divf %122, %123 : vector<32x1xf32>
    %125 = vector.broadcast %124 : vector<32x1xf32> to vector<32x128xf32>
    %126 = arith.subf %118, %125 : vector<32x128xf32>
    %127 = arith.mulf %126, %126 : vector<32x128xf32>
    %cst_31 = arith.constant dense<0.000000e+00> : vector<32xf32>
    %128 = vector.multi_reduction <add>, %127, %cst_31 [1] : vector<32x128xf32> to vector<32xf32>
    %129 = vector.shape_cast %128 : vector<32xf32> to vector<32x1xf32>
    %cst_32 = arith.constant 1.280000e+02 : f32
    %130 = vector.broadcast %cst_32 : f32 to vector<32x1xf32>
    %131 = arith.divf %129, %130 : vector<32x1xf32>
    %132 = vector.broadcast %124 : vector<32x1xf32> to vector<32x128xf32>
    %133 = arith.subf %118, %132 : vector<32x128xf32>
    %cst_33 = arith.constant 9.99999974E-6 : f32
    %134 = vector.broadcast %cst_33 : f32 to vector<32x1xf32>
    %135 = arith.addf %131, %134 : vector<32x1xf32>
    %136 = math.rsqrt %135 : vector<32x1xf32>
    %137 = vector.broadcast %136 : vector<32x1xf32> to vector<32x128xf32>
    %138 = arith.mulf %133, %137 : vector<32x128xf32>
    %139 = vector.broadcast %119 : vector<1x128xf32> to vector<32x128xf32>
    %140 = arith.mulf %138, %139 : vector<32x128xf32>
    %141 = vector.broadcast %120 : vector<1x128xf32> to vector<32x128xf32>
    %142 = arith.addf %140, %141 : vector<32x128xf32>
    %c0_34 = arith.constant 0 : index
    %c0_35 = arith.constant 0 : index
    %c0_36 = arith.constant 0 : index
    %143 = vector.load %arg4[%c0_34, %c0_35, %c0_36] : memref<1x128x512xbf16, #tpu.memory_space<vmem>>, vector<1x128x512xbf16>
    %144 = vector.shape_cast %143 : vector<1x128x512xbf16> to vector<128x512xbf16>
    %145 = arith.truncf %142 : vector<32x128xf32> to vector<32x128xbf16>
    %cst_37 = arith.constant dense<0.000000e+00> : vector<32x512xf32>
    %146 = tpu.matmul %145, %144, %cst_37 {dimension_numbers = #tpu.dot_dimension_numbers<[1], [0], [0], [1], [0, 0, 1, 1], [], []>} : vector<32x128xbf16>, vector<128x512xbf16>, vector<32x512xf32> -> vector<32x512xf32>
    %147 = vector.extract_strided_slice %5 {offsets = [4, 0], sizes = [1, 512], strides = [1, 1]} : vector<8x512xf32> to vector<1x512xf32>
    %148 = vector.broadcast %147 : vector<1x512xf32> to vector<32x512xf32>
    %149 = arith.addf %146, %148 : vector<32x512xf32>
    %cst_38 = arith.constant 5.000000e-01 : f32
    %150 = vector.broadcast %cst_38 : f32 to vector<32x512xf32>
    %151 = arith.mulf %150, %149 : vector<32x512xf32>
    %cst_39 = arith.constant 0.707106769 : f32
    %152 = vector.broadcast %cst_39 : f32 to vector<32x512xf32>
    %153 = arith.mulf %149, %152 : vector<32x512xf32>
    %154 = math.erf %153 : vector<32x512xf32>
    %cst_40 = arith.constant 1.000000e+00 : f32
    %155 = vector.broadcast %cst_40 : f32 to vector<32x512xf32>
    %156 = arith.addf %155, %154 : vector<32x512xf32>
    %157 = arith.mulf %151, %156 : vector<32x512xf32>
    %c0_41 = arith.constant 0 : index
    %c0_42 = arith.constant 0 : index
    %c0_43 = arith.constant 0 : index
    %158 = vector.load %arg5[%c0_41, %c0_42, %c0_43] : memref<1x512x128xbf16, #tpu.memory_space<vmem>>, vector<1x512x128xbf16>
    %159 = vector.shape_cast %158 : vector<1x512x128xbf16> to vector<512x128xbf16>
    %160 = arith.truncf %157 : vector<32x512xf32> to vector<32x512xbf16>
    %cst_44 = arith.constant dense<0.000000e+00> : vector<32x128xf32>
    %161 = tpu.matmul %160, %159, %cst_44 {dimension_numbers = #tpu.dot_dimension_numbers<[1], [0], [0], [1], [0, 0, 1, 1], [], []>} : vector<32x512xbf16>, vector<512x128xbf16>, vector<32x128xf32> -> vector<32x128xf32>
    %162 = vector.extract_strided_slice %5 {offsets = [5, 0], sizes = [1, 128], strides = [1, 1]} : vector<8x512xf32> to vector<1x128xf32>
    %163 = vector.broadcast %162 : vector<1x128xf32> to vector<32x128xf32>
    %164 = arith.addf %161, %163 : vector<32x128xf32>
    %165 = arith.addf %142, %164 : vector<32x128xf32>
    %166 = vector.extract_strided_slice %5 {offsets = [6, 0], sizes = [1, 128], strides = [1, 1]} : vector<8x512xf32> to vector<1x128xf32>
    %167 = vector.extract_strided_slice %5 {offsets = [7, 0], sizes = [1, 128], strides = [1, 1]} : vector<8x512xf32> to vector<1x128xf32>
    %cst_45 = arith.constant dense<0.000000e+00> : vector<32xf32>
    %168 = vector.multi_reduction <add>, %165, %cst_45 [1] : vector<32x128xf32> to vector<32xf32>
    %169 = vector.shape_cast %168 : vector<32xf32> to vector<32x1xf32>
    %cst_46 = arith.constant 1.280000e+02 : f32
    %170 = vector.broadcast %cst_46 : f32 to vector<32x1xf32>
    %171 = arith.divf %169, %170 : vector<32x1xf32>
    %172 = vector.broadcast %171 : vector<32x1xf32> to vector<32x128xf32>
    %173 = arith.subf %165, %172 : vector<32x128xf32>
    %174 = arith.mulf %173, %173 : vector<32x128xf32>
    %cst_47 = arith.constant dense<0.000000e+00> : vector<32xf32>
    %175 = vector.multi_reduction <add>, %174, %cst_47 [1] : vector<32x128xf32> to vector<32xf32>
    %176 = vector.shape_cast %175 : vector<32xf32> to vector<32x1xf32>
    %cst_48 = arith.constant 1.280000e+02 : f32
    %177 = vector.broadcast %cst_48 : f32 to vector<32x1xf32>
    %178 = arith.divf %176, %177 : vector<32x1xf32>
    %179 = vector.broadcast %171 : vector<32x1xf32> to vector<32x128xf32>
    %180 = arith.subf %165, %179 : vector<32x128xf32>
    %cst_49 = arith.constant 9.99999974E-6 : f32
    %181 = vector.broadcast %cst_49 : f32 to vector<32x1xf32>
    %182 = arith.addf %178, %181 : vector<32x1xf32>
    %183 = math.rsqrt %182 : vector<32x1xf32>
    %184 = vector.broadcast %183 : vector<32x1xf32> to vector<32x128xf32>
    %185 = arith.mulf %180, %184 : vector<32x128xf32>
    %186 = vector.broadcast %166 : vector<1x128xf32> to vector<32x128xf32>
    %187 = arith.mulf %185, %186 : vector<32x128xf32>
    %188 = vector.broadcast %167 : vector<1x128xf32> to vector<32x128xf32>
    %189 = arith.addf %187, %188 : vector<32x128xf32>
    %c0_50 = arith.constant 0 : index
    %c0_51 = arith.constant 0 : index
    %190 = vector.load %arg10[%c0_50, %c0_51] : memref<32x128xf32, #tpu.memory_space<vmem>>, vector<32x128xf32>
    tpu.vector_store %arg10[%c0_50, %c0_51], %189 {strides = array<i32>} : memref<32x128xf32, #tpu.memory_space<vmem>>, vector<32x128xf32>,
    %c1_i32 = arith.constant 1 : i32
    %191 = arith.cmpi eq, %arg0, %c1_i32 : i32
    %192 = arith.extui %191 : i1 to i32
    %c0_i32_52 = arith.constant 0 : i32
    %193 = arith.cmpi ne, %192, %c0_i32_52 : i32
    scf.if %193 {
      %194 = vector.shape_cast %189 : vector<32x128xf32> to vector<2x16x128xf32>
      %cst_53 = arith.constant dense<0.000000e+00> : vector<2x128xf32>
      %195 = vector.multi_reduction <add>, %194, %cst_53 [1] : vector<2x16x128xf32> to vector<2x128xf32>
      %cst_54 = arith.constant 1.600000e+01 : f32
      %196 = vector.broadcast %cst_54 : f32 to vector<2x128xf32>
      %197 = arith.divf %195, %196 : vector<2x128xf32>
      %c0_55 = arith.constant 0 : index
      %c0_56 = arith.constant 0 : index
      %198 = vector.load %arg8[%c0_55, %c0_56] : memref<3x128xf32, #tpu.memory_space<vmem>>, vector<1x128xf32>
      %c1 = arith.constant 1 : index
      %c0_57 = arith.constant 0 : index
      %199 = vector.load %arg8[%c1, %c0_57] : memref<3x128xf32, #tpu.memory_space<vmem>>, vector<1x128xf32>
      %cst_58 = arith.constant dense<0.000000e+00> : vector<2xf32>
      %200 = vector.multi_reduction <add>, %197, %cst_58 [1] : vector<2x128xf32> to vector<2xf32>
      %201 = vector.shape_cast %200 : vector<2xf32> to vector<2x1xf32>
      %cst_59 = arith.constant 1.280000e+02 : f32
      %202 = vector.broadcast %cst_59 : f32 to vector<2x1xf32>
      %203 = arith.divf %201, %202 : vector<2x1xf32>
      %204 = vector.broadcast %203 : vector<2x1xf32> to vector<2x128xf32>
      %205 = arith.subf %197, %204 : vector<2x128xf32>
      %206 = arith.mulf %205, %205 : vector<2x128xf32>
      %cst_60 = arith.constant dense<0.000000e+00> : vector<2xf32>
      %207 = vector.multi_reduction <add>, %206, %cst_60 [1] : vector<2x128xf32> to vector<2xf32>
      %208 = vector.shape_cast %207 : vector<2xf32> to vector<2x1xf32>
      %cst_61 = arith.constant 1.280000e+02 : f32
      %209 = vector.broadcast %cst_61 : f32 to vector<2x1xf32>
      %210 = arith.divf %208, %209 : vector<2x1xf32>
      %211 = vector.broadcast %203 : vector<2x1xf32> to vector<2x128xf32>
      %212 = arith.subf %197, %211 : vector<2x128xf32>
      %cst_62 = arith.constant 9.99999974E-6 : f32
      %213 = vector.broadcast %cst_62 : f32 to vector<2x1xf32>
      %214 = arith.addf %210, %213 : vector<2x1xf32>
      %215 = math.rsqrt %214 : vector<2x1xf32>
      %216 = vector.broadcast %215 : vector<2x1xf32> to vector<2x128xf32>
      %217 = arith.mulf %212, %216 : vector<2x128xf32>
      %218 = vector.broadcast %198 : vector<1x128xf32> to vector<2x128xf32>
      %219 = arith.mulf %217, %218 : vector<2x128xf32>
      %220 = vector.broadcast %199 : vector<1x128xf32> to vector<2x128xf32>
      %221 = arith.addf %219, %220 : vector<2x128xf32>
      %c0_63 = arith.constant 0 : index
      %c0_64 = arith.constant 0 : index
      %222 = vector.load %arg7[%c0_63, %c0_64] : memref<128x128xbf16, #tpu.memory_space<vmem>>, vector<128x128xbf16>
      %223 = arith.truncf %221 : vector<2x128xf32> to vector<2x128xbf16>
      %cst_65 = arith.constant dense<0.000000e+00> : vector<2x128xf32>
      %224 = tpu.matmul %223, %222, %cst_65 {dimension_numbers = #tpu.dot_dimension_numbers<[1], [0], [0], [1], [0, 0, 1, 1], [], []>} : vector<2x128xbf16>, vector<128x128xbf16>, vector<2x128xf32> -> vector<2x128xf32>
      %c2 = arith.constant 2 : index
      %c0_66 = arith.constant 0 : index
      %225 = vector.load %arg8[%c2, %c0_66] : memref<3x128xf32, #tpu.memory_space<vmem>>, vector<1x128xf32>
      %226 = vector.broadcast %225 : vector<1x128xf32> to vector<2x128xf32>
      %227 = arith.addf %224, %226 : vector<2x128xf32>
      %c0_67 = arith.constant 0 : index
      %c0_68 = arith.constant 0 : index
      %228 = vector.load %arg9[%c0_67, %c0_68] : memref<2x128xf32, #tpu.memory_space<vmem>>, vector<2x128xf32>
      tpu.vector_store %arg9[%c0_67, %c0_68], %227 {strides = array<i32>} : memref<2x128xf32, #tpu.memory_space<vmem>>, vector<2x128xf32>,
    } else {
    }
    return
  }
  func.func @transform_0(%arg0: i32) -> (i32, i32) {
    %c0_i32 = arith.constant 0 : i32
    %c0_i32_0 = arith.constant 0 : i32
    %c0_i32_1 = arith.constant 0 : i32
    return %c0_i32, %c0_i32_0 : i32, i32
  }
  func.func @transform_1(%arg0: i32) -> (i32, i32, i32) {
    %c0_i32 = arith.constant 0 : i32
    %c0_i32_0 = arith.constant 0 : i32
    %c0_i32_1 = arith.constant 0 : i32
    return %arg0, %c0_i32, %c0_i32_0 : i32, i32, i32
  }
  func.func @transform_2(%arg0: i32) -> (i32, i32, i32) {
    %c0_i32 = arith.constant 0 : i32
    %c0_i32_0 = arith.constant 0 : i32
    %c0_i32_1 = arith.constant 0 : i32
    return %arg0, %c0_i32, %c0_i32_0 : i32, i32, i32
  }
  func.func @transform_3(%arg0: i32) -> (i32, i32, i32) {
    %c0_i32 = arith.constant 0 : i32
    %c0_i32_0 = arith.constant 0 : i32
    %c0_i32_1 = arith.constant 0 : i32
    return %arg0, %c0_i32, %c0_i32_0 : i32, i32, i32
  }
  func.func @transform_4(%arg0: i32) -> (i32, i32, i32) {
    %c0_i32 = arith.constant 0 : i32
    %c0_i32_0 = arith.constant 0 : i32
    %c0_i32_1 = arith.constant 0 : i32
    return %arg0, %c0_i32, %c0_i32_0 : i32, i32, i32
  }
  func.func @transform_5(%arg0: i32) -> (i32, i32, i32) {
    %c0_i32 = arith.constant 0 : i32
    %c0_i32_0 = arith.constant 0 : i32
    %c0_i32_1 = arith.constant 0 : i32
    return %arg0, %c0_i32, %c0_i32_0 : i32, i32, i32
  }
  func.func @transform_6(%arg0: i32) -> (i32, i32) {
    %c0_i32 = arith.constant 0 : i32
    %c0_i32_0 = arith.constant 0 : i32
    %c0_i32_1 = arith.constant 0 : i32
    return %c0_i32, %c0_i32_0 : i32, i32
  }
  func.func @transform_7(%arg0: i32) -> (i32, i32) {
    %c0_i32 = arith.constant 0 : i32
    %c0_i32_0 = arith.constant 0 : i32
    %c0_i32_1 = arith.constant 0 : i32
    return %c0_i32, %c0_i32_0 : i32, i32
  }
  func.func @transform_8(%arg0: i32) -> (i32, i32) {
    %c0_i32 = arith.constant 0 : i32
    %c0_i32_0 = arith.constant 0 : i32
    %c0_i32_1 = arith.constant 0 : i32
    return %c0_i32, %c0_i32_0 : i32, i32
  }
}

</mosaic_0001>

<bundles_post_ra>
// kernel: squeeze.9
= control target key start
LH: loop header
LB: loop body
LE: loop exit
PB: predicated region body
PF: predicated region fallthrough
CT: control target
= control target key end

     0   :  { %s514_s8 = smov 124   ;;  %s515_s9 = smov 108   ;;  %vm7_vm0 = vcmask 31744   ;;  %s717_s0 = inlined_call_operand.vmem [shape: f32[2,128], index: 0, kind: input, shape index: {}]   ;;  %s718_s1 = inlined_call_operand.vmem [shape: f32[2,16,2,4], index: 1, kind: output, shape index: {}]  }
   0x1   :  { %v4_v0 = vld [vmem:[%s717_s0] sm:$0x3]  ;;  %s513_s0 = smov 116   ;;  %s516_s10 = smov 112  }
   0x2   :  { %5 = vst [vmem:[#allocation1] sm:$0x3] %v4_v0  ;;  %s517_s11 = smov 120   ;;  %s518_s12 = smov 104  }
   0x3   :  { %s519_s13 = smov 96   ;;  %s520_s14 = smov 100  }
   0x4   :  { %s521_s15 = smov 92   ;;  %s522_s16 = smov 84  }
   0x5   :  { %s523_s17 = smov 88   ;;  %s524_s18 = smov 80  }
   0x6   :  { %s525_s19 = smov 72   ;;  %s526_s20 = smov 76  }
   0x7   :  { %s527_s21 = smov 68   ;;  %s528_s22 = smov 60  }
   0x8   :  { %s529_s23 = smov 64   ;;  %s530_s24 = smov 56  }
   0x9   :  { %v27_v1 = vld [vmem:[#allocation1] sm:$0x3]   ;;  %s531_s25 = smov 48   ;;  %s532_s26 = smov 52  }
   0xa   :  { %v11_v2 = vld [vmem:[#allocation1] sm:$0x3]   ;;  %28 = vrot.lane.b32.xlu1 %v27_v1, %s513_s0  ;;  %s533_s27 = smov 44   ;;  %s534_s28 = smov 36  }
   0xb   :  { %12 = vrot.lane.b32.xlu0 %v11_v2, %s514_s8  ;;  %v43_v3 = vld [vmem:[#allocation1] sm:$0x3]   ;;  %s535_s29 = smov 40   ;;  %s536_s30 = smov 32  }
   0xc   :  { %44 = vrot.lane.b32.xlu2 %v43_v3, %s515_s9  ;;  %v35_v4 = vld [vmem:[#allocation1] sm:$0x3]   ;;  %s537_s2 = smov 24   ;;  %s538_s3 = smov 28  }
   0xd   :  { %v19_v5 = vld [vmem:[#allocation1] sm:$0x3]   ;;  %s539_s4 = smov 20   ;;  %s540_s5 = smov 12  }
   0xe   :  { %v51_v6 = vld [vmem:[#allocation1] sm:$0x3]   ;;  %s541_s6 = smov 16   ;;  %s542_s7 = smov 8  }
   0xf   :  { %v67_v7 = vld [vmem:[#allocation1] sm:$0x3]   ;;  %s543_s0 = smov 4  }
  0x10   :  { %v59_v8 = vld [vmem:[#allocation1] sm:$0x3]  }
  0x11   :  { %v75_v9 = vld [vmem:[#allocation1] sm:$0x3]  }
  0x12   :  { %36 = vrot.lane.b32.xlu1 %v35_v4, %s516_s10  ;;  %v91_v10 = vld [vmem:[#allocation1] sm:$0x3]  }
  0x13   :  { %20 = vrot.lane.b32.xlu0 %v19_v5, %s517_s11  ;;  %v83_v11 = vld [vmem:[#allocation1] sm:$0x3]  }
  0x14   :  { %52 = vrot.lane.b32.xlu2 %v51_v6, %s518_s12  ;;  %v99_v12 = vld [vmem:[#allocation1] sm:$0x3]  }
  0x15   :  { %v115_v13 = vld [vmem:[#allocation1] sm:$0x3]  }
  0x16   :  { %v107_v14 = vld [vmem:[#allocation1] sm:$0x3]  }
  0x17   :  { %v123_v15 = vld [vmem:[#allocation1] sm:$0x3]  }
  0x18   :  { %v139_v16 = vld [vmem:[#allocation1] sm:$0x3]  }
  0x19   :  { %v131_v17 = vld [vmem:[#allocation1] sm:$0x3]  }
  0x1a   :  { %68 = vrot.lane.b32.xlu1 %v67_v7, %s519_s13  ;;  %v147_v18 = vld [vmem:[#allocation1] sm:$0x3]  }
  0x1b   :  { %60 = vrot.lane.b32.xlu0 %v59_v8, %s520_s14  ;;  %v163_v19 = vld [vmem:[#allocation1] sm:$0x3]  }
  0x1c   :  { %76 = vrot.lane.b32.xlu2 %v75_v9, %s521_s15  ;;  %v155_v20 = vld [vmem:[#allocation1] sm:$0x3]  }
  0x1d   :  { %v171_v21 = vld [vmem:[#allocation1] sm:$0x3]  }
  0x1e   :  { %v187_v22 = vld [vmem:[#allocation1] sm:$0x3]  }
  0x1f   :  { %v179_v23 = vld [vmem:[#allocation1] sm:$0x3]  }
  0x20   :  { %v195_v24 = vld [vmem:[#allocation1] sm:$0x3]  }
  0x21   :  { %v211_v25 = vld [vmem:[#allocation1] sm:$0x3]  }
  0x22   :  { %92 = vrot.lane.b32.xlu1 %v91_v10, %s522_s16  ;;  %v203_v26 = vld [vmem:[#allocation1] sm:$0x3]  }
  0x23   :  { %84 = vrot.lane.b32.xlu0 %v83_v11, %s523_s17  ;;  %v219_v27 = vld [vmem:[#allocation1] sm:$0x3]  }
  0x24   :  { %100 = vrot.lane.b32.xlu2 %v99_v12, %s524_s18  ;;  %v235_v28 = vld [vmem:[#allocation1] sm:$0x3]  }
  0x25   :  { %v227_v29 = vld [vmem:[#allocation1] sm:$0x3]  }
  0x26   :  { %v243_v30 = vld [vmem:[#allocation1] sm:$0x3]  }
  0x27   :  { %v251_v31 = vld [vmem:[#allocation1] sm:$0x3]  }
  0x28   :  { %v6_v32 = vld [vmem:[#allocation1] sm:$0x3]  }
  0x29   :  { %8 = vst.msk [vmem:[#allocation0] sm:$0x1] %vm7_vm0, %v6_v32  }
  0x2a   :  { %116 = vrot.lane.b32.xlu1 %v115_v13, %s525_s19  ;;  %10 = vst.msk [vmem:[#allocation0 + $0x7f] sm:$0x2] %vm7_vm0, %v6_v32  }
  0x2b   :  { %108 = vrot.lane.b32.xlu0 %v107_v14, %s526_s20 }
  0x2c   :  { %124 = vrot.lane.b32.xlu2 %v123_v15, %s527_s21 }
  0x32   :  { %140 = vrot.lane.b32.xlu1 %v139_v16, %s528_s22 }
  0x33   :  { %132 = vrot.lane.b32.xlu0 %v131_v17, %s529_s23 }
  0x34   :  { %148 = vrot.lane.b32.xlu2 %v147_v18, %s530_s24 }
  0x3a   :  { %164 = vrot.lane.b32.xlu1 %v163_v19, %s531_s25 }
  0x3b   :  { %156 = vrot.lane.b32.xlu0 %v155_v20, %s532_s26 }
  0x3c   :  { %172 = vrot.lane.b32.xlu2 %v171_v21, %s533_s27 }
  0x42   :  { %188 = vrot.lane.b32.xlu1 %v187_v22, %s534_s28 }
  0x43   :  { %180 = vrot.lane.b32.xlu0 %v179_v23, %s535_s29 }
  0x44   :  { %196 = vrot.lane.b32.xlu2 %v195_v24, %s536_s30 }
  0x4a   :  { %212 = vrot.lane.b32.xlu1 %v211_v25, %s537_s2 }
  0x4b   :  { %204 = vrot.lane.b32.xlu0 %v203_v26, %s538_s3 }
  0x4c   :  { %220 = vrot.lane.b32.xlu2 %v219_v27, %s539_s4 }
  0x52   :  { %236 = vrot.lane.b32.xlu1 %v235_v28, %s540_s5 }
  0x53   :  { %228 = vrot.lane.b32.xlu0 %v227_v29, %s541_s6 }
  0x54   :  { %244 = vrot.lane.b32.xlu2 %v243_v30, %s542_s7 }
  0x5b   :  { %252 = vrot.lane.b32.xlu0 %v251_v31, %s543_s0 }
  0x66   :  { %v45_v33 = vpop.permute.xlu2 %44  }
  0x67   :  { %48 = vst.msk [vmem:[#allocation0 + $0x11] sm:$0x1] %vm7_vm0, %v45_v33  }
  0x68   :  { %50 = vst.msk [vmem:[#allocation0 + $0x90] sm:$0x2] %vm7_vm0, %v45_v33  }
  0x6e   :  { %v53_v34 = vpop.permute.xlu2 %52  }
  0x6f   :  { %56 = vst.msk [vmem:[#allocation0 + $0x18] sm:$0x1] %vm7_vm0, %v53_v34  }
  0x70   :  { %58 = vst.msk [vmem:[#allocation0 + $0x97] sm:$0x2] %vm7_vm0, %v53_v34  }
  0x76   :  { %v77_v35 = vpop.permute.xlu2 %76  }
  0x77   :  { %80 = vst.msk [vmem:[#allocation0 + $0x21] sm:$0x1] %vm7_vm0, %v77_v35  }
  0x78   :  { %82 = vst.msk [vmem:[#allocation0 + $0xa0] sm:$0x2] %vm7_vm0, %v77_v35  }
  0x7c   :  { %v29_v36 = vpop.permute.xlu1 %28  }
  0x7d   :  { %v13_v37 = vpop.permute.xlu0 %12   ;;  %32 = vst.msk [vmem:[#allocation0 + $0x9] sm:$0x1] %vm7_vm0, %v29_v36  }
  0x7e   :  { %34 = vst.msk [vmem:[#allocation0 + $0x88] sm:$0x2] %vm7_vm0, %v29_v36   ;;  %v101_v38 = vpop.permute.xlu2 %100  }
  0x7f   :  { %16 = vst.msk [vmem:[#allocation0 + $0x1] sm:$0x1] %vm7_vm0, %v13_v37  }
  0x80   :  { %18 = vst.msk [vmem:[#allocation0 + $0x80] sm:$0x2] %vm7_vm0, %v13_v37  }
  0x81   :  { %104 = vst.msk [vmem:[#allocation0 + $0x30] sm:$0x1] %vm7_vm0, %v101_v38  }
  0x82   :  { %106 = vst.msk [vmem:[#allocation0 + $0xaf] sm:$0x2] %vm7_vm0, %v101_v38  }
  0x84   :  { %v37_v39 = vpop.permute.xlu1 %36  }
  0x85   :  { %v21_v40 = vpop.permute.xlu0 %20   ;;  %40 = vst.msk [vmem:[#allocation0 + $0x10] sm:$0x1] %vm7_vm0, %v37_v39  }
  0x86   :  { %v261_v41 = vld [vmem:[#allocation0] sm:$0x3]  ;;  %42 = vst.msk [vmem:[#allocation0 + $0x8f] sm:$0x2] %vm7_vm0, %v37_v39   ;;  %v125_v43 = vpop.permute.xlu2 %124  }
  0x87   :  { %264 = vst [vmem:[%s718_s1] sm:$0x3] %v261_v41  ;;  %v356_v42 = vld [vmem:[#allocation0 + $0x80] sm:$0x3] }
  0x88   :  { %466 = vst [vmem:[%s718_s1 + $0x20] sm:$0x3] %v356_v42 }
  0x89   :  { %24 = vst.msk [vmem:[#allocation0 + $0x8] sm:$0x1] %vm7_vm0, %v21_v40  }
  0x8a   :  { %26 = vst.msk [vmem:[#allocation0 + $0x87] sm:$0x2] %vm7_vm0, %v21_v40  }
  0x8b   :  { %128 = vst.msk [vmem:[#allocation0 + $0x39] sm:$0x1] %vm7_vm0, %v125_v43  }
  0x8c   :  { %v272_v44 = vld [vmem:[#allocation0 + $0x10] sm:$0x3]  ;;  %v69_v45 = vpop.permute.xlu1 %68   ;;  %130 = vst.msk [vmem:[#allocation0 + $0xb8] sm:$0x2] %vm7_vm0, %v125_v43  }
  0x8d   :  { %v61_v46 = vpop.permute.xlu0 %60   ;;  %v368_v47 = vld [vmem:[#allocation0 + $0x90] sm:$0x3]  ;;  %452 = vst [vmem:[%s718_s1 + $0x4] sm:$0x3] %v272_v44 }
  0x8e   :  { %468 = vst [vmem:[%s718_s1 + $0x24] sm:$0x3] %v368_v47  ;;  %v149_v50 = vpop.permute.xlu2 %148  }
  0x8f   :  { %72 = vst.msk [vmem:[#allocation0 + $0x20] sm:$0x1] %vm7_vm0, %v69_v45  }
  0x90   :  { %v266_v48 = vld [vmem:[#allocation0 + $0x8] sm:$0x3]  ;;  %74 = vst.msk [vmem:[#allocation0 + $0x9f] sm:$0x2] %vm7_vm0, %v69_v45  }
  0x91   :  { %451 = vst [vmem:[%s718_s1 + $0x2] sm:$0x3] %v266_v48  ;;  %v362_v49 = vld [vmem:[#allocation0 + $0x88] sm:$0x3] }
  0x92   :  { %467 = vst [vmem:[%s718_s1 + $0x22] sm:$0x3] %v362_v49 }
  0x93   :  { %64 = vst.msk [vmem:[#allocation0 + $0x19] sm:$0x1] %vm7_vm0, %v61_v46  }
  0x94   :  { %66 = vst.msk [vmem:[#allocation0 + $0x98] sm:$0x2] %vm7_vm0, %v61_v46   ;;  %v93_v51 = vpop.permute.xlu1 %92  }
  0x95   :  { %v85_v52 = vpop.permute.xlu0 %84   ;;  %96 = vst.msk [vmem:[#allocation0 + $0x29] sm:$0x1] %vm7_vm0, %v93_v51  }
  0x96   :  { %v284_v53 = vld [vmem:[#allocation0 + $0x20] sm:$0x3]  ;;  %98 = vst.msk [vmem:[#allocation0 + $0xa8] sm:$0x2] %vm7_vm0, %v93_v51   ;;  %v173_v57 = vpop.permute.xlu2 %172  }
  0x97   :  { %v380_v54 = vld [vmem:[#allocation0 + $0xa0] sm:$0x3]  ;;  %454 = vst [vmem:[%s718_s1 + $0x8] sm:$0x3] %v284_v53 }
  0x98   :  { %470 = vst [vmem:[%s718_s1 + $0x28] sm:$0x3] %v380_v54 }
  0x99   :  { %88 = vst.msk [vmem:[#allocation0 + $0x28] sm:$0x1] %vm7_vm0, %v85_v52  }
  0x9a   :  { %v278_v55 = vld [vmem:[#allocation0 + $0x18] sm:$0x3]  ;;  %90 = vst.msk [vmem:[#allocation0 + $0xa7] sm:$0x2] %vm7_vm0, %v85_v52  }
  0x9b   :  { %453 = vst [vmem:[%s718_s1 + $0x6] sm:$0x3] %v278_v55  ;;  %v374_v56 = vld [vmem:[#allocation0 + $0x98] sm:$0x3] }
  0x9c   :  { %469 = vst [vmem:[%s718_s1 + $0x26] sm:$0x3] %v374_v56  ;;  %v117_v58 = vpop.permute.xlu1 %116  }
  0x9d   :  { %v109_v59 = vpop.permute.xlu0 %108   ;;  %120 = vst.msk [vmem:[#allocation0 + $0x38] sm:$0x1] %vm7_vm0, %v117_v58  }
  0x9e   :  { %122 = vst.msk [vmem:[#allocation0 + $0xb7] sm:$0x2] %vm7_vm0, %v117_v58   ;;  %v197_v62 = vpop.permute.xlu2 %196  }
  0x9f   :  { %112 = vst.msk [vmem:[#allocation0 + $0x31] sm:$0x1] %vm7_vm0, %v109_v59  }
  0xa0   :  { %v290_v60 = vld [vmem:[#allocation0 + $0x28] sm:$0x3]  ;;  %114 = vst.msk [vmem:[#allocation0 + $0xb0] sm:$0x2] %vm7_vm0, %v109_v59  }
  0xa1   :  { %455 = vst [vmem:[%s718_s1 + $0xa] sm:$0x3] %v290_v60  ;;  %v386_v61 = vld [vmem:[#allocation0 + $0xa8] sm:$0x3] }
  0xa2   :  { %471 = vst [vmem:[%s718_s1 + $0x2a] sm:$0x3] %v386_v61 }
  0xa3   :  { %152 = vst.msk [vmem:[#allocation0 + $0x48] sm:$0x1] %vm7_vm0, %v149_v50  }
  0xa4   :  { %v302_v63 = vld [vmem:[#allocation0 + $0x38] sm:$0x3]  ;;  %v141_v0 = vpop.permute.xlu1 %140   ;;  %154 = vst.msk [vmem:[#allocation0 + $0xc7] sm:$0x2] %vm7_vm0, %v149_v50  }
  0xa5   :  { %v133_v1 = vpop.permute.xlu0 %132   ;;  %457 = vst [vmem:[%s718_s1 + $0xe] sm:$0x3] %v302_v63  ;;  %v398_v4 = vld [vmem:[#allocation0 + $0xb8] sm:$0x3] }
  0xa6   :  { %v296_v2 = vld [vmem:[#allocation0 + $0x30] sm:$0x3]  ;;  %144 = vst.msk [vmem:[#allocation0 + $0x41] sm:$0x1] %vm7_vm0, %v141_v0   ;;  %v221_v7 = vpop.permute.xlu2 %220  }
  0xa7   :  { %456 = vst [vmem:[%s718_s1 + $0xc] sm:$0x3] %v296_v2  ;;  %v392_v3 = vld [vmem:[#allocation0 + $0xb0] sm:$0x3] }
  0xa8   :  { %472 = vst [vmem:[%s718_s1 + $0x2c] sm:$0x3] %v392_v3 }
  0xa9   :  { %146 = vst.msk [vmem:[#allocation0 + $0xc0] sm:$0x2] %vm7_vm0, %v141_v0  }
  0xaa   :  { %136 = vst.msk [vmem:[#allocation0 + $0x40] sm:$0x1] %vm7_vm0, %v133_v1  }
  0xab   :  { %473 = vst [vmem:[%s718_s1 + $0x2e] sm:$0x3] %v398_v4 }
  0xac   :  { %138 = vst.msk [vmem:[#allocation0 + $0xbf] sm:$0x2] %vm7_vm0, %v133_v1   ;;  %v165_v5 = vpop.permute.xlu1 %164  }
  0xad   :  { %v157_v6 = vpop.permute.xlu0 %156   ;;  %168 = vst.msk [vmem:[#allocation0 + $0x50] sm:$0x1] %vm7_vm0, %v165_v5  }
  0xae   :  { %170 = vst.msk [vmem:[#allocation0 + $0xcf] sm:$0x2] %vm7_vm0, %v165_v5   ;;  %v245_v12 = vpop.permute.xlu2 %244  }
  0xaf   :  { %160 = vst.msk [vmem:[#allocation0 + $0x49] sm:$0x1] %vm7_vm0, %v157_v6  }
  0xb0   :  { %162 = vst.msk [vmem:[#allocation0 + $0xc8] sm:$0x2] %vm7_vm0, %v157_v6  }
  0xb1   :  { %v308_v8 = vld [vmem:[#allocation0 + $0x40] sm:$0x3]  ;;  %176 = vst.msk [vmem:[#allocation0 + $0x51] sm:$0x1] %vm7_vm0, %v173_v57  }
  0xb2   :  { %458 = vst [vmem:[%s718_s1 + $0x10] sm:$0x3] %v308_v8 }
  0xb3   :  { %v404_v9 = vld [vmem:[#allocation0 + $0xc0] sm:$0x3]  ;;  %178 = vst.msk [vmem:[#allocation0 + $0xd0] sm:$0x2] %vm7_vm0, %v173_v57  }
  0xb4   :  { %474 = vst [vmem:[%s718_s1 + $0x30] sm:$0x3] %v404_v9  ;;  %v189_v10 = vpop.permute.xlu1 %188  }
  0xb5   :  { %v181_v11 = vpop.permute.xlu0 %180   ;;  %192 = vst.msk [vmem:[#allocation0 + $0x59] sm:$0x1] %vm7_vm0, %v189_v10  }
  0xb6   :  { %v314_v13 = vld [vmem:[#allocation0 + $0x48] sm:$0x3]  ;;  %194 = vst.msk [vmem:[#allocation0 + $0xd8] sm:$0x2] %vm7_vm0, %v189_v10  }
  0xb7   :  { %459 = vst [vmem:[%s718_s1 + $0x12] sm:$0x3] %v314_v13  ;;  %v410_v14 = vld [vmem:[#allocation0 + $0xc8] sm:$0x3] }
  0xb8   :  { %475 = vst [vmem:[%s718_s1 + $0x32] sm:$0x3] %v410_v14  ;;  %v320_v15 = vld [vmem:[#allocation0 + $0x50] sm:$0x3] }
  0xb9   :  { %184 = vst.msk [vmem:[#allocation0 + $0x58] sm:$0x1] %vm7_vm0, %v181_v11  }
  0xba   :  { %460 = vst [vmem:[%s718_s1 + $0x14] sm:$0x3] %v320_v15  ;;  %v416_v16 = vld [vmem:[#allocation0 + $0xd0] sm:$0x3] }
  0xbb   :  { %186 = vst.msk [vmem:[#allocation0 + $0xd7] sm:$0x2] %vm7_vm0, %v181_v11  }
  0xbc   :  { %v213_v17 = vpop.permute.xlu1 %212   ;;  %476 = vst [vmem:[%s718_s1 + $0x34] sm:$0x3] %v416_v16 }
  0xbd   :  { %v205_v18 = vpop.permute.xlu0 %204   ;;  %200 = vst.msk [vmem:[#allocation0 + $0x60] sm:$0x1] %vm7_vm0, %v197_v62  }
  0xbe   :  { %202 = vst.msk [vmem:[#allocation0 + $0xdf] sm:$0x2] %vm7_vm0, %v197_v62  }
  0xbf   :  { %216 = vst.msk [vmem:[#allocation0 + $0x68] sm:$0x1] %vm7_vm0, %v213_v17  }
  0xc0   :  { %v326_v19 = vld [vmem:[#allocation0 + $0x58] sm:$0x3]  ;;  %218 = vst.msk [vmem:[#allocation0 + $0xe7] sm:$0x2] %vm7_vm0, %v213_v17  }
  0xc1   :  { %461 = vst [vmem:[%s718_s1 + $0x16] sm:$0x3] %v326_v19 }
  0xc2   :  { %v422_v20 = vld [vmem:[#allocation0 + $0xd8] sm:$0x3]  ;;  %208 = vst.msk [vmem:[#allocation0 + $0x61] sm:$0x1] %vm7_vm0, %v205_v18  }
  0xc3   :  { %477 = vst [vmem:[%s718_s1 + $0x36] sm:$0x3] %v422_v20 }
  0xc4   :  { %v237_v21 = vpop.permute.xlu1 %236   ;;  %210 = vst.msk [vmem:[#allocation0 + $0xe0] sm:$0x2] %vm7_vm0, %v205_v18  }
  0xc5   :  { %v229_v22 = vpop.permute.xlu0 %228   ;;  %224 = vst.msk [vmem:[#allocation0 + $0x69] sm:$0x1] %vm7_vm0, %v221_v7  }
  0xc6   :  { %226 = vst.msk [vmem:[#allocation0 + $0xe8] sm:$0x2] %vm7_vm0, %v221_v7  }
  0xc7   :  { %240 = vst.msk [vmem:[#allocation0 + $0x71] sm:$0x1] %vm7_vm0, %v237_v21  }
  0xc8   :  { %242 = vst.msk [vmem:[#allocation0 + $0xf0] sm:$0x2] %vm7_vm0, %v237_v21  }
  0xc9   :  { %v332_v23 = vld [vmem:[#allocation0 + $0x60] sm:$0x3]  ;;  %232 = vst.msk [vmem:[#allocation0 + $0x70] sm:$0x1] %vm7_vm0, %v229_v22  }
  0xca   :  { %462 = vst [vmem:[%s718_s1 + $0x18] sm:$0x3] %v332_v23 }
  0xcb   :  { %v428_v24 = vld [vmem:[#allocation0 + $0xe0] sm:$0x3]  ;;  %234 = vst.msk [vmem:[#allocation0 + $0xef] sm:$0x2] %vm7_vm0, %v229_v22  }
  0xcc   :  { %478 = vst [vmem:[%s718_s1 + $0x38] sm:$0x3] %v428_v24  ;;  %v338_v26 = vld [vmem:[#allocation0 + $0x68] sm:$0x3] }
  0xcd   :  { %v253_v25 = vpop.permute.xlu0 %252   ;;  %463 = vst [vmem:[%s718_s1 + $0x1a] sm:$0x3] %v338_v26  ;;  %v434_v27 = vld [vmem:[#allocation0 + $0xe8] sm:$0x3] }
  0xce   :  { %479 = vst [vmem:[%s718_s1 + $0x3a] sm:$0x3] %v434_v27 }
  0xcf   :  { %248 = vst.msk [vmem:[#allocation0 + $0x78] sm:$0x1] %vm7_vm0, %v245_v12  }
  0xd0   :  { %v344_v28 = vld [vmem:[#allocation0 + $0x70] sm:$0x3]  ;;  %250 = vst.msk [vmem:[#allocation0 + $0xf7] sm:$0x2] %vm7_vm0, %v245_v12  }
  0xd1   :  { %464 = vst [vmem:[%s718_s1 + $0x1c] sm:$0x3] %v344_v28 }
  0xd2   :  { %v440_v29 = vld [vmem:[#allocation0 + $0xf0] sm:$0x3]  ;;  %256 = vst.msk [vmem:[#allocation0 + $0x79] sm:$0x1] %vm7_vm0, %v253_v25  }
  0xd3   :  { %480 = vst [vmem:[%s718_s1 + $0x3c] sm:$0x3] %v440_v29 }
  0xd4   :  { %258 = vst.msk [vmem:[#allocation0 + $0xf8] sm:$0x2] %vm7_vm0, %v253_v25  }
  0xd9   :  { %v350_v30 = vld [vmem:[#allocation0 + $0x78] sm:$0x3] }
  0xda   :  { %465 = vst [vmem:[%s718_s1 + $0x1e] sm:$0x3] %v350_v30 }
  0xdb   :  { %v446_v31 = vld [vmem:[#allocation0 + $0xf8] sm:$0x3] }
  0xdc   :  { %481 = vst [vmem:[%s718_s1 + $0x3e] sm:$0x3] %v446_v31 }

// kernel: model_forward.2
= control target key start
LH: loop header
LB: loop body
LE: loop exit
PB: predicated region body
PF: predicated region fallthrough
CT: control target
= control target key end

     0   :  { %16 = vsyncpa [#allocation3], 0  ;;  %s5428_s0 = inlined_call_operand.vmem [shape: f32[64,4], index: 0, kind: input, shape index: {}]   ;;  %s5429_s1 = inlined_call_operand.vmem [shape: f32[64,4], index: 1, kind: input, shape index: {}]   ;;  %s5430_s2 = inlined_call_operand.vmem [shape: bf16[2,4,128], index: 2, kind: input, shape index: {}]   ;;  %s5431_s3 = inlined_call_operand.hbm [shape: bf16[2,128,128], index: 3, kind: input, shape index: {}]   ;;  %s5432_s4 = inlined_call_operand.hbm [shape: bf16[2,128,128], index: 4, kind: input, shape index: {}]   ;;  %s5433_s5 = inlined_call_operand.hbm [shape: bf16[2,128,128], index: 5, kind: input, shape index: {}]   ;;  %s5434_s6 = inlined_call_operand.vmem [shape: f32[2,5,128], index: 6, kind: input, shape index: {}]   ;;  %s5435_s7 = inlined_call_operand.vmem [shape: bf16[128,128], index: 7, kind: input, shape index: {}]   ;;  %s5436_s8 = inlined_call_operand.hbm [shape: bf16[256,128], index: 8, kind: input, shape index: {}]   ;;  %s5437_s9 = inlined_call_operand.vmem [shape: bf16[3,128,128], index: 9, kind: input, shape index: {}]   ;;  %s5438_s10 = inlined_call_operand.vmem [shape: f32[9,256], index: 10, kind: input, shape index: {}]   ;;  %s5439_s11 = inlined_call_operand.vmem [shape: f32[32,128], index: 11, kind: output, shape index: {}]  }
   0x1   :  { %17 = vsyncpa [#allocation5], 0 }
   0x2   :  { %18 = vsyncpa [#allocation8], 0  ;;  %s42_s19 = sshll.u32 %s5432_s4, 4  ;;  %s4043_s20 = smov [#allocation4]   ;;  %s43_s19 = int_to_ptr.hbm [resolvable:$true] %s42_s19 }
   0x3   :  { %s44_s21 = sshll.u32 %s4043_s20, 4  ;;  %s29_s24 = sshll.u32 %s5431_s3, 4  ;;  %s45_s21 = int_to_ptr.vmem [resolvable:$true] %s44_s21  ;;  %s30_s24 = int_to_ptr.hbm [resolvable:$true] %s29_s24 }
   0x4   :  { %s4044_s25 = smov 64   ;;  %s4045_s26 = smov 4  }
   0x5   :  { %50 = dma.hbm_to_vmem [thread:$0]  %s43_s19, 2048, %s45_s21, [#allocation5], %s4044_s25, %s4044_s25, %s4045_s26  }
   0x6   :  { %s4046_s27 = smov [#allocation2]   ;;  %s55_s12 = sshll.u32 %s5433_s5, 4  ;;  %s56_s12 = int_to_ptr.hbm [resolvable:$true] %s55_s12 }
   0x7   :  { %s31_s28 = sshll.u32 %s4046_s27, 4  ;;  %s72_s14 = sshll.u32 %s5436_s8, 4  ;;  %s32_s28 = int_to_ptr.vmem [resolvable:$true] %s31_s28  ;;  %s73_s14 = int_to_ptr.hbm [resolvable:$true] %s72_s14 }
   0x8   :  { %37 = dma.hbm_to_vmem [thread:$0]  %s30_s24, 2048, %s32_s28, [#allocation3], %s4044_s25, %s4044_s25, %s4045_s26  }
   0x9   :  { %s4047_s15 = smov [#allocation6]   ;;  %s4048_s3 = smov [#allocation7]  }
   0xa   :  { %s57_s16 = sshll.u32 %s4047_s15, 4  ;;  %s74_s17 = sshll.u32 %s4048_s3, 4  ;;  %s58_s16 = int_to_ptr.vmem [resolvable:$true] %s57_s16  ;;  %s75_s17 = int_to_ptr.vmem [resolvable:$true] %s74_s17 }
   0xb   :  { %63 = dma.hbm_to_vmem [thread:$0]  %s56_s12, 2048, %s58_s16, [#allocation5], %s4044_s25, %s4044_s25, %s4045_s26  }
   0xc   :  { %80 = dma.hbm_to_vmem [thread:$0]  %s73_s14, 2048, %s75_s17, [#allocation8], %s4044_s25, %s4044_s25, %s4045_s26  }
   0xd   :  { %4037 = dma.done.wait [#allocation3], 2048  }
   0xe   :  { %4038 = vsyncadd [#allocation3], 4294965248 }
   0xf   :  { %4039 = dma.done.wait [#allocation5], 4096  }
  0x10   :  { %4040 = vsyncadd [#allocation5], 4294963200 }
  0x11   :  { %4041 = dma.done.wait [#allocation8], 2048  }
  0x12   :  { %4042 = vsyncadd [#allocation8], 4294965248  ;;  %vm134_vm0 = vcmask 1041408   ;;  %v115_v0 = vld [vmem:[%s5430_s2] sm:$0x3]  ;;  %v108_v2 = vld [vmem:[%s5428_s0 + $0x8] sm:$0xff] }
  0x13   :  { %v107_v1 = vld [vmem:[%s5428_s0] sm:$0xff]  ;;  %v136_v3 = vsel %vm134_vm0, %v115_v0, 0  ;;  %vm121_vm1 = vcmask 31744   ;;  %v109_v5 = vld [vmem:[%s5428_s0 + $0x10] sm:$0xff]  ;;  %v110_v6 = vld [vmem:[%s5428_s0 + $0x18] sm:$0xff] }
  0x14   :  { %v116_v4 = vpack.c.bf16 %v108_v2, %v107_v1  ;;  %145 = vmatpush.bf16.msra.mxu0 %v136_v3  ;;  %v117_v7 = vpack.c.bf16 %v110_v6, %v109_v5  ;;  %v111_v8 = vld [vmem:[%s5428_s0 + $0x20] sm:$0xff]  ;;  %v112_v9 = vld [vmem:[%s5428_s0 + $0x28] sm:$0xff]  ;;  %v113_v11 = vld [vmem:[%s5428_s0 + $0x30] sm:$0xff] }
  0x15   :  { %v118_v10 = vpack.c.bf16 %v112_v9, %v111_v8  ;;  %v114_v12 = vld [vmem:[%s5428_s0 + $0x38] sm:$0xff]  ;;  %v4159_v14 = vld [vmem:[%s5434_s6] sm:$0x1f]  ;;  %v3725_v20 = vld [vmem:[#allocation2 + $0x30] sm:$0xff] }
  0x16   :  { %v119_v13 = vpack.c.bf16 %v114_v12, %v113_v11  ;;  %v4162_v15 = vperm.slane %v4159_v14, 0  ;;  %v3726_v17 = vld [vmem:[#allocation2 + $0x38] sm:$0xff]  ;;  %v3724_v24 = vld [vmem:[#allocation2 + $0x28] sm:$0xff]  ;;  %v3723_v30 = vld [vmem:[#allocation2 + $0x20] sm:$0xff] }
  0x17   :  { %3249 = vmatmul.msk.bf16.vlgmr.msra.gmra.mxu0 %vm121_vm1, %v116_v4  ;;  %670 = vmatpush.bf16.msra.mxu2 %v3726_v17  ;;  %v3722_v37 = vld [vmem:[#allocation2 + $0x18] sm:$0xff]  ;;  %v3721_v46 = vld [vmem:[#allocation2 + $0x10] sm:$0xff]  ;;  %v3720_v57 = vld [vmem:[#allocation2 + $0x8] sm:$0xff] }
  0x18   :  { %v3719_v3 = vld [vmem:[#allocation2] sm:$0xff] }
  0x1b   :  { %671 = vmatpush.bf16.msra.mxu2 %v3725_v20 }
  0x1f   :  { %672 = vmatpush.bf16.msra.mxu2 %v3724_v24 }
  0x23   :  { %673 = vmatpush.bf16.msra.mxu2 %v3723_v30 }
  0x27   :  { %3250 = vmatmul.msk.bf16.gmra.mxu0 %vm121_vm1, %v117_v7  ;;  %674 = vmatpush.bf16.msra.mxu2 %v3722_v37 }
  0x2b   :  { %675 = vmatpush.bf16.msra.mxu2 %v3721_v46 }
  0x2f   :  { %676 = vmatpush.bf16.msra.mxu2 %v3720_v57 }
  0x33   :  { %677 = vmatpush.bf16.msra.mxu2 %v3719_v3 }
  0x37   :  { %3251 = vmatmul.msk.bf16.gmra.mxu0 %vm121_vm1, %v118_v10 }
  0x47   :  { %3252 = vmatmul.msk.bf16.gmra.mxu0 %vm121_vm1, %v119_v13 }
  0x94   :  { %v147_v16 = vpop.f32.mrf.mxu0 }
  0x95   :  { %v4165_v18 = vadd.f32 %v147_v16, %v4162_v15 }
  0x97   :  { %v4168_v19 = vmul.f32 0.70710677, %v4165_v18 }
  0x99   :  { %v183_v21 = vmul.f32 %v4168_v19, %v4168_v19 }
  0x9b   :  { %v4172_v22 = vmin.f32 %v183_v21, 16.0 }
  0x9c   :  { %v149_v23 = vpop.f32.mrf.mxu0 }
  0x9d   :  { %v185_v25 = vmul.f32 2.1237322e-06, %v4172_v22  ;;  %v4176_v26 = vadd.f32 %v149_v23, %v4162_v15  ;;  %v196_v27 = vmul.f32 3.8918573e-05, %v4172_v22 }
  0x9f   :  { %v186_v28 = vadd.f32 0.00028619796, %v185_v25  ;;  %v4180_v29 = vmul.f32 0.70710677, %v4176_v26  ;;  %v197_v31 = vadd.f32 0.001143296, %v196_v27 }
  0xa1   :  { %v223_v32 = vmul.f32 %v4180_v29, %v4180_v29  ;;  %v198_v33 = vmul.f32 %v197_v31, %v4172_v22  ;;  %v187_v34 = vmul.f32 %v186_v28, %v4172_v22 }
  0xa3   :  { %v4186_v35 = vmin.f32 %v223_v32, 16.0  ;;  %v199_v38 = vadd.f32 0.014752088, %v198_v33  ;;  %v188_v43 = vadd.f32 0.0036580483, %v187_v34  ;;  %v3734_v32 = vld [vmem:[#allocation4 + $0x38] sm:$0xff] }
  0xa4   :  { %v152_v36 = vpop.f32.mrf.mxu0  ;;  %603 = vmatpush.bf16.msra.mxu1 %v3734_v32 }
  0xa5   :  { %v225_v39 = vmul.f32 2.1237322e-06, %v4186_v35  ;;  %v4190_v40 = vadd.f32 %v152_v36, %v4162_v15  ;;  %v236_v41 = vmul.f32 3.8918573e-05, %v4186_v35  ;;  %v200_v42 = vmul.f32 %v199_v38, %v4172_v22 }
  0xa6   :  { %v189_v52 = vmul.f32 %v188_v43, %v4172_v22 }
  0xa7   :  { %v226_v44 = vadd.f32 0.00028619796, %v225_v39  ;;  %v4195_v45 = vmul.f32 0.70710677, %v4190_v40  ;;  %v201_v47 = vadd.f32 0.112945676, %v200_v42 }
  0xa8   :  { %v237_v49 = vadd.f32 0.001143296, %v236_v41  ;;  %v190_v63 = vadd.f32 0.05243302, %v189_v52 }
  0xa9   :  { %v227_v48 = vmul.f32 %v226_v44, %v4186_v35  ;;  %v263_v50 = vmul.f32 %v4195_v45, %v4195_v45  ;;  %v202_v51 = vmul.f32 %v201_v47, %v4172_v22  ;;  %v3733_v47 = vld [vmem:[#allocation4 + $0x30] sm:$0xff] }
  0xaa   :  { %v238_v53 = vmul.f32 %v237_v49, %v4186_v35  ;;  %v191_v8 = vmul.f32 %v190_v63, %v4172_v22  ;;  %604 = vmatpush.bf16.msra.mxu1 %v3733_v47 }
  0xab   :  { %v228_v54 = vadd.f32 0.0036580483, %v227_v48  ;;  %v4203_v55 = vmin.f32 %v263_v50, 16.0  ;;  %v203_v58 = vadd.f32 0.4994258, %v202_v51 }
  0xac   :  { %v154_v56 = vpop.f32.mrf.mxu0  ;;  %v239_v60 = vadd.f32 0.014752088, %v238_v53  ;;  %v192_v24 = vadd.f32 0.18741608, %v191_v8 }
  0xad   :  { %v4206_v59 = vadd.f32 %v154_v56, %v4162_v15  ;;  %v204_v61 = vmul.f32 %v203_v58, %v4172_v22  ;;  %v276_v62 = vmul.f32 3.8918573e-05, %v4203_v55  ;;  %v229_v1 = vmul.f32 %v228_v54, %v4186_v35 }
  0xae   :  { %v240_v0 = vmul.f32 %v239_v60, %v4186_v35  ;;  %v265_v11 = vmul.f32 2.1237322e-06, %v4203_v55  ;;  %v193_v42 = vmul.f32 %v192_v24, %v4172_v22 }
  0xaf   :  { %v4213_v2 = vmul.f32 0.70710677, %v4206_v59  ;;  %v4215_v4 = vadd.f32 1.0, %v204_v61  ;;  %v277_v6 = vadd.f32 0.001143296, %v276_v62 }
  0xb0   :  { %v241_v5 = vadd.f32 0.112945676, %v240_v0  ;;  %v230_v10 = vadd.f32 0.05243302, %v229_v1  ;;  %v266_v30 = vadd.f32 0.00028619796, %v265_v11 }
  0xb1   :  { %v303_v7 = vmul.f32 %v4213_v2, %v4213_v2  ;;  %3830 = vrcp.f32 %v4215_v4  ;;  %v278_v16 = vmul.f32 %v277_v6, %v4203_v55  ;;  %v217_v52 = vand.u32 2147483648, %v4215_v4  ;;  %v3732_v1 = vld [vmem:[#allocation4 + $0x28] sm:$0xff]  ;;  %v3731_v11 = vld [vmem:[#allocation4 + $0x20] sm:$0xff] }
  0xb2   :  { %v242_v9 = vmul.f32 %v241_v5, %v4186_v35  ;;  %v231_v28 = vmul.f32 %v230_v10, %v4186_v35  ;;  %v267_v44 = vmul.f32 %v266_v30, %v4203_v55  ;;  %vm211_vm3 = vweird.f32 %v4215_v4  ;;  %605 = vmatpush.bf16.msra.mxu1 %v3732_v1 }
  0xb3   :  { %v4223_v12 = vmin.f32 %v303_v7, 16.0  ;;  %v279_v23 = vadd.f32 0.014752088, %v278_v16  ;;  %v215_v57 = vand.u32 2147483647, %v4215_v4  ;;  %v218_v7 = vor.u32 1.1754944e-38, %v217_v52 }
  0xb4   :  { %v157_v13 = vpop.f32.mrf.mxu0  ;;  %v243_v21 = vadd.f32 0.4994258, %v242_v9  ;;  %v232_v43 = vadd.f32 0.18741608, %v231_v28  ;;  %v194_v58 = vadd.f32 1.1283791, %v193_v42 }
  0xb5   :  { %v4227_v17 = vadd.f32 %v157_v13, %v4162_v15  ;;  %v305_v20 = vmul.f32 2.1237322e-06, %v4223_v12  ;;  %v280_v33 = vmul.f32 %v279_v23, %v4203_v55  ;;  %v316_v53 = vmul.f32 3.8918573e-05, %v4223_v12 }
  0xb6   :  { %v244_v31 = vmul.f32 %v243_v21, %v4186_v35  ;;  %v268_v60 = vadd.f32 0.0036580483, %v267_v44  ;;  %v233_v62 = vmul.f32 %v232_v43, %v4186_v35  ;;  %vm216_vm5 = vcmp.eq.f32.partialorder %v215_v57, 8.507059e+37  ;;  %606 = vmatpush.bf16.msra.mxu1 %v3731_v11 }
  0xb7   :  { %v4231_v25 = vmul.f32 0.70710677, %v4227_v17  ;;  %v3831_v27 = vpop.eup %3830  ;;  %v306_v34 = vadd.f32 0.00028619796, %v305_v20  ;;  %v281_v39 = vadd.f32 0.112945676, %v280_v33  ;;  %v195_v20 = vmul.f32 %v194_v58, %v4168_v19 }
  0xb8   :  { %v207_v36 = vmul.f32 %v3831_v27, %v4215_v4  ;;  %v4239_v38 = vadd.f32 1.0, %v244_v31  ;;  %vm212_vm2 = vweird.f32 %v3831_v27  ;;  %v317_v8 = vadd.f32 0.001143296, %v316_v53 }
  0xb9   :  { %v343_v37 = vmul.f32 %v4231_v25, %v4231_v25  ;;  %v307_v48 = vmul.f32 %v306_v34, %v4223_v12  ;;  %v282_v22 = vmul.f32 %v281_v39, %v4203_v55  ;;  %vm4258_vm4 = vmor %vm211_vm3, %vm212_vm2  ;;  %v234_v21 = vadd.f32 1.1283791, %v233_v62 }
  0xba   :  { %v208_v41 = vsub.f32 1.0, %v207_v36  ;;  %3832 = vrcp.f32 %v4239_v38  ;;  %v318_v16 = vmul.f32 %v317_v8, %v4223_v12  ;;  %v269_v23 = vmul.f32 %v268_v60, %v4203_v55 }
  0xbb   :  { %v4248_v51 = vmin.f32 %v343_v37, 16.0  ;;  %v308_v63 = vadd.f32 0.0036580483, %v307_v48  ;;  %v283_v3 = vadd.f32 0.4994258, %v282_v22  ;;  %v257_v34 = vand.u32 2147483648, %v4239_v38 }
  0xbc   :  { %v159_v46 = vpop.f32.mrf.mxu0  ;;  %v209_v50 = vmul.f32 %v3831_v27, %v208_v41  ;;  %v255_v30 = vand.u32 2147483647, %v4239_v38  ;;  %v319_v36 = vadd.f32 0.014752088, %v318_v16  ;;  %v270_v39 = vadd.f32 0.05243302, %v269_v23 }
  0xbd   :  { %v4246_v49 = vadd.f32 %v159_v46, %v4162_v15  ;;  %v345_v6 = vmul.f32 2.1237322e-06, %v4248_v51  ;;  %v284_v13 = vmul.f32 %v283_v3, %v4203_v55  ;;  %v309_v24 = vmul.f32 %v308_v63, %v4223_v12 }
  0xbe   :  { %v210_v56 = vadd.f32 %v3831_v27, %v209_v50  ;;  %vm251_vm7 = vweird.f32 %v4239_v38  ;;  %v258_v47 = vor.u32 1.1754944e-38, %v257_v34  ;;  %v320_v48 = vmul.f32 %v319_v36, %v4223_v12 }
  0xbf   :  { %v4254_v54 = vmul.f32 0.70710677, %v4246_v49  ;;  %v4275_v31 = vadd.f32 1.0, %v284_v13  ;;  %v310_v41 = vadd.f32 0.05243302, %v309_v24  ;;  %v235_v50 = vmul.f32 %v234_v21, %v4180_v29 }
  0xc0   :  { %v214_v0 = vsel %vm4258_vm4, %v3831_v27, %v210_v56  ;;  %v3833_v5 = vpop.eup %3832  ;;  %v346_v27 = vadd.f32 0.00028619796, %v345_v6  ;;  %vm256_vm9 = vcmp.eq.f32.partialorder %v255_v30, 8.507059e+37  ;;  %v271_v56 = vmul.f32 %v270_v39, %v4203_v55  ;;  %v3730_v30 = vld [vmem:[#allocation4 + $0x18] sm:$0xff] }
  0xc1   :  { %v383_v4 = vmul.f32 %v4254_v54, %v4254_v54  ;;  %v247_v9 = vmul.f32 %v3833_v5, %v4239_v38  ;;  %v219_v35 = vsel %vm216_vm5, %v218_v7, %v214_v0  ;;  %vm252_vm6 = vweird.f32 %v3833_v5  ;;  %607 = vmatpush.bf16.msra.mxu1 %v3730_v30 }
  0xc2   :  { %v220_v33 = vmul.f32 %v219_v35, %v195_v20  ;;  %3834 = vrcp.f32 %v4275_v31  ;;  %v347_v42 = vmul.f32 %v346_v27, %v4248_v51  ;;  %vm253_vm8 = vmor %vm251_vm7, %vm252_vm6  ;;  %v311_v57 = vmul.f32 %v310_v41, %v4223_v12 }
  0xc3   :  { %v248_v28 = vsub.f32 1.0, %v247_v9  ;;  %v4277_v32 = vmin.f32 %v383_v4, 16.0  ;;  %v321_v63 = vadd.f32 0.112945676, %v320_v48  ;;  %v356_v29 = vmul.f32 3.8918573e-05, %v4248_v51 }
  0xc4   :  { %v162_v10 = vpop.f32.mrf.mxu0  ;;  %v3253_v46 = vclamps-f32 %v220_v33, 1.0  ;;  %v348_v61 = vadd.f32 0.0036580483, %v347_v42  ;;  %v167_v0 = vmul.f32 0.5, %v4165_v18  ;;  %v168_v6 = vmul.f32 0.5, %v4176_v26 }
  0xc5   :  { %v4281_v19 = vadd.f32 %v162_v10, %v4162_v15  ;;  %v249_v37 = vmul.f32 %v3833_v5, %v248_v28  ;;  %v385_v44 = vmul.f32 2.1237322e-06, %v4277_v32  ;;  %v272_v4 = vadd.f32 0.18741608, %v271_v56 }
  0xc6   :  { %v503_v3 = vadd.f32 1.0, %v3253_v46  ;;  %v312_v9 = vadd.f32 0.18741608, %v311_v57  ;;  %v322_v35 = vmul.f32 %v321_v63, %v4223_v12  ;;  %v349_v18 = vmul.f32 %v348_v61, %v4248_v51  ;;  %v3728_v61 = vld [vmem:[#allocation4 + $0x8] sm:$0xff] }
  0xc7   :  { %v250_v43 = vadd.f32 %v3833_v5, %v249_v37  ;;  %v4290_v52 = vmul.f32 0.70710677, %v4281_v19  ;;  %v386_v1 = vadd.f32 0.00028619796, %v385_v44  ;;  %v357_v16 = vadd.f32 0.001143296, %v356_v29 }
  0xc8   :  { %v4297_v60 = vpop.eup %3834  ;;  %v511_v20 = vmul.f32 %v503_v3, %v167_v0  ;;  %v323_v21 = vadd.f32 0.4994258, %v322_v35  ;;  %v396_v23 = vmul.f32 3.8918573e-05, %v4277_v32  ;;  %v273_v34 = vmul.f32 %v272_v4, %v4203_v55  ;;  %v3727_v35 = vld [vmem:[#allocation4] sm:$0xff] }
  0xc9   :  { %v254_v53 = vsel %vm253_vm8, %v3833_v5, %v250_v43  ;;  %v287_v5 = vmul.f32 %v4297_v60, %v4275_v31  ;;  %v387_v26 = vmul.f32 %v386_v1, %v4277_v32  ;;  %v358_v33 = vmul.f32 %v357_v16, %v4248_v51  ;;  %v3729_v43 = vld [vmem:[#allocation4 + $0x10] sm:$0xff] }
  0xca   :  { %v259_v58 = vsel %vm256_vm9, %v258_v47, %v254_v53  ;;  %v324_v36 = vmul.f32 %v323_v21, %v4223_v12  ;;  %v397_v37 = vadd.f32 0.001143296, %v396_v23  ;;  %v313_v39 = vmul.f32 %v312_v9, %v4223_v12  ;;  %608 = vmatpush.bf16.msra.mxu1 %v3729_v43 }
  0xcb   :  { %v260_v62 = vmul.f32 %v259_v58, %v235_v50  ;;  %v288_v10 = vsub.f32 1.0, %v287_v5  ;;  %v359_v44 = vadd.f32 0.014752088, %v358_v33  ;;  %v350_v46 = vadd.f32 0.05243302, %v349_v18 }
  0xcc   :  { %v164_v22 = vpop.f32.mrf.mxu0  ;;  %v388_v47 = vadd.f32 0.0036580483, %v387_v26  ;;  %v4324_v48 = vadd.f32 1.0, %v324_v36  ;;  %v398_v50 = vmul.f32 %v397_v37, %v4277_v32  ;;  %vm292_vm10 = vweird.f32 %v4297_v60 }
  0xcd   :  { %v4295_v38 = vadd.f32 %v164_v22, %v4162_v15  ;;  %v423_v15 = vmul.f32 %v4290_v52, %v4290_v52  ;;  %v3254_v8 = vclamps-f32 %v260_v62, 1.0  ;;  %v289_v28 = vmul.f32 %v4297_v60, %v288_v10 }
  0xce   :  { %v360_v12 = vmul.f32 %v359_v44, %v4248_v51  ;;  %v274_v53 = vadd.f32 1.1283791, %v273_v34  ;;  %v297_v56 = vand.u32 2147483648, %v4275_v31  ;;  %3836 = vrcp.f32 %v4324_v48  ;;  %609 = vmatpush.bf16.msra.mxu1 %v3728_v61 }
  0xcf   :  { %v4307_v7 = vmul.f32 0.70710677, %v4295_v38  ;;  %v504_v13 = vadd.f32 1.0, %v3254_v8  ;;  %v4315_v24 = vmin.f32 %v423_v15, 16.0  ;;  %v290_v55 = vadd.f32 %v4297_v60, %v289_v28 }
  0xd0   :  { %vm291_vm11 = vweird.f32 %v4275_v31  ;;  %v295_v58 = vand.u32 2147483647, %v4275_v31  ;;  %v314_v62 = vadd.f32 1.1283791, %v313_v39  ;;  %v361_v29 = vadd.f32 0.112945676, %v360_v12 }
  0xd1   :  { %v463_v11 = vmul.f32 %v4307_v7, %v4307_v7  ;;  %v512_v27 = vmul.f32 %v504_v13, %v168_v6  ;;  %v425_v22 = vmul.f32 2.1237322e-06, %v4315_v24  ;;  %vm4336_vm12 = vmor %vm291_vm11, %vm292_vm10  ;;  %v399_v0 = vadd.f32 0.014752088, %v398_v50 }
  0xd2   :  { %v351_v1 = vmul.f32 %v350_v46, %v4248_v51  ;;  %v389_v3 = vmul.f32 %v388_v47, %v4277_v32  ;;  %v294_v6 = vsel %vm4336_vm12, %v4297_v60, %v290_v55  ;;  %v298_v15 = vor.u32 1.1754944e-38, %v297_v56  ;;  %610 = vmatpush.bf16.msra.mxu1 %v3727_v35 }
  0xd3   :  { %v4322_v41 = vmin.f32 %v463_v11, 16.0  ;;  %v535_v42 = vpack.c.bf16 %v512_v27, %v511_v20  ;;  %v426_v5 = vadd.f32 0.00028619796, %v425_v22  ;;  %v362_v31 = vmul.f32 %v361_v29, %v4248_v51 }
  0xd4   :  { %v400_v8 = vmul.f32 %v399_v0, %v4277_v32  ;;  %v436_v4 = vmul.f32 3.8918573e-05, %v4315_v24  ;;  %v275_v9 = vmul.f32 %v274_v53, %v4195_v45  ;;  %vm296_vm13 = vcmp.eq.f32.partialorder %v295_v58, 8.507059e+37  ;;  %v3837_v11 = vpop.eup %3836 }
  0xd5   :  { %678 = vmatmul.bf16.vlgmr.msra.gmra.mxu2 %v535_v42  ;;  %v465_v57 = vmul.f32 2.1237322e-06, %v4322_v41  ;;  %v476_v18 = vmul.f32 3.8918573e-05, %v4322_v41  ;;  %v299_v13 = vsel %vm296_vm13, %v298_v15, %v294_v6  ;;  %v363_v16 = vadd.f32 0.4994258, %v362_v31 }
  0xd6   :  { %v401_v26 = vadd.f32 0.112945676, %v400_v8  ;;  %v437_v60 = vadd.f32 0.001143296, %v436_v4  ;;  %v352_v20 = vadd.f32 0.18741608, %v351_v1  ;;  %v427_v23 = vmul.f32 %v426_v5, %v4315_v24 }
  0xd7   :  { %v466_v10 = vadd.f32 0.00028619796, %v465_v57  ;;  %v390_v21 = vadd.f32 0.05243302, %v389_v3  ;;  %v327_v27 = vmul.f32 %v3837_v11, %v4324_v48  ;;  %v364_v28 = vmul.f32 %v363_v16, %v4248_v51 }
  0xd8   :  { %v402_v45 = vmul.f32 %v401_v26, %v4277_v32  ;;  %v438_v30 = vmul.f32 %v437_v60, %v4315_v24  ;;  %v477_v33 = vadd.f32 0.001143296, %v476_v18  ;;  %v300_v36 = vmul.f32 %v299_v13, %v275_v9 }
  0xd9   :  { %v467_v34 = vmul.f32 %v466_v10, %v4322_v41  ;;  %v328_v37 = vsub.f32 1.0, %v327_v27  ;;  %v337_v39 = vand.u32 2147483648, %v4324_v48  ;;  %v4357_v42 = vadd.f32 1.0, %v364_v28 }
  0xda   :  { %v403_v43 = vadd.f32 0.4994258, %v402_v45  ;;  %v439_v44 = vadd.f32 0.014752088, %v438_v30  ;;  %v478_v46 = vmul.f32 %v477_v33, %v4322_v41  ;;  %v353_v47 = vmul.f32 %v352_v20, %v4248_v51 }
  0xdb   :  { %v329_v50 = vmul.f32 %v3837_v11, %v328_v37  ;;  %vm332_vm14 = vweird.f32 %v3837_v11  ;;  %v335_v22 = vand.u32 2147483647, %v4324_v48  ;;  %v391_v55 = vmul.f32 %v390_v21, %v4277_v32 }
  0xdc   :  { %v428_v12 = vadd.f32 0.0036580483, %v427_v23  ;;  %vm331_vm15 = vweird.f32 %v4324_v48  ;;  %3838 = vrcp.f32 %v4357_v42  ;;  %v3255_v53 = vclamps-f32 %v300_v36, 1.0 }
  0xdd   :  { %v330_v56 = vadd.f32 %v3837_v11, %v329_v50  ;;  %v404_v57 = vmul.f32 %v403_v43, %v4277_v32  ;;  %v440_v58 = vmul.f32 %v439_v44, %v4315_v24  ;;  %v315_v61 = vmul.f32 %v314_v62, %v4213_v2  ;;  %vm333_vm2 = vmor %vm331_vm15, %vm332_vm14 }
  0xde   :  { %v468_v51 = vadd.f32 0.0036580483, %v467_v34  ;;  %v338_v63 = vor.u32 1.1754944e-38, %v337_v39  ;;  %v479_v29 = vadd.f32 0.014752088, %v478_v46  ;;  %vm336_vm3 = vcmp.eq.f32.partialorder %v335_v22, 8.507059e+37 }
  0xdf   :  { %v334_v0 = vsel %vm333_vm2, %v3837_v11, %v330_v56  ;;  %v4368_v1 = vadd.f32 1.0, %v404_v57  ;;  %v441_v3 = vadd.f32 0.112945676, %v440_v58  ;;  %v354_v48 = vadd.f32 1.1283791, %v353_v47 }
  0xe0   :  { %v392_v5 = vadd.f32 0.18741608, %v391_v55  ;;  %v339_v6 = vsel %vm336_vm3, %v338_v63, %v334_v0  ;;  %v480_v15 = vmul.f32 %v479_v29, %v4322_v41  ;;  %v429_v31 = vmul.f32 %v428_v12, %v4315_v24 }
  0xe1   :  { %v340_v8 = vmul.f32 %v339_v6, %v315_v61  ;;  %v505_v4 = vadd.f32 1.0, %v3255_v53  ;;  %3840 = vrcp.f32 %v4368_v1  ;;  %v469_v62 = vmul.f32 %v468_v51, %v4322_v41 }
  0xe2   :  { %v3839_v2 = vpop.eup %3838  ;;  %v442_v9 = vmul.f32 %v441_v3, %v4315_v24  ;;  %v481_v10 = vadd.f32 0.112945676, %v480_v15  ;;  %v169_v35 = vmul.f32 0.5, %v4190_v40  ;;  %v170_v18 = vmul.f32 0.5, %v4206_v59 }
  0xe3   :  { %v3256_v11 = vclamps-f32 %v340_v8, 1.0  ;;  %v367_v13 = vmul.f32 %v3839_v2, %v4357_v42  ;;  %v355_v16 = vmul.f32 %v354_v48, %v4231_v25  ;;  %v393_v26 = vmul.f32 %v392_v5, %v4277_v32 }
  0xe4   :  { %v443_v60 = vadd.f32 0.4994258, %v442_v9  ;;  %v482_v20 = vmul.f32 %v481_v10, %v4322_v41  ;;  %v430_v21 = vadd.f32 0.05243302, %v429_v31  ;;  %v513_v27 = vmul.f32 %v505_v4, %v169_v35 }
  0xe5   :  { %v506_v23 = vadd.f32 1.0, %v3256_v11  ;;  %v368_v28 = vsub.f32 1.0, %v367_v13  ;;  %v470_v45 = vadd.f32 0.05243302, %v469_v62  ;;  %v377_v30 = vand.u32 2147483648, %v4357_v42 }
  0xe6   :  { %v444_v40 = vmul.f32 %v443_v60, %v4315_v24  ;;  %v483_v59 = vadd.f32 0.4994258, %v482_v20  ;;  %vm372_vm4 = vweird.f32 %v3839_v2  ;;  %v375_v25 = vand.u32 2147483647, %v4357_v42 }
  0xe7   :  { %v3841_v33 = vpop.eup %3840  ;;  %v514_v34 = vmul.f32 %v506_v23, %v170_v18  ;;  %v369_v36 = vmul.f32 %v3839_v2, %v368_v28  ;;  %v394_v32 = vadd.f32 1.1283791, %v393_v26  ;;  %v431_v44 = vmul.f32 %v430_v21, %v4315_v24 }
  0xe8   :  { %v407_v37 = vmul.f32 %v3841_v33, %v4368_v1  ;;  %v4385_v39 = vadd.f32 1.0, %v444_v40  ;;  %v484_v43 = vmul.f32 %v483_v59, %v4322_v41  ;;  %vm371_vm5 = vweird.f32 %v4357_v42 }
  0xe9   :  { %v536_v46 = vpack.c.bf16 %v514_v34, %v513_v27  ;;  %v370_v47 = vadd.f32 %v3839_v2, %v369_v36  ;;  %v471_v50 = vmul.f32 %v470_v45, %v4322_v41  ;;  %vm373_vm6 = vmor %vm371_vm5, %vm372_vm4  ;;  %v378_v22 = vor.u32 1.1754944e-38, %v377_v30 }
  0xea   :  { %v408_v55 = vsub.f32 1.0, %v407_v37  ;;  %3842 = vrcp.f32 %v4385_v39  ;;  %vm376_vm7 = vcmp.eq.f32.partialorder %v375_v25, 8.507059e+37  ;;  %v417_v53 = vand.u32 2147483648, %v4368_v1 }
  0xeb   :  { %683 = vmatmul.bf16.gmra.mxu2 %v536_v46  ;;  %v374_v12 = vsel %vm373_vm6, %v3839_v2, %v370_v47  ;;  %v485_v56 = vadd.f32 1.0, %v484_v43  ;;  %vm412_vm8 = vweird.f32 %v3841_v33  ;;  %v415_v61 = vand.u32 2147483647, %v4368_v1 }
  0xec   :  { %v379_v57 = vsel %vm376_vm7, %v378_v22, %v374_v12  ;;  %v409_v58 = vmul.f32 %v3841_v33, %v408_v55  ;;  %v432_v51 = vadd.f32 0.18741608, %v431_v44  ;;  %v472_v63 = vadd.f32 0.18741608, %v471_v50 }
  0xed   :  { %v380_v42 = vmul.f32 %v379_v57, %v355_v16  ;;  %3844 = vrcp.f32 %v485_v56  ;;  %vm411_vm9 = vweird.f32 %v4368_v1  ;;  %v418_v0 = vor.u32 1.1754944e-38, %v417_v53 }
  0xee   :  { %v410_v29 = vadd.f32 %v3841_v33, %v409_v58  ;;  %vm413_vm10 = vmor %vm411_vm9, %vm412_vm8  ;;  %v395_v48 = vmul.f32 %v394_v32, %v4254_v54  ;;  %vm416_vm11 = vcmp.eq.f32.partialorder %v415_v61, 8.507059e+37  ;;  %v433_v15 = vmul.f32 %v432_v51, %v4315_v24 }
  0xef   :  { %v3257_v5 = vclamps-f32 %v380_v42, 1.0  ;;  %v473_v4 = vmul.f32 %v472_v63, %v4322_v41  ;;  %v171_v9 = vmul.f32 0.5, %v4227_v17  ;;  %v457_v10 = vand.u32 2147483648, %v4385_v39 }
  0xf0   :  { %v3843_v3 = vpop.eup %3842  ;;  %v414_v6 = vsel %vm413_vm10, %v3841_v33, %v410_v29  ;;  %v172_v35 = vmul.f32 0.5, %v4246_v49  ;;  %v434_v13 = vadd.f32 1.1283791, %v433_v15  ;;  %v455_v24 = vand.u32 2147483647, %v4385_v39 }
  0xf1   :  { %v419_v31 = vsel %vm416_vm11, %v418_v0, %v414_v6  ;;  %v447_v8 = vmul.f32 %v3843_v3, %v4385_v39  ;;  %v507_v18 = vadd.f32 1.0, %v3257_v5  ;;  %vm452_vm12 = vweird.f32 %v3843_v3 }
  0xf2   :  { %v420_v2 = vmul.f32 %v419_v31, %v395_v48  ;;  %v474_v26 = vadd.f32 1.1283791, %v473_v4  ;;  %vm451_vm13 = vweird.f32 %v4385_v39  ;;  %v458_v17 = vor.u32 1.1754944e-38, %v457_v10 }
  0xf3   :  { %v3845_v62 = vpop.eup %3844  ;;  %v448_v1 = vsub.f32 1.0, %v447_v8  ;;  %v495_v21 = vand.u32 2147483647, %v485_v56  ;;  %v497_v23 = vand.u32 2147483648, %v485_v56  ;;  %v515_v27 = vmul.f32 %v507_v18, %v171_v9  ;;  %vm453_vm14 = vmor %vm451_vm13, %vm452_vm12 }
  0xf4   :  { %v3258_v54 = vclamps-f32 %v420_v2, 1.0  ;;  %v487_v11 = vmul.f32 %v3845_v62, %v485_v56  ;;  %vm492_vm15 = vweird.f32 %v3845_v62  ;;  %v435_v45 = vmul.f32 %v434_v13, %v4290_v52 }
  0xf5   :  { %v449_v16 = vmul.f32 %v3843_v3, %v448_v1  ;;  %vm456_vm2 = vcmp.eq.f32.partialorder %v455_v24, 8.507059e+37  ;;  %vm491_vm3 = vweird.f32 %v485_v56  ;;  %v498_v36 = vor.u32 1.1754944e-38, %v497_v23 }
  0xf6   :  { %v508_v60 = vadd.f32 1.0, %v3258_v54  ;;  %v488_v41 = vsub.f32 1.0, %v487_v11  ;;  %vm493_vm4 = vmor %vm491_vm3, %vm492_vm15  ;;  %v475_v25 = vmul.f32 %v474_v26, %v4307_v7  ;;  %vm496_vm5 = vcmp.eq.f32.partialorder %v495_v21, 8.507059e+37 }
  0xf7   :  { %v450_v20 = vadd.f32 %v3843_v3, %v449_v16  ;;  %v174_v52 = vmul.f32 0.5, %v4295_v38  ;;  %v173_v50 = vmul.f32 0.5, %v4281_v19  ;;  %v689_v7 = vperm.slane %v4159_v14, 1 }
  0xf8   :  { %v516_v28 = vmul.f32 %v508_v60, %v172_v35  ;;  %v489_v49 = vmul.f32 %v3845_v62, %v488_v41 }
  0xf9   :  { %v454_v30 = vsel %vm453_vm14, %v3843_v3, %v450_v20 }
  0xfa   :  { %v553_v40 = vpack.c.bf16 %v516_v28, %v515_v27  ;;  %v459_v59 = vsel %vm456_vm2, %v458_v17, %v454_v30  ;;  %v490_v33 = vadd.f32 %v3845_v62, %v489_v49 }
  0xfb   :  { %v460_v34 = vmul.f32 %v459_v59, %v435_v45 }
  0xfc   :  { %611 = vmatmul.bf16.vlgmr.msra.gmra.mxu1 %v553_v40  ;;  %v494_v32 = vsel %vm493_vm4, %v3845_v62, %v490_v33 }
  0xfd   :  { %v499_v37 = vsel %vm496_vm5, %v498_v36, %v494_v32  ;;  %v3259_v39 = vclamps-f32 %v460_v34, 1.0 }
  0xfe   :  { %v500_v43 = vmul.f32 %v499_v37, %v475_v25 }
  0xff   :  { %v509_v46 = vadd.f32 1.0, %v3259_v39 }
 0x100   :  { %v3260_v44 = vclamps-f32 %v500_v43, 1.0 }
 0x101   :  { %v517_v55 = vmul.f32 %v509_v46, %v173_v50 }
 0x102   :  { %v510_v47 = vadd.f32 1.0, %v3260_v44 }
 0x104   :  { %v518_v22 = vmul.f32 %v510_v47, %v174_v52 }
 0x106   :  { %v554_v12 = vpack.c.bf16 %v518_v22, %v517_v55 }
 0x10c   :  { %616 = vmatmul.bf16.gmra.mxu1 %v554_v12 }
 0x158   :  { %v679_v53 = vpop.f32.mrf.mxu2 }
 0x160   :  { %v681_v61 = vpop.f32.mrf.mxu2 }
 0x16e   :  { %v684_v6 = vpop.f32.mrf.mxu2 }
 0x176   :  { %v686_v20 = vpop.f32.mrf.mxu2 }
 0x179   :  { %v612_v56 = vpop.f32.mrf.mxu1 }
 0x17a   :  { %v680_v57 = vadd.f32 %v679_v53, %v612_v56 }
 0x17c   :  { %v4409_v58 = vadd.f32 %v689_v7, %v680_v57 }
 0x17e   :  { %v4412_v51 = vmul.f32 0.70710677, %v4409_v58 }
 0x180   :  { %v702_v38 = vmul.f32 %v4412_v51, %v4412_v51 }
 0x181   :  { %v614_v42 = vpop.f32.mrf.mxu1 }
 0x182   :  { %v4416_v19 = vmin.f32 %v702_v38, 16.0  ;;  %v682_v63 = vadd.f32 %v681_v61, %v614_v42 }
 0x184   :  { %v4418_v29 = vadd.f32 %v689_v7, %v682_v63  ;;  %v704_v0 = vmul.f32 2.1237322e-06, %v4416_v19  ;;  %v715_v14 = vmul.f32 3.8918573e-05, %v4416_v19 }
 0x186   :  { %v4423_v3 = vmul.f32 0.70710677, %v4418_v29  ;;  %v705_v48 = vadd.f32 0.00028619796, %v704_v0  ;;  %v716_v5 = vadd.f32 0.001143296, %v715_v14 }
 0x188   :  { %v742_v15 = vmul.f32 %v4423_v3, %v4423_v3  ;;  %v706_v31 = vmul.f32 %v705_v48, %v4416_v19  ;;  %v717_v8 = vmul.f32 %v716_v5, %v4416_v19 }
 0x189   :  { %v617_v4 = vpop.f32.mrf.mxu1 }
 0x18a   :  { %v4429_v2 = vmin.f32 %v742_v15, 16.0  ;;  %v685_v62 = vadd.f32 %v684_v6, %v617_v4  ;;  %v707_v9 = vadd.f32 0.0036580483, %v706_v31  ;;  %v718_v1 = vadd.f32 0.014752088, %v717_v8 }
 0x18c   :  { %v4431_v10 = vadd.f32 %v689_v7, %v685_v62  ;;  %v719_v35 = vmul.f32 %v718_v1, %v4416_v19  ;;  %v744_v54 = vmul.f32 2.1237322e-06, %v4429_v2  ;;  %v755_v18 = vmul.f32 3.8918573e-05, %v4429_v2 }
 0x18d   :  { %v708_v13 = vmul.f32 %v707_v9, %v4416_v19 }
 0x18e   :  { %v4437_v11 = vmul.f32 0.70710677, %v4431_v10  ;;  %v720_v16 = vadd.f32 0.112945676, %v719_v35  ;;  %v745_v24 = vadd.f32 0.00028619796, %v744_v54 }
 0x18f   :  { %v756_v26 = vadd.f32 0.001143296, %v755_v18  ;;  %v709_v49 = vadd.f32 0.05243302, %v708_v13 }
 0x190   :  { %v782_v60 = vmul.f32 %v4437_v11, %v4437_v11  ;;  %v721_v41 = vmul.f32 %v720_v16, %v4416_v19  ;;  %v746_v21 = vmul.f32 %v745_v24, %v4429_v2 }
 0x191   :  { %v619_v17 = vpop.f32.mrf.mxu1  ;;  %v757_v23 = vmul.f32 %v756_v26, %v4429_v2  ;;  %v710_v32 = vmul.f32 %v709_v49, %v4416_v19  ;;  %v3362_v49 = vld [vmem:[%s5430_s2 + $0x2] sm:$0x3] }
 0x192   :  { %v4445_v27 = vmin.f32 %v782_v60, 16.0  ;;  %v687_v28 = vadd.f32 %v686_v20, %v619_v17  ;;  %v722_v45 = vadd.f32 0.4994258, %v721_v41  ;;  %v747_v33 = vadd.f32 0.0036580483, %v746_v21 }
 0x193   :  { %v758_v30 = vadd.f32 0.014752088, %v757_v23  ;;  %v711_v22 = vadd.f32 0.18741608, %v710_v32 }
 0x194   :  { %v4447_v40 = vadd.f32 %v689_v7, %v687_v28  ;;  %v723_v59 = vmul.f32 %v722_v45, %v4416_v19  ;;  %v784_v34 = vmul.f32 2.1237322e-06, %v4445_v27  ;;  %v795_v39 = vmul.f32 3.8918573e-05, %v4445_v27  ;;  %v1055_v45 = vld [vmem:[%s5429_s1] sm:$0xff] }
 0x195   :  { %v759_v36 = vmul.f32 %v758_v30, %v4429_v2  ;;  %v748_v46 = vmul.f32 %v747_v33, %v4429_v2  ;;  %v712_v0 = vmul.f32 %v711_v22, %v4416_v19  ;;  %v1056_v30 = vld [vmem:[%s5429_s1 + $0x8] sm:$0xff] }
 0x196   :  { %v4453_v25 = vmul.f32 0.70710677, %v4447_v40  ;;  %v724_v37 = vadd.f32 1.0, %v723_v59  ;;  %v785_v44 = vadd.f32 0.00028619796, %v784_v34  ;;  %v1083_v34 = vsel %vm134_vm0, %v3362_v49, 0 }
 0x197   :  { %v760_v43 = vadd.f32 0.112945676, %v759_v36  ;;  %v796_v12 = vadd.f32 0.001143296, %v795_v39  ;;  %v749_v7 = vadd.f32 0.05243302, %v748_v46  ;;  %v1065_v36 = vpack.c.bf16 %v1056_v30, %v1055_v45  ;;  %1092 = vmatpush.bf16.msrb.mxu1 %v1083_v34 }
 0x198   :  { %v822_v52 = vmul.f32 %v4453_v25, %v4453_v25  ;;  %3846 = vrcp.f32 %v724_v37  ;;  %v786_v55 = vmul.f32 %v785_v44, %v4445_v27  ;;  %v734_v31 = vand.u32 2147483647, %v724_v37 }
 0x199   :  { %v761_v47 = vmul.f32 %v760_v43, %v4429_v2  ;;  %v797_v56 = vmul.f32 %v796_v12, %v4445_v27  ;;  %v750_v8 = vmul.f32 %v749_v7, %v4429_v2  ;;  %v736_v1 = vand.u32 2147483648, %v724_v37 }
 0x19a   :  { %v4461_v50 = vmin.f32 %v822_v52, 16.0  ;;  %v787_v42 = vadd.f32 0.0036580483, %v786_v55  ;;  %v713_v19 = vadd.f32 1.1283791, %v712_v0  ;;  %vm730_vm7 = vweird.f32 %v724_v37  ;;  %3363 = vmatmul.msk.bf16.vlgmr.msrb.gmra.mxu1 %vm121_vm1, %v1065_v36 }
 0x19b   :  { %v762_v53 = vadd.f32 0.4994258, %v761_v47  ;;  %v798_v14 = vadd.f32 0.014752088, %v797_v56  ;;  %vm4477_vm8 = vcmp.eq.f32.partialorder %v734_v31, 8.507059e+37  ;;  %v737_v20 = vor.u32 1.1754944e-38, %v736_v1 }
 0x19c   :  { %v824_v57 = vmul.f32 2.1237322e-06, %v4461_v50  ;;  %v835_v61 = vmul.f32 3.8918573e-05, %v4461_v50  ;;  %v788_v35 = vmul.f32 %v787_v42, %v4445_v27  ;;  %v751_v26 = vadd.f32 0.18741608, %v750_v8 }
 0x19d   :  { %v763_v38 = vmul.f32 %v762_v53, %v4429_v2  ;;  %v799_v4 = vmul.f32 %v798_v14, %v4445_v27  ;;  %v714_v23 = vmul.f32 %v713_v19, %v4412_v51 }
 0x19e   :  { %v3847_v63 = vpop.eup %3846  ;;  %v836_v48 = vadd.f32 0.001143296, %v835_v61  ;;  %v825_v15 = vadd.f32 0.00028619796, %v824_v57  ;;  %v789_v17 = vadd.f32 0.05243302, %v788_v35 }
 0x19f   :  { %v726_v5 = vmul.f32 %v3847_v63, %v724_v37  ;;  %v4469_v6 = vadd.f32 1.0, %v763_v38  ;;  %vm731_vm6 = vweird.f32 %v3847_v63  ;;  %v800_v54 = vadd.f32 0.112945676, %v799_v4 }
 0x1a0   :  { %v837_v62 = vmul.f32 %v836_v48, %v4461_v50  ;;  %v826_v13 = vmul.f32 %v825_v15, %v4461_v50  ;;  %vm732_vm9 = vmor %vm730_vm7, %vm731_vm6  ;;  %v752_v37 = vmul.f32 %v751_v26, %v4429_v2  ;;  %v790_v22 = vmul.f32 %v789_v17, %v4445_v27 }
 0x1a1   :  { %v727_v9 = vsub.f32 1.0, %v726_v5  ;;  %3848 = vrcp.f32 %v4469_v6  ;;  %v801_v60 = vmul.f32 %v800_v54, %v4445_v27  ;;  %v776_v47 = vand.u32 2147483648, %v4469_v6  ;;  %v1058_v54 = vld [vmem:[%s5429_s1 + $0x18] sm:$0xff] }
 0x1a2   :  { %v838_v16 = vadd.f32 0.014752088, %v837_v62  ;;  %v827_v32 = vadd.f32 0.0036580483, %v826_v13  ;;  %v753_v7 = vadd.f32 1.1283791, %v752_v37  ;;  %vm770_vm10 = vweird.f32 %v4469_v6 }
 0x1a3   :  { %v728_v18 = vmul.f32 %v3847_v63, %v727_v9  ;;  %v802_v28 = vadd.f32 0.4994258, %v801_v60  ;;  %v774_v57 = vand.u32 2147483647, %v4469_v6  ;;  %v694_v61 = vmul.f32 0.5, %v4409_v58 }
 0x1a4   :  { %v839_v21 = vmul.f32 %v838_v16, %v4461_v50  ;;  %v828_v53 = vmul.f32 %v827_v32, %v4461_v50  ;;  %v777_v14 = vor.u32 1.1754944e-38, %v776_v47  ;;  %v791_v48 = vadd.f32 0.18741608, %v790_v22 }
 0x1a5   :  { %v729_v41 = vadd.f32 %v3847_v63, %v728_v18  ;;  %v803_v44 = vmul.f32 %v802_v28, %v4445_v27  ;;  %v754_v15 = vmul.f32 %v753_v7, %v4423_v3  ;;  %vm775_vm12 = vcmp.eq.f32.partialorder %v774_v57, 8.507059e+37  ;;  %v1057_v3 = vld [vmem:[%s5429_s1 + $0x10] sm:$0xff] }
 0x1a6   :  { %v840_v52 = vadd.f32 0.112945676, %v839_v21  ;;  %v829_v5 = vadd.f32 0.05243302, %v828_v53  ;;  %v695_v18 = vmul.f32 0.5, %v4418_v29  ;;  %v1066_v60 = vpack.c.bf16 %v1058_v54, %v1057_v3  ;;  %v1061_v57 = vld [vmem:[%s5429_s1 + $0x30] sm:$0xff] }
 0x1a7   :  { %v3849_v59 = vpop.eup %3848  ;;  %v733_v33 = vsel %vm732_vm9, %v3847_v63, %v729_v41  ;;  %v804_v12 = vadd.f32 1.0, %v803_v44  ;;  %v697_v7 = vmul.f32 0.5, %v4447_v40 }
 0x1a8   :  { %v738_v51 = vsel %vm4477_vm8, %v737_v20, %v733_v33  ;;  %v766_v39 = vmul.f32 %v3849_v59, %v4469_v6  ;;  %v841_v2 = vmul.f32 %v840_v52, %v4461_v50  ;;  %vm771_vm0 = vweird.f32 %v3849_v59 }
 0x1a9   :  { %v739_v43 = vmul.f32 %v738_v51, %v714_v23  ;;  %3850 = vrcp.f32 %v804_v12  ;;  %vm772_vm11 = vmor %vm770_vm10, %vm771_vm0  ;;  %v792_v6 = vmul.f32 %v791_v48, %v4445_v27  ;;  %v830_v1 = vmul.f32 %v829_v5, %v4461_v50 }
 0x1aa   :  { %v767_v46 = vsub.f32 1.0, %v766_v39  ;;  %v842_v63 = vadd.f32 0.4994258, %v841_v2  ;;  %v816_v26 = vand.u32 2147483648, %v804_v12  ;;  %v814_v17 = vand.u32 2147483647, %v804_v12  ;;  %3364 = vmatmul.msk.bf16.gmra.mxu1 %vm121_vm1, %v1066_v60 }
 0x1ab   :  { %v3325_v55 = vclamps-f32 %v739_v43, 1.0  ;;  %v793_v24 = vadd.f32 1.1283791, %v792_v6  ;;  %v831_v27 = vadd.f32 0.18741608, %v830_v1  ;;  %vm810_vm14 = vweird.f32 %v804_v12 }
 0x1ac   :  { %v768_v56 = vmul.f32 %v3849_v59, %v767_v46  ;;  %v843_v8 = vmul.f32 %v842_v63, %v4461_v50  ;;  %v817_v28 = vor.u32 1.1754944e-38, %v816_v26  ;;  %vm815_vm2 = vcmp.eq.f32.partialorder %v814_v17, 8.507059e+37 }
 0x1ad   :  { %v862_v38 = vadd.f32 1.0, %v3325_v55  ;;  %v832_v29 = vmul.f32 %v831_v27, %v4461_v50  ;;  %v794_v45 = vmul.f32 %v793_v24, %v4437_v11  ;;  %v696_v50 = vmul.f32 0.5, %v4431_v10  ;;  %v1059_v55 = vld [vmem:[%s5429_s1 + $0x20] sm:$0xff] }
 0x1ae   :  { %v769_v42 = vadd.f32 %v3849_v59, %v768_v56  ;;  %v844_v62 = vadd.f32 1.0, %v843_v8 }
 0x1af   :  { %v4507_v0 = vmul.f32 %v862_v38, %v694_v61  ;;  %v3851_v9 = vpop.eup %3850  ;;  %v833_v32 = vadd.f32 1.1283791, %v832_v29  ;;  %v1062_v61 = vld [vmem:[%s5429_s1 + $0x38] sm:$0xff] }
 0x1b0   :  { %v773_v31 = vsel %vm772_vm11, %v3849_v59, %v769_v42  ;;  %v806_v19 = vmul.f32 %v3851_v9, %v804_v12  ;;  %3852 = vrcp.f32 %v844_v62  ;;  %vm811_vm13 = vweird.f32 %v3851_v9  ;;  %v1060_v12 = vld [vmem:[%s5429_s1 + $0x28] sm:$0xff] }
 0x1b1   :  { %870 = vadd.xlane.f32.xlu0 %v4507_v0  ;;  %v778_v58 = vsel %vm775_vm12, %v777_v14, %v773_v31  ;;  %vm812_vm15 = vmor %vm810_vm14, %vm811_vm13  ;;  %v856_v36 = vand.u32 2147483648, %v844_v62  ;;  %v854_v37 = vand.u32 2147483647, %v844_v62  ;;  %vm850_vm4 = vweird.f32 %v844_v62 }
 0x1b2   :  { %v779_v4 = vmul.f32 %v778_v58, %v754_v15  ;;  %v807_v16 = vsub.f32 1.0, %v806_v19  ;;  %v834_v11 = vmul.f32 %v833_v32, %v4453_v25  ;;  %v1067_v2 = vpack.c.bf16 %v1060_v12, %v1059_v55 }
 0x1b3   :  { %v857_v52 = vor.u32 1.1754944e-38, %v856_v36  ;;  %vm855_vm6 = vcmp.eq.f32.partialorder %v854_v37, 8.507059e+37  ;;  %v1068_v38 = vpack.c.bf16 %v1062_v61, %v1061_v57  ;;  %v4049_v42 = vmov 128.0  }
 0x1b4   :  { %v3326_v35 = vclamps-f32 %v779_v4, 1.0  ;;  %v808_v20 = vmul.f32 %v3851_v9, %v807_v16  ;;  %3854 = vrcp.f32 %v4049_v42  ;;  %v3361_v4 = vld [vmem:[%s5434_s6 + $0x8] sm:$0x1f] }
 0x1b6   :  { %v863_v13 = vadd.f32 1.0, %v3326_v35  ;;  %v3853_v21 = vpop.eup %3852  ;;  %v809_v23 = vadd.f32 %v3851_v9, %v808_v20 }
 0x1b7   :  { %v846_v49 = vmul.f32 %v3853_v21, %v844_v62  ;;  %vm851_vm3 = vweird.f32 %v3853_v21 }
 0x1b8   :  { %v4521_v41 = vmul.f32 %v863_v13, %v695_v18  ;;  %v813_v30 = vsel %vm812_vm15, %v3851_v9, %v809_v23  ;;  %vm852_vm5 = vmor %vm850_vm4, %vm851_vm3  ;;  %v4555_v9 = vperm.slane %v3361_v4, 0 }
 0x1b9   :  { %v818_v59 = vsel %vm815_vm2, %v817_v28, %v813_v30  ;;  %v847_v33 = vsub.f32 1.0, %v846_v49 }
 0x1ba   :  { %872 = vadd.xlane.f32.xlu0 %v4521_v41  ;;  %v819_v34 = vmul.f32 %v818_v59, %v794_v45  ;;  %3365 = vmatmul.msk.bf16.gmra.mxu1 %vm121_vm1, %v1067_v2  ;;  %v3855_v63 = vpop.eup %3854 }
 0x1bb   :  { %v848_v51 = vmul.f32 %v3853_v21, %v847_v33  ;;  %v879_v40 = vmul.f32 128.0, %v3855_v63  ;;  %vm883_vm7 = vweird.f32 %v3855_v63 }
 0x1bc   :  { %v3327_v39 = vclamps-f32 %v819_v34, 1.0 }
 0x1bd   :  { %v849_v43 = vadd.f32 %v3853_v21, %v848_v51  ;;  %v880_v14 = vsub.f32 1.0, %v879_v40 }
 0x1be   :  { %v864_v44 = vadd.f32 1.0, %v3327_v39 }
 0x1bf   :  { %v853_v46 = vsel %vm852_vm5, %v3853_v21, %v849_v43  ;;  %v881_v48 = vmul.f32 %v3855_v63, %v880_v14 }
 0x1c0   :  { %v868_v47 = vmul.f32 %v864_v44, %v696_v50  ;;  %v858_v22 = vsel %vm855_vm6, %v857_v52, %v853_v46 }
 0x1c1   :  { %v859_v53 = vmul.f32 %v858_v22, %v834_v11  ;;  %v882_v5 = vadd.f32 %v3855_v63, %v881_v48 }
 0x1c2   :  { %874 = vadd.xlane.f32.xlu1 %v868_v47 }
 0x1c3   :  { %v3328_v10 = vclamps-f32 %v859_v53, 1.0  ;;  %v4544_v15 = vsel %vm883_vm7, %v3855_v63, %v882_v5 }
 0x1c5   :  { %v865_v56 = vadd.f32 1.0, %v3328_v10 }
 0x1c7   :  { %v869_v25 = vmul.f32 %v865_v56, %v697_v7 }
 0x1ca   :  { %876 = vadd.xlane.f32.xlu1 %v869_v25  ;;  %3366 = vmatmul.msk.bf16.gmra.mxu1 %vm121_vm1, %v1068_v38 }
 0x217   :  { %v1094_v6 = vpop.f32.mrf.mxu1 }
 0x218   :  { %v4558_v1 = vadd.f32 %v1094_v6, %v4555_v9 }
 0x21a   :  { %v4561_v19 = vmul.f32 0.70710677, %v4558_v1 }
 0x21c   :  { %v1130_v3 = vmul.f32 %v4561_v19, %v4561_v19 }
 0x21e   :  { %v1131_v18 = vmin.f32 %v1130_v3, 16.0 }
 0x21f   :  { %v1096_v26 = vpop.f32.mrf.mxu1 }
 0x220   :  { %v1132_v16 = vmul.f32 2.1237322e-06, %v1131_v18  ;;  %v1143_v24 = vmul.f32 3.8918573e-05, %v1131_v18  ;;  %v4575_v30 = vadd.f32 %v1096_v26, %v4555_v9 }
 0x222   :  { %v1144_v27 = vadd.f32 0.001143296, %v1143_v24  ;;  %v1133_v60 = vadd.f32 0.00028619796, %v1132_v16  ;;  %v4580_v36 = vmul.f32 0.70710677, %v4575_v30 }
 0x224   :  { %v871_v31 = vpop.xlane.xlu0 %870  ;;  %v1145_v20 = vmul.f32 %v1144_v27, %v1131_v18  ;;  %v1134_v28 = vmul.f32 %v1133_v60, %v1131_v18  ;;  %v1170_v37 = vmul.f32 %v4580_v36, %v4580_v36 }
 0x225   :  { %v885_v8 = vmul.f32 %v4544_v15, %v871_v31 }
 0x226   :  { %v1146_v21 = vadd.f32 0.014752088, %v1145_v20  ;;  %v1135_v33 = vadd.f32 0.0036580483, %v1134_v28  ;;  %v4585_v44 = vmin.f32 %v1170_v37, 16.0 }
 0x227   :  { %v4548_v58 = vsub.f32 %v4507_v0, %v885_v8 }
 0x228   :  { %v1147_v29 = vmul.f32 %v1146_v21, %v1131_v18  ;;  %v1136_v43 = vmul.f32 %v1135_v33, %v1131_v18  ;;  %v1183_v55 = vmul.f32 3.8918573e-05, %v4585_v44 }
 0x229   :  { %v893_v62 = vmul.f32 %v4548_v58, %v4548_v58 }
 0x22a   :  { %v1148_v45 = vadd.f32 0.112945676, %v1147_v29  ;;  %v1137_v12 = vadd.f32 0.05243302, %v1136_v43  ;;  %v1184_v10 = vadd.f32 0.001143296, %v1183_v55 }
 0x22b   :  { %897 = vadd.xlane.f32.xlu2 %v893_v62 }
 0x22c   :  { %v1149_v34 = vmul.f32 %v1148_v45, %v1131_v18  ;;  %v1185_v7 = vmul.f32 %v1184_v10, %v4585_v44  ;;  %v1138_v56 = vmul.f32 %v1137_v12, %v1131_v18  ;;  %v4645_v10 = vmul.f32 0.5, %v4558_v1 }
 0x22d   :  { %v873_v35 = vpop.xlane.xlu0 %872 }
 0x22e   :  { %v886_v0 = vmul.f32 %v4544_v15, %v873_v35  ;;  %v1150_v51 = vadd.f32 0.4994258, %v1149_v34  ;;  %v1186_v57 = vadd.f32 0.014752088, %v1185_v7  ;;  %v1139_v5 = vadd.f32 0.18741608, %v1138_v56 }
 0x230   :  { %v4567_v54 = vsub.f32 %v4521_v41, %v886_v0  ;;  %v1099_v41 = vpop.f32.mrf.mxu1  ;;  %v1151_v50 = vmul.f32 %v1150_v51, %v1131_v18  ;;  %v1187_v48 = vmul.f32 %v1186_v57, %v4585_v44 }
 0x231   :  { %v4596_v42 = vadd.f32 %v1099_v41, %v4555_v9 }
 0x232   :  { %v894_v13 = vmul.f32 %v4567_v54, %v4567_v54  ;;  %v1152_v46 = vadd.f32 1.0, %v1151_v50  ;;  %v1188_v4 = vadd.f32 0.112945676, %v1187_v48 }
 0x233   :  { %v4604_v31 = vmul.f32 0.70710677, %v4596_v42 }
 0x234   :  { %899 = vadd.xlane.f32.xlu2 %v894_v13  ;;  %3856 = vrcp.f32 %v1152_v46  ;;  %v1189_v0 = vmul.f32 %v1188_v4, %v4585_v44  ;;  %v1140_v13 = vmul.f32 %v1139_v5, %v1131_v18  ;;  %vm1158_vm1 = vweird.f32 %v1152_v46 }
 0x235   :  { %v875_v17 = vpop.xlane.xlu1 %874  ;;  %v1210_v6 = vmul.f32 %v4604_v31, %v4604_v31  ;;  %v1164_v16 = vand.u32 2147483648, %v1152_v46 }
 0x236   :  { %v887_v23 = vmul.f32 %v4544_v15, %v875_v17  ;;  %v1190_v24 = vadd.f32 0.4994258, %v1189_v0  ;;  %v1141_v41 = vadd.f32 1.1283791, %v1140_v13 }
 0x237   :  { %v4613_v60 = vmin.f32 %v1210_v6, 16.0  ;;  %v1165_v33 = vor.u32 1.1754944e-38, %v1164_v16 }
 0x238   :  { %v4572_v49 = vsub.f32 %v868_v47, %v887_v23  ;;  %v1101_v11 = vpop.f32.mrf.mxu1  ;;  %v1172_v47 = vmul.f32 2.1237322e-06, %v4585_v44  ;;  %v1162_v23 = vand.u32 2147483647, %v1152_v46  ;;  %v1191_v28 = vmul.f32 %v1190_v24, %v4585_v44 }
 0x239   :  { %v4599_v63 = vadd.f32 %v1101_v11, %v4555_v9  ;;  %v1223_v51 = vmul.f32 3.8918573e-05, %v4613_v60  ;;  %v1142_v43 = vmul.f32 %v1141_v41, %v4561_v19 }
 0x23a   :  { %v895_v59 = vmul.f32 %v4572_v49, %v4572_v49  ;;  %v1173_v53 = vadd.f32 0.00028619796, %v1172_v47  ;;  %v3857_v38 = vpop.eup %3856  ;;  %v1192_v45 = vadd.f32 1.0, %v1191_v28  ;;  %vm1163_vm0 = vcmp.eq.f32.partialorder %v1162_v23, 8.507059e+37  ;;  %v3756_v23 = vld [vmem:[#allocation4 + $0x68] sm:$0xff] }
 0x23b   :  { %v1154_v40 = vmul.f32 %v3857_v38, %v1152_v46  ;;  %vm1159_vm8 = vweird.f32 %v3857_v38  ;;  %v1224_v55 = vadd.f32 0.001143296, %v1223_v51 }
 0x23c   :  { %901 = vadd.xlane.f32.xlu0 %v895_v59  ;;  %v1174_v2 = vmul.f32 %v1173_v53, %v4585_v44  ;;  %vm4622_vm9 = vmor %vm1158_vm1, %vm1159_vm8  ;;  %3858 = vrcp.f32 %v1192_v45  ;;  %vm1198_vm10 = vweird.f32 %v1192_v45 }
 0x23d   :  { %v877_v32 = vpop.xlane.xlu1 %876  ;;  %v1155_v8 = vsub.f32 1.0, %v1154_v40  ;;  %v1225_v1 = vmul.f32 %v1224_v55, %v4613_v60 }
 0x23e   :  { %v888_v39 = vmul.f32 %v4544_v15, %v877_v32 }
 0x23f   :  { %v1156_v35 = vmul.f32 %v3857_v38, %v1155_v8  ;;  %v1202_v8 = vand.u32 2147483647, %v1192_v45 }
 0x240   :  { %v4587_v52 = vsub.f32 %v869_v25, %v888_v39  ;;  %v1175_v25 = vadd.f32 0.0036580483, %v1174_v2  ;;  %v1104_v61 = vpop.f32.mrf.mxu1  ;;  %v4648_v2 = vmul.f32 0.5, %v4575_v30 }
 0x241   :  { %v4610_v3 = vadd.f32 %v1104_v61, %v4555_v9  ;;  %v1157_v21 = vadd.f32 %v3857_v38, %v1156_v35  ;;  %vm1203_vm13 = vcmp.eq.f32.partialorder %v1202_v8, 8.507059e+37 }
 0x242   :  { %v896_v22 = vmul.f32 %v4587_v52, %v4587_v52  ;;  %v1176_v14 = vmul.f32 %v1175_v25, %v4585_v44  ;;  %v3859_v19 = vpop.eup %3858  ;;  %v4651_v25 = vmul.f32 0.70710677, %v4599_v63 }
 0x243   :  { %v4616_v20 = vmul.f32 0.70710677, %v4610_v3  ;;  %v1161_v37 = vsel %vm4622_vm9, %v3857_v38, %v1157_v21  ;;  %v1194_v38 = vmul.f32 %v3859_v19, %v1192_v45  ;;  %vm1199_vm11 = vweird.f32 %v3859_v19 }
 0x244   :  { %903 = vadd.xlane.f32.xlu1 %v896_v22  ;;  %v1177_v62 = vadd.f32 0.05243302, %v1176_v14  ;;  %v1166_v46 = vsel %vm1163_vm0, %v1165_v33, %v1161_v37  ;;  %v1204_v14 = vand.u32 2147483648, %v1192_v45  ;;  %v1250_v6 = vmul.f32 %v4651_v25, %v4651_v25  ;;  %vm4667_vm12 = vmor %vm1198_vm10, %vm1199_vm11 }
 0x245   :  { %v1290_v29 = vmul.f32 %v4616_v20, %v4616_v20  ;;  %v1167_v56 = vmul.f32 %v1166_v46, %v1142_v43  ;;  %v1195_v5 = vsub.f32 1.0, %v1194_v38 }
 0x246   :  { %v1178_v27 = vmul.f32 %v1177_v62, %v4585_v44  ;;  %v1205_v28 = vor.u32 1.1754944e-38, %v1204_v14  ;;  %v4674_v51 = vmin.f32 %v1250_v6, 16.0 }
 0x247   :  { %v4631_v32 = vmin.f32 %v1290_v29, 16.0  ;;  %v3367_v62 = vclamps-f32 %v1167_v56, 1.0  ;;  %v1196_v13 = vmul.f32 %v3859_v19, %v1195_v5 }
 0x248   :  { %v1106_v26 = vpop.f32.mrf.mxu1  ;;  %v1179_v34 = vadd.f32 0.18741608, %v1178_v27  ;;  %v1226_v27 = vadd.f32 0.014752088, %v1225_v1 }
 0x249   :  { %v4619_v17 = vadd.f32 %v1106_v26, %v4555_v9  ;;  %v1292_v50 = vmul.f32 2.1237322e-06, %v4631_v32  ;;  %v1303_v22 = vmul.f32 3.8918573e-05, %v4631_v32  ;;  %v1197_v41 = vadd.f32 %v3859_v19, %v1196_v13 }
 0x24a   :  { %v1180_v47 = vmul.f32 %v1179_v34, %v4585_v44  ;;  %v1450_v46 = vadd.f32 1.0, %v3367_v62 }
 0x24b   :  { %v4629_v59 = vmul.f32 0.70710677, %v4619_v17  ;;  %v1293_v12 = vadd.f32 0.00028619796, %v1292_v50  ;;  %v1304_v7 = vadd.f32 0.001143296, %v1303_v22 }
 0x24c   :  { %v1181_v61 = vadd.f32 1.1283791, %v1180_v47  ;;  %v1212_v22 = vmul.f32 2.1237322e-06, %v4613_v60  ;;  %v4697_v5 = vmul.f32 %v1450_v46, %v4645_v10 }
 0x24d   :  { %v1330_v39 = vmul.f32 %v4629_v59, %v4629_v59  ;;  %v1294_v44 = vmul.f32 %v1293_v12, %v4631_v32  ;;  %v1305_v40 = vmul.f32 %v1304_v7, %v4631_v32 }
 0x24e   :  { %v1182_v21 = vmul.f32 %v1181_v61, %v4580_v36  ;;  %v1213_v8 = vadd.f32 0.00028619796, %v1212_v22 }
 0x24f   :  { %v4642_v53 = vmin.f32 %v1330_v39, 16.0  ;;  %v1295_v30 = vadd.f32 0.0036580483, %v1294_v44  ;;  %v1306_v4 = vadd.f32 0.014752088, %v1305_v40  ;;  %v1201_v39 = vsel %vm4667_vm12, %v3859_v19, %v1197_v41  ;;  %v3758_v44 = vld [vmem:[#allocation4 + $0x78] sm:$0xff] }
 0x250   :  { %v1109_v11 = vpop.f32.mrf.mxu1  ;;  %v1206_v47 = vsel %vm1203_vm13, %v1205_v28, %v1201_v39  ;;  %v1252_v19 = vmul.f32 2.1237322e-06, %v4674_v51  ;;  %1552 = vmatpush.bf16.msrb.mxu2 %v3758_v44 }
 0x251   :  { %v1343_v57 = vmul.f32 3.8918573e-05, %v4642_v53  ;;  %v1296_v35 = vmul.f32 %v1295_v30, %v4631_v32  ;;  %v1307_v16 = vmul.f32 %v1306_v4, %v4631_v32  ;;  %v4663_v24 = vadd.f32 %v1109_v11, %v4555_v9  ;;  %v3757_v30 = vld [vmem:[#allocation4 + $0x70] sm:$0xff] }
 0x252   :  { %v1332_v36 = vmul.f32 2.1237322e-06, %v4642_v53  ;;  %v1227_v11 = vmul.f32 %v1226_v27, %v4613_v60  ;;  %v1207_v12 = vmul.f32 %v1206_v47, %v1182_v21  ;;  %v3755_v47 = vld [vmem:[#allocation4 + $0x60] sm:$0xff] }
 0x253   :  { %v1344_v48 = vadd.f32 0.001143296, %v1343_v57  ;;  %v1297_v18 = vadd.f32 0.05243302, %v1296_v35  ;;  %v1308_v33 = vadd.f32 0.112945676, %v1307_v16 }
 0x254   :  { %v4672_v34 = vmul.f32 0.70710677, %v4663_v24  ;;  %v1333_v55 = vadd.f32 0.00028619796, %v1332_v36  ;;  %v3368_v40 = vclamps-f32 %v1207_v12, 1.0  ;;  %1553 = vmatpush.bf16.msrb.mxu2 %v3757_v30 }
 0x255   :  { %v1345_v0 = vmul.f32 %v1344_v48, %v4642_v53  ;;  %v1298_v37 = vmul.f32 %v1297_v18, %v4631_v32  ;;  %v1309_v43 = vmul.f32 %v1308_v33, %v4631_v32  ;;  %v1228_v48 = vadd.f32 0.112945676, %v1227_v11 }
 0x256   :  { %v1334_v61 = vmul.f32 %v1333_v55, %v4642_v53  ;;  %v1451_v6 = vadd.f32 1.0, %v3368_v40  ;;  %v1214_v18 = vmul.f32 %v1213_v8, %v4613_v60  ;;  %v1253_v33 = vadd.f32 0.00028619796, %v1252_v19 }
 0x257   :  { %v1346_v29 = vadd.f32 0.014752088, %v1345_v0  ;;  %v1310_v7 = vadd.f32 0.4994258, %v1309_v43  ;;  %v1299_v57 = vadd.f32 0.18741608, %v1298_v37  ;;  %v1229_v28 = vmul.f32 %v1228_v48, %v4613_v60 }
 0x258   :  { %v1111_v26 = vpop.f32.mrf.mxu1  ;;  %v1335_v4 = vadd.f32 0.0036580483, %v1334_v61  ;;  %v4708_v10 = vmul.f32 %v1451_v6, %v4648_v2  ;;  %1554 = vmatpush.bf16.msrb.mxu2 %v3756_v23  ;;  %v4723_v12 = vadd.f32 0.0036580483, %v1214_v18  ;;  %v1254_v44 = vmul.f32 %v1253_v33, %v4674_v51 }
 0x259   :  { %v4679_v45 = vadd.f32 %v1111_v26, %v4555_v9  ;;  %v1347_v50 = vmul.f32 %v1346_v29, %v4642_v53  ;;  %v1370_v9 = vmul.f32 %v4672_v34, %v4672_v34  ;;  %v1311_v1 = vmul.f32 %v1310_v7, %v4631_v32 }
 0x25a   :  { %v1300_v16 = vmul.f32 %v1299_v57, %v4631_v32  ;;  %v1336_v26 = vmul.f32 %v1335_v4, %v4642_v53  ;;  %v1483_v39 = vpack.c.bf16 %v4708_v10, %v4697_v5  ;;  %v1230_v55 = vadd.f32 0.4994258, %v1229_v28  ;;  %v3754_v4 = vld [vmem:[#allocation4 + $0x58] sm:$0xff]  ;;  %v3772_v5 = vld [vmem:[%s5435_s7 + $0x28] sm:$0xff]  ;;  %v3771_v10 = vld [vmem:[%s5435_s7 + $0x20] sm:$0xff] }
 0x25b   :  { %v1348_v56 = vadd.f32 0.112945676, %v1347_v50  ;;  %v4692_v38 = vmul.f32 0.70710677, %v4679_v45  ;;  %v4699_v62 = vmin.f32 %v1370_v9, 16.0  ;;  %v1312_v35 = vadd.f32 1.0, %v1311_v1 }
 0x25c   :  { %v1337_v29 = vadd.f32 0.05243302, %v1336_v26  ;;  %v1301_v2 = vadd.f32 1.1283791, %v1300_v16  ;;  %v1263_v30 = vmul.f32 3.8918573e-05, %v4674_v51  ;;  %1555 = vmatpush.bf16.msrb.mxu2 %v3755_v47 }
 0x25d   :  { %v1349_v14 = vmul.f32 %v1348_v56, %v4642_v53  ;;  %v1410_v13 = vmul.f32 %v4692_v38, %v4692_v38  ;;  %v1372_v27 = vmul.f32 2.1237322e-06, %v4699_v62  ;;  %v1383_v21 = vmul.f32 3.8918573e-05, %v4699_v62  ;;  %v3752_v26 = vld [vmem:[#allocation4 + $0x48] sm:$0xff] }
 0x25e   :  { %3860 = vrcp.f32 %v1312_v35  ;;  %v1338_v43 = vmul.f32 %v1337_v29, %v4642_v53  ;;  %v1322_v7 = vand.u32 2147483647, %v1312_v35  ;;  %v1302_v40 = vmul.f32 %v1301_v2, %v4616_v20 }
 0x25f   :  { %v1350_v0 = vadd.f32 0.4994258, %v1349_v14  ;;  %v1373_v32 = vadd.f32 0.00028619796, %v1372_v27  ;;  %v4713_v37 = vmin.f32 %v1410_v13, 16.0  ;;  %v1324_v14 = vand.u32 2147483648, %v1312_v35 }
 0x260   :  { %v1384_v36 = vadd.f32 0.001143296, %v1383_v21  ;;  %v1339_v19 = vadd.f32 0.18741608, %v1338_v43  ;;  %vm1318_vm14 = vweird.f32 %v1312_v35  ;;  %vm4733_vm2 = vcmp.eq.f32.partialorder %v1322_v7, 8.507059e+37  ;;  %1556 = vmatpush.bf16.msrb.mxu2 %v3754_v4 }
 0x261   :  { %v1351_v41 = vmul.f32 %v1350_v0, %v4642_v53  ;;  %v1374_v11 = vmul.f32 %v1373_v32, %v4699_v62  ;;  %v1412_v46 = vmul.f32 2.1237322e-06, %v4713_v37  ;;  %v1423_v56 = vmul.f32 3.8918573e-05, %v4713_v37 }
 0x262   :  { %v1385_v22 = vmul.f32 %v1384_v36, %v4699_v62  ;;  %v1231_v0 = vmul.f32 %v1230_v55, %v4613_v60  ;;  %v1340_v20 = vmul.f32 %v1339_v19, %v4642_v53  ;;  %v1325_v18 = vor.u32 1.1754944e-38, %v1324_v14  ;;  %v3753_v53 = vld [vmem:[#allocation4 + $0x50] sm:$0xff] }
 0x263   :  { %v4718_v50 = vadd.f32 1.0, %v1351_v41  ;;  %v1375_v57 = vadd.f32 0.0036580483, %v1374_v11  ;;  %v1413_v61 = vadd.f32 0.00028619796, %v1412_v46 }
 0x264   :  { %v3861_v9 = vpop.eup %3860  ;;  %v1386_v6 = vadd.f32 0.014752088, %v1385_v22  ;;  %v1424_v16 = vadd.f32 0.001143296, %v1423_v56  ;;  %v4747_v36 = vadd.f32 1.0, %v1231_v0  ;;  %1557 = vmatpush.bf16.msrb.mxu2 %v3753_v53 }
 0x265   :  { %3862 = vrcp.f32 %v4718_v50  ;;  %v1314_v1 = vmul.f32 %v3861_v9, %v1312_v35  ;;  %v1376_v48 = vmul.f32 %v1375_v57, %v4699_v62  ;;  %v1414_v8 = vmul.f32 %v1413_v61, %v4713_v37 }
 0x266   :  { %vm1319_vm15 = vweird.f32 %v3861_v9  ;;  %v1387_v21 = vmul.f32 %v1386_v6, %v4699_v62  ;;  %v1364_v29 = vand.u32 2147483648, %v4718_v50  ;;  %v1425_v41 = vmul.f32 %v1424_v16, %v4713_v37 }
 0x267   :  { %v1315_v13 = vsub.f32 1.0, %v1314_v1  ;;  %v1415_v27 = vadd.f32 0.0036580483, %v1414_v8  ;;  %vm4741_vm3 = vmor %vm1318_vm14, %vm1319_vm15  ;;  %vm1358_vm4 = vweird.f32 %v4718_v50  ;;  %v1377_v33 = vadd.f32 0.05243302, %v1376_v48 }
 0x268   :  { %v1388_v11 = vadd.f32 0.112945676, %v1387_v21  ;;  %v1426_v46 = vadd.f32 0.014752088, %v1425_v41  ;;  %v1341_v47 = vadd.f32 1.1283791, %v1340_v20  ;;  %3864 = vrcp.f32 %v4747_v36  ;;  %1558 = vmatpush.bf16.msrb.mxu2 %v3752_v26 }
 0x269   :  { %v1316_v28 = vmul.f32 %v3861_v9, %v1315_v13  ;;  %v1416_v43 = vmul.f32 %v1415_v27, %v4713_v37  ;;  %v1362_v55 = vand.u32 2147483647, %v4718_v50  ;;  %v1365_v56 = vor.u32 1.1754944e-38, %v1364_v29 }
 0x26a   :  { %v1389_v19 = vmul.f32 %v1388_v11, %v4699_v62  ;;  %v1427_v57 = vmul.f32 %v1426_v46, %v4713_v37  ;;  %v1378_v14 = vmul.f32 %v1377_v33, %v4699_v62  ;;  %v1255_v0 = vadd.f32 0.0036580483, %v1254_v44 }
 0x26b   :  { %v3863_v23 = vpop.eup %3862  ;;  %v1317_v2 = vadd.f32 %v3861_v9, %v1316_v28  ;;  %v1342_v13 = vmul.f32 %v1341_v47, %v4629_v59  ;;  %vm1363_vm7 = vcmp.eq.f32.partialorder %v1362_v55, 8.507059e+37  ;;  %v1264_v21 = vadd.f32 0.001143296, %v1263_v30  ;;  %v3751_v30 = vld [vmem:[#allocation4 + $0x40] sm:$0xff]  ;;  %v3742_v55 = vld [vmem:[#allocation6 + $0x38] sm:$0xff] }
 0x26c   :  { %v1354_v32 = vmul.f32 %v3863_v23, %v4718_v50  ;;  %vm1359_vm5 = vweird.f32 %v3863_v23  ;;  %v1390_v4 = vadd.f32 0.4994258, %v1389_v19  ;;  %v1428_v6 = vadd.f32 0.112945676, %v1427_v57  ;;  %1559 = vmatpush.bf16.msrb.mxu2 %v3751_v30  ;;  %1034 = vmatpush.bf16.msra.mxu3 %v3742_v55 }
 0x26d   :  { %v1321_v7 = vsel %vm4741_vm3, %v3861_v9, %v1317_v2  ;;  %vm4761_vm6 = vmor %vm1358_vm4, %vm1359_vm5  ;;  %v1417_v9 = vadd.f32 0.05243302, %v1416_v43  ;;  %v1216_v50 = vmul.f32 %v4723_v12, %v4613_v60  ;;  %v1256_v2 = vmul.f32 %v1255_v0, %v4674_v51 }
 0x26e   :  { %v1355_v22 = vsub.f32 1.0, %v1354_v32  ;;  %v1326_v61 = vsel %vm4733_vm2, %v1325_v18, %v1321_v7  ;;  %v1391_v27 = vmul.f32 %v1390_v4, %v4699_v62  ;;  %v1379_v18 = vadd.f32 0.18741608, %v1378_v14  ;;  %v4773_v35 = vpop.eup %3864 }
 0x26f   :  { %v1327_v48 = vmul.f32 %v1326_v61, %v1302_v40  ;;  %v1429_v40 = vmul.f32 %v1428_v6, %v4713_v37  ;;  %v1418_v59 = vmul.f32 %v1417_v9, %v4713_v37  ;;  %v1118_v32 = vmul.f32 0.5, %v4610_v3  ;;  %v3741_v9 = vld [vmem:[#allocation6 + $0x30] sm:$0xff] }
 0x270   :  { %v1356_v1 = vmul.f32 %v3863_v23, %v1355_v22  ;;  %v1392_v29 = vadd.f32 1.0, %v1391_v27  ;;  %v1217_v43 = vadd.f32 0.05243302, %v1216_v50  ;;  %v1119_v11 = vmul.f32 0.5, %v4619_v17  ;;  %1035 = vmatpush.bf16.msra.mxu3 %v3741_v9 }
 0x271   :  { %v3371_v20 = vclamps-f32 %v1327_v48, 1.0  ;;  %v1430_v41 = vadd.f32 0.4994258, %v1429_v40  ;;  %v1380_v47 = vmul.f32 %v1379_v18, %v4699_v62  ;;  %v1419_v22 = vadd.f32 0.18741608, %v1418_v59 }
 0x272   :  { %v1357_v16 = vadd.f32 %v3863_v23, %v1356_v1  ;;  %3866 = vrcp.f32 %v1392_v29  ;;  %v1234_v7 = vmul.f32 %v4773_v35, %v4747_v36  ;;  %v1257_v61 = vadd.f32 0.05243302, %v1256_v2 }
 0x273   :  { %v1454_v33 = vadd.f32 1.0, %v3371_v20  ;;  %v1431_v12 = vmul.f32 %v1430_v41, %v4713_v37  ;;  %v1218_v62 = vmul.f32 %v1217_v43, %v4613_v60  ;;  %v1381_v48 = vadd.f32 1.1283791, %v1380_v47  ;;  %v3739_v43 = vld [vmem:[#allocation6 + $0x20] sm:$0xff] }
 0x274   :  { %v1361_v28 = vsel %vm4761_vm6, %v3863_v23, %v1357_v16  ;;  %v1265_v23 = vmul.f32 %v1264_v21, %v4674_v51  ;;  %v1420_v8 = vmul.f32 %v1419_v22, %v4713_v37  ;;  %v1235_v4 = vsub.f32 1.0, %v1234_v7  ;;  %v3740_v37 = vld [vmem:[#allocation6 + $0x28] sm:$0xff] }
 0x275   :  { %v1366_v44 = vsel %vm1363_vm7, %v1365_v56, %v1361_v28  ;;  %v4781_v3 = vadd.f32 1.0, %v1431_v12  ;;  %v1462_v19 = vmul.f32 %v1454_v33, %v1118_v32  ;;  %v1402_v16 = vand.u32 2147483647, %v1392_v29  ;;  %1036 = vmatpush.bf16.msra.mxu3 %v3740_v37 }
 0x276   :  { %v1367_v53 = vmul.f32 %v1366_v44, %v1342_v13  ;;  %v1266_v56 = vadd.f32 0.014752088, %v1265_v23  ;;  %v1258_v13 = vmul.f32 %v1257_v61, %v4674_v51  ;;  %v1404_v26 = vand.u32 2147483648, %v1392_v29 }
 0x277   :  { %3868 = vrcp.f32 %v4781_v3  ;;  %vm1398_vm1 = vweird.f32 %v1392_v29  ;;  %v1219_v21 = vadd.f32 0.18741608, %v1218_v62  ;;  %v1382_v50 = vmul.f32 %v1381_v48, %v4672_v34  ;;  %v3738_v62 = vld [vmem:[#allocation6 + $0x18] sm:$0xff] }
 0x278   :  { %v3372_v46 = vclamps-f32 %v1367_v53, 1.0  ;;  %v1267_v17 = vmul.f32 %v1266_v56, %v4674_v51  ;;  %v3867_v14 = vpop.eup %3866  ;;  %v1421_v28 = vadd.f32 1.1283791, %v1420_v8  ;;  %v1236_v18 = vmul.f32 %v4773_v35, %v1235_v4 }
 0x279   :  { %v1394_v0 = vmul.f32 %v3867_v14, %v1392_v29  ;;  %vm1399_vm8 = vweird.f32 %v3867_v14  ;;  %v1444_v41 = vand.u32 2147483648, %v4781_v3  ;;  %vm4799_vm0 = vcmp.eq.f32.partialorder %v1402_v16, 8.507059e+37  ;;  %1037 = vmatpush.bf16.msra.mxu3 %v3739_v43 }
 0x27a   :  { %v1455_v57 = vadd.f32 1.0, %v3372_v46  ;;  %v1268_v27 = vadd.f32 0.112945676, %v1267_v17  ;;  %vm4795_vm9 = vmor %vm1398_vm1, %vm1399_vm8  ;;  %v1405_v34 = vor.u32 1.1754944e-38, %v1404_v26  ;;  %vm1438_vm10 = vweird.f32 %v4781_v3 }
 0x27b   :  { %v1395_v20 = vsub.f32 1.0, %v1394_v0  ;;  %v1442_v53 = vand.u32 2147483647, %v4781_v3  ;;  %v1220_v23 = vmul.f32 %v1219_v21, %v4613_v60  ;;  %vm1238_vm12 = vweird.f32 %v4747_v36 }
 0x27c   :  { %v1463_v1 = vmul.f32 %v1455_v57, %v1119_v11  ;;  %v1269_v32 = vmul.f32 %v1268_v27, %v4674_v51  ;;  %v1242_v11 = vand.u32 2147483647, %v4747_v36  ;;  %v1244_v46 = vand.u32 2147483648, %v4747_v36 }
 0x27d   :  { %v3869_v40 = vpop.eup %3868  ;;  %v1396_v44 = vmul.f32 %v3867_v14, %v1395_v20  ;;  %vm1239_vm13 = vweird.f32 %v4773_v35  ;;  %v1422_v7 = vmul.f32 %v1421_v28, %v4692_v38  ;;  %v1237_v57 = vadd.f32 %v4773_v35, %v1236_v18  ;;  %1038 = vmatpush.bf16.msra.mxu3 %v3738_v62  ;;  %v3737_v20 = vld [vmem:[#allocation6 + $0x10] sm:$0xff]  ;;  %v3748_v38 = vld [vmem:[#allocation2 + $0x68] sm:$0xff] }
 0x27e   :  { %v1502_v6 = vpack.c.bf16 %v1463_v1, %v1462_v19  ;;  %v1434_v59 = vmul.f32 %v3869_v40, %v4781_v3  ;;  %vm1439_vm11 = vweird.f32 %v3869_v40  ;;  %v1270_v12 = vadd.f32 0.4994258, %v1269_v32  ;;  %vm4825_vm2 = vmor %vm1238_vm12, %vm1239_vm13 }
 0x27f   :  { %v1397_v30 = vadd.f32 %v3867_v14, %v1396_v44  ;;  %vm4818_vm14 = vmor %vm1438_vm10, %vm1439_vm11  ;;  %v1445_v19 = vor.u32 1.1754944e-38, %v1444_v41  ;;  %vm1443_vm15 = vcmp.eq.f32.partialorder %v1442_v53, 8.507059e+37  ;;  %v1221_v3 = vadd.f32 1.1283791, %v1220_v23 }
 0x280   :  { %1560 = vmatmul.bf16.vlgmr.msrb.gmra.mxu2 %v1502_v6  ;;  %v1435_v2 = vsub.f32 1.0, %v1434_v59  ;;  %v1271_v55 = vmul.f32 %v1270_v12, %v4674_v51  ;;  %v1120_v9 = vmul.f32 0.5, %v4663_v24  ;;  %v1245_v6 = vor.u32 1.1754944e-38, %v1244_v46 }
 0x281   :  { %v1401_v47 = vsel %vm4795_vm9, %v3867_v14, %v1397_v30  ;;  %v1259_v14 = vadd.f32 0.18741608, %v1258_v13  ;;  %v1241_v36 = vsel %vm4825_vm2, %v4773_v35, %v1237_v57  ;;  %vm1243_vm3 = vcmp.eq.f32.partialorder %v1242_v11, 8.507059e+37  ;;  %1039 = vmatpush.bf16.msra.mxu3 %v3737_v20  ;;  %v3736_v35 = vld [vmem:[#allocation6 + $0x8] sm:$0xff] }
 0x282   :  { %v1436_v22 = vmul.f32 %v3869_v40, %v1435_v2  ;;  %v1406_v60 = vsel %vm4799_vm0, %v1405_v34, %v1401_v47  ;;  %v1272_v17 = vadd.f32 1.0, %v1271_v55  ;;  %v1222_v27 = vmul.f32 %v1221_v3, %v4604_v31  ;;  %v3735_v34 = vld [vmem:[#allocation6] sm:$0xff]  ;;  %v3750_v55 = vld [vmem:[#allocation2 + $0x78] sm:$0xff] }
 0x283   :  { %v1407_v61 = vmul.f32 %v1406_v60, %v1382_v50  ;;  %v1260_v16 = vmul.f32 %v1259_v14, %v4674_v51  ;;  %v1246_v50 = vsel %vm1243_vm3, %v1245_v6, %v1241_v36  ;;  %v1116_v60 = vmul.f32 0.5, %v4596_v42 }
 0x284   :  { %v1437_v1 = vadd.f32 %v3869_v40, %v1436_v22  ;;  %3870 = vrcp.f32 %v1272_v17  ;;  %v1247_v32 = vmul.f32 %v1246_v50, %v1222_v27  ;;  %v1284_v29 = vand.u32 2147483648, %v1272_v17  ;;  %v3746_v50 = vld [vmem:[#allocation2 + $0x58] sm:$0xff] }
 0x285   :  { %v3373_v48 = vclamps-f32 %v1407_v61, 1.0  ;;  %v1261_v59 = vadd.f32 1.1283791, %v1260_v16  ;;  %1040 = vmatpush.bf16.msra.mxu3 %v3736_v35  ;;  %vm1278_vm4 = vweird.f32 %v1272_v17  ;;  %v1117_v61 = vmul.f32 0.5, %v4599_v63  ;;  %v3747_v63 = vld [vmem:[#allocation2 + $0x60] sm:$0xff] }
 0x286   :  { %v1441_v8 = vsel %vm4818_vm14, %v3869_v40, %v1437_v1  ;;  %v1121_v40 = vmul.f32 0.5, %v4679_v45  ;;  %v1282_v45 = vand.u32 2147483647, %v1272_v17  ;;  %v1285_v12 = vor.u32 1.1754944e-38, %v1284_v29 }
 0x287   :  { %v1446_v4 = vsel %vm1443_vm15, %v1445_v19, %v1441_v8  ;;  %v1456_v13 = vadd.f32 1.0, %v3373_v48  ;;  %v1262_v30 = vmul.f32 %v1261_v59, %v4651_v25  ;;  %v3369_v43 = vclamps-f32 %v1247_v32, 1.0 }
 0x288   :  { %v1447_v0 = vmul.f32 %v1446_v4, %v1422_v7  ;;  %vm1283_vm7 = vcmp.eq.f32.partialorder %v1282_v45, 8.507059e+37  ;;  %v3744_v45 = vld [vmem:[#allocation2 + $0x48] sm:$0xff] }
 0x289   :  { %v1464_v44 = vmul.f32 %v1456_v13, %v1120_v9  ;;  %1041 = vmatpush.bf16.msra.mxu3 %v3735_v34  ;;  %v1452_v57 = vadd.f32 1.0, %v3369_v43 }
 0x28a   :  { %v3374_v21 = vclamps-f32 %v1447_v0, 1.0  ;;  %v3871_v28 = vpop.eup %3870 }
 0x28b   :  { %v1274_v41 = vmul.f32 %v3871_v28, %v1272_v17  ;;  %vm1279_vm5 = vweird.f32 %v3871_v28  ;;  %v3749_v17 = vld [vmem:[#allocation2 + $0x70] sm:$0xff]  ;;  %v4843_v48 = vmul.f32 %v1452_v57, %v1116_v60 }
 0x28c   :  { %v1457_v18 = vadd.f32 1.0, %v3374_v21  ;;  %vm1280_vm6 = vmor %vm1278_vm4, %vm1279_vm5 }
 0x28d   :  { %v1275_v31 = vsub.f32 1.0, %v1274_v41  ;;  %1619 = vmatpush.bf16.msrb.mxu3 %v3750_v55 }
 0x28e   :  { %v1465_v51 = vmul.f32 %v1457_v18, %v1121_v40 }
 0x28f   :  { %v1276_v53 = vmul.f32 %v3871_v28, %v1275_v31 }
 0x290   :  { %v1503_v33 = vpack.c.bf16 %v1465_v51, %v1464_v44  ;;  %v3745_v44 = vld [vmem:[#allocation2 + $0x50] sm:$0xff] }
 0x291   :  { %v1277_v11 = vadd.f32 %v3871_v28, %v1276_v53  ;;  %1620 = vmatpush.bf16.msrb.mxu3 %v3749_v17 }
 0x292   :  { %1565 = vmatmul.bf16.gmra.mxu2 %v1503_v33 }
 0x293   :  { %v1281_v7 = vsel %vm1280_vm6, %v3871_v28, %v1277_v11 }
 0x294   :  { %v1286_v56 = vsel %vm1283_vm7, %v1285_v12, %v1281_v7  ;;  %v3743_v12 = vld [vmem:[#allocation2 + $0x40] sm:$0xff] }
 0x295   :  { %v1287_v25 = vmul.f32 %v1286_v56, %v1262_v30  ;;  %1621 = vmatpush.bf16.msrb.mxu3 %v3748_v38  ;;  %v3767_v38 = vld [vmem:[%s5435_s7] sm:$0xff] }
 0x297   :  { %v3370_v14 = vclamps-f32 %v1287_v25, 1.0 }
 0x299   :  { %v1453_v3 = vadd.f32 1.0, %v3370_v14  ;;  %1622 = vmatpush.bf16.msrb.mxu3 %v3747_v63  ;;  %v3769_v14 = vld [vmem:[%s5435_s7 + $0x10] sm:$0xff] }
 0x29b   :  { %v4845_v9 = vmul.f32 %v1453_v3, %v1117_v61 }
 0x29d   :  { %v1484_v13 = vpack.c.bf16 %v4845_v9, %v4843_v48  ;;  %1623 = vmatpush.bf16.msrb.mxu3 %v3746_v50 }
 0x29e   :  { %v898_v26 = vpop.xlane.xlu2 %897 }
 0x29f   :  { %v905_v24 = vmul.f32 %v898_v26, %v4544_v15 }
 0x2a1   :  { %v909_v37 = vadd.f32 1e-05, %v905_v24  ;;  %v4854_v24 = vld [vmem:[%s5434_s6] sm:$0x1f]  ;;  %1624 = vmatpush.bf16.msrb.mxu3 %v3745_v44 }
 0x2a2   :  { %v957_v21 = vperm.slane %v4854_v24, 2  ;;  %v962_v32 = vperm.slane %v4854_v24, 3  ;;  %v985_v48 = vperm.slane %v4854_v24, 4 }
 0x2a3   :  { %3872 = vrsqrt.f32 %v909_v37  ;;  %vm919_vm8 = vweird.f32 %v909_v37 }
 0x2a5   :  { %1625 = vmatpush.bf16.msrb.mxu3 %v3744_v45 }
 0x2a7   :  { %v900_v2 = vpop.xlane.xlu2 %899 }
 0x2a8   :  { %v906_v23 = vmul.f32 %v900_v2, %v4544_v15 }
 0x2a9   :  { %v3873_v46 = vpop.eup %3872  ;;  %1626 = vmatpush.bf16.msrb.mxu3 %v3743_v12 }
 0x2aa   :  { %v914_v47 = vmul.f32 %v3873_v46, %v909_v37  ;;  %v910_v22 = vadd.f32 1e-05, %v906_v23  ;;  %vm920_vm1 = vweird.f32 %v3873_v46 }
 0x2ab   :  { %vm921_vm9 = vmor %vm919_vm8, %vm920_vm1 }
 0x2ac   :  { %v915_v19 = vmul.f32 %v3873_v46, %v914_v47  ;;  %3874 = vrsqrt.f32 %v910_v22  ;;  %vm929_vm10 = vweird.f32 %v910_v22 }
 0x2ae   :  { %v916_v1 = vmul.f32 0.5, %v915_v19 }
 0x2af   :  { %v902_v6 = vpop.xlane.xlu0 %901 }
 0x2b0   :  { %v917_v62 = vsub.f32 1.5, %v916_v1  ;;  %v907_v0 = vmul.f32 %v902_v6, %v4544_v15 }
 0x2b2   :  { %v3875_v8 = vpop.eup %3874  ;;  %v918_v42 = vmul.f32 %v3873_v46, %v917_v62  ;;  %v911_v16 = vadd.f32 1e-05, %v907_v0  ;;  %v3768_v62 = vld [vmem:[%s5435_s7 + $0x8] sm:$0xff] }
 0x2b3   :  { %v924_v4 = vmul.f32 %v3875_v8, %v910_v22  ;;  %vm930_vm0 = vweird.f32 %v3875_v8 }
 0x2b4   :  { %v922_v20 = vsel %vm921_vm9, %v3873_v46, %v918_v42  ;;  %3876 = vrsqrt.f32 %v911_v16  ;;  %vm931_vm11 = vmor %vm929_vm10, %vm930_vm0  ;;  %vm939_vm13 = vweird.f32 %v911_v16 }
 0x2b5   :  { %v925_v36 = vmul.f32 %v3875_v8, %v924_v4  ;;  %v953_v40 = vmul.f32 %v922_v20, %v4548_v58 }
 0x2b7   :  { %v926_v26 = vmul.f32 0.5, %v925_v36  ;;  %v904_v37 = vpop.xlane.xlu1 %903  ;;  %v958_v51 = vmul.f32 %v957_v21, %v953_v40 }
 0x2b8   :  { %v908_v18 = vmul.f32 %v904_v37, %v4544_v15 }
 0x2b9   :  { %v927_v27 = vsub.f32 1.5, %v926_v26  ;;  %v963_v34 = vadd.f32 %v962_v32, %v958_v51  ;;  %v4896_v26 = vld [vmem:[%s5434_s6 + $0x8] sm:$0x1f] }
 0x2ba   :  { %v3877_v35 = vpop.eup %3876  ;;  %v912_v41 = vadd.f32 1e-05, %v908_v18  ;;  %v1638_v20 = vperm.slane %v4896_v26, 1 }
 0x2bb   :  { %v928_v28 = vmul.f32 %v3875_v8, %v927_v27  ;;  %v934_v29 = vmul.f32 %v3877_v35, %v911_v16  ;;  %vm940_vm12 = vweird.f32 %v3877_v35 }
 0x2bc   :  { %3878 = vrsqrt.f32 %v912_v41  ;;  %vm941_vm14 = vmor %vm939_vm13, %vm940_vm12  ;;  %vm949_vm2 = vweird.f32 %v912_v41 }
 0x2bd   :  { %v932_v59 = vsel %vm931_vm11, %v3875_v8, %v928_v28  ;;  %v935_v33 = vmul.f32 %v3877_v35, %v934_v29 }
 0x2be   :  { %v954_v58 = vmul.f32 %v932_v59, %v4567_v54 }
 0x2bf   :  { %v936_v30 = vmul.f32 0.5, %v935_v33 }
 0x2c0   :  { %v959_v31 = vmul.f32 %v957_v21, %v954_v58 }
 0x2c1   :  { %v937_v23 = vsub.f32 1.5, %v936_v30 }
 0x2c2   :  { %v964_v53 = vadd.f32 %v962_v32, %v959_v31  ;;  %v3879_v43 = vpop.eup %3878 }
 0x2c3   :  { %v938_v11 = vmul.f32 %v3877_v35, %v937_v23  ;;  %v944_v54 = vmul.f32 %v3879_v43, %v912_v41  ;;  %vm950_vm15 = vweird.f32 %v3879_v43 }
 0x2c4   :  { %v983_v2 = vpack.c.bf16 %v964_v53, %v963_v34  ;;  %vm951_vm3 = vmor %vm949_vm2, %vm950_vm15 }
 0x2c5   :  { %v945_v46 = vmul.f32 %v3879_v43, %v944_v54  ;;  %v942_v22 = vsel %vm941_vm14, %v3877_v35, %v938_v11 }
 0x2c6   :  { %1042 = vmatmul.bf16.vlgmr.msra.gmra.mxu3 %v983_v2  ;;  %v955_v7 = vmul.f32 %v942_v22, %v4572_v49  ;;  %v3774_v49 = vld [vmem:[%s5435_s7 + $0x38] sm:$0xff] }
 0x2c7   :  { %v946_v47 = vmul.f32 0.5, %v945_v46  ;;  %2063 = vmatpush.bf16.msra.mxu2 %v3774_v49  ;;  %2174 = vmatpush.bf16.msra.mxu3 %v3774_v49 }
 0x2c8   :  { %v960_v25 = vmul.f32 %v957_v21, %v955_v7 }
 0x2c9   :  { %v947_v55 = vsub.f32 1.5, %v946_v47 }
 0x2ca   :  { %v965_v61 = vadd.f32 %v962_v32, %v960_v25 }
 0x2cb   :  { %v948_v60 = vmul.f32 %v3879_v43, %v947_v55 }
 0x2cd   :  { %v952_v56 = vsel %vm951_vm3, %v3879_v43, %v948_v60 }
 0x2ce   :  { %v956_v19 = vmul.f32 %v952_v56, %v4587_v52  ;;  %v3773_v52 = vld [vmem:[%s5435_s7 + $0x30] sm:$0xff] }
 0x2cf   :  { %2064 = vmatpush.bf16.msra.mxu2 %v3773_v52  ;;  %2175 = vmatpush.bf16.msra.mxu3 %v3773_v52 }
 0x2d0   :  { %v961_v57 = vmul.f32 %v957_v21, %v956_v19 }
 0x2d2   :  { %v966_v1 = vadd.f32 %v962_v32, %v961_v57 }
 0x2d3   :  { %2065 = vmatpush.bf16.msra.mxu2 %v3772_v5  ;;  %2176 = vmatpush.bf16.msra.mxu3 %v3772_v5 }
 0x2d4   :  { %v984_v17 = vpack.c.bf16 %v966_v1, %v965_v61 }
 0x2d6   :  { %1047 = vmatmul.bf16.gmra.mxu3 %v984_v17 }
 0x2d7   :  { %2066 = vmatpush.bf16.msra.mxu2 %v3771_v10  ;;  %2177 = vmatpush.bf16.msra.mxu3 %v3771_v10 }
 0x2e6   :  { %1627 = vmatmul.bf16.vlgmr.msrb.gmra.mxu3 %v1483_v39  ;;  %v3770_v39 = vld [vmem:[%s5435_s7 + $0x18] sm:$0xff] }
 0x2e7   :  { %2067 = vmatpush.bf16.msra.mxu2 %v3770_v39  ;;  %2178 = vmatpush.bf16.msra.mxu3 %v3770_v39 }
 0x2eb   :  { %2068 = vmatpush.bf16.msra.mxu2 %v3769_v14  ;;  %2179 = vmatpush.bf16.msra.mxu3 %v3769_v14 }
 0x2ef   :  { %2069 = vmatpush.bf16.msra.mxu2 %v3768_v62  ;;  %2180 = vmatpush.bf16.msra.mxu3 %v3768_v62 }
 0x2f3   :  { %2070 = vmatpush.bf16.msra.mxu2 %v3767_v38  ;;  %2181 = vmatpush.bf16.msra.mxu3 %v3767_v38 }
 0x2f6   :  { %1632 = vmatmul.bf16.gmra.mxu3 %v1484_v13 }
 0x303   :  { %v1561_v36 = vpop.f32.mrf.mxu2 }
 0x30b   :  { %v1563_v21 = vpop.f32.mrf.mxu2 }
 0x315   :  { %v1566_v29 = vpop.f32.mrf.mxu2 }
 0x31d   :  { %v1568_v19 = vpop.f32.mrf.mxu2 }
 0x349   :  { %v1043_v3 = vpop.f32.mrf.mxu3 }
 0x34a   :  { %v1044_v9 = vadd.f32 %v1043_v3, %v985_v48 }
 0x351   :  { %v1045_v8 = vpop.f32.mrf.mxu3 }
 0x352   :  { %v1046_v42 = vadd.f32 %v1045_v8, %v985_v48 }
 0x354   :  { %v2012_v4 = vpack.c.bf16 %v1046_v42, %v1044_v9 }
 0x356   :  { %2071 = vmatmul.bf16.vlgmr.msra.gmra.mxu2 %v2012_v4 }
 0x359   :  { %v1048_v6 = vpop.f32.mrf.mxu3 }
 0x35a   :  { %v1049_v63 = vadd.f32 %v1048_v6, %v985_v48 }
 0x361   :  { %v1050_v0 = vpop.f32.mrf.mxu3 }
 0x362   :  { %v1051_v13 = vadd.f32 %v1050_v0, %v985_v48 }
 0x364   :  { %v2013_v16 = vpack.c.bf16 %v1051_v13, %v1049_v63 }
 0x366   :  { %2076 = vmatmul.bf16.gmra.mxu2 %v2013_v16 }
 0x369   :  { %v1628_v27 = vpop.f32.mrf.mxu3 }
 0x36a   :  { %v1629_v40 = vadd.f32 %v1628_v27, %v1561_v36 }
 0x36c   :  { %v4899_v24 = vadd.f32 %v1638_v20, %v1629_v40 }
 0x36e   :  { %v4902_v50 = vmul.f32 0.70710677, %v4899_v24 }
 0x370   :  { %v1651_v28 = vmul.f32 %v4902_v50, %v4902_v50 }
 0x371   :  { %v1630_v37 = vpop.f32.mrf.mxu3 }
 0x372   :  { %v1652_v18 = vmin.f32 %v1651_v28, 16.0  ;;  %v1631_v44 = vadd.f32 %v1630_v37, %v1563_v21 }
 0x374   :  { %v4906_v59 = vadd.f32 %v1638_v20, %v1631_v44  ;;  %v1653_v35 = vmul.f32 2.1237322e-06, %v1652_v18  ;;  %v1664_v41 = vmul.f32 3.8918573e-05, %v1652_v18 }
 0x376   :  { %v4909_v58 = vmul.f32 0.70710677, %v4906_v59  ;;  %v1654_v51 = vadd.f32 0.00028619796, %v1653_v35  ;;  %v1665_v32 = vadd.f32 0.001143296, %v1664_v41 }
 0x378   :  { %v1691_v31 = vmul.f32 %v4909_v58, %v4909_v58  ;;  %v1655_v45 = vmul.f32 %v1654_v51, %v1652_v18  ;;  %v1666_v33 = vmul.f32 %v1665_v32, %v1652_v18 }
 0x379   :  { %v1633_v34 = vpop.f32.mrf.mxu3 }
 0x37a   :  { %v4913_v53 = vmin.f32 %v1691_v31, 16.0  ;;  %v1634_v30 = vadd.f32 %v1633_v34, %v1566_v29  ;;  %v1656_v2 = vadd.f32 0.0036580483, %v1655_v45  ;;  %v1667_v12 = vadd.f32 0.014752088, %v1666_v33 }
 0x37c   :  { %v4915_v23 = vadd.f32 %v1638_v20, %v1634_v30  ;;  %v1668_v43 = vmul.f32 %v1667_v12, %v1652_v18  ;;  %v1693_v11 = vmul.f32 2.1237322e-06, %v4913_v53  ;;  %v1657_v54 = vmul.f32 %v1656_v2, %v1652_v18 }
 0x37d   :  { %v1704_v46 = vmul.f32 3.8918573e-05, %v4913_v53 }
 0x37e   :  { %v4920_v47 = vmul.f32 0.70710677, %v4915_v23  ;;  %v1669_v22 = vadd.f32 0.112945676, %v1668_v43  ;;  %v1694_v55 = vadd.f32 0.00028619796, %v1693_v11 }
 0x37f   :  { %v1705_v7 = vadd.f32 0.001143296, %v1704_v46  ;;  %v1658_v57 = vadd.f32 0.05243302, %v1657_v54 }
 0x380   :  { %v1731_v60 = vmul.f32 %v4920_v47, %v4920_v47  ;;  %v1670_v56 = vmul.f32 %v1669_v22, %v1652_v18  ;;  %v1695_v61 = vmul.f32 %v1694_v55, %v4913_v53 }
 0x381   :  { %v1635_v25 = vpop.f32.mrf.mxu3  ;;  %v1706_v1 = vmul.f32 %v1705_v7, %v4913_v53  ;;  %v1659_v38 = vmul.f32 %v1658_v57, %v1652_v18 }
 0x382   :  { %v4926_v17 = vmin.f32 %v1731_v60, 16.0  ;;  %v1636_v49 = vadd.f32 %v1635_v25, %v1568_v19  ;;  %v1671_v52 = vadd.f32 0.4994258, %v1670_v56  ;;  %v1696_v5 = vadd.f32 0.0036580483, %v1695_v61 }
 0x383   :  { %v1707_v10 = vadd.f32 0.014752088, %v1706_v1  ;;  %v1660_v63 = vadd.f32 0.18741608, %v1659_v38 }
 0x384   :  { %v4928_v39 = vadd.f32 %v1638_v20, %v1636_v49  ;;  %v1672_v14 = vmul.f32 %v1671_v52, %v1652_v18  ;;  %v1733_v62 = vmul.f32 2.1237322e-06, %v4926_v17  ;;  %v1697_v9 = vmul.f32 %v1696_v5, %v4913_v53 }
 0x385   :  { %v1708_v3 = vmul.f32 %v1707_v10, %v4913_v53  ;;  %v1744_v42 = vmul.f32 3.8918573e-05, %v4926_v17  ;;  %v1661_v44 = vmul.f32 %v1660_v63, %v1652_v18 }
 0x386   :  { %v4933_v48 = vmul.f32 0.70710677, %v4928_v39  ;;  %v1673_v8 = vadd.f32 1.0, %v1672_v14  ;;  %v1734_v6 = vadd.f32 0.00028619796, %v1733_v62 }
 0x387   :  { %v1709_v4 = vadd.f32 0.112945676, %v1708_v3  ;;  %v1698_v16 = vadd.f32 0.05243302, %v1697_v9  ;;  %v1745_v20 = vadd.f32 0.001143296, %v1744_v42 }
 0x388   :  { %v1771_v0 = vmul.f32 %v4933_v48, %v4933_v48  ;;  %3880 = vrcp.f32 %v1673_v8  ;;  %v1735_v40 = vmul.f32 %v1734_v6, %v4926_v17  ;;  %v1662_v43 = vadd.f32 1.1283791, %v1661_v44 }
 0x389   :  { %v1710_v13 = vmul.f32 %v1709_v4, %v4913_v53  ;;  %v1746_v21 = vmul.f32 %v1745_v20, %v4926_v17  ;;  %v1699_v51 = vmul.f32 %v1698_v16, %v4913_v53  ;;  %v1683_v18 = vand.u32 2147483647, %v1673_v8 }
 0x38a   :  { %v4940_v36 = vmin.f32 %v1771_v0, 16.0  ;;  %v1736_v34 = vadd.f32 0.0036580483, %v1735_v40  ;;  %v1685_v54 = vand.u32 2147483648, %v1673_v8  ;;  %vm1679_vm5 = vweird.f32 %v1673_v8 }
 0x38b   :  { %v1711_v27 = vadd.f32 0.4994258, %v1710_v13  ;;  %v1747_v32 = vadd.f32 0.014752088, %v1746_v21  ;;  %v1700_v46 = vadd.f32 0.18741608, %v1699_v51  ;;  %v1663_v61 = vmul.f32 %v1662_v43, %v4902_v50 }
 0x38c   :  { %v1773_v28 = vmul.f32 2.1237322e-06, %v4940_v36  ;;  %v1784_v37 = vmul.f32 3.8918573e-05, %v4940_v36  ;;  %v1737_v7 = vmul.f32 %v1736_v34, %v4926_v17  ;;  %v1686_v1 = vor.u32 1.1754944e-38, %v1685_v54 }
 0x38d   :  { %v1712_v35 = vmul.f32 %v1711_v27, %v4913_v53  ;;  %v1748_v30 = vmul.f32 %v1747_v32, %v4926_v17  ;;  %v1701_v49 = vmul.f32 %v1700_v46, %v4913_v53  ;;  %vm1684_vm7 = vcmp.eq.f32.partialorder %v1683_v18, 8.507059e+37 }
 0x38e   :  { %v3881_v41 = vpop.eup %3880  ;;  %v1774_v29 = vadd.f32 0.00028619796, %v1773_v28  ;;  %v1785_v31 = vadd.f32 0.001143296, %v1784_v37  ;;  %v1738_v14 = vadd.f32 0.05243302, %v1737_v7 }
 0x38f   :  { %v1675_v45 = vmul.f32 %v3881_v41, %v1673_v8  ;;  %v1713_v33 = vadd.f32 1.0, %v1712_v35  ;;  %v1749_v22 = vadd.f32 0.112945676, %v1748_v30  ;;  %vm1680_vm4 = vweird.f32 %v3881_v41 }
 0x390   :  { %v1775_v2 = vmul.f32 %v1774_v29, %v4940_v36  ;;  %v1786_v12 = vmul.f32 %v1785_v31, %v4940_v36  ;;  %vm1681_vm6 = vmor %vm1679_vm5, %vm1680_vm4  ;;  %v1702_v50 = vadd.f32 1.1283791, %v1701_v49  ;;  %v1739_v53 = vmul.f32 %v1738_v14, %v4926_v17 }
 0x391   :  { %v1676_v11 = vsub.f32 1.0, %v1675_v45  ;;  %3882 = vrcp.f32 %v1713_v33  ;;  %v1750_v56 = vmul.f32 %v1749_v22, %v4926_v17  ;;  %v1725_v0 = vand.u32 2147483648, %v1713_v33 }
 0x392   :  { %v1787_v60 = vadd.f32 0.014752088, %v1786_v12  ;;  %v1776_v19 = vadd.f32 0.0036580483, %v1775_v2  ;;  %v1723_v27 = vand.u32 2147483647, %v1713_v33  ;;  %vm1719_vm8 = vweird.f32 %v1713_v33 }
 0x393   :  { %v1677_v55 = vmul.f32 %v3881_v41, %v1676_v11  ;;  %v1751_v52 = vadd.f32 0.4994258, %v1750_v56  ;;  %v1643_v21 = vmul.f32 0.5, %v4899_v24  ;;  %v1726_v51 = vor.u32 1.1754944e-38, %v1725_v0 }
 0x394   :  { %v1788_v57 = vmul.f32 %v1787_v60, %v4940_v36  ;;  %v1777_v9 = vmul.f32 %v1776_v19, %v4940_v36  ;;  %v1740_v32 = vadd.f32 0.18741608, %v1739_v53  ;;  %vm1724_vm0 = vcmp.eq.f32.partialorder %v1723_v27, 8.507059e+37 }
 0x395   :  { %v1678_v25 = vadd.f32 %v3881_v41, %v1677_v55  ;;  %v1752_v8 = vmul.f32 %v1751_v52, %v4926_v17  ;;  %v1646_v0 = vmul.f32 0.5, %v4928_v39 }
 0x396   :  { %v1789_v62 = vadd.f32 0.112945676, %v1788_v57  ;;  %v1778_v40 = vadd.f32 0.05243302, %v1777_v9  ;;  %v1741_v30 = vmul.f32 %v1740_v32, %v4926_v17  ;;  %v1645_v9 = vmul.f32 0.5, %v4915_v23 }
 0x397   :  { %v3883_v5 = vpop.eup %3882  ;;  %v1682_v10 = vsel %vm1681_vm6, %v3881_v41, %v1678_v25  ;;  %v1753_v13 = vadd.f32 1.0, %v1752_v8  ;;  %v1703_v41 = vmul.f32 %v1702_v50, %v4909_v58  ;;  %v1644_v58 = vmul.f32 0.5, %v4906_v59 }
 0x398   :  { %v1687_v38 = vsel %vm1684_vm7, %v1686_v1, %v1682_v10  ;;  %v1715_v3 = vmul.f32 %v3883_v5, %v1713_v33  ;;  %v1790_v4 = vmul.f32 %v1789_v62, %v4940_v36  ;;  %vm1720_vm1 = vweird.f32 %v3883_v5 }
 0x399   :  { %v1688_v42 = vmul.f32 %v1687_v38, %v1663_v61  ;;  %3884 = vrcp.f32 %v1753_v13  ;;  %vm1721_vm9 = vmor %vm1719_vm8, %vm1720_vm1  ;;  %v1779_v31 = vmul.f32 %v1778_v40, %v4940_v36  ;;  %v1742_v54 = vadd.f32 1.1283791, %v1741_v30 }
 0x39a   :  { %v1716_v6 = vsub.f32 1.0, %v1715_v3  ;;  %v1791_v16 = vadd.f32 0.4994258, %v1790_v4  ;;  %v1763_v46 = vand.u32 2147483647, %v1753_v13  ;;  %v1765_v22 = vand.u32 2147483648, %v1753_v13 }
 0x39b   :  { %v3439_v63 = vclamps-f32 %v1688_v42, 1.0  ;;  %v1780_v43 = vadd.f32 0.18741608, %v1779_v31  ;;  %vm1759_vm11 = vweird.f32 %v1753_v13  ;;  %v1743_v17 = vmul.f32 %v1742_v54, %v4920_v47  ;;  %v3763_v31 = vld [vmem:[#allocation6 + $0x60] sm:$0xff] }
 0x39c   :  { %v1717_v20 = vmul.f32 %v3883_v5, %v1716_v6  ;;  %v1792_v44 = vmul.f32 %v1791_v16, %v4940_v36  ;;  %v1766_v57 = vor.u32 1.1754944e-38, %v1765_v22  ;;  %vm1764_vm13 = vcmp.eq.f32.partialorder %v1763_v46, 8.507059e+37  ;;  %v3761_v46 = vld [vmem:[#allocation6 + $0x50] sm:$0xff] }
 0x39d   :  { %v1811_v28 = vadd.f32 1.0, %v3439_v63  ;;  %v1781_v56 = vmul.f32 %v1780_v43, %v4940_v36 }
 0x39e   :  { %v1718_v37 = vadd.f32 %v3883_v5, %v1717_v20  ;;  %v1793_v45 = vadd.f32 1.0, %v1792_v44 }
 0x39f   :  { %v4962_v35 = vmul.f32 %v1811_v28, %v1643_v21  ;;  %v3885_v33 = vpop.eup %3884  ;;  %v1782_v1 = vadd.f32 1.1283791, %v1781_v56  ;;  %v3766_v21 = vld [vmem:[#allocation6 + $0x78] sm:$0xff]  ;;  %v3765_v28 = vld [vmem:[#allocation6 + $0x70] sm:$0xff] }
 0x3a0   :  { %v1722_v29 = vsel %vm1721_vm9, %v3883_v5, %v1718_v37  ;;  %3886 = vrcp.f32 %v1793_v45  ;;  %v1755_v12 = vmul.f32 %v3885_v33, %v1753_v13  ;;  %vm1760_vm10 = vweird.f32 %v3885_v33  ;;  %1977 = vmatpush.bf16.msrb.mxu0 %v3766_v21  ;;  %v4988_v37 = vld [vmem:[%s5438_s10] sm:$0xff] }
 0x3a1   :  { %1819 = vadd.xlane.f32.xlu2 %v4962_v35  ;;  %v1727_v24 = vsel %vm1724_vm0, %v1726_v51, %v1722_v29  ;;  %vm1761_vm12 = vmor %vm1759_vm11, %vm1760_vm10  ;;  %v1805_v49 = vand.u32 2147483648, %v1793_v45  ;;  %v1803_v10 = vand.u32 2147483647, %v1793_v45  ;;  %vm1799_vm15 = vweird.f32 %v1793_v45 }
 0x3a2   :  { %v1728_v34 = vmul.f32 %v1727_v24, %v1703_v41  ;;  %v1756_v18 = vsub.f32 1.0, %v1755_v12  ;;  %v1783_v3 = vmul.f32 %v1782_v1, %v4933_v48  ;;  %v4991_v44 = vperm.slane %v4988_v37, 0 }
 0x3a3   :  { %v1806_v38 = vor.u32 1.1754944e-38, %v1805_v49  ;;  %vm1804_vm3 = vcmp.eq.f32.partialorder %v1803_v10, 8.507059e+37 }
 0x3a4   :  { %v3440_v2 = vclamps-f32 %v1728_v34, 1.0  ;;  %v1757_v60 = vmul.f32 %v3885_v33, %v1756_v18  ;;  %1978 = vmatpush.bf16.msrb.mxu0 %v3765_v28  ;;  %v3762_v18 = vld [vmem:[#allocation6 + $0x58] sm:$0xff] }
 0x3a6   :  { %v1812_v11 = vadd.f32 1.0, %v3440_v2  ;;  %v3887_v55 = vpop.eup %3886  ;;  %v1758_v25 = vadd.f32 %v3885_v33, %v1757_v60  ;;  %v3760_v60 = vld [vmem:[#allocation6 + $0x48] sm:$0xff] }
 0x3a7   :  { %v1795_v19 = vmul.f32 %v3887_v55, %v1793_v45  ;;  %vm1800_vm14 = vweird.f32 %v3887_v55 }
 0x3a8   :  { %v1816_v7 = vmul.f32 %v1812_v11, %v1644_v58  ;;  %v1762_v61 = vsel %vm1761_vm12, %v3885_v33, %v1758_v25  ;;  %vm1801_vm2 = vmor %vm1799_vm15, %vm1800_vm14 }
 0x3a9   :  { %v1796_v59 = vsub.f32 1.0, %v1795_v19  ;;  %v1767_v52 = vsel %vm1764_vm13, %v1766_v57, %v1762_v61 }
 0x3aa   :  { %1821 = vadd.xlane.f32.xlu0 %v1816_v7  ;;  %v1768_v14 = vmul.f32 %v1767_v52, %v1743_v17 }
 0x3ab   :  { %v1797_v5 = vmul.f32 %v3887_v55, %v1796_v59  ;;  %v3759_v59 = vld [vmem:[#allocation6 + $0x40] sm:$0xff] }
 0x3ac   :  { %v3441_v36 = vclamps-f32 %v1768_v14, 1.0 }
 0x3ad   :  { %v1798_v62 = vadd.f32 %v3887_v55, %v1797_v5 }
 0x3ae   :  { %v1813_v42 = vadd.f32 1.0, %v3441_v36 }
 0x3af   :  { %v1802_v47 = vsel %vm1801_vm2, %v3887_v55, %v1798_v62 }
 0x3b0   :  { %v1807_v8 = vsel %vm1804_vm3, %v1806_v38, %v1802_v47  ;;  %v1817_v50 = vmul.f32 %v1813_v42, %v1645_v9 }
 0x3b1   :  { %v1808_v4 = vmul.f32 %v1807_v8, %v1783_v3 }
 0x3b2   :  { %1823 = vadd.xlane.f32.xlu1 %v1817_v50 }
 0x3b3   :  { %v3442_v6 = vclamps-f32 %v1808_v4, 1.0  ;;  %v1899_v4 = vperm.slane %v4896_v26, 2 }
 0x3b5   :  { %v1814_v63 = vadd.f32 1.0, %v3442_v6 }
 0x3b7   :  { %v1818_v53 = vmul.f32 %v1814_v63, %v1646_v0 }
 0x3b9   :  { %1825 = vadd.xlane.f32.xlu2 %v1818_v53 }
 0x3d9   :  { %v2072_v41 = vpop.f32.mrf.mxu2 }
 0x3da   :  { %v4994_v32 = vadd.f32 %v2072_v41, %v4991_v44 }
 0x3e1   :  { %v2074_v30 = vpop.f32.mrf.mxu2 }
 0x3e2   :  { %v5008_v43 = vadd.f32 %v2074_v30, %v4991_v44 }
 0x3e9   :  { %v2077_v58 = vpop.f32.mrf.mxu2 }
 0x3ea   :  { %v5012_v11 = vadd.f32 %v2077_v58, %v4991_v44 }
 0x414   :  { %v1820_v13 = vpop.xlane.xlu2 %1819 }
 0x415   :  { %v1827_v16 = vmul.f32 %v1820_v13, %v4544_v15 }
 0x417   :  { %v4976_v48 = vsub.f32 %v4962_v35, %v1827_v16  ;;  %v3764_v35 = vld [vmem:[#allocation6 + $0x68] sm:$0xff]  ;;  %v1904_v16 = vperm.slane %v4896_v26, 3 }
 0x418   :  { %1979 = vmatpush.bf16.msrb.mxu0 %v3764_v35 }
 0x419   :  { %v1835_v23 = vmul.f32 %v4976_v48, %v4976_v48 }
 0x41b   :  { %1839 = vadd.xlane.f32.xlu0 %v1835_v23 }
 0x41c   :  { %1980 = vmatpush.bf16.msrb.mxu0 %v3763_v31 }
 0x41d   :  { %v1822_v20 = vpop.xlane.xlu0 %1821 }
 0x41e   :  { %v1828_v27 = vmul.f32 %v1822_v20, %v4544_v15 }
 0x420   :  { %v4981_v40 = vsub.f32 %v1816_v7, %v1828_v27  ;;  %1981 = vmatpush.bf16.msrb.mxu0 %v3762_v18 }
 0x422   :  { %v1836_v39 = vmul.f32 %v4981_v40, %v4981_v40 }
 0x424   :  { %1841 = vadd.xlane.f32.xlu1 %v1836_v39  ;;  %1982 = vmatpush.bf16.msrb.mxu0 %v3761_v46 }
 0x425   :  { %v1824_v51 = vpop.xlane.xlu1 %1823 }
 0x426   :  { %v1829_v29 = vmul.f32 %v1824_v51, %v4544_v15 }
 0x428   :  { %v4997_v45 = vsub.f32 %v1817_v50, %v1829_v29  ;;  %1983 = vmatpush.bf16.msrb.mxu0 %v3760_v60  ;;  %v1928_v60 = vperm.slane %v4896_v26, 4 }
 0x42a   :  { %v1837_v24 = vmul.f32 %v4997_v45, %v4997_v45 }
 0x42c   :  { %2082 = vadd.xlane.f32.xlu1 %v4994_v32  ;;  %v1826_v34 = vpop.xlane.xlu2 %1825  ;;  %1843 = vadd.xlane.f32.xlu2 %v1837_v24 }
 0x42d   :  { %v1830_v33 = vmul.f32 %v1826_v34, %v4544_v15  ;;  %1984 = vmatpush.bf16.msrb.mxu0 %v3759_v59 }
 0x42f   :  { %v5003_v2 = vsub.f32 %v1818_v53, %v1830_v33 }
 0x431   :  { %v1838_v12 = vmul.f32 %v5003_v2, %v5003_v2 }
 0x433   :  { %1845 = vadd.xlane.f32.xlu0 %v1838_v12 }
 0x434   :  { %2084 = vadd.xlane.f32.xlu2 %v5008_v43 }
 0x43c   :  { %2086 = vadd.xlane.f32.xlu2 %v5012_v11 }
 0x48e   :  { %v1840_v54 = vpop.xlane.xlu0 %1839 }
 0x48f   :  { %v1847_v22 = vmul.f32 %v1840_v54, %v4544_v15 }
 0x491   :  { %v1851_v55 = vadd.f32 1e-05, %v1847_v22 }
 0x493   :  { %3888 = vrsqrt.f32 %v1851_v55  ;;  %vm1861_vm5 = vweird.f32 %v1851_v55 }
 0x497   :  { %v1842_v7 = vpop.xlane.xlu1 %1841 }
 0x498   :  { %v1848_v56 = vmul.f32 %v1842_v7, %v4544_v15 }
 0x499   :  { %v3889_v19 = vpop.eup %3888 }
 0x49a   :  { %v1856_v25 = vmul.f32 %v3889_v19, %v1851_v55  ;;  %v1852_v17 = vadd.f32 1e-05, %v1848_v56  ;;  %vm1862_vm4 = vweird.f32 %v3889_v19 }
 0x49b   :  { %vm1863_vm6 = vmor %vm1861_vm5, %vm1862_vm4 }
 0x49c   :  { %v1857_v57 = vmul.f32 %v3889_v19, %v1856_v25  ;;  %3890 = vrsqrt.f32 %v1852_v17  ;;  %vm1871_vm1 = vweird.f32 %v1852_v17 }
 0x49e   :  { %v1858_v61 = vmul.f32 0.5, %v1857_v57 }
 0x49f   :  { %v1844_v10 = vpop.xlane.xlu2 %1843 }
 0x4a0   :  { %v1859_v1 = vsub.f32 1.5, %v1858_v61  ;;  %v1849_v14 = vmul.f32 %v1844_v10, %v4544_v15 }
 0x4a2   :  { %v3891_v49 = vpop.eup %3890  ;;  %v1860_v52 = vmul.f32 %v3889_v19, %v1859_v1  ;;  %v1853_v36 = vadd.f32 1e-05, %v1849_v14 }
 0x4a3   :  { %v1866_v5 = vmul.f32 %v3891_v49, %v1852_v17  ;;  %vm1872_vm7 = vweird.f32 %v3891_v49 }
 0x4a4   :  { %v1864_v38 = vsel %vm1863_vm6, %v3889_v19, %v1860_v52  ;;  %3892 = vrsqrt.f32 %v1853_v36  ;;  %vm1873_vm8 = vmor %vm1871_vm1, %vm1872_vm7  ;;  %vm1881_vm0 = vweird.f32 %v1853_v36  ;;  %v2079_v52 = vpop.f32.mrf.mxu2 }
 0x4a5   :  { %v1867_v62 = vmul.f32 %v3891_v49, %v1866_v5  ;;  %v1895_v8 = vmul.f32 %v1864_v38, %v4976_v48  ;;  %v2083_v5 = vpop.xlane.xlu1 %2082  ;;  %v2080_v26 = vadd.f32 %v2079_v52, %v4991_v44 }
 0x4a6   :  { %v1846_v47 = vpop.xlane.xlu0 %1845  ;;  %v2090_v14 = vmul.f32 %v2083_v5, %v4544_v15 }
 0x4a7   :  { %v1868_v3 = vmul.f32 0.5, %v1867_v62  ;;  %v1850_v42 = vmul.f32 %v1846_v47, %v4544_v15  ;;  %v1900_v13 = vmul.f32 %v1899_v4, %v1895_v8  ;;  %v2085_v38 = vpop.xlane.xlu2 %2084 }
 0x4a9   :  { %v1869_v9 = vsub.f32 1.5, %v1868_v3  ;;  %v1854_v6 = vadd.f32 1e-05, %v1850_v42  ;;  %v1905_v21 = vadd.f32 %v1904_v16, %v1900_v13 }
 0x4aa   :  { %v3893_v63 = vpop.eup %3892 }
 0x4ab   :  { %v1870_v50 = vmul.f32 %v3891_v49, %v1869_v9  ;;  %3894 = vrsqrt.f32 %v1854_v6  ;;  %v1876_v23 = vmul.f32 %v3893_v63, %v1853_v36  ;;  %vm1882_vm9 = vweird.f32 %v3893_v63 }
 0x4ac   :  { %vm1883_vm10 = vmor %vm1881_vm0, %vm1882_vm9  ;;  %vm1891_vm12 = vweird.f32 %v1854_v6  ;;  %v5031_v36 = vsub.f32 %v4994_v32, %v2090_v14  ;;  %v2091_v9 = vmul.f32 %v2085_v38, %v4544_v15 }
 0x4ad   :  { %v1874_v0 = vsel %vm1873_vm8, %v3891_v49, %v1870_v50  ;;  %v1877_v27 = vmul.f32 %v3893_v63, %v1876_v23 }
 0x4ae   :  { %v1896_v53 = vmul.f32 %v1874_v0, %v4981_v40  ;;  %v2098_v47 = vmul.f32 %v5031_v36, %v5031_v36  ;;  %v5038_v8 = vsub.f32 %v5008_v43, %v2091_v9 }
 0x4af   :  { %v1878_v28 = vmul.f32 0.5, %v1877_v27 }
 0x4b0   :  { %v1901_v20 = vmul.f32 %v1899_v4, %v1896_v53  ;;  %v2099_v0 = vmul.f32 %v5038_v8, %v5038_v8 }
 0x4b1   :  { %v3895_v48 = vpop.eup %3894  ;;  %v1879_v51 = vsub.f32 1.5, %v1878_v28 }
 0x4b2   :  { %v1906_v39 = vadd.f32 %v1904_v16, %v1901_v20  ;;  %v1886_v35 = vmul.f32 %v3895_v48, %v1854_v6  ;;  %vm1892_vm11 = vweird.f32 %v3895_v48 }
 0x4b3   :  { %v1880_v31 = vmul.f32 %v3893_v63, %v1879_v51  ;;  %vm1893_vm13 = vmor %vm1891_vm12, %vm1892_vm11 }
 0x4b4   :  { %v1926_v41 = vpack.c.bf16 %v1906_v39, %v1905_v21  ;;  %v1887_v29 = vmul.f32 %v3895_v48, %v1886_v35 }
 0x4b5   :  { %v1884_v24 = vsel %vm1883_vm10, %v3893_v63, %v1880_v31 }
 0x4b6   :  { %1985 = vmatmul.bf16.vlgmr.msrb.gmra.mxu0 %v1926_v41  ;;  %v1888_v40 = vmul.f32 0.5, %v1887_v29  ;;  %v1897_v33 = vmul.f32 %v1884_v24, %v4997_v45 }
 0x4b8   :  { %v1889_v34 = vsub.f32 1.5, %v1888_v40  ;;  %v1902_v18 = vmul.f32 %v1899_v4, %v1897_v33 }
 0x4ba   :  { %v1890_v30 = vmul.f32 %v3895_v48, %v1889_v34  ;;  %v1907_v46 = vadd.f32 %v1904_v16, %v1902_v18 }
 0x4bc   :  { %v1894_v12 = vsel %vm1893_vm13, %v3895_v48, %v1890_v30 }
 0x4bd   :  { %v1898_v58 = vmul.f32 %v1894_v12, %v5003_v2 }
 0x4bf   :  { %v1903_v54 = vmul.f32 %v1899_v4, %v1898_v58  ;;  %v2087_v4 = vpop.xlane.xlu2 %2086 }
 0x4c0   :  { %v2092_v6 = vmul.f32 %v2087_v4, %v4544_v15 }
 0x4c1   :  { %v1908_v22 = vadd.f32 %v1904_v16, %v1903_v54 }
 0x4c2   :  { %v5045_v63 = vsub.f32 %v5012_v11, %v2092_v6 }
 0x4c3   :  { %v1927_v55 = vpack.c.bf16 %v1908_v22, %v1907_v46 }
 0x4c4   :  { %v2100_v53 = vmul.f32 %v5045_v63, %v5045_v63 }
 0x4c6   :  { %1990 = vmatmul.bf16.gmra.mxu0 %v1927_v55 }
 0x533   :  { %v1986_v7 = vpop.f32.mrf.mxu0 }
 0x534   :  { %v1987_v19 = vadd.f32 %v1986_v7, %v1928_v60 }
 0x53b   :  { %v1988_v56 = vpop.f32.mrf.mxu0 }
 0x53c   :  { %v1989_v25 = vadd.f32 %v1988_v56, %v1928_v60 }
 0x53e   :  { %v2172_v17 = vpack.c.bf16 %v1989_v25, %v1987_v19 }
 0x540   :  { %2182 = vmatmul.bf16.vlgmr.msra.gmra.mxu3 %v2172_v17 }
 0x543   :  { %v1991_v45 = vpop.f32.mrf.mxu0 }
 0x544   :  { %v1992_v59 = vadd.f32 %v1991_v45, %v1928_v60 }
 0x54b   :  { %v1993_v57 = vpop.f32.mrf.mxu0 }
 0x54c   :  { %v1994_v61 = vadd.f32 %v1993_v57, %v1928_v60 }
 0x54e   :  { %v2173_v1 = vpack.c.bf16 %v1994_v61, %v1992_v59  ;;  %v5078_v59 = vperm.slane %v4988_v37, 1 }
 0x550   :  { %2187 = vmatmul.bf16.gmra.mxu3 %v2173_v1 }
 0x5c3   :  { %v2183_v2 = vpop.f32.mrf.mxu3 }
 0x5c4   :  { %v2184_v49 = vadd.f32 %v2183_v2, %v4991_v44 }
 0x5c6   :  { %2193 = vadd.xlane.f32.xlu0 %v2184_v49 }
 0x5cb   :  { %v2185_v10 = vpop.f32.mrf.mxu3 }
 0x5cc   :  { %v2186_v62 = vadd.f32 %v2185_v10, %v4991_v44 }
 0x5ce   :  { %2088 = vadd.xlane.f32.xlu0 %v2080_v26  ;;  %2195 = vadd.xlane.f32.xlu1 %v2186_v62 }
 0x5d3   :  { %v2188_v3 = vpop.f32.mrf.mxu3 }
 0x5d4   :  { %v2189_v42 = vadd.f32 %v2188_v3, %v4991_v44 }
 0x5d6   :  { %2102 = vadd.xlane.f32.xlu0 %v2098_v47  ;;  %2197 = vadd.xlane.f32.xlu1 %v2189_v42 }
 0x5db   :  { %v2190_v50 = vpop.f32.mrf.mxu3 }
 0x5dc   :  { %v2191_v32 = vadd.f32 %v2190_v50, %v4991_v44 }
 0x5de   :  { %2199 = vadd.xlane.f32.xlu2 %v2191_v32  ;;  %2104 = vadd.xlane.f32.xlu1 %v2099_v0 }
 0x5e6   :  { %2106 = vadd.xlane.f32.xlu1 %v2100_v53 }
 0x639   :  { %v2194_v43 = vpop.xlane.xlu0 %2193 }
 0x63a   :  { %v2201_v13 = vmul.f32 %v2194_v43, %v4544_v15 }
 0x63c   :  { %v5050_v16 = vsub.f32 %v2184_v49, %v2201_v13  ;;  %v5082_v49 = vperm.slane %v4988_v37, 2 }
 0x63e   :  { %v2209_v44 = vmul.f32 %v5050_v16, %v5050_v16 }
 0x640   :  { %2213 = vadd.xlane.f32.xlu2 %v2209_v44 }
 0x641   :  { %v2089_v23 = vpop.xlane.xlu0 %2088  ;;  %v2196_v20 = vpop.xlane.xlu1 %2195 }
 0x642   :  { %v2093_v27 = vmul.f32 %v2089_v23, %v4544_v15  ;;  %v2202_v11 = vmul.f32 %v2196_v20, %v4544_v15 }
 0x644   :  { %v5056_v21 = vsub.f32 %v2080_v26, %v2093_v27  ;;  %v5058_v39 = vsub.f32 %v2186_v62, %v2202_v11 }
 0x646   :  { %v2101_v48 = vmul.f32 %v5056_v21, %v5056_v21  ;;  %v2210_v28 = vmul.f32 %v5058_v39, %v5058_v39 }
 0x648   :  { %2108 = vadd.xlane.f32.xlu2 %v2101_v48  ;;  %2215 = vadd.xlane.f32.xlu0 %v2210_v28 }
 0x649   :  { %v2103_v35 = vpop.xlane.xlu0 %2102  ;;  %v2198_v51 = vpop.xlane.xlu1 %2197 }
 0x64a   :  { %v2110_v41 = vmul.f32 %v2103_v35, %v4544_v15  ;;  %v2203_v29 = vmul.f32 %v2198_v51, %v4544_v15 }
 0x64c   :  { %v2114_v31 = vadd.f32 1e-05, %v2110_v41  ;;  %v5066_v40 = vsub.f32 %v2189_v42, %v2203_v29 }
 0x64e   :  { %3896 = vrsqrt.f32 %v2114_v31  ;;  %v2211_v24 = vmul.f32 %v5066_v40, %v5066_v40  ;;  %vm2124_vm15 = vweird.f32 %v2114_v31 }
 0x650   :  { %2217 = vadd.xlane.f32.xlu0 %v2211_v24 }
 0x651   :  { %v2200_v34 = vpop.xlane.xlu2 %2199  ;;  %v2105_v33 = vpop.xlane.xlu1 %2104 }
 0x652   :  { %v2204_v30 = vmul.f32 %v2200_v34, %v4544_v15  ;;  %v2111_v12 = vmul.f32 %v2105_v33, %v4544_v15 }
 0x654   :  { %v3897_v58 = vpop.eup %3896  ;;  %v5072_v54 = vsub.f32 %v2191_v32, %v2204_v30  ;;  %v2115_v46 = vadd.f32 1e-05, %v2111_v12 }
 0x655   :  { %v2119_v18 = vmul.f32 %v3897_v58, %v2114_v31  ;;  %vm2125_vm14 = vweird.f32 %v3897_v58 }
 0x656   :  { %3898 = vrsqrt.f32 %v2115_v46  ;;  %v2212_v55 = vmul.f32 %v5072_v54, %v5072_v54  ;;  %vm2126_vm2 = vmor %vm2124_vm15, %vm2125_vm14  ;;  %vm2134_vm4 = vweird.f32 %v2115_v46 }
 0x657   :  { %v2120_v22 = vmul.f32 %v3897_v58, %v2119_v18 }
 0x658   :  { %2219 = vadd.xlane.f32.xlu1 %v2212_v55 }
 0x659   :  { %v2121_v7 = vmul.f32 0.5, %v2120_v22  ;;  %v2107_v60 = vpop.xlane.xlu1 %2106 }
 0x65a   :  { %v2112_v19 = vmul.f32 %v2107_v60, %v4544_v15 }
 0x65b   :  { %v2122_v56 = vsub.f32 1.5, %v2121_v7 }
 0x65c   :  { %v3899_v25 = vpop.eup %3898  ;;  %v2116_v45 = vadd.f32 1e-05, %v2112_v19 }
 0x65d   :  { %v2123_v17 = vmul.f32 %v3897_v58, %v2122_v56  ;;  %v2129_v57 = vmul.f32 %v3899_v25, %v2115_v46  ;;  %vm2135_vm3 = vweird.f32 %v3899_v25 }
 0x65e   :  { %3900 = vrsqrt.f32 %v2116_v45  ;;  %vm2136_vm5 = vmor %vm2134_vm4, %vm2135_vm3  ;;  %vm2144_vm7 = vweird.f32 %v2116_v45 }
 0x65f   :  { %v2127_v61 = vsel %vm2126_vm2, %v3897_v58, %v2123_v17  ;;  %v2130_v1 = vmul.f32 %v3899_v25, %v2129_v57 }
 0x660   :  { %v2158_v2 = vmul.f32 %v2127_v61, %v5031_v36 }
 0x661   :  { %v2131_v52 = vmul.f32 0.5, %v2130_v1 }
 0x662   :  { %v2163_v5 = vmul.f32 %v5078_v59, %v2158_v2 }
 0x663   :  { %v2132_v10 = vsub.f32 1.5, %v2131_v52 }
 0x664   :  { %v5086_v26 = vadd.f32 %v5082_v49, %v2163_v5  ;;  %v3901_v14 = vpop.eup %3900 }
 0x665   :  { %v2133_v62 = vmul.f32 %v3899_v25, %v2132_v10  ;;  %v2139_v38 = vmul.f32 %v3901_v14, %v2116_v45  ;;  %vm2145_vm6 = vweird.f32 %v3901_v14 }
 0x666   :  { %2281 = vadd.xlane.f32.xlu2 %v5086_v26  ;;  %vm2146_vm1 = vmor %vm2144_vm7, %vm2145_vm6 }
 0x667   :  { %v2140_v3 = vmul.f32 %v3901_v14, %v2139_v38  ;;  %v2137_v36 = vsel %vm2136_vm5, %v3899_v25, %v2133_v62 }
 0x668   :  { %v2159_v47 = vmul.f32 %v2137_v36, %v5038_v8 }
 0x669   :  { %v2141_v9 = vmul.f32 0.5, %v2140_v3 }
 0x66a   :  { %v2164_v42 = vmul.f32 %v5078_v59, %v2159_v47 }
 0x66b   :  { %v2142_v4 = vsub.f32 1.5, %v2141_v9 }
 0x66c   :  { %v5092_v50 = vadd.f32 %v5082_v49, %v2164_v42 }
 0x66d   :  { %v2143_v6 = vmul.f32 %v3901_v14, %v2142_v4 }
 0x66e   :  { %2283 = vadd.xlane.f32.xlu0 %v5092_v50 }
 0x66f   :  { %v2147_v32 = vsel %vm2146_vm1, %v3901_v14, %v2143_v6 }
 0x670   :  { %v2160_v0 = vmul.f32 %v2147_v32, %v5045_v63 }
 0x672   :  { %v2165_v53 = vmul.f32 %v5078_v59, %v2160_v0 }
 0x674   :  { %v5098_v8 = vadd.f32 %v5082_v49, %v2165_v53 }
 0x676   :  { %2285 = vadd.xlane.f32.xlu0 %v5098_v8 }
 0x6b3   :  { %v2214_v43 = vpop.xlane.xlu2 %2213 }
 0x6b4   :  { %v2221_v13 = vmul.f32 %v2214_v43, %v4544_v15 }
 0x6b6   :  { %v2225_v44 = vadd.f32 1e-05, %v2221_v13 }
 0x6b8   :  { %3902 = vrsqrt.f32 %v2225_v44  ;;  %vm2235_vm9 = vweird.f32 %v2225_v44 }
 0x6bb   :  { %v2109_v23 = vpop.xlane.xlu2 %2108  ;;  %v2216_v20 = vpop.xlane.xlu0 %2215 }
 0x6bc   :  { %v2113_v27 = vmul.f32 %v2109_v23, %v4544_v15  ;;  %v2222_v11 = vmul.f32 %v2216_v20, %v4544_v15 }
 0x6be   :  { %v3903_v48 = vpop.eup %3902  ;;  %v2117_v63 = vadd.f32 1e-05, %v2113_v27  ;;  %v2226_v28 = vadd.f32 1e-05, %v2222_v11 }
 0x6bf   :  { %v2230_v35 = vmul.f32 %v3903_v48, %v2225_v44  ;;  %vm2236_vm8 = vweird.f32 %v3903_v48 }
 0x6c0   :  { %3904 = vrsqrt.f32 %v2117_v63  ;;  %vm2237_vm0 = vmor %vm2235_vm9, %vm2236_vm8  ;;  %vm2154_vm12 = vweird.f32 %v2117_v63  ;;  %vm2245_vm14 = vweird.f32 %v2226_v28 }
 0x6c1   :  { %v2231_v41 = vmul.f32 %v3903_v48, %v2230_v35  ;;  %3906 = vrsqrt.f32 %v2226_v28 }
 0x6c3   :  { %v2232_v51 = vmul.f32 0.5, %v2231_v41  ;;  %v2218_v29 = vpop.xlane.xlu0 %2217 }
 0x6c4   :  { %v2223_v24 = vmul.f32 %v2218_v29, %v4544_v15 }
 0x6c5   :  { %v2233_v31 = vsub.f32 1.5, %v2232_v51 }
 0x6c6   :  { %v3905_v34 = vpop.eup %3904  ;;  %v2227_v58 = vadd.f32 1e-05, %v2223_v24 }
 0x6c7   :  { %v3907_v33 = vpop.eup %3906  ;;  %v2234_v30 = vmul.f32 %v3903_v48, %v2233_v31  ;;  %v2149_v12 = vmul.f32 %v3905_v34, %v2117_v63  ;;  %vm2155_vm10 = vweird.f32 %v3905_v34 }
 0x6c8   :  { %v2240_v18 = vmul.f32 %v3907_v33, %v2226_v28  ;;  %3908 = vrsqrt.f32 %v2227_v58  ;;  %vm2246_vm11 = vweird.f32 %v3907_v33  ;;  %vm2156_vm13 = vmor %vm2154_vm12, %vm2155_vm10  ;;  %vm2255_vm3 = vweird.f32 %v2227_v58 }
 0x6c9   :  { %v2150_v46 = vmul.f32 %v3905_v34, %v2149_v12  ;;  %v2238_v22 = vsel %vm2237_vm0, %v3903_v48, %v2234_v30  ;;  %vm2247_vm15 = vmor %vm2245_vm14, %vm2246_vm11  ;;  %v3782_v12 = vld [vmem:[#allocation7 + $0x38] sm:$0xff] }
 0x6ca   :  { %v2241_v55 = vmul.f32 %v3907_v33, %v2240_v18  ;;  %v2269_v7 = vmul.f32 %v2238_v22, %v5050_v16  ;;  %2575 = vmatpush.bf16.msra.mxu1 %v3782_v12 }
 0x6cb   :  { %v2151_v60 = vmul.f32 0.5, %v2150_v46  ;;  %v2220_v19 = vpop.xlane.xlu1 %2219 }
 0x6cc   :  { %v2242_v56 = vmul.f32 0.5, %v2241_v55  ;;  %v2273_v25 = vmul.f32 %v2269_v7, %v5078_v59  ;;  %v2224_v45 = vmul.f32 %v2220_v19, %v4544_v15  ;;  %v3780_v55 = vld [vmem:[#allocation7 + $0x28] sm:$0xff] }
 0x6cd   :  { %v2152_v17 = vsub.f32 1.5, %v2151_v60 }
 0x6ce   :  { %v2243_v57 = vsub.f32 1.5, %v2242_v56  ;;  %v5109_v61 = vadd.f32 %v2273_v25, %v5082_v49  ;;  %v3909_v1 = vpop.eup %3908  ;;  %v2228_v52 = vadd.f32 1e-05, %v2224_v45 }
 0x6cf   :  { %v2153_v2 = vmul.f32 %v3905_v34, %v2152_v17  ;;  %v2250_v5 = vmul.f32 %v3909_v1, %v2227_v58  ;;  %vm2256_vm2 = vweird.f32 %v3909_v1 }
 0x6d0   :  { %v2244_v16 = vmul.f32 %v3907_v33, %v2243_v57  ;;  %2289 = vadd.xlane.f32.xlu1 %v5109_v61  ;;  %3910 = vrsqrt.f32 %v2228_v52  ;;  %vm2257_vm4 = vmor %vm2255_vm3, %vm2256_vm2  ;;  %vm2265_vm6 = vweird.f32 %v2228_v52 }
 0x6d1   :  { %v2157_v10 = vsel %vm2156_vm13, %v3905_v34, %v2153_v2  ;;  %v2251_v14 = vmul.f32 %v3909_v1, %v2250_v5 }
 0x6d2   :  { %v2161_v62 = vmul.f32 %v2157_v10, %v5056_v21  ;;  %v2248_v38 = vsel %vm2247_vm15, %v3907_v33, %v2244_v16 }
 0x6d3   :  { %v2270_v3 = vmul.f32 %v2248_v38, %v5058_v39  ;;  %v2252_v36 = vmul.f32 0.5, %v2251_v14 }
 0x6d4   :  { %v2166_v47 = vmul.f32 %v5078_v59, %v2161_v62 }
 0x6d5   :  { %v2274_v9 = vmul.f32 %v2270_v3, %v5078_v59  ;;  %v2253_v42 = vsub.f32 1.5, %v2252_v36 }
 0x6d6   :  { %v5117_v4 = vadd.f32 %v5082_v49, %v2166_v47  ;;  %v3911_v6 = vpop.eup %3910  ;;  %v3779_v47 = vld [vmem:[#allocation7 + $0x20] sm:$0xff] }
 0x6d7   :  { %v2278_v32 = vadd.f32 %v2274_v9, %v5082_v49  ;;  %v2254_v0 = vmul.f32 %v3909_v1, %v2253_v42  ;;  %v2260_v53 = vmul.f32 %v3911_v6, %v2228_v52  ;;  %vm2266_vm5 = vweird.f32 %v3911_v6  ;;  %v3790_v9 = vld [vmem:[#allocation7 + $0x78] sm:$0xff]  ;;  %v3789_v42 = vld [vmem:[#allocation7 + $0x70] sm:$0xff] }
 0x6d8   :  { %2287 = vadd.xlane.f32.xlu1 %v5117_v4  ;;  %vm2267_vm7 = vmor %vm2265_vm6, %vm2266_vm5  ;;  %2508 = vmatpush.bf16.msra.mxu0 %v3790_v9 }
 0x6d9   :  { %2291 = vadd.xlane.f32.xlu2 %v2278_v32  ;;  %v2261_v21 = vmul.f32 %v3911_v6, %v2260_v53  ;;  %v2258_v39 = vsel %vm2257_vm4, %v3909_v1, %v2254_v0  ;;  %v2282_v24 = vpop.xlane.xlu2 %2281  ;;  %v3778_v53 = vld [vmem:[#allocation7 + $0x18] sm:$0xff] }
 0x6da   :  { %v2271_v43 = vmul.f32 %v2258_v39, %v5066_v40  ;;  %v4050_v40 = vmov 256.0  }
 0x6db   :  { %v2262_v13 = vmul.f32 0.5, %v2261_v21  ;;  %3912 = vrcp.f32 %v4050_v40  ;;  %v3785_v40 = vld [vmem:[#allocation7 + $0x50] sm:$0xff] }
 0x6dc   :  { %v2275_v44 = vmul.f32 %v2271_v43, %v5078_v59  ;;  %2509 = vmatpush.bf16.msra.mxu0 %v3789_v42  ;;  %v3787_v43 = vld [vmem:[#allocation7 + $0x60] sm:$0xff] }
 0x6dd   :  { %v2263_v23 = vsub.f32 1.5, %v2262_v13  ;;  %v3777_v13 = vld [vmem:[#allocation7 + $0x10] sm:$0xff] }
 0x6de   :  { %v2279_v20 = vadd.f32 %v2275_v44, %v5082_v49 }
 0x6df   :  { %v2264_v27 = vmul.f32 %v3911_v6, %v2263_v23 }
 0x6e1   :  { %2293 = vadd.xlane.f32.xlu2 %v2279_v20  ;;  %v2268_v11 = vsel %vm2267_vm7, %v3911_v6, %v2264_v27  ;;  %v3913_v35 = vpop.eup %3912  ;;  %v2284_v18 = vpop.xlane.xlu0 %2283  ;;  %v3786_v27 = vld [vmem:[#allocation7 + $0x58] sm:$0xff]  ;;  %vm4051_vm7 = vmmov 1  }
 0x6e2   :  { %v2272_v48 = vmul.f32 %v2268_v11, %v5072_v54  ;;  %v2302_v41 = vmul.f32 256.0, %v3913_v35  ;;  %vm2306_vm1 = vweird.f32 %v3913_v35 }
 0x6e4   :  { %v2276_v63 = vmul.f32 %v2272_v48, %v5078_v59  ;;  %v2303_v51 = vsub.f32 1.0, %v2302_v41  ;;  %v3781_v59 = vld [vmem:[#allocation7 + $0x30] sm:$0xff] }
 0x6e5   :  { %2576 = vmatpush.bf16.msra.mxu1 %v3781_v59  ;;  %v3783_v59 = vld [vmem:[#allocation7 + $0x40] sm:$0xff] }
 0x6e6   :  { %v2280_v28 = vadd.f32 %v2276_v63, %v5082_v49  ;;  %v2304_v29 = vmul.f32 %v3913_v35, %v2303_v51  ;;  %v3784_v51 = vld [vmem:[#allocation7 + $0x48] sm:$0xff] }
 0x6e8   :  { %2295 = vadd.xlane.f32.xlu0 %v2280_v28  ;;  %v2305_v31 = vadd.f32 %v3913_v35, %v2304_v29 }
 0x6e9   :  { %2577 = vmatpush.bf16.msra.mxu1 %v3780_v55  ;;  %v2286_v45 = vpop.xlane.xlu0 %2285 }
 0x6ea   :  { %v5127_v34 = vsel %vm2306_vm1, %v3913_v35, %v2305_v31  ;;  %v3776_v35 = vld [vmem:[#allocation7 + $0x8] sm:$0xff] }
 0x6ed   :  { %2578 = vmatpush.bf16.msra.mxu1 %v3779_v47 }
 0x6f1   :  { %2579 = vmatpush.bf16.msra.mxu1 %v3778_v53 }
 0x6f5   :  { %2580 = vmatpush.bf16.msra.mxu1 %v3777_v13 }
 0x6f9   :  { %2581 = vmatpush.bf16.msra.mxu1 %v3776_v35 }
 0x743   :  { %v2290_v33 = vpop.xlane.xlu1 %2289 }
 0x744   :  { %v2297_v30 = vadd.f32 %v2290_v33, %v2282_v24  ;;  %v3775_v24 = vld [vmem:[#allocation7] sm:$0xff] }
 0x745   :  { %2582 = vmatpush.bf16.msra.mxu1 %v3775_v24 }
 0x746   :  { %v2308_v54 = vmul.f32 %v5127_v34, %v2297_v30 }
 0x748   :  { %v5131_v49 = vsub.f32 %v5109_v61, %v2308_v54  ;;  %v5134_v58 = vsub.f32 %v5086_v26, %v2308_v54 }
 0x74a   :  { %v2332_v46 = vmul.f32 %v5131_v49, %v5131_v49  ;;  %v2316_v22 = vmul.f32 %v5134_v58, %v5134_v58 }
 0x74b   :  { %v2288_v5 = vpop.xlane.xlu1 %2287 }
 0x74c   :  { %v2292_v7 = vpop.xlane.xlu2 %2291  ;;  %2336 = vadd.xlane.f32.xlu0 %v2332_v46  ;;  %2320 = vadd.xlane.f32.xlu1 %v2316_v22 }
 0x74d   :  { %v2298_v60 = vadd.f32 %v2292_v7, %v2284_v18 }
 0x74f   :  { %v2309_v56 = vmul.f32 %v5127_v34, %v2298_v60 }
 0x751   :  { %v5142_v19 = vsub.f32 %v5092_v50, %v2309_v56  ;;  %v5144_v26 = vsub.f32 %v2278_v32, %v2309_v56 }
 0x753   :  { %v2317_v25 = vmul.f32 %v5142_v19, %v5142_v19  ;;  %v2333_v17 = vmul.f32 %v5144_v26, %v5144_v26 }
 0x754   :  { %v2294_v57 = vpop.xlane.xlu2 %2293 }
 0x755   :  { %v2299_v61 = vadd.f32 %v2294_v57, %v2286_v45  ;;  %2322 = vadd.xlane.f32.xlu2 %v2317_v25  ;;  %2338 = vadd.xlane.f32.xlu1 %v2333_v17  ;;  %v103_v17 = vld [vmem:[%s5438_s10 + $0x8] sm:$0xff]  ;;  %v3806_v45 = vld [vmem:[%s5437_s9 + $0x78] sm:$0xff] }
 0x756   :  { %2787 = vmatpush.bf16.msrb.mxu2 %v3806_v45  ;;  %v3797_v45 = vld [vmem:[%s5437_s9 + $0x30] sm:$0xff] }
 0x757   :  { %v2310_v1 = vmul.f32 %v5127_v34, %v2299_v61 }
 0x759   :  { %v5152_v2 = vsub.f32 %v5098_v8, %v2310_v1  ;;  %v5154_v50 = vsub.f32 %v2279_v20, %v2310_v1  ;;  %v3814_v1 = vld [vmem:[%s5437_s9 + $0xb8] sm:$0xff] }
 0x75b   :  { %v2318_v52 = vmul.f32 %v5152_v2, %v5152_v2  ;;  %v2334_v16 = vmul.f32 %v5154_v50, %v5154_v50  ;;  %v2296_v10 = vpop.xlane.xlu0 %2295 }
 0x75c   :  { %v2300_v14 = vadd.f32 %v2296_v10, %v2288_v5  ;;  %v2414_v10 = vperm.slane %v103_v17, 7  ;;  %v3801_v17 = vld [vmem:[%s5437_s9 + $0x50] sm:$0xff] }
 0x75d   :  { %2324 = vadd.xlane.f32.xlu2 %v2318_v52  ;;  %2340 = vadd.xlane.f32.xlu1 %v2334_v16  ;;  %v3805_v16 = vld [vmem:[%s5437_s9 + $0x70] sm:$0xff] }
 0x75e   :  { %v2311_v62 = vmul.f32 %v5127_v34, %v2300_v14  ;;  %v3813_v14 = vld [vmem:[%s5437_s9 + $0xb0] sm:$0xff]  ;;  %2788 = vmatpush.bf16.msrb.mxu2 %v3805_v16  ;;  %v3799_v16 = vld [vmem:[%s5437_s9 + $0x40] sm:$0xff] }
 0x760   :  { %v5161_v38 = vsub.f32 %v2280_v28, %v2311_v62  ;;  %v5164_v8 = vsub.f32 %v5117_v4, %v2311_v62  ;;  %v3788_v4 = vld [vmem:[#allocation7 + $0x68] sm:$0xff] }
 0x761   :  { %2510 = vmatpush.bf16.msra.mxu0 %v3788_v4 }
 0x762   :  { %v2335_v3 = vmul.f32 %v5161_v38, %v5161_v38  ;;  %v2319_v36 = vmul.f32 %v5164_v8, %v5164_v8 }
 0x764   :  { %2326 = vadd.xlane.f32.xlu0 %v2319_v36 }
 0x765   :  { %2342 = vadd.xlane.f32.xlu2 %v2335_v3  ;;  %2511 = vmatpush.bf16.msra.mxu0 %v3787_v43 }
 0x769   :  { %2512 = vmatpush.bf16.msra.mxu0 %v3786_v27 }
 0x76d   :  { %2513 = vmatpush.bf16.msra.mxu0 %v3785_v40 }
 0x771   :  { %2514 = vmatpush.bf16.msra.mxu0 %v3784_v51 }
 0x775   :  { %2515 = vmatpush.bf16.msra.mxu0 %v3783_v59 }
 0x779   :  { %2940 = vmatpush.bf16.msrb.mxu0 %v3814_v1  ;;  %v3796_v1 = vld [vmem:[%s5437_s9 + $0x28] sm:$0xff] }
 0x77d   :  { %2941 = vmatpush.bf16.msrb.mxu0 %v3813_v14  ;;  %v3794_v14 = vld [vmem:[%s5437_s9 + $0x18] sm:$0xff] }
 0x7bf   :  { %v2337_v6 = vpop.xlane.xlu0 %2336  ;;  %v2321_v32 = vpop.xlane.xlu1 %2320 }
 0x7c0   :  { %v2344_v0 = vadd.f32 %v2337_v6, %v2321_v32  ;;  %v3804_v6 = vld [vmem:[%s5437_s9 + $0x68] sm:$0xff] }
 0x7c1   :  { %2789 = vmatpush.bf16.msrb.mxu2 %v3804_v6  ;;  %v2599_v6 = vlaneseq }
 0x7c2   :  { %v2348_v21 = vmul.f32 %v2344_v0, %v5127_v34 }
 0x7c4   :  { %v2352_v39 = vadd.f32 1e-05, %v2348_v21  ;;  %v3829_v21 = vld [vmem:[%s5438_s10 + $0x10] ss:$0 sm:$0xff] }
 0x7c6   :  { %3914 = vrsqrt.f32 %v2352_v39  ;;  %vm2362_vm9 = vweird.f32 %v2352_v39 }
 0x7c8   :  { %v2323_v44 = vpop.xlane.xlu2 %2322  ;;  %v2339_v23 = vpop.xlane.xlu1 %2338 }
 0x7c9   :  { %v2345_v20 = vadd.f32 %v2339_v23, %v2323_v44 }
 0x7cb   :  { %v2349_v11 = vmul.f32 %v2345_v20, %v5127_v34 }
 0x7cc   :  { %v3915_v48 = vpop.eup %3914 }
 0x7cd   :  { %v2357_v63 = vmul.f32 %v3915_v48, %v2352_v39  ;;  %v2353_v28 = vadd.f32 1e-05, %v2349_v11  ;;  %vm2363_vm8 = vweird.f32 %v3915_v48 }
 0x7ce   :  { %vm2364_vm0 = vmor %vm2362_vm9, %vm2363_vm8 }
 0x7cf   :  { %v2358_v41 = vmul.f32 %v3915_v48, %v2357_v63  ;;  %3916 = vrsqrt.f32 %v2353_v28  ;;  %vm2372_vm11 = vweird.f32 %v2353_v28 }
 0x7d0   :  { %v2325_v29 = vpop.xlane.xlu2 %2324  ;;  %v2341_v31 = vpop.xlane.xlu1 %2340 }
 0x7d1   :  { %v2359_v33 = vmul.f32 0.5, %v2358_v41  ;;  %v2346_v30 = vadd.f32 %v2341_v31, %v2325_v29 }
 0x7d3   :  { %v2360_v12 = vsub.f32 1.5, %v2359_v33  ;;  %v2350_v54 = vmul.f32 %v2346_v30, %v5127_v34 }
 0x7d5   :  { %v3917_v18 = vpop.eup %3916  ;;  %v5173_v46 = vadd.f32 1e-05, %v2350_v54  ;;  %v2361_v22 = vmul.f32 %v3915_v48, %v2360_v12 }
 0x7d6   :  { %v2367_v55 = vmul.f32 %v3917_v18, %v2353_v28  ;;  %vm2373_vm10 = vweird.f32 %v3917_v18 }
 0x7d7   :  { %3918 = vrsqrt.f32 %v5173_v46  ;;  %v2327_v56 = vpop.xlane.xlu0 %2326  ;;  %v2365_v57 = vsel %vm2364_vm0, %v3915_v48, %v2361_v22  ;;  %vm2374_vm12 = vmor %vm2372_vm11, %vm2373_vm10  ;;  %vm2382_vm14 = vweird.f32 %v5173_v46 }
 0x7d8   :  { %v2368_v7 = vmul.f32 %v3917_v18, %v2367_v55  ;;  %v2343_v60 = vpop.xlane.xlu2 %2342  ;;  %v2396_v3 = vmul.f32 %v2365_v57, %v5134_v58  ;;  %v2410_v36 = vmul.f32 %v2365_v57, %v5131_v49  ;;  %v3811_v57 = vld [vmem:[%s5437_s9 + $0xa0] sm:$0xff] }
 0x7d9   :  { %v2347_v25 = vadd.f32 %v2343_v60, %v2327_v56 }
 0x7da   :  { %v2369_v61 = vmul.f32 0.5, %v2368_v7  ;;  %v2415_v53 = vmul.f32 %v2414_v10, %v2410_v36  ;;  %v3807_v36 = vld [vmem:[%s5437_s9 + $0x80] sm:$0xff] }
 0x7db   :  { %v2351_v52 = vmul.f32 %v2347_v25, %v5127_v34  ;;  %v2400_v34 = vperm.slane %v4988_v37, 7  ;;  %v3828_v37 = vld [vmem:[%s5438_s10 + $0x18] ss:$0 sm:$0xff] }
 0x7dc   :  { %v2370_v5 = vsub.f32 1.5, %v2369_v61  ;;  %v2420_v23 = vadd.f32 %v3828_v37, %v2415_v53  ;;  %v3800_v61 = vld [vmem:[%s5437_s9 + $0x48] sm:$0xff] }
 0x7dd   :  { %v3919_v62 = vpop.eup %3918  ;;  %v2355_v47 = vadd.f32 1e-05, %v2351_v52  ;;  %v2401_v4 = vmul.f32 %v2400_v34, %v2396_v3  ;;  %v3810_v52 = vld [vmem:[%s5437_s9 + $0x98] sm:$0xff]  ;;  %v3793_v3 = vld [vmem:[%s5437_s9 + $0x10] sm:$0xff] }
 0x7de   :  { %v2371_v9 = vmul.f32 %v3917_v18, %v2370_v5  ;;  %v2377_v42 = vmul.f32 %v3919_v62, %v5173_v46  ;;  %vm2383_vm13 = vweird.f32 %v3919_v62  ;;  %v3795_v5 = vld [vmem:[%s5437_s9 + $0x20] sm:$0xff] }
 0x7df   :  { %3920 = vrsqrt.f32 %v2355_v47  ;;  %v2406_v27 = vadd.f32 %v3829_v21, %v2401_v4  ;;  %vm2384_vm15 = vmor %vm2382_vm14, %vm2383_vm13  ;;  %vm2392_vm3 = vweird.f32 %v2355_v47  ;;  %v2600_v4 = vshrl.u32 %v2599_v6, 7 }
 0x7e0   :  { %v2375_v32 = vsel %vm2374_vm12, %v3917_v18, %v2371_v9  ;;  %v2378_v0 = vmul.f32 %v3919_v62, %v2377_v42 }
 0x7e1   :  { %v2397_v58 = vmul.f32 %v2375_v32, %v5142_v19  ;;  %v2411_v49 = vmul.f32 %v2375_v32, %v5144_v26  ;;  %v3803_v19 = vld [vmem:[%s5437_s9 + $0x60] sm:$0xff]  ;;  %vm2685_vm5 = vcmp.lt.s32.totalorder %v2600_v4, 7  ;;  %vm2660_vm8 = vcmp.lt.s32.totalorder %v2600_v4, 1 }
 0x7e2   :  { %v2379_v39 = vmul.f32 0.5, %v2378_v0  ;;  %2790 = vmatpush.bf16.msrb.mxu2 %v3803_v19  ;;  %v5272_v0 = vld [vmem:[%s5438_s10] sm:$0xff] }
 0x7e3   :  { %v2416_v43 = vmul.f32 %v2414_v10, %v2411_v49  ;;  %v2402_v13 = vmul.f32 %v2400_v34, %v2397_v58  ;;  %v2594_v58 = vperm.slane %v5272_v0, 3 }
 0x7e4   :  { %v2380_v44 = vsub.f32 1.5, %v2379_v39 }
 0x7e5   :  { %v3921_v26 = vpop.eup %3920  ;;  %v2421_v20 = vadd.f32 %v3828_v37, %v2416_v43  ;;  %v2407_v11 = vadd.f32 %v3829_v21, %v2402_v13  ;;  %v2601_v43 = vadd.s32 8, %v2600_v4 }
 0x7e6   :  { %v2381_v48 = vmul.f32 %v3919_v62, %v2380_v44  ;;  %v2387_v63 = vmul.f32 %v3921_v26, %v2355_v47  ;;  %vm2393_vm2 = vweird.f32 %v3921_v26  ;;  %v3792_v47 = vld [vmem:[%s5437_s9 + $0x8] sm:$0xff] }
 0x7e7   :  { %v2458_v28 = vpack.c.bf16 %v2421_v20, %v2420_v23  ;;  %v2456_v40 = vpack.c.bf16 %v2407_v11, %v2406_v27  ;;  %vm2394_vm4 = vmor %vm2392_vm3, %vm2393_vm2 }
 0x7e8   :  { %v2388_v35 = vmul.f32 %v3921_v26, %v2387_v63  ;;  %v2385_v51 = vsel %vm2384_vm15, %v3919_v62, %v2381_v48  ;;  %v3808_v62 = vld [vmem:[%s5437_s9 + $0x88] sm:$0xff] }
 0x7e9   :  { %2516 = vmatmul.bf16.vlgmr.msra.gmra.mxu0 %v2458_v28  ;;  %2583 = vmatmul.bf16.vlgmr.msra.gmra.mxu1 %v2456_v40  ;;  %v2412_v31 = vmul.f32 %v2385_v51, %v5154_v50  ;;  %v2398_v24 = vmul.f32 %v2385_v51, %v5152_v2  ;;  %v3802_v2 = vld [vmem:[%s5437_s9 + $0x58] sm:$0xff]  ;;  %v2608_v51 = vand.u32 15, %v2600_v4 }
 0x7ea   :  { %v2389_v41 = vmul.f32 0.5, %v2388_v35  ;;  %2791 = vmatpush.bf16.msrb.mxu2 %v3802_v2 }
 0x7eb   :  { %v2417_v54 = vmul.f32 %v2414_v10, %v2412_v31  ;;  %v2403_v18 = vmul.f32 %v2400_v34, %v2398_v24  ;;  %vm3815_vm9 = vcmp.ne.s32.totalorder %v2608_v51, 0 }
 0x7ec   :  { %v2390_v29 = vsub.f32 1.5, %v2389_v41  ;;  %vm3652_vm0 = vmpackc.low %vm4051_vm7, %vm3815_vm9 }
 0x7ed   :  { %v2422_v55 = vadd.f32 %v3828_v37, %v2417_v54  ;;  %v2408_v60 = vadd.f32 %v3829_v21, %v2403_v18 }
 0x7ee   :  { %v2391_v33 = vmul.f32 %v3921_v26, %v2390_v29  ;;  %2792 = vmatpush.bf16.msrb.mxu2 %v3801_v17 }
 0x7f0   :  { %v2395_v30 = vsel %vm2394_vm4, %v3921_v26, %v2391_v33  ;;  %v2615_v26 = vand.u32 15, %v2601_v43  ;;  %v2603_v33 = vadd.s32 24, %v2600_v4 }
 0x7f1   :  { %v2413_v12 = vmul.f32 %v2395_v30, %v5161_v38  ;;  %v2399_v59 = vmul.f32 %v2395_v30, %v5164_v8  ;;  %v3798_v38 = vld [vmem:[%s5437_s9 + $0x38] sm:$0xff]  ;;  %v3812_v8 = vld [vmem:[%s5437_s9 + $0xa8] sm:$0xff] }
 0x7f2   :  { %2854 = vmatpush.bf16.msrb.mxu3 %v3798_v38  ;;  %2942 = vmatpush.bf16.msrb.mxu0 %v3812_v8  ;;  %vm3817_vm6 = vcmp.ne.s32.totalorder %v2615_v26, 15 }
 0x7f3   :  { %v2418_v46 = vmul.f32 %v2414_v10, %v2413_v12  ;;  %v2404_v22 = vmul.f32 %v2400_v34, %v2399_v59  ;;  %2793 = vmatpush.bf16.msrb.mxu2 %v3800_v61  ;;  %v3809_v10 = vld [vmem:[%s5437_s9 + $0x90] sm:$0xff]  ;;  %v3791_v34 = vld [vmem:[%s5437_s9] sm:$0xff]  ;;  %vm3708_vm1 = vmpackc.low %vm3817_vm6, %vm4051_vm7 }
 0x7f5   :  { %v2423_v7 = vadd.f32 %v3828_v37, %v2418_v46  ;;  %v2409_v56 = vadd.f32 %v3829_v21, %v2404_v22  ;;  %v2629_v22 = vand.u32 15, %v2603_v33 }
 0x7f6   :  { %2855 = vmatpush.bf16.msrb.mxu3 %v3797_v45  ;;  %2943 = vmatpush.bf16.msrb.mxu0 %v3811_v57 }
 0x7f7   :  { %v2459_v25 = vpack.c.bf16 %v2423_v7, %v2422_v55  ;;  %v2457_v50 = vpack.c.bf16 %v2409_v56, %v2408_v60  ;;  %2794 = vmatpush.bf16.msrb.mxu2 %v3799_v16  ;;  %vm3818_vm10 = vcmp.ne.s32.totalorder %v2629_v22, 15  ;;  %v2602_v7 = vadd.s32 16, %v2600_v4 }
 0x7f8   :  { %vm3712_vm11 = vmpackc.low %vm3818_vm10, %vm4051_vm7 }
 0x7f9   :  { %2521 = vmatmul.bf16.gmra.mxu0 %v2459_v25  ;;  %2588 = vmatmul.bf16.gmra.mxu1 %v2457_v50  ;;  %v2622_v50 = vand.u32 15, %v2602_v7 }
 0x7fa   :  { %2856 = vmatpush.bf16.msrb.mxu3 %v3796_v1  ;;  %2944 = vmatpush.bf16.msrb.mxu0 %v3810_v52  ;;  %v2963_v52 = vperm.slane %v5272_v0, 4 }
 0x7fb   :  { %vm3816_vm12 = vcmp.ne.s32.totalorder %v2622_v50, 0 }
 0x7fc   :  { %vm3656_vm13 = vmpackc.low %vm4051_vm7, %vm3816_vm12 }
 0x7fe   :  { %2857 = vmatpush.bf16.msrb.mxu3 %v3795_v5  ;;  %2945 = vmatpush.bf16.msrb.mxu0 %v3809_v10 }
 0x802   :  { %2858 = vmatpush.bf16.msrb.mxu3 %v3794_v14  ;;  %2946 = vmatpush.bf16.msrb.mxu0 %v3808_v62 }
 0x806   :  { %2859 = vmatpush.bf16.msrb.mxu3 %v3793_v3  ;;  %2947 = vmatpush.bf16.msrb.mxu0 %v3807_v36 }
 0x80a   :  { %2860 = vmatpush.bf16.msrb.mxu3 %v3792_v47 }
 0x80e   :  { %2861 = vmatpush.bf16.msrb.mxu3 %v3791_v34 }
 0x866   :  { %v2517_v9 = vpop.f32.mrf.mxu0  ;;  %v2584_v42 = vpop.f32.mrf.mxu1 }
 0x867   :  { %v2585_v32 = vadd.f32 %v2584_v42, %v2517_v9 }
 0x869   :  { %v5275_v21 = vadd.f32 %v2594_v58, %v2585_v32 }
 0x86b   :  { %v2681_v11 = vrot.slane %v5275_v21, 1  ;;  %v2656_v30 = vrot.slane %v5275_v21, 7 }
 0x86e   :  { %v2519_v49 = vpop.f32.mrf.mxu0  ;;  %v2586_v53 = vpop.f32.mrf.mxu1 }
 0x86f   :  { %v2587_v37 = vadd.f32 %v2586_v53, %v2519_v49 }
 0x871   :  { %v5277_v39 = vadd.f32 %v2594_v58, %v2587_v37 }
 0x873   :  { %v2737_v13 = vpack.c.bf16 %v5277_v39, %v5275_v21  ;;  %v2682_v20 = vrot.slane %v5277_v39, 1  ;;  %v2657_v31 = vrot.slane %v5277_v39, 7 }
 0x875   :  { %2795 = vmatmul.bf16.vlgmr.msrb.gmra.mxu2 %v2737_v13  ;;  %v2688_v28 = vsel %vm2685_vm5, %v2681_v11, %v2682_v20  ;;  %v2663_v59 = vsel %vm2660_vm8, %v2656_v30, %v2657_v31 }
 0x876   :  { %v2522_v19 = vpop.f32.mrf.mxu0  ;;  %v2589_v44 = vpop.f32.mrf.mxu1 }
 0x877   :  { %v2590_v23 = vadd.f32 %v2589_v44, %v2522_v19 }
 0x879   :  { %v5282_v27 = vadd.f32 %v2594_v58, %v2590_v23 }
 0x87b   :  { %v2683_v48 = vrot.slane %v5282_v27, 1  ;;  %v2658_v2 = vrot.slane %v5282_v27, 7 }
 0x87d   :  { %v2687_v63 = vsel %vm2685_vm5, %v2682_v20, %v2683_v48  ;;  %v2662_v8 = vsel %vm2660_vm8, %v2657_v31, %v2658_v2 }
 0x87e   :  { %v2524_v40 = vpop.f32.mrf.mxu0  ;;  %v2591_v35 = vpop.f32.mrf.mxu1  ;;  %v3709_v41 = vpack.c.bf16 %v2687_v63, %v2688_v28 }
 0x87f   :  { %v2592_v29 = vadd.f32 %v2591_v35, %v2524_v40 }
 0x880   :  { %3710 = vmatmul.msk.bf16.vlgmr.msrb.gmra.mxu0 %vm3708_vm1, %v3709_v41 }
 0x881   :  { %v5290_v24 = vadd.f32 %v2594_v58, %v2592_v29 }
 0x883   :  { %v2659_v12 = vrot.slane %v5290_v24, 7  ;;  %v2738_v54 = vpack.c.bf16 %v5290_v24, %v5282_v27  ;;  %v2684_v55 = vrot.slane %v5290_v24, 1 }
 0x885   :  { %2800 = vmatmul.bf16.gmra.mxu2 %v2738_v54  ;;  %v2664_v18 = vsel %vm2660_vm8, %v2659_v12, %v2656_v30  ;;  %v2686_v60 = vsel %vm2685_vm5, %v2683_v48, %v2684_v55  ;;  %v2689_v56 = vsel %vm2685_vm5, %v2684_v55, %v2681_v11  ;;  %v2661_v38 = vsel %vm2660_vm8, %v2658_v2, %v2659_v12 }
 0x886   :  { %v3653_v46 = vpack.c.bf16 %v2663_v59, %v2664_v18  ;;  %v3713_v25 = vpack.c.bf16 %v2689_v56, %v2686_v60  ;;  %v3657_v17 = vpack.c.bf16 %v2661_v38, %v2662_v8 }
 0x888   :  { %3654 = vmatmul.msk.bf16.vlgmr.msrb.gmra.mxu3 %vm3652_vm0, %v3653_v46 }
 0x890   :  { %3714 = vmatmul.msk.bf16.gmra.mxu0 %vm3712_vm11, %v3713_v25 }
 0x898   :  { %3658 = vmatmul.msk.bf16.gmra.mxu3 %vm3656_vm13, %v3657_v17 }
 0x8f8   :  { %v2796_v45 = vpop.f32.mrf.mxu2 }
 0x8fd   :  { %v2949_v57 = vpop.f32.mrf.mxu0 }
 0x900   :  { %v2798_v5 = vpop.f32.mrf.mxu2 }
 0x905   :  { %v2951_v14 = vpop.f32.mrf.mxu0 }
 0x908   :  { %v2801_v58 = vpop.f32.mrf.mxu2 }
 0x90b   :  { %v2863_v61 = vpop.f32.mrf.mxu3 }
 0x90c   :  { %v2864_v1 = vadd.f32 %v2863_v61, %v2796_v45 }
 0x90d   :  { %v2954_v4 = vpop.f32.mrf.mxu0 }
 0x90e   :  { %v2959_v16 = vadd.f32 %v2949_v57, %v2864_v1 }
 0x910   :  { %v5308_v10 = vadd.f32 %v2963_v52, %v2959_v16  ;;  %v2803_v31 = vpop.f32.mrf.mxu2 }
 0x912   :  { %v5311_v62 = vmul.f32 0.70710677, %v5308_v10 }
 0x913   :  { %v2865_v3 = vpop.f32.mrf.mxu3 }
 0x914   :  { %v2976_v36 = vmul.f32 %v5311_v62, %v5311_v62  ;;  %v2866_v47 = vadd.f32 %v2865_v3, %v2798_v5 }
 0x915   :  { %v2956_v46 = vpop.f32.mrf.mxu0 }
 0x916   :  { %v5315_v34 = vmin.f32 %v2976_v36, 16.0  ;;  %v2960_v9 = vadd.f32 %v2951_v14, %v2866_v47 }
 0x918   :  { %v5317_v42 = vadd.f32 %v2963_v52, %v2960_v9  ;;  %v2978_v6 = vmul.f32 2.1237322e-06, %v5315_v34  ;;  %v2989_v32 = vmul.f32 3.8918573e-05, %v5315_v34 }
 0x91a   :  { %v5322_v49 = vmul.f32 0.70710677, %v5317_v42  ;;  %v2979_v53 = vadd.f32 0.00028619796, %v2978_v6  ;;  %v2990_v37 = vadd.f32 0.001143296, %v2989_v32 }
 0x91b   :  { %v2868_v43 = vpop.f32.mrf.mxu3 }
 0x91c   :  { %v3016_v13 = vmul.f32 %v5322_v49, %v5322_v49  ;;  %v2869_v19 = vadd.f32 %v2868_v43, %v2801_v58  ;;  %v2980_v44 = vmul.f32 %v2979_v53, %v5315_v34  ;;  %v2991_v26 = vmul.f32 %v2990_v37, %v5315_v34 }
 0x91e   :  { %v5328_v23 = vmin.f32 %v3016_v13, 16.0  ;;  %v2961_v20 = vadd.f32 %v2954_v4, %v2869_v19  ;;  %v2981_v11 = vadd.f32 0.0036580483, %v2980_v44  ;;  %v2992_v48 = vadd.f32 0.014752088, %v2991_v26 }
 0x920   :  { %v5330_v63 = vadd.f32 %v2963_v52, %v2961_v20  ;;  %v2993_v28 = vmul.f32 %v2992_v48, %v5315_v34  ;;  %v3018_v40 = vmul.f32 2.1237322e-06, %v5328_v23  ;;  %v2982_v35 = vmul.f32 %v2981_v11, %v5315_v34 }
 0x921   :  { %v3029_v41 = vmul.f32 3.8918573e-05, %v5328_v23 }
 0x922   :  { %v5337_v51 = vmul.f32 0.70710677, %v5330_v63  ;;  %v2994_v29 = vadd.f32 0.112945676, %v2993_v28  ;;  %v3019_v30 = vadd.f32 0.00028619796, %v3018_v40 }
 0x923   :  { %v2870_v33 = vpop.f32.mrf.mxu3  ;;  %v3030_v12 = vadd.f32 0.001143296, %v3029_v41  ;;  %v2983_v22 = vadd.f32 0.05243302, %v2982_v35 }
 0x924   :  { %v3056_v54 = vmul.f32 %v5337_v51, %v5337_v51  ;;  %v2871_v59 = vadd.f32 %v2870_v33, %v2803_v31  ;;  %v2995_v18 = vmul.f32 %v2994_v29, %v5315_v34  ;;  %v3020_v55 = vmul.f32 %v3019_v30, %v5328_v23 }
 0x925   :  { %v3031_v7 = vmul.f32 %v3030_v12, %v5328_v23  ;;  %v2984_v45 = vmul.f32 %v2983_v22, %v5315_v34 }
 0x926   :  { %v5344_v60 = vmin.f32 %v3056_v54, 16.0  ;;  %v2962_v56 = vadd.f32 %v2956_v46, %v2871_v59  ;;  %v2996_v25 = vadd.f32 0.4994258, %v2995_v18  ;;  %v3021_v50 = vadd.f32 0.0036580483, %v3020_v55 }
 0x927   :  { %v3032_v2 = vadd.f32 0.014752088, %v3031_v7  ;;  %v2985_v36 = vadd.f32 0.18741608, %v2984_v45 }
 0x928   :  { %v5346_v38 = vadd.f32 %v2963_v52, %v2962_v56  ;;  %v2997_v8 = vmul.f32 %v2996_v25, %v5315_v34  ;;  %v3058_v17 = vmul.f32 2.1237322e-06, %v5344_v60  ;;  %v3022_v16 = vmul.f32 %v3021_v50, %v5328_v23 }
 0x929   :  { %v3033_v57 = vmul.f32 %v3032_v2, %v5328_v23  ;;  %v3069_v5 = vmul.f32 3.8918573e-05, %v5344_v60  ;;  %v2986_v13 = vmul.f32 %v2985_v36, %v5315_v34 }
 0x92a   :  { %v5353_v61 = vmul.f32 0.70710677, %v5346_v38  ;;  %v2998_v1 = vadd.f32 1.0, %v2997_v8  ;;  %v3059_v3 = vadd.f32 0.00028619796, %v3058_v17 }
 0x92b   :  { %v3034_v14 = vadd.f32 0.112945676, %v3033_v57  ;;  %v3023_v6 = vadd.f32 0.05243302, %v3022_v16  ;;  %v3070_v32 = vadd.f32 0.001143296, %v3069_v5 }
 0x92c   :  { %v3096_v52 = vmul.f32 %v5353_v61, %v5353_v61  ;;  %3922 = vrcp.f32 %v2998_v1  ;;  %v3060_v53 = vmul.f32 %v3059_v3, %v5344_v60  ;;  %v2987_v33 = vadd.f32 1.1283791, %v2986_v13 }
 0x92d   :  { %v3035_v47 = vmul.f32 %v3034_v14, %v5328_v23  ;;  %v3071_v37 = vmul.f32 %v3070_v32, %v5344_v60  ;;  %v3024_v26 = vmul.f32 %v3023_v6, %v5328_v23  ;;  %v3008_v34 = vand.u32 2147483647, %v2998_v1 }
 0x92e   :  { %v5360_v9 = vmin.f32 %v3096_v52, 16.0  ;;  %v3061_v35 = vadd.f32 0.0036580483, %v3060_v53  ;;  %v3010_v12 = vand.u32 2147483648, %v2998_v1  ;;  %vm3004_vm15 = vweird.f32 %v2998_v1 }
 0x92f   :  { %v3036_v58 = vadd.f32 0.4994258, %v3035_v47  ;;  %v3072_v20 = vadd.f32 0.014752088, %v3071_v37  ;;  %v3025_v54 = vadd.f32 0.18741608, %v3024_v26  ;;  %v2988_v50 = vmul.f32 %v2987_v33, %v5311_v62 }
 0x930   :  { %v3098_v4 = vmul.f32 2.1237322e-06, %v5360_v9  ;;  %v3109_v43 = vmul.f32 3.8918573e-05, %v5360_v9  ;;  %v3062_v46 = vmul.f32 %v3061_v35, %v5344_v60  ;;  %v3011_v2 = vor.u32 1.1754944e-38, %v3010_v12 }
 0x931   :  { %v3037_v19 = vmul.f32 %v3036_v58, %v5328_v23  ;;  %v3073_v41 = vmul.f32 %v3072_v20, %v5344_v60  ;;  %v3026_v8 = vmul.f32 %v3025_v54, %v5328_v23  ;;  %vm3009_vm3 = vcmp.eq.f32.partialorder %v3008_v34, 8.507059e+37 }
 0x932   :  { %v3923_v44 = vpop.eup %3922  ;;  %v3099_v11 = vadd.f32 0.00028619796, %v3098_v4  ;;  %v3110_v48 = vadd.f32 0.001143296, %v3109_v43  ;;  %v3063_v16 = vadd.f32 0.05243302, %v3062_v46 }
 0x933   :  { %v3000_v28 = vmul.f32 %v3923_v44, %v2998_v1  ;;  %v3038_v40 = vadd.f32 1.0, %v3037_v19  ;;  %v3074_v59 = vadd.f32 0.112945676, %v3073_v41  ;;  %vm3005_vm14 = vweird.f32 %v3923_v44 }
 0x934   :  { %v3100_v29 = vmul.f32 %v3099_v11, %v5360_v9  ;;  %v3111_v31 = vmul.f32 %v3110_v48, %v5360_v9  ;;  %vm3006_vm2 = vmor %vm3004_vm15, %vm3005_vm14  ;;  %v3027_v62 = vadd.f32 1.1283791, %v3026_v8  ;;  %v3064_v23 = vmul.f32 %v3063_v16, %v5344_v60 }
 0x935   :  { %v3001_v30 = vsub.f32 1.0, %v3000_v28  ;;  %3924 = vrcp.f32 %v3038_v40  ;;  %v3075_v55 = vmul.f32 %v3074_v59, %v5344_v60  ;;  %v3050_v32 = vand.u32 2147483648, %v3038_v40 }
 0x936   :  { %v3112_v22 = vadd.f32 0.014752088, %v3111_v31  ;;  %v3101_v7 = vadd.f32 0.0036580483, %v3100_v29  ;;  %v3048_v43 = vand.u32 2147483647, %v3038_v40  ;;  %vm3044_vm5 = vweird.f32 %v3038_v40 }
 0x937   :  { %v3002_v18 = vmul.f32 %v3923_v44, %v3001_v30  ;;  %v3076_v17 = vadd.f32 0.4994258, %v3075_v55  ;;  %v2968_v19 = vmul.f32 0.5, %v5308_v10  ;;  %v3028_v48 = vmul.f32 %v3027_v62, %v5322_v49 }
 0x938   :  { %v3113_v25 = vmul.f32 %v3112_v22, %v5360_v9  ;;  %v3102_v52 = vmul.f32 %v3101_v7, %v5360_v9  ;;  %v3051_v28 = vor.u32 1.1754944e-38, %v3050_v32  ;;  %v3065_v35 = vadd.f32 0.18741608, %v3064_v23 }
 0x939   :  { %v3003_v56 = vadd.f32 %v3923_v44, %v3002_v18  ;;  %v3077_v1 = vmul.f32 %v3076_v17, %v5344_v60  ;;  %vm3049_vm7 = vcmp.eq.f32.partialorder %v3048_v43, 8.507059e+37  ;;  %v2969_v59 = vmul.f32 0.5, %v5317_v42 }
 0x93a   :  { %v3114_v5 = vadd.f32 0.112945676, %v3113_v25  ;;  %v3103_v13 = vadd.f32 0.05243302, %v3102_v52  ;;  %v2970_v62 = vmul.f32 0.5, %v5330_v63 }
 0x93b   :  { %v3925_v45 = vpop.eup %3924  ;;  %v3007_v57 = vsel %vm3006_vm2, %v3923_v44, %v3003_v56  ;;  %v3078_v53 = vadd.f32 1.0, %v3077_v1 }
 0x93c   :  { %v3012_v14 = vsel %vm3009_vm3, %v3011_v2, %v3007_v57  ;;  %v3040_v3 = vmul.f32 %v3925_v45, %v3038_v40  ;;  %v3115_v47 = vmul.f32 %v3114_v5, %v5360_v9  ;;  %vm3045_vm4 = vweird.f32 %v3925_v45 }
 0x93d   :  { %v3013_v36 = vmul.f32 %v3012_v14, %v2988_v50  ;;  %3926 = vrcp.f32 %v3078_v53  ;;  %vm3046_vm6 = vmor %vm3044_vm5, %vm3045_vm4  ;;  %v3104_v29 = vmul.f32 %v3103_v13, %v5360_v9  ;;  %v3066_v40 = vmul.f32 %v3065_v35, %v5344_v60 }
 0x93e   :  { %v3041_v6 = vsub.f32 1.0, %v3040_v3  ;;  %v3116_v37 = vadd.f32 0.4994258, %v3115_v47  ;;  %v3088_v55 = vand.u32 2147483647, %v3078_v53  ;;  %v3090_v7 = vand.u32 2147483648, %v3078_v53 }
 0x93f   :  { %v3715_v58 = vclamps-f32 %v3013_v36, 1.0  ;;  %v3105_v49 = vadd.f32 0.18741608, %v3104_v29  ;;  %v3067_v22 = vadd.f32 1.1283791, %v3066_v40  ;;  %vm3084_vm8 = vweird.f32 %v3078_v53 }
 0x940   :  { %v3042_v4 = vmul.f32 %v3925_v45, %v3041_v6  ;;  %v3117_v20 = vmul.f32 %v3116_v37, %v5360_v9  ;;  %v3091_v42 = vor.u32 1.1754944e-38, %v3090_v7  ;;  %vm3089_vm0 = vcmp.eq.f32.partialorder %v3088_v55, 8.507059e+37 }
 0x941   :  { %v3136_v44 = vadd.f32 1.0, %v3715_v58  ;;  %v3106_v50 = vmul.f32 %v3105_v49, %v5360_v9  ;;  %v3068_v17 = vmul.f32 %v3067_v22, %v5337_v51 }
 0x942   :  { %v3043_v26 = vadd.f32 %v3925_v45, %v3042_v4  ;;  %v3118_v31 = vadd.f32 1.0, %v3117_v20  ;;  %v2971_v4 = vmul.f32 0.5, %v5346_v38 }
 0x943   :  { %v3140_v11 = vmul.f32 %v3136_v44, %v2968_v19  ;;  %v3927_v34 = vpop.eup %3926  ;;  %v3107_v16 = vadd.f32 1.1283791, %v3106_v50 }
 0x944   :  { %v3047_v41 = vsel %vm3046_vm6, %v3925_v45, %v3043_v26  ;;  %3928 = vrcp.f32 %v3118_v31  ;;  %v3080_v54 = vmul.f32 %v3927_v34, %v3078_v53  ;;  %vm3085_vm1 = vweird.f32 %v3927_v34 }
 0x945   :  { %v3144_v33 = vadd.f32 %v3140_v11, %v5275_v21  ;;  %v3052_v10 = vsel %vm3049_vm7, %v3051_v28, %v3047_v41  ;;  %vm3086_vm9 = vmor %vm3084_vm8, %vm3085_vm1  ;;  %v3130_v5 = vand.u32 2147483648, %v3118_v31  ;;  %v3128_v52 = vand.u32 2147483647, %v3118_v31 }
 0x946   :  { %v3053_v30 = vmul.f32 %v3052_v10, %v3028_v48  ;;  %v3081_v46 = vsub.f32 1.0, %v3080_v54  ;;  %vm3124_vm11 = vweird.f32 %v3118_v31  ;;  %v3108_v51 = vmul.f32 %v3107_v16, %v5353_v61 }
 0x947   :  { %3148 = vadd.xlane.f32.xlu0 %v3144_v33  ;;  %v3131_v1 = vor.u32 1.1754944e-38, %v3130_v5  ;;  %vm3129_vm13 = vcmp.eq.f32.partialorder %v3128_v52, 8.507059e+37 }
 0x948   :  { %v3716_v12 = vclamps-f32 %v3053_v30, 1.0  ;;  %v3082_v21 = vmul.f32 %v3927_v34, %v3081_v46 }
 0x94a   :  { %v3137_v18 = vadd.f32 1.0, %v3716_v12  ;;  %v3929_v56 = vpop.eup %3928  ;;  %v3083_v60 = vadd.f32 %v3927_v34, %v3082_v21 }
 0x94b   :  { %v3120_v2 = vmul.f32 %v3929_v56, %v3118_v31  ;;  %vm3125_vm10 = vweird.f32 %v3929_v56 }
 0x94c   :  { %v3141_v25 = vmul.f32 %v3137_v18, %v2969_v59  ;;  %v3087_v57 = vsel %vm3086_vm9, %v3927_v34, %v3083_v60  ;;  %vm3126_vm12 = vmor %vm3124_vm11, %vm3125_vm10 }
 0x94d   :  { %v3121_v45 = vsub.f32 1.0, %v3120_v2  ;;  %v3092_v14 = vsel %vm3089_vm0, %v3091_v42, %v3087_v57 }
 0x94e   :  { %v3145_v8 = vadd.f32 %v3141_v25, %v5277_v39  ;;  %v3093_v9 = vmul.f32 %v3092_v14, %v3068_v17 }
 0x94f   :  { %v3122_v3 = vmul.f32 %v3929_v56, %v3121_v45 }
 0x950   :  { %3150 = vadd.xlane.f32.xlu1 %v3145_v8  ;;  %v3717_v39 = vclamps-f32 %v3093_v9, 1.0 }
 0x951   :  { %v3123_v36 = vadd.f32 %v3929_v56, %v3122_v3 }
 0x952   :  { %v3138_v6 = vadd.f32 1.0, %v3717_v39 }
 0x953   :  { %v3127_v47 = vsel %vm3126_vm12, %v3929_v56, %v3123_v36  ;;  %v3228_v56 = vperm.slane %v5272_v0, 5 }
 0x954   :  { %v3132_v32 = vsel %vm3129_vm13, %v3131_v1, %v3127_v47  ;;  %v3142_v23 = vmul.f32 %v3138_v6, %v2970_v62 }
 0x955   :  { %v3133_v58 = vmul.f32 %v3132_v32, %v3108_v51 }
 0x956   :  { %v3146_v37 = vadd.f32 %v3142_v23, %v5282_v27 }
 0x957   :  { %v3718_v53 = vclamps-f32 %v3133_v58, 1.0 }
 0x958   :  { %3152 = vadd.xlane.f32.xlu2 %v3146_v37 }
 0x959   :  { %v3139_v43 = vadd.f32 1.0, %v3718_v53 }
 0x95b   :  { %v3143_v13 = vmul.f32 %v3139_v43, %v2971_v4 }
 0x95d   :  { %v3147_v19 = vadd.f32 %v3143_v13, %v5290_v24 }
 0x95f   :  { %3154 = vadd.xlane.f32.xlu0 %v3147_v19 }
 0x9ba   :  { %v3149_v61 = vpop.xlane.xlu0 %3148 }
 0x9bb   :  { %v3156_v44 = vmul.f32 %v3149_v61, %v4544_v15 }
 0x9bd   :  { %v3160_v26 = vsub.f32 %v3144_v33, %v3156_v44 }
 0x9bf   :  { %v3164_v63 = vmul.f32 %v3160_v26, %v3160_v26 }
 0x9c1   :  { %3168 = vadd.xlane.f32.xlu1 %v3164_v63 }
 0x9c3   :  { %v3151_v20 = vpop.xlane.xlu1 %3150 }
 0x9c4   :  { %v3157_v11 = vmul.f32 %v3151_v20, %v4544_v15 }
 0x9c6   :  { %v3161_v48 = vsub.f32 %v3145_v8, %v3157_v11  ;;  %v3233_v8 = vperm.slane %v5272_v0, 6 }
 0x9c8   :  { %v3165_v28 = vmul.f32 %v3161_v48, %v3161_v48 }
 0x9ca   :  { %3170 = vadd.xlane.f32.xlu2 %v3165_v28 }
 0x9cb   :  { %v3153_v27 = vpop.xlane.xlu2 %3152 }
 0x9cc   :  { %v3158_v38 = vmul.f32 %v3153_v27, %v4544_v15 }
 0x9ce   :  { %v5399_v35 = vsub.f32 %v3146_v37, %v3158_v38 }
 0x9d0   :  { %v3166_v24 = vmul.f32 %v5399_v35, %v5399_v35 }
 0x9d2   :  { %v3155_v41 = vpop.xlane.xlu0 %3154  ;;  %3172 = vadd.xlane.f32.xlu0 %v3166_v24 }
 0x9d3   :  { %v3159_v29 = vmul.f32 %v3155_v41, %v4544_v15 }
 0x9d5   :  { %v5404_v31 = vsub.f32 %v3147_v19, %v3159_v29 }
 0x9d7   :  { %v3167_v33 = vmul.f32 %v5404_v31, %v5404_v31 }
 0x9d9   :  { %3174 = vadd.xlane.f32.xlu1 %v3167_v33 }
 0xa34   :  { %v3169_v10 = vpop.xlane.xlu1 %3168 }
 0xa35   :  { %v3176_v30 = vmul.f32 %v3169_v10, %v4544_v15 }
 0xa37   :  { %v3180_v34 = vadd.f32 1e-05, %v3176_v30 }
 0xa39   :  { %3930 = vrsqrt.f32 %v3180_v34  ;;  %vm3190_vm15 = vweird.f32 %v3180_v34 }
 0xa3d   :  { %v3171_v40 = vpop.xlane.xlu2 %3170 }
 0xa3e   :  { %v3177_v12 = vmul.f32 %v3171_v40, %v4544_v15 }
 0xa3f   :  { %v3931_v54 = vpop.eup %3930 }
 0xa40   :  { %v3185_v49 = vmul.f32 %v3931_v54, %v3180_v34  ;;  %v3181_v59 = vadd.f32 1e-05, %v3177_v12  ;;  %vm3191_vm14 = vweird.f32 %v3931_v54 }
 0xa41   :  { %vm3192_vm2 = vmor %vm3190_vm15, %vm3191_vm14 }
 0xa42   :  { %v3186_v18 = vmul.f32 %v3931_v54, %v3185_v49  ;;  %3932 = vrsqrt.f32 %v3181_v59  ;;  %vm3200_vm4 = vweird.f32 %v3181_v59 }
 0xa44   :  { %v3187_v46 = vmul.f32 0.5, %v3186_v18 }
 0xa45   :  { %v3173_v21 = vpop.xlane.xlu0 %3172 }
 0xa46   :  { %v3188_v22 = vsub.f32 1.5, %v3187_v46  ;;  %v3178_v2 = vmul.f32 %v3173_v21, %v4544_v15 }
 0xa48   :  { %v3933_v55 = vpop.eup %3932  ;;  %v3189_v7 = vmul.f32 %v3931_v54, %v3188_v22  ;;  %v3182_v42 = vadd.f32 1e-05, %v3178_v2 }
 0xa49   :  { %v3195_v25 = vmul.f32 %v3933_v55, %v3181_v59  ;;  %vm3201_vm3 = vweird.f32 %v3933_v55 }
 0xa4a   :  { %v3193_v50 = vsel %vm3192_vm2, %v3931_v54, %v3189_v7  ;;  %3934 = vrsqrt.f32 %v3182_v42  ;;  %vm3202_vm5 = vmor %vm3200_vm4, %vm3201_vm3  ;;  %vm3210_vm7 = vweird.f32 %v3182_v42 }
 0xa4b   :  { %v3224_v60 = vmul.f32 %v3193_v50, %v3160_v26  ;;  %v3196_v17 = vmul.f32 %v3933_v55, %v3195_v25 }
 0xa4c   :  { %v3175_v16 = vpop.xlane.xlu1 %3174 }
 0xa4d   :  { %v3229_v45 = vmul.f32 %v3228_v56, %v3224_v60  ;;  %v3197_v57 = vmul.f32 0.5, %v3196_v17  ;;  %v3179_v3 = vmul.f32 %v3175_v16, %v4544_v15 }
 0xa4f   :  { %v3234_v5 = vadd.f32 %v3233_v8, %v3229_v45  ;;  %v3198_v14 = vsub.f32 1.5, %v3197_v57  ;;  %v3183_v9 = vadd.f32 1e-05, %v3179_v3 }
 0xa50   :  { %v3935_v36 = vpop.eup %3934 }
 0xa51   :  { %3238 = vst [vmem:[%s5439_s11] sm:$0xff] %v3234_v5  ;;  %v3199_v52 = vmul.f32 %v3933_v55, %v3198_v14  ;;  %3936 = vrsqrt.f32 %v3183_v9  ;;  %v3205_v1 = vmul.f32 %v3935_v36, %v3182_v42  ;;  %vm3211_vm6 = vweird.f32 %v3935_v36 }
 0xa52   :  { %vm3212_vm1 = vmor %vm3210_vm7, %vm3211_vm6  ;;  %vm3220_vm9 = vweird.f32 %v3183_v9 }
 0xa53   :  { %v3203_v0 = vsel %vm3202_vm5, %v3933_v55, %v3199_v52  ;;  %v3206_v47 = vmul.f32 %v3935_v36, %v3205_v1 }
 0xa54   :  { %v3225_v39 = vmul.f32 %v3203_v0, %v3161_v48 }
 0xa55   :  { %v3207_v32 = vmul.f32 0.5, %v3206_v47 }
 0xa56   :  { %v3230_v51 = vmul.f32 %v3228_v56, %v3225_v39 }
 0xa57   :  { %v3937_v6 = vpop.eup %3936  ;;  %v3208_v58 = vsub.f32 1.5, %v3207_v32 }
 0xa58   :  { %v3235_v62 = vadd.f32 %v3233_v8, %v3230_v51  ;;  %v3215_v15 = vmul.f32 %v3937_v6, %v3183_v9  ;;  %vm3221_vm8 = vweird.f32 %v3937_v6 }
 0xa59   :  { %v3209_v53 = vmul.f32 %v3935_v36, %v3208_v58  ;;  %vm3222_vm0 = vmor %vm3220_vm9, %vm3221_vm8 }
 0xa5a   :  { %3239 = vst [vmem:[%s5439_s11 + $0x8] sm:$0xff] %v3235_v62  ;;  %v3216_v23 = vmul.f32 %v3937_v6, %v3215_v15 }
 0xa5b   :  { %v3213_v4 = vsel %vm3212_vm1, %v3935_v36, %v3209_v53 }
 0xa5c   :  { %v3217_v37 = vmul.f32 0.5, %v3216_v23  ;;  %v3226_v43 = vmul.f32 %v3213_v4, %v5399_v35 }
 0xa5e   :  { %v3218_v13 = vsub.f32 1.5, %v3217_v37  ;;  %v3231_v19 = vmul.f32 %v3228_v56, %v3226_v43 }
 0xa60   :  { %v3219_v61 = vmul.f32 %v3937_v6, %v3218_v13  ;;  %v3236_v44 = vadd.f32 %v3233_v8, %v3231_v19 }
 0xa62   :  { %v3223_v26 = vsel %vm3222_vm0, %v3937_v6, %v3219_v61  ;;  %3240 = vst [vmem:[%s5439_s11 + $0x10] sm:$0xff] %v3236_v44 }
 0xa63   :  { %v3227_v63 = vmul.f32 %v3223_v26, %v5404_v31 }
 0xa65   :  { %v3232_v20 = vmul.f32 %v3228_v56, %v3227_v63 }
 0xa67   :  { %v3237_v11 = vadd.f32 %v3233_v8, %v3232_v20 }
 0xa69   :  { %3241 = vst [vmem:[%s5439_s11 + $0x18] sm:$0xff] %v3237_v11 }
 0xa6a   :  { %3246 = vsyncpa [#allocation3], 1 }
 0xa6b   :  { %3247 = vsyncpa [#allocation5], 1 }
 0xa6c   :  { %3248 = vsyncpa [#allocation8], 1 }

// kernel: model_forward.3
= control target key start
LH: loop header
LB: loop body
LE: loop exit
PB: predicated region body
PF: predicated region fallthrough
CT: control target
= control target key end

     0   :  { %s5786_s0 = inlined_call_operand.vmem [shape: f32[32,128], index: 0, kind: input, shape index: {}]   ;;  %s5787_s1 = inlined_call_operand.vmem [shape: bf16[2,128,384], index: 1, kind: input, shape index: {}]   ;;  %s5788_s2 = inlined_call_operand.hbm [shape: bf16[2,128,128], index: 2, kind: input, shape index: {}]   ;;  %s5789_s3 = inlined_call_operand.hbm [shape: bf16[2,128,512], index: 3, kind: input, shape index: {}]   ;;  %s5790_s4 = inlined_call_operand.hbm [shape: bf16[2,512,128], index: 4, kind: input, shape index: {}]   ;;  %s5791_s5 = inlined_call_operand.hbm [shape: f32[2,8,512], index: 5, kind: input, shape index: {}]   ;;  %s5792_s6 = inlined_call_operand.hbm [shape: bf16[128,128], index: 6, kind: input, shape index: {}]   ;;  %s5793_s7 = inlined_call_operand.vmem [shape: f32[3,128], index: 7, kind: input, shape index: {}]   ;;  %s5794_s8 = inlined_call_operand.hbm [shape: f32[2,128], index: 8, kind: output, shape index: {}]  }
   0x1   :  { %5804 = sst [smem:[#allocation21_spill]] %s5789_s3 }
   0x2   :  { %5805 = sst [smem:[#allocation22_spill]] %s5792_s6 }
   0x3   :  { %5806 = sst [smem:[#allocation23_spill]] %s5794_s8 }
   0x4   :  { %13 = vsyncpa [#allocation4], 0 }
   0x5   :  { %15 = vsyncpa [#allocation4 + $0x1], 0 }
   0x6   :  { %16 = vsyncpa [#allocation7], 0 }
   0x7   :  { %18 = vsyncpa [#allocation7 + $0x1], 0 }
   0x8   :  { %19 = vsyncpa [#allocation10], 0 }
   0x9   :  { %21 = vsyncpa [#allocation10 + $0x1], 0 }
   0xa   :  { %22 = vsyncpa [#allocation5], 0  ;;  %s4427_s27 = smov 0   ;;  %s4429_s28 = smov 0  }
   0xb   :  { %s4431_s29 = smov 0   ;;  %s4433_s30 = smov 0  }
   0xc LB: > { %5807 = sst [smem:[#allocation18_spill]] %s4365_s29  ;;  %s4446_s9 = sadd.s32 4294967295, %s4369_s30   ;;  %s4369_s30 = sphi %s4433_s30, %s5840_s30   ;;  %s4365_s29 = sphi %s4431_s29, %s5842_s29   ;;  %s4361_s28 = sphi %s4429_s28, %s5844_s28   ;;  %s4357_s27 = sphi %s4427_s27, %s5843_s27  }
   0xd   : > { %p95_p0 = scmp.ne.s32.totalorder %s4361_s28, %s4357_s27  ;;  %p96_p1 = scmp.eq.s32.totalorder %s4446_s9, 0 }
   0xe   : > { %p3316_p2 = scmp.ge.s32.totalorder %s4369_s30, 1  ;;  %p247_p3 = scmp.lt.s32.totalorder %s4369_s30, 3 }
   0xf   : > { %p3317_p4 = scmp.ne.s32.totalorder %s4446_s9, 0  ;;  %p4455_p5 = por %p96_p1, %p95_p0 }
  0x10   : > { %s5809_s6 = sld [smem:[#allocation22_spill]]  ;;  %p4462_p6 = pnand %p3316_p2, %p247_p3 }
  0x11   : > { %s4371_s15 = smov [#allocation11]   ;;  %s4471_s17 = sadd.s32 1, %s4369_s30  }
  0x12   : > { %p3917_p7 = pneg %p4462_p6  ;;  %s263_s16 = sshll.u32 %s4371_s15, 4  ;;  %s264_s16 = int_to_ptr.vmem [resolvable:$true] %s263_s16 }
  0x13   : > { %5811 = sst [smem:[#allocation19_spill]] %s4471_s17  ;;  %s5795_s18 = smov 64  }
  0x14   : > { %p3918_p8 = pnand %p3917_p7, %p96_p1  ;;  %s5797_s19 = smov 4  }
  0x15   : > { %s79_s20 = ssub.s32 %s4369_s30, %s4471_s17  ;;  %s82_s21 = sadd.s32 1, %s4365_s29 }
  0x16   : > { %s261_s13 = sshll.u32 %s5809_s6, 4  ;;  %p80_p9 = scmp.eq.s32.totalorder %s79_s20, 0  ;;  %s262_s13 = int_to_ptr.hbm [resolvable:$true] %s261_s13 }
  0x17   : > { %3920 = dma.hbm_to_vmem [thread:$0]  (!%p3918_p8), %s262_s13, 1024, %s264_s16, [#allocation10], %s5795_s18, %s5795_s18, %s5797_s19  }
  0x18   : > { %p89_p10 = scmp.ne.s32.totalorder %s4365_s29, %s4361_s28  ;;  %p90_p11 = scmp.eq.s32.totalorder %s4369_s30, 0 }
  0x19   : > { %p3935_p12 = scmp.lt.s32.totalorder %s4369_s30, 2  ;;  %s4487_s23 = sand.u32 1, %s4365_s29  }
  0x1a   : > { %s4484_s22 = scalar_select %p80_p9, %s4365_s29, %s82_s21  }
  0x1b   : > { %p91_p13 = por %p90_p11, %p89_p10  ;;  %s5800_s24 = sand.u32 1, %s4369_s30  }
  0x1c   : > { %5812 = sst [smem:[#allocation20_spill]] %s4484_s22  ;;  %s5799_s25 = sshll.u32 %s4487_s23, 8 }
  0x1d   : > { %p4491_p0 = pnand %p3935_p12, %p91_p13  ;;  %s3793_s27 = sshll.u32 %s4369_s30, 8 }
  0x1e   : > { %s5814_s3 = sld [smem:[#allocation21_spill]]  ;;  %s314_s16 = scalar_lea.vmem [#allocation6], %s5799_s25 }
  0x1f   : > { %s322_s20 = sshll.u32 %s314_s16, 4  ;;  %s4503_s21 = scalar_lea.sflag [#allocation7], %s5800_s24  ;;  %s323_s20 = int_to_ptr.vmem [resolvable:$true] %s322_s20 }
  0x20   : > { %p4175_p3 = pneg %p4491_p0 }
  0x24   : > { %s319_s13 = scalar_lea.hbm %s5814_s3, %s3793_s27 }
  0x25   : > { %s320_s15 = sshll.u32 %s319_s13, 4  ;;  %s4178_s13 = scalar_lea.hbm %s5814_s3, 512  ;;  %s321_s15 = int_to_ptr.hbm [resolvable:$true] %s320_s15 }
  0x26   : > { %s4171_s18 = sshra.s32 %s321_s15, 4  ;;  %s4172_s18 = int_to_ptr.hbm [resolvable:$true] %s4171_s18 }
  0x27   : > { %s4173_s19 = scalar_lea.hbm %s4172_s18, 256  ;;  %p4179_p9 = scmp.lt.s32.totalorder %s4172_s18, %s5814_s3 }
  0x28   : > { %p4174_p2 = scmp.ne.s32.totalorder %s4172_s18, %s4173_s19  ;;  %p4180_p10 = scmp.lt.s32.totalorder %s4178_s13, %s4173_s19 }
  0x2a   : > { %p4176_p7 = pnand %p4175_p3, %p4174_p2  ;;  %p4181_p11 = por %p4180_p10, %p4179_p9 }
  0x2c   : > { %p4177_p8 = pneg %p4176_p7 }
  0x2e   : > { %p4182_p12 = pnand %p4181_p11, %p4177_p8 }
  0x30   : > { %4185 = shalt.err (!%p4182_p12)
}
  0x31   : > { %s4374_s24 = smov 256   ;;  %s4375_s6 = smov 16  }
  0x32   : > { %3927 = dma.hbm_to_vmem [thread:$0]  (!%p4491_p0), %s321_s15, 4096, %s323_s20, %s4503_s21, %s4374_s24, %s4374_s24, %s4375_s6  }
  0x33   : > { %s341_s22 = scalar_lea.hbm %s5790_s4, %s3793_s27  ;;  %s5815_s18 = sshll.u32 %s4487_s23, 8 }
  0x34   : > { %s342_s25 = sshll.u32 %s341_s22, 4  ;;  %s336_s19 = scalar_lea.vmem [#allocation8], %s5815_s18  ;;  %s4524_s25 = int_to_ptr.hbm [resolvable:$true] %s342_s25 }
  0x35   : > { %s344_s13 = sshll.u32 %s336_s19, 4  ;;  %s3319_s16 = sshll.u32 %s4487_s23, 6  ;;  %s4526_s13 = int_to_ptr.vmem [resolvable:$true] %s344_s13 }
  0x36   : > { %s3792_s3 = sshll.u32 %s4369_s30, 6  ;;  %s292_s6 = scalar_lea.vmem [#allocation3], %s3319_s16 }
  0x37   : > { %s297_s8 = scalar_lea.hbm %s5788_s2, %s3792_s3  ;;  %s300_s24 = sshll.u32 %s292_s6, 4  ;;  %s301_s24 = int_to_ptr.vmem [resolvable:$true] %s300_s24 }
  0x38   : > { %s298_s15 = sshll.u32 %s297_s8, 4  ;;  %s289_s22 = scalar_lea.sflag [#allocation4], %s4487_s23  ;;  %s299_s15 = int_to_ptr.hbm [resolvable:$true] %s298_s15 }
  0x39   : > { %s4201_s27 = sshra.s32 %s299_s15, 4  ;;  %s4208_s18 = scalar_lea.hbm %s5788_s2, 128  ;;  %s4202_s27 = int_to_ptr.hbm [resolvable:$true] %s4201_s27 }
  0x3a   : > { %s4203_s20 = scalar_lea.hbm %s4202_s27, 64  ;;  %p4209_p8 = scmp.lt.s32.totalorder %s4202_s27, %s5788_s2 }
  0x3b   : > { %p4204_p13 = scmp.ne.s32.totalorder %s4202_s27, %s4203_s20  ;;  %p4210_p9 = scmp.lt.s32.totalorder %s4208_s18, %s4203_s20 }
  0x3d   : > { %p4206_p2 = pnand %p4204_p13, %p4175_p3  ;;  %p4211_p10 = por %p4210_p9, %p4209_p8 }
  0x3f   : > { %p4207_p7 = pneg %p4206_p2 }
  0x41   : > { %p4212_p11 = pnand %p4211_p10, %p4207_p7 }
  0x43   : > { %4215 = shalt.err (!%p4212_p11)
}
  0x44   : > { %s5816_s8 = smov 4   ;;  %s5817_s17 = smov 64  }
  0x45   : > { %3924 = dma.hbm_to_vmem [thread:$0]  (!%p4491_p0), %s299_s15, 1024, %s301_s24, %s289_s22, %s5817_s17, %s5817_s17, %s5816_s8  }
  0x46   : > { %s4231_s19 = sshra.s32 %s4524_s25, 4  ;;  %s4238_s20 = scalar_lea.hbm %s5790_s4, 512  ;;  %s4232_s19 = int_to_ptr.hbm [resolvable:$true] %s4231_s19 }
  0x47   : > { %s4233_s16 = scalar_lea.hbm %s4232_s19, 256  ;;  %p4239_p7 = scmp.lt.s32.totalorder %s4232_s19, %s5790_s4 }
  0x48   : > { %p4234_p12 = scmp.ne.s32.totalorder %s4232_s19, %s4233_s16  ;;  %p4240_p8 = scmp.lt.s32.totalorder %s4238_s20, %s4233_s16 }
  0x4a   : > { %p4236_p13 = pnand %p4234_p12, %p4175_p3  ;;  %p4241_p9 = por %p4240_p8, %p4239_p7 }
  0x4c   : > { %p4237_p2 = pneg %p4236_p13 }
  0x4e   : > { %p4242_p10 = pnand %p4241_p9, %p4237_p2 }
  0x50   : > { %4245 = shalt.err (!%p4242_p10)
}
  0x51   : > { %3930 = dma.hbm_to_vmem [thread:$0]  (!%p4491_p0), %s4524_s25, 4096, %s4526_s13, %s4503_s21, %s5817_s17, %s5817_s17, %s5816_s8  }
  0x52   : > { %s3328_s24 = sshll.u32 %s4487_s23, 5  ;;  %s3795_s15 = sshll.u32 %s4369_s30, 5 }
  0x53   : > { %s363_s29 = scalar_lea.hbm %s5791_s5, %s3795_s15  ;;  %s358_s19 = scalar_lea.vmem [#allocation9], %s3328_s24 }
  0x54   : > { %s365_s3 = sshll.u32 %s363_s29, 4  ;;  %s367_s16 = sshll.u32 %s358_s19, 4  ;;  %s366_s3 = int_to_ptr.hbm [resolvable:$true] %s365_s3  ;;  %s368_s16 = int_to_ptr.vmem [resolvable:$true] %s367_s16 }
  0x55   : > { %s5818_s6 = sand.u32 1, %s4369_s30   ;;  %s4261_s20 = sshra.s32 %s366_s3, 4  ;;  %s4262_s20 = int_to_ptr.hbm [resolvable:$true] %s4261_s20 }
  0x56   : > { %s355_s27 = scalar_lea.sflag [#allocation10], %s5818_s6  ;;  %s4263_s11 = scalar_lea.hbm %s4262_s20, 32 }
  0x57   : > { %p4264_p11 = scmp.ne.s32.totalorder %s4262_s20, %s4263_s11  ;;  %s4268_s25 = scalar_lea.hbm %s5791_s5, 64 }
  0x58   : > { %p4269_p2 = scmp.lt.s32.totalorder %s4262_s20, %s5791_s5  ;;  %p4270_p7 = scmp.lt.s32.totalorder %s4268_s25, %s4263_s11 }
  0x59   : > { %p4266_p12 = pnand %p4264_p11, %p4175_p3 }
  0x5a   : > { %p4271_p8 = por %p4270_p7, %p4269_p2 }
  0x5b   : > { %p4267_p13 = pneg %p4266_p12 }
  0x5d   : > { %p4272_p9 = pnand %p4271_p8, %p4267_p13 }
  0x5f   : > { %4275 = shalt.err (!%p4272_p9)
}
  0x60   : > { %3933 = dma.hbm_to_vmem [thread:$0]  (!%p4491_p0), %s366_s3, 512, %s368_s16, %s355_s27  }
  0x61   : > { %376 = sbr.rel (%p4462_p6) target bundleno = 2709 (0xa95), region = 52  ;;  %s378_s30 = sand.u32 (!%p4462_p6), 1, %s4361_s28  }
  0x62   : > { %s3332_s17 = sshll.u32 (!%p4462_p6), %s378_s30, 6  ;;  %s379_s12 = scalar_lea.sflag (!%p4462_p6), [#allocation4], %s378_s30 }
  0x63   : > { %s4587_s24 = scalar_lea.vmem (!%p4462_p6), [#allocation3], %s3332_s17 }
  0x66   : > { %4336 = dma.done.wait (%p4455_p5), %s379_s12, 1024  }
  0x67   : > { %4338 = vsyncadd (%p4455_p5), %s379_s12, 4294966272  ;;  %s388_s15 = sand.u32 1, %s4446_s9   ;;  %s3333_s26 = sshll.u32 %s378_s30, 8 }
  0x68   : > { %s389_s22 = scalar_lea.sflag [#allocation7], %s388_s15  ;;  %s4594_s18 = scalar_lea.vmem [#allocation6], %s3333_s26 }
  0x69   : > { %4340 = dma.done.wait (%p4455_p5), %s389_s22, 8192  }
  0x6a   : > { %4342 = vsyncadd (%p4455_p5), %s389_s22, 4294959104  ;;  %s3335_s14 = sshll.u32 %s378_s30, 5  ;;  %s4600_s29 = scalar_lea.vmem [#allocation8], %s3333_s26 }
  0x6b   : > { %s409_s3 = scalar_lea.sflag [#allocation10], %s388_s15  ;;  %s4602_s19 = scalar_lea.vmem [#allocation9], %s3335_s14 }
  0x6c   : > { %4344 = dma.done.wait (%p4455_p5), %s409_s3, 512  }
  0x6d   : > { %4346 = vsyncadd (%p4455_p5), %s409_s3, 4294966784 }
  0x6e   : > { %4348 = dma.done.wait (%p96_p1), [#allocation10], 1024  }
  0x6f   : > { %4350 = vsyncadd (%p96_p1), [#allocation10], 4294966272  ;;  %p466_p6 = scmp.lt.s32.totalorder %s4446_s9, 1 }
  0x71   : > { %s467_s16 = scalar_select %p466_p6, %s4446_s9, 1 }
  0x72   : > { %475 = sbr.rel (%p3317_p4) target bundleno = 124 (0x7c), region = 76 }
  0x73   : > { %s3900_s6 = smul.u32 192, %s467_s16 }
  0x75   : > { %s4617_s11 = scalar_lea.vmem %s5787_s1, %s3900_s6 }
  0x77   : > { %v476_v0 = vld [vmem:[%s5786_s0] sm:$0xff]  ;;  %v477_v1 = vld [vmem:[%s5786_s0 + $0x8] sm:$0xff]  ;;  %v478_v2 = vld [vmem:[%s5786_s0 + $0x10] sm:$0xff] }
  0x78   : > { %480 = vst [vmem:[#allocation2 + $0x10] sm:$0xff] %v476_v0  ;;  %v479_v3 = vld [vmem:[%s5786_s0 + $0x18] sm:$0xff] }
  0x79   : > { %481 = vst [vmem:[#allocation2] sm:$0xff] %v477_v1 }
  0x7a   : > { %482 = vst [vmem:[#allocation2 + $0x18] sm:$0xff] %v478_v2 }
  0x7b   : > { %483 = vst [vmem:[#allocation2 + $0x8] sm:$0xff] %v479_v3 }
  0x7c PF: > { %v3817_v4 = vld [vmem:[%s4617_s11 + $0xac] sm:$0xf]  ;;  %v3427_v5 = vld [vmem:[%s4617_s11 + $0xb4] sm:$0xf0]  ;;  %v3814_v6 = vld [vmem:[%s4617_s11 + $0x94] sm:$0xf] }
  0x7d   : > { %v3430_v7 = vor.u32 %v3817_v4, %v3427_v5  ;;  %v3415_v8 = vld [vmem:[%s4617_s11 + $0x9c] sm:$0xf0]  ;;  %v3425_v9 = vld [vmem:[%s4617_s11 + $0xa8] sm:$0xf]  ;;  %v3818_v10 = vld [vmem:[%s4617_s11 + $0xb0] sm:$0xf0] }
  0x7e   : > { %v3426_v11 = vor.u32 %v3818_v10, %v3425_v9  ;;  %v3413_v12 = vld [vmem:[%s4617_s11 + $0x90] sm:$0xf]  ;;  %v3418_v13 = vor.u32 %v3814_v6, %v3415_v8  ;;  %v3815_v14 = vld [vmem:[%s4617_s11 + $0x98] sm:$0xf0]  ;;  %v3403_v16 = vld [vmem:[%s4617_s11 + $0x84] sm:$0xf0] }
  0x7f   : > { %676 = vmatpush.bf16.msra.mxu1 %v3430_v7  ;;  %v3811_v15 = vld [vmem:[%s4617_s11 + $0x7c] sm:$0xf]  ;;  %v3414_v17 = vor.u32 %v3815_v14, %v3413_v12  ;;  %v3401_v18 = vld [vmem:[%s4617_s11 + $0x78] sm:$0xf]  ;;  %v3812_v19 = vld [vmem:[%s4617_s11 + $0x80] sm:$0xf0] }
  0x80   : > { %657 = vmatpush.bf16.msra.mxu0 %v3426_v11  ;;  %v3406_v20 = vor.u32 %v3811_v15, %v3403_v16  ;;  %v3808_v21 = vld [vmem:[%s4617_s11 + $0x64] sm:$0xf]  ;;  %v3391_v22 = vld [vmem:[%s4617_s11 + $0x6c] sm:$0xf0]  ;;  %v3402_v23 = vor.u32 %v3812_v19, %v3401_v18  ;;  %v3389_v24 = vld [vmem:[%s4617_s11 + $0x60] sm:$0xf] }
  0x81   : > { %v3809_v25 = vld [vmem:[%s4617_s11 + $0x68] sm:$0xf0]  ;;  %v3394_v26 = vor.u32 %v3808_v21, %v3391_v22  ;;  %v3379_v28 = vld [vmem:[%s4617_s11 + $0x54] sm:$0xf0]  ;;  %v3377_v30 = vld [vmem:[%s4617_s11 + $0x48] sm:$0xf] }
  0x82   : > { %v3805_v27 = vld [vmem:[%s4617_s11 + $0x4c] sm:$0xf]  ;;  %v3390_v29 = vor.u32 %v3809_v25, %v3389_v24  ;;  %v3806_v31 = vld [vmem:[%s4617_s11 + $0x50] sm:$0xf0]  ;;  %v3367_v34 = vld [vmem:[%s4617_s11 + $0x3c] sm:$0xf0] }
  0x83   : > { %677 = vmatpush.bf16.msra.mxu1 %v3418_v13  ;;  %v3382_v32 = vor.u32 %v3805_v27, %v3379_v28  ;;  %v3802_v33 = vld [vmem:[%s4617_s11 + $0x34] sm:$0xf]  ;;  %v3378_v35 = vor.u32 %v3806_v31, %v3377_v30  ;;  %v3365_v36 = vld [vmem:[%s4617_s11 + $0x30] sm:$0xf]  ;;  %v3803_v37 = vld [vmem:[%s4617_s11 + $0x38] sm:$0xf0] }
  0x84   : > { %658 = vmatpush.bf16.msra.mxu0 %v3414_v17  ;;  %v3370_v38 = vor.u32 %v3802_v33, %v3367_v34  ;;  %v3433_v39 = vld [vmem:[%s4617_s11 + $0xb0] sm:$0xf]  ;;  %v3819_v40 = vld [vmem:[%s4617_s11 + $0xb8] sm:$0xf0]  ;;  %v3421_v41 = vld [vmem:[%s4617_s11 + $0x98] sm:$0xf]  ;;  %v3366_v44 = vor.u32 %v3803_v37, %v3365_v36 }
  0x85   : > { %v3799_v42 = vld [vmem:[%s4617_s11 + $0x1c] sm:$0xf]  ;;  %v3355_v43 = vld [vmem:[%s4617_s11 + $0x24] sm:$0xf0]  ;;  %v3434_v45 = vor.u32 %v3819_v40, %v3433_v39  ;;  %v3816_v46 = vld [vmem:[%s4617_s11 + $0xa0] sm:$0xf0] }
  0x86   : > { %v3353_v47 = vld [vmem:[%s4617_s11 + $0x18] sm:$0xf]  ;;  %v3800_v48 = vld [vmem:[%s4617_s11 + $0x20] sm:$0xf0]  ;;  %v3422_v49 = vor.u32 %v3816_v46, %v3421_v41  ;;  %v3358_v50 = vor.u32 %v3799_v42, %v3355_v43  ;;  %v3409_v51 = vld [vmem:[%s4617_s11 + $0x80] sm:$0xf] }
  0x87   : > { %678 = vmatpush.bf16.msra.mxu1 %v3406_v20  ;;  %695 = vmatpush.bf16.msra.mxu2 %v3434_v45  ;;  %v3813_v52 = vld [vmem:[%s4617_s11 + $0x88] sm:$0xf0]  ;;  %v3796_v53 = vld [vmem:[%s4617_s11 + $0x4] sm:$0xf]  ;;  %v3343_v54 = vld [vmem:[%s4617_s11 + $0xc] sm:$0xf0]  ;;  %v3354_v55 = vor.u32 %v3800_v48, %v3353_v47 }
  0x88   : > { %659 = vmatpush.bf16.msra.mxu0 %v3402_v23  ;;  %v3341_v56 = vld [vmem:[%s4617_s11] sm:$0xf]  ;;  %v3797_v57 = vld [vmem:[%s4617_s11 + $0x8] sm:$0xf0]  ;;  %v484_v58 = vld [vmem:[#allocation2 + $0x10] sm:$0xff]  ;;  %v3410_v59 = vor.u32 %v3813_v52, %v3409_v51  ;;  %v3346_v60 = vor.u32 %v3796_v53, %v3343_v54  ;;  %vm740_vm0 = vcmask 261120  }
  0x89   : > { %v485_v61 = vld [vmem:[#allocation2] sm:$0xff]  ;;  %v3397_v62 = vld [vmem:[%s4617_s11 + $0x68] sm:$0xf]  ;;  %v3810_v63 = vld [vmem:[%s4617_s11 + $0x70] sm:$0xf0]  ;;  %v3342_v0 = vor.u32 %v3797_v57, %v3341_v56  ;;  %s4376_s12 = smov 96  }
  0x8a   : > { %v524_v1 = vpack.c.bf16 %v485_v61, %v484_v58  ;;  %v3398_v2 = vor.u32 %v3810_v63, %v3397_v62  ;;  %v3385_v3 = vld [vmem:[%s4617_s11 + $0x50] sm:$0xf]  ;;  %v3807_v4 = vld [vmem:[%s4617_s11 + $0x58] sm:$0xf0]  ;;  %v3373_v6 = vld [vmem:[%s4617_s11 + $0x38] sm:$0xf] }
  0x8b   : > { %679 = vmatpush.bf16.msra.mxu1 %v3394_v26  ;;  %696 = vmatpush.bf16.msra.mxu2 %v3422_v49  ;;  %v3386_v5 = vor.u32 %v3807_v4, %v3385_v3  ;;  %v3804_v7 = vld [vmem:[%s4617_s11 + $0x40] sm:$0xf0]  ;;  %v3361_v9 = vld [vmem:[%s4617_s11 + $0x20] sm:$0xf]  ;;  %v3801_v10 = vld [vmem:[%s4617_s11 + $0x28] sm:$0xf0] }
  0x8c   : > { %660 = vmatpush.bf16.msra.mxu0 %v3390_v29  ;;  %v3374_v8 = vor.u32 %v3804_v7, %v3373_v6  ;;  %v486_v11 = vld [vmem:[#allocation2 + $0x18] sm:$0xff]  ;;  %v3362_v12 = vor.u32 %v3801_v10, %v3361_v9  ;;  %v487_v13 = vld [vmem:[#allocation2 + $0x8] sm:$0xff]  ;;  %v3798_v15 = vld [vmem:[%s4617_s11 + $0x10] sm:$0xf0]  ;;  %s4377_s15 = smov 64   ;;  %s4378_s26 = smov 32  }
  0x8d   : > { %v3349_v14 = vld [vmem:[%s4617_s11 + $0x8] sm:$0xf]  ;;  %v525_v16 = vpack.c.bf16 %v487_v13, %v486_v11  ;;  %v4683_v19 = vld [vmem:[%s4602_s19] sm:$0xff]  ;;  %v490_v56 = vld [vmem:[%s4602_s19 + $0x10] sm:$0xff]  ;;  %vm791_vm1 = vcmask 130048   ;;  %vm1386_vm2 = vcmask 523264  }
  0x8e   : > { %v3350_v17 = vor.u32 %v3798_v15, %v3349_v14  ;;  %v489_v18 = vld [vmem:[%s4602_s19 + $0x8] sm:$0xff]  ;;  %v526_v22 = vperm.slane %v4683_v19, 0  ;;  %vm1391_vm3 = vcmask 785408   ;;  %p3755_p1 = scmp.ne.s32.totalorder %s4446_s9, 1 }
  0x8f   : > { %680 = vmatpush.bf16.msra.mxu1 %v3382_v32  ;;  %697 = vmatpush.bf16.msra.mxu2 %v3410_v59  ;;  %v527_v21 = vperm.slane %v489_v18, 0 }
  0x90   : > { %661 = vmatpush.bf16.msra.mxu0 %v3378_v35 }
  0x93   : > { %681 = vmatpush.bf16.msra.mxu1 %v3370_v38  ;;  %698 = vmatpush.bf16.msra.mxu2 %v3398_v2 }
  0x94   : > { %662 = vmatpush.bf16.msra.mxu0 %v3366_v44 }
  0x97   : > { %682 = vmatpush.bf16.msra.mxu1 %v3358_v50  ;;  %699 = vmatpush.bf16.msra.mxu2 %v3386_v5 }
  0x98   : > { %663 = vmatpush.bf16.msra.mxu0 %v3354_v55 }
  0x9b   : > { %683 = vmatpush.bf16.msra.mxu1 %v3346_v60  ;;  %700 = vmatpush.bf16.msra.mxu2 %v3374_v8  ;;  %v528_v60 = vperm.slane %v490_v56, 0 }
  0x9c   : > { %664 = vmatpush.bf16.msra.mxu0 %v3342_v0 }
  0x9e   : > { %684 = vmatmul.bf16.vlgmr.msra.gmra.mxu1 %v524_v1 }
  0x9f   : > { %665 = vmatmul.bf16.vlgmr.msra.gmra.mxu0 %v524_v1  ;;  %701 = vmatpush.bf16.msra.mxu2 %v3362_v12 }
  0xa3   : > { %702 = vmatpush.bf16.msra.mxu2 %v3350_v17 }
  0xa6   : > { %703 = vmatmul.bf16.vlgmr.msra.gmra.mxu2 %v524_v1 }
  0xae   : > { %689 = vmatmul.bf16.gmra.mxu1 %v525_v16 }
  0xaf   : > { %670 = vmatmul.bf16.gmra.mxu0 %v525_v16 }
  0xb6   : > { %708 = vmatmul.bf16.gmra.mxu2 %v525_v16 }
 0x11b   : > { %v685_v20 = vpop.f32.mrf.mxu1 }
 0x11c   : > { %v666_v23 = vpop.f32.mrf.mxu0  ;;  %v686_v24 = vadd.f32 %v685_v20, %v527_v21 }
 0x11d   : > { %v667_v25 = vadd.f32 %v666_v23, %v526_v22 }
 0x11e   : > { %v722_v27 = vpack.c.bf16 %v686_v24, %v686_v24 }
 0x11f   : > { %v714_v28 = vmul.f32 0.17677669, %v667_v25 }
 0x120   : > { %v737_v34 = vunpack.c.l.b16 %v722_v27 }
 0x121   : > { %v718_v35 = vpack.c.bf16 %v714_v28, %v714_v28 }
 0x123   : > { %v687_v26 = vpop.f32.mrf.mxu1  ;;  %v732_v40 = vunpack.c.l.b16 %v718_v35 }
 0x124   : > { %v688_v29 = vadd.f32 %v687_v26, %v527_v21  ;;  %v668_v30 = vpop.f32.mrf.mxu0 }
 0x125   : > { %v669_v31 = vadd.f32 %v668_v30, %v526_v22 }
 0x126   : > { %v723_v32 = vpack.c.bf16 %v688_v29, %v688_v29 }
 0x127   : > { %v715_v33 = vmul.f32 0.17677669, %v669_v31 }
 0x128   : > { %v738_v36 = vunpack.c.l.b16 %v723_v32 }
 0x129   : > { %v719_v37 = vpack.c.bf16 %v715_v33, %v715_v33  ;;  %v704_v57 = vpop.f32.mrf.mxu2 }
 0x12a   : > { %v739_v38 = vpack.c.b16 %v738_v36, %v737_v34  ;;  %v705_v0 = vadd.f32 %v704_v57, %v528_v60 }
 0x12b   : > { %v690_v39 = vpop.f32.mrf.mxu1  ;;  %v733_v41 = vunpack.c.l.b16 %v719_v37 }
 0x12c   : > { %898 = vrot.lane.b32.xlu0 %v739_v38, %s4376_s12  ;;  %v745_v42 = vsel %vm740_vm0, %v739_v38, 0  ;;  %v671_v43 = vpop.f32.mrf.mxu0  ;;  %v691_v46 = vadd.f32 %v690_v39, %v527_v21  ;;  %v726_v4 = vpack.c.bf16 %v705_v0, %v705_v0 }
 0x12d   : > { %754 = vmatpush.bf16.xpose.msra.mxu3 %v745_v42  ;;  %v672_v44 = vadd.f32 %v671_v43, %v526_v22  ;;  %v734_v45 = vpack.c.b16 %v733_v41, %v732_v40 }
 0x12e   : > { %v724_v49 = vpack.c.bf16 %v691_v46, %v691_v46  ;;  %v847_v7 = vunpack.c.l.b16 %v726_v4 }
 0x12f   : > { %v716_v47 = vmul.f32 0.17677669, %v672_v44 }
 0x130   : > { %v768_v58 = vunpack.c.l.b16 %v724_v49 }
 0x131   : > { %v720_v52 = vpack.c.bf16 %v716_v47, %v716_v47  ;;  %v706_v5 = vpop.f32.mrf.mxu2 }
 0x132   : > { %v707_v6 = vadd.f32 %v706_v5, %v528_v60 }
 0x133   : > { %v692_v48 = vpop.f32.mrf.mxu1  ;;  %v763_v61 = vunpack.c.l.b16 %v720_v52 }
 0x134   : > { %v693_v50 = vadd.f32 %v692_v48, %v527_v21  ;;  %896 = vrot.lane.b32.xlu0 %v734_v45, %s4376_s12  ;;  %3435 = vmatmul.msk.bf16.vlgmr.msra.gmra.mxu3 %vm740_vm0, %v734_v45  ;;  %v673_v51 = vpop.f32.mrf.mxu0  ;;  %v727_v8 = vpack.c.bf16 %v707_v6, %v707_v6 }
 0x135   : > { %v674_v53 = vadd.f32 %v673_v51, %v526_v22 }
 0x136   : > { %v725_v54 = vpack.c.bf16 %v693_v50, %v693_v50  ;;  %v848_v9 = vunpack.c.l.b16 %v727_v8 }
 0x137   : > { %v717_v55 = vmul.f32 0.17677669, %v674_v53 }
 0x138   : > { %v769_v59 = vunpack.c.l.b16 %v725_v54  ;;  %v4698_v10 = vpack.c.b16 %v848_v9, %v847_v7 }
 0x139   : > { %v721_v62 = vpack.c.bf16 %v717_v55, %v717_v55  ;;  %v709_v11 = vpop.f32.mrf.mxu2 }
 0x13a   : > { %v770_v63 = vpack.c.b16 %v769_v59, %v768_v58  ;;  %v710_v12 = vadd.f32 %v709_v11, %v528_v60 }
 0x13b   : > { %v764_v1 = vunpack.c.l.b16 %v721_v62 }
 0x13c   : > { %922 = vrot.lane.b32.xlu1 %v770_v63, %s4376_s12  ;;  %1068 = vrot.lane.b32.xlu0 %v770_v63, %s4377_s15  ;;  %v775_v2 = vsel %vm740_vm0, %v770_v63, 0  ;;  %v728_v13 = vpack.c.bf16 %v710_v12, %v710_v12 }
 0x13d   : > { %v765_v3 = vpack.c.b16 %v764_v1, %v763_v61  ;;  %784 = vmatpush.bf16.xpose.msrb.mxu3 %v775_v2 }
 0x13e   : > { %v875_v16 = vunpack.c.l.b16 %v728_v13 }
 0x13f   : > { %920 = vrot.lane.b32.xlu2 %v765_v3, %s4376_s12 }
 0x141   : > { %v711_v14 = vpop.f32.mrf.mxu2 }
 0x142   : > { %v712_v15 = vadd.f32 %v711_v14, %v528_v60 }
 0x144   : > { %1044 = vrot.lane.b32.xlu1 %v739_v38, %s4377_s15  ;;  %3436 = vmatmul.msk.bf16.vlgmr.msrb.gmra.mxu3 %vm740_vm0, %v765_v3  ;;  %v729_v17 = vpack.c.bf16 %v712_v15, %v712_v15 }
 0x145   : > { %1188 = vrot.lane.b32.xlu0 %v734_v45, %s4378_s26  ;;  %861 = vmatpush.bf16.msra.mxu3 %v4698_v10 }
 0x146   : > { %v876_v18 = vunpack.c.l.b16 %v729_v17 }
 0x147   : > { %1042 = vrot.lane.b32.xlu2 %v734_v45, %s4377_s15 }
 0x148   : > { %v4707_v20 = vpack.c.b16 %v876_v18, %v875_v16 }
 0x14a   : > { %889 = vmatpush.bf16.msrb.mxu3 %v4707_v20 }
 0x14c   : > { %1190 = vrot.lane.b32.xlu1 %v739_v38, %s4378_s26 }
 0x14d   : > { %997 = vrot.lane.b32.xlu0 %v4698_v10, %s4376_s12 }
 0x14f   : > { %1066 = vrot.lane.b32.xlu2 %v765_v3, %s4377_s15 }
 0x154   : > { %1214 = vrot.lane.b32.xlu1 %v770_v63, %s4378_s26 }
 0x157   : > { %1212 = vrot.lane.b32.xlu2 %v765_v3, %s4378_s26 }
 0x15c   : > { %1022 = vrot.lane.b32.xlu1 %v4707_v20, %s4376_s12 }
 0x199   : > { %v921_v28 = vpop.permute.xlu2 %920 }
 0x19e   : > { %v899_v21 = vpop.permute.xlu0 %898 }
 0x19f   : > { %v904_v22 = vsel %vm740_vm0, %v899_v21, 0 }
 0x1a0   : > { %913 = vmatpush.bf16.xpose.msrb.mxu1 %v904_v22 }
 0x1a1   : > { %v1043_v33 = vpop.permute.xlu2 %1042 }
 0x1a6   : > { %v897_v23 = vpop.permute.xlu0 %896 }
 0x1a7   : > { %3439 = vmatmul.msk.bf16.vlgmr.msrb.gmra.mxu1 %vm740_vm0, %v897_v23 }
 0x1a9   : > { %v1067_v38 = vpop.permute.xlu2 %1066 }
 0x1ae   : > { %v923_v24 = vpop.permute.xlu1 %922  ;;  %v1069_v25 = vpop.permute.xlu0 %1068 }
 0x1af   : > { %v928_v26 = vsel %vm740_vm0, %v923_v24, 0  ;;  %v1074_v27 = vsel %vm740_vm0, %v1069_v25, 0 }
 0x1b0   : > { %937 = vmatpush.bf16.xpose.msra.mxu1 %v928_v26 }
 0x1b1   : > { %v1213_v46 = vpop.permute.xlu2 %1212 }
 0x1b6   : > { %v1045_v29 = vpop.permute.xlu1 %1044 }
 0x1b7   : > { %v756_v30 = vpop.f32.mrf.mxu3  ;;  %3440 = vmatmul.msk.bf16.vlgmr.msra.gmra.mxu1 %vm740_vm0, %v921_v28  ;;  %v1050_v31 = vsel %vm740_vm0, %v1045_v29, 0  ;;  %v1189_v43 = vpop.permute.xlu0 %1188 }
 0x1b8   : > { %1083 = vmatpush.bf16.xpose.msrb.mxu1 %v1074_v27  ;;  %1059 = vmatpush.bf16.xpose.msrb.mxu0 %v1050_v31  ;;  %v792_v32 = vsel %vm791_vm1, %v756_v30, -inf }
 0x1b9   : > { %793 = vmax.xlane.f32.xlu0 %v792_v32 }
 0x1be   : > { %v1191_v34 = vpop.permute.xlu1 %1190 }
 0x1bf   : > { %v1196_v35 = vsel %vm740_vm0, %v1191_v34, 0  ;;  %3443 = vmatmul.msk.bf16.vlgmr.msrb.gmra.mxu0 %vm740_vm0, %v1043_v33  ;;  %v758_v36 = vpop.f32.mrf.mxu3  ;;  %v998_v47 = vpop.permute.xlu0 %997 }
 0x1c0   : > { %1205 = vmatpush.bf16.xpose.msra.mxu0 %v1196_v35  ;;  %v795_v37 = vsel %vm791_vm1, %v758_v36, -inf  ;;  %1010 = vmatpush.bf16.msrb.mxu2 %v998_v47 }
 0x1c1   : > { %796 = vmax.xlane.f32.xlu1 %v795_v37 }
 0x1c6   : > { %v1215_v39 = vpop.permute.xlu1 %1214 }
 0x1c7   : > { %v1220_v40 = vsel %vm740_vm0, %v1215_v39, 0  ;;  %v786_v41 = vpop.f32.mrf.mxu3  ;;  %3444 = vmatmul.msk.bf16.vlgmr.msrb.gmra.mxu1 %vm740_vm0, %v1067_v38 }
 0x1c8   : > { %1229 = vmatpush.bf16.xpose.msra.mxu1 %v1220_v40  ;;  %v798_v42 = vsel %vm791_vm1, %v786_v41, -inf }
 0x1c9   : > { %799 = vmax.xlane.f32.xlu2 %v798_v42 }
 0x1ce   : > { %v4745_v58 = vpop.permute.xlu1 %1022 }
 0x1cf   : > { %v788_v44 = vpop.f32.mrf.mxu3  ;;  %3447 = vmatmul.msk.bf16.vlgmr.msra.gmra.mxu0 %vm740_vm0, %v1189_v43 }
 0x1d0   : > { %v801_v45 = vsel %vm791_vm1, %v788_v44, -inf }
 0x1d1   : > { %802 = vmax.xlane.f32.xlu2 %v801_v45 }
 0x1d7   : > { %3448 = vmatmul.msk.bf16.vlgmr.msra.gmra.mxu1 %vm740_vm0, %v1213_v46 }
 0x224   : > { %v4729_v48 = vpop.f32.mrf.mxu1 }
 0x225   : > { %v944_v49 = vsel %vm791_vm1, %v4729_v48, -inf }
 0x226   : > { %945 = vmax.xlane.f32.xlu0 %v944_v49 }
 0x22c   : > { %v4733_v50 = vpop.f32.mrf.mxu1  ;;  %v794_v52 = vpop.xlane.xlu0 %793 }
 0x22d   : > { %v804_v53 = vsub.f32 %v756_v30, %v794_v52  ;;  %v947_v62 = vsel %vm791_vm1, %v4733_v50, -inf }
 0x22f   : > { %v808_v59 = vmul.f32 1.442695, %v804_v53 }
 0x231   : > { %4012 = vpow2.f32 %v808_v59 }
 0x234   : > { %v4735_v51 = vpop.f32.mrf.mxu1  ;;  %v797_v2 = vpop.xlane.xlu1 %796 }
 0x235   : > { %v805_v5 = vsub.f32 %v758_v36, %v797_v2  ;;  %v950_v7 = vsel %vm791_vm1, %v4735_v51, -inf }
 0x237   : > { %v4755_v1 = vpop.eup %4012  ;;  %v810_v8 = vmul.f32 1.442695, %v805_v5 }
 0x238   : > { %v816_v6 = vsel %vm791_vm1, %v4755_v1, 0.0 }
 0x239   : > { %4014 = vpow2.f32 %v810_v8 }
 0x23c   : > { %v4737_v54 = vpop.f32.mrf.mxu1  ;;  %v4739_v55 = vpop.f32.mrf.mxu0 }
 0x23d   : > { %v953_v56 = vsel %vm791_vm1, %v4737_v54, -inf  ;;  %v1090_v57 = vsel %vm791_vm1, %v4739_v55, -inf  ;;  %v800_v0 = vpop.xlane.xlu2 %799 }
 0x23e   : > { %954 = vmax.xlane.f32.xlu0 %v953_v56  ;;  %1091 = vmax.xlane.f32.xlu1 %v1090_v57  ;;  %v806_v14 = vsub.f32 %v786_v41, %v800_v0 }
 0x23f   : > { %v4775_v22 = vpop.eup %4014 }
 0x240   : > { %v812_v21 = vmul.f32 1.442695, %v806_v14  ;;  %v819_v26 = vsel %vm791_vm1, %v4775_v22, 0.0 }
 0x244   : > { %v4747_v60 = vpop.f32.mrf.mxu0  ;;  %v4749_v61 = vpop.f32.mrf.mxu1 }
 0x245   : > { %v1093_v63 = vsel %vm791_vm1, %v4747_v60, -inf  ;;  %v803_v9 = vpop.xlane.xlu2 %802  ;;  %v1096_v24 = vsel %vm791_vm1, %v4749_v61, -inf }
 0x246   : > { %948 = vmax.xlane.f32.xlu1 %v947_v62  ;;  %1094 = vmax.xlane.f32.xlu2 %v1093_v63  ;;  %v807_v11 = vsub.f32 %v788_v44, %v803_v9 }
 0x248   : > { %v814_v18 = vmul.f32 1.442695, %v807_v11 }
 0x24a   : > { %4016 = vpow2.f32 %v814_v18 }
 0x24b   : > { %4018 = vpow2.f32 %v812_v21 }
 0x24c   : > { %v4757_v3 = vpop.f32.mrf.mxu1  ;;  %v4759_v4 = vpop.f32.mrf.mxu0 }
 0x24d   : > { %v1099_v16 = vsel %vm791_vm1, %v4757_v3, -inf  ;;  %v1236_v17 = vsel %vm791_vm1, %v4759_v4, -inf }
 0x24e   : > { %817 = vadd.xlane.f32.xlu1 %v816_v6  ;;  %951 = vmax.xlane.f32.xlu2 %v950_v7 }
 0x250   : > { %v4785_v27 = vpop.eup %4016 }
 0x251   : > { %v4787_v28 = vpop.eup %4018  ;;  %v825_v29 = vsel %vm791_vm1, %v4785_v27, 0.0 }
 0x252   : > { %v822_v30 = vsel %vm791_vm1, %v4787_v28, 0.0 }
 0x254   : > { %v4765_v12 = vpop.f32.mrf.mxu0  ;;  %v4767_v13 = vpop.f32.mrf.mxu1 }
 0x255   : > { %v1239_v15 = vsel %vm791_vm1, %v4765_v12, -inf  ;;  %v1242_v31 = vsel %vm791_vm1, %v4767_v13, -inf }
 0x256   : > { %1240 = vmax.xlane.f32.xlu0 %v1239_v15  ;;  %1100 = vmax.xlane.f32.xlu1 %v1099_v16 }
 0x257   : > { %1237 = vmax.xlane.f32.xlu2 %v1236_v17 }
 0x25c   : > { %v4777_v23 = vpop.f32.mrf.mxu1 }
 0x25d   : > { %v1245_v25 = vsel %vm791_vm1, %v4777_v23, -inf }
 0x25e   : > { %1097 = vmax.xlane.f32.xlu0 %v1096_v24  ;;  %1246 = vmax.xlane.f32.xlu1 %v1245_v25 }
 0x25f   : > { %820 = vadd.xlane.f32.xlu2 %v819_v26 }
 0x266   : > { %826 = vadd.xlane.f32.xlu0 %v825_v29 }
 0x267   : > { %823 = vadd.xlane.f32.xlu2 %v822_v30 }
 0x26e   : > { %1243 = vmax.xlane.f32.xlu0 %v1242_v31 }
 0x282   : > { %1143 = vrot.lane.b32.xlu0 %v4698_v10, %s4377_s15 }
 0x299   : > { %v946_v32 = vpop.xlane.xlu0 %945 }
 0x29a   : > { %v956_v33 = vsub.f32 %v4729_v48, %v946_v32 }
 0x29c   : > { %v960_v34 = vmul.f32 1.442695, %v956_v33 }
 0x29e   : > { %4020 = vpow2.f32 %v960_v34 }
 0x2a4   : > { %v4798_v35 = vpop.eup %4020 }
 0x2a5   : > { %v968_v36 = vsel %vm791_vm1, %v4798_v35, 0.0 }
 0x2a6   : > { %969 = vadd.xlane.f32.xlu1 %v968_v36 }
 0x2b1   : > { %v1092_v37 = vpop.xlane.xlu1 %1091  ;;  %v955_v47 = vpop.xlane.xlu0 %954 }
 0x2b2   : > { %v1102_v38 = vsub.f32 %v4739_v55, %v1092_v37 }
 0x2b4   : > { %v1106_v39 = vmul.f32 1.442695, %v1102_v38 }
 0x2b6   : > { %4022 = vpow2.f32 %v1106_v39 }
 0x2b9   : > { %v949_v40 = vpop.xlane.xlu1 %948  ;;  %v1095_v41 = vpop.xlane.xlu2 %1094 }
 0x2ba   : > { %v957_v42 = vsub.f32 %v4733_v50, %v949_v40  ;;  %v1103_v44 = vsub.f32 %v4747_v60, %v1095_v41  ;;  %v959_v50 = vsub.f32 %v4737_v54, %v955_v47 }
 0x2bc   : > { %v962_v43 = vmul.f32 1.442695, %v957_v42  ;;  %v4805_v45 = vpop.eup %4022  ;;  %v1108_v48 = vmul.f32 1.442695, %v1103_v44  ;;  %v966_v59 = vmul.f32 1.442695, %v959_v50 }
 0x2bd   : > { %v1114_v46 = vsel %vm791_vm1, %v4805_v45, 0.0 }
 0x2be   : > { %4024 = vpow2.f32 %v962_v43  ;;  %1115 = vadd.xlane.f32.xlu1 %v1114_v46 }
 0x2bf   : > { %4026 = vpow2.f32 %v1108_v48 }
 0x2c1   : > { %v818_v49 = vpop.xlane.xlu1 %817  ;;  %v952_v52 = vpop.xlane.xlu2 %951 }
 0x2c2   : > { %v958_v53 = vsub.f32 %v4735_v51, %v952_v52 }
 0x2c4   : > { %v4810_v55 = vpop.eup %4024  ;;  %v964_v56 = vmul.f32 1.442695, %v958_v53 }
 0x2c5   : > { %v971_v57 = vsel %vm791_vm1, %v4810_v55, 0.0  ;;  %v4815_v63 = vpop.eup %4026 }
 0x2c6   : > { %4028 = vpow2.f32 %v964_v56  ;;  %972 = vadd.xlane.f32.xlu2 %v971_v57  ;;  %v1117_v54 = vsel %vm791_vm1, %v4815_v63, 0.0 }
 0x2c7   : > { %4030 = vpow2.f32 %v966_v59 }
 0x2c8   : > { %4032 = vrcp.f32 %v818_v49 }
 0x2c9   : > { %v1241_v60 = vpop.xlane.xlu0 %1240  ;;  %v1101_v62 = vpop.xlane.xlu1 %1100 }
 0x2ca   : > { %v1105_v0 = vsub.f32 %v4757_v3, %v1101_v62  ;;  %v1238_v2 = vpop.xlane.xlu2 %1237 }
 0x2cb   : > { %v1248_v16 = vsub.f32 %v4759_v4, %v1238_v2 }
 0x2cc   : > { %v4818_v51 = vpop.eup %4028  ;;  %v1112_v5 = vmul.f32 1.442695, %v1105_v0 }
 0x2cd   : > { %v974_v6 = vsel %vm791_vm1, %v4818_v51, 0.0  ;;  %v4824_v9 = vpop.eup %4030 }
 0x2ce   : > { %1118 = vadd.xlane.f32.xlu2 %v1117_v54  ;;  %975 = vadd.xlane.f32.xlu1 %v974_v6  ;;  %4034 = vpow2.f32 %v1112_v5  ;;  %v4033_v15 = vpop.eup %4032  ;;  %v977_v24 = vsel %vm791_vm1, %v4824_v9, 0.0 }
 0x2cf   : > { %v832_v25 = vmul.f32 %v4033_v15, %v4755_v1  ;;  %v1249_v1 = vsub.f32 %v4765_v12, %v1241_v60 }
 0x2d1   : > { %v1098_v7 = vpop.xlane.xlu0 %1097  ;;  %v1247_v8 = vpop.xlane.xlu1 %1246  ;;  %v836_v4 = vpack.c.bf16 %v832_v25, %v832_v25  ;;  %v1254_v40 = vmul.f32 1.442695, %v1249_v1 }
 0x2d2   : > { %v1104_v3 = vsub.f32 %v4749_v61, %v1098_v7  ;;  %v1251_v11 = vsub.f32 %v4777_v23, %v1247_v8  ;;  %v821_v14 = vpop.xlane.xlu2 %820  ;;  %v1252_v23 = vmul.f32 1.442695, %v1248_v16 }
 0x2d3   : > { %4036 = vrcp.f32 %v821_v14  ;;  %v842_v37 = vunpack.c.l.b16 %v836_v4 }
 0x2d4   : > { %v1110_v17 = vmul.f32 1.442695, %v1104_v3  ;;  %v1258_v18 = vmul.f32 1.442695, %v1251_v11  ;;  %v4829_v21 = vpop.eup %4034 }
 0x2d5   : > { %v1123_v61 = vsel %vm791_vm1, %v4829_v21, 0.0 }
 0x2d6   : > { %4038 = vpow2.f32 %v1110_v17  ;;  %978 = vadd.xlane.f32.xlu2 %v977_v24  ;;  %1124 = vadd.xlane.f32.xlu0 %v1123_v61 }
 0x2d7   : > { %4040 = vpow2.f32 %v1258_v18 }
 0x2d9   : > { %v4037_v26 = vpop.eup %4036  ;;  %v827_v29 = vpop.xlane.xlu0 %826 }
 0x2da   : > { %v833_v30 = vmul.f32 %v4037_v26, %v4775_v22  ;;  %4042 = vrcp.f32 %v827_v29  ;;  %v824_v31 = vpop.xlane.xlu2 %823 }
 0x2db   : > { %4044 = vrcp.f32 %v824_v31 }
 0x2dc   : > { %v4837_v32 = vpop.eup %4038  ;;  %4046 = vpow2.f32 %v1252_v23  ;;  %v837_v33 = vpack.c.bf16 %v833_v30, %v833_v30 }
 0x2dd   : > { %v4840_v34 = vpop.eup %4040  ;;  %v1120_v36 = vsel %vm791_vm1, %v4837_v32, 0.0  ;;  %4048 = vpow2.f32 %v1254_v40 }
 0x2de   : > { %v843_v38 = vunpack.c.l.b16 %v837_v33  ;;  %v1269_v39 = vsel %vm791_vm1, %v4840_v34, 0.0  ;;  %1121 = vadd.xlane.f32.xlu2 %v1120_v36 }
 0x2df   : > { %1270 = vadd.xlane.f32.xlu0 %v1269_v39 }
 0x2e0   : > { %v4043_v22 = vpop.eup %4042  ;;  %v844_v41 = vpack.c.b16 %v843_v38, %v842_v37 }
 0x2e1   : > { %v4045_v42 = vpop.eup %4044  ;;  %v835_v12 = vmul.f32 %v4043_v22, %v4785_v27  ;;  %v1244_v50 = vpop.xlane.xlu0 %1243 }
 0x2e2   : > { %v4846_v43 = vpop.eup %4046  ;;  %3437 = vmatmul.msk.bf16.vlgmr.msra.gmra.mxu3 %vm791_vm1, %v844_v41  ;;  %v834_v44 = vmul.f32 %v4045_v42, %v4787_v28  ;;  %v1250_v56 = vsub.f32 %v4767_v13, %v1244_v50 }
 0x2e3   : > { %1035 = vmatpush.bf16.msra.mxu3 %v4745_v58  ;;  %v1260_v46 = vsel %vm791_vm1, %v4846_v43, 0.0  ;;  %v839_v47 = vpack.c.bf16 %v835_v12, %v835_v12  ;;  %v4856_v49 = vpop.eup %4048 }
 0x2e4   : > { %v838_v48 = vpack.c.bf16 %v834_v44, %v834_v44  ;;  %v1263_v58 = vsel %vm791_vm1, %v4856_v49, 0.0  ;;  %v1256_v57 = vmul.f32 1.442695, %v1250_v56 }
 0x2e5   : > { %v871_v52 = vunpack.c.l.b16 %v839_v47 }
 0x2e6   : > { %1261 = vadd.xlane.f32.xlu2 %v1260_v46  ;;  %v870_v53 = vunpack.c.l.b16 %v838_v48  ;;  %4050 = vpow2.f32 %v1256_v57 }
 0x2e7   : > { %1168 = vrot.lane.b32.xlu1 %v4707_v20, %s4377_s15 }
 0x2e8   : > { %v872_v27 = vpack.c.b16 %v871_v52, %v870_v53 }
 0x2ec   : > { %v4864_v59 = vpop.eup %4050 }
 0x2ed   : > { %v1266_v60 = vsel %vm791_vm1, %v4864_v59, 0.0 }
 0x2ee   : > { %1264 = vadd.xlane.f32.xlu2 %v1263_v58 }
 0x2f2   : > { %3438 = vmatmul.msk.bf16.vlgmr.msrb.gmra.mxu3 %vm791_vm1, %v872_v27 }
 0x2f4   : > { %v1144_v28 = vpop.permute.xlu0 %1143 }
 0x2f5   : > { %1156 = vmatpush.bf16.msra.mxu2 %v1144_v28 }
 0x306   : > { %1289 = vrot.lane.b32.xlu2 %v4698_v10, %s4378_s26 }
 0x30e   : > { %1314 = vrot.lane.b32.xlu2 %v4707_v20, %s4378_s26 }
 0x311   : > { %1267 = vadd.xlane.f32.xlu1 %v1266_v60 }
 0x319   : > { %v970_v62 = vpop.xlane.xlu1 %969 }
 0x31a   : > { %4052 = vrcp.f32 %v970_v62 }
 0x320   : > { %v4053_v5 = vpop.eup %4052 }
 0x321   : > { %v984_v13 = vmul.f32 %v4053_v5, %v4798_v35 }
 0x323   : > { %v988_v10 = vpack.c.bf16 %v984_v13, %v984_v13 }
 0x325   : > { %v994_v3 = vunpack.c.l.b16 %v988_v10 }
 0x331   : > { %v1116_v0 = vpop.xlane.xlu1 %1115 }
 0x339   : > { %v973_v2 = vpop.xlane.xlu2 %972 }
 0x33a   : > { %4054 = vrcp.f32 %v973_v2 }
 0x33b   : > { %4056 = vrcp.f32 %v1116_v0 }
 0x340   : > { %v4055_v54 = vpop.eup %4054 }
 0x341   : > { %v985_v6 = vmul.f32 %v4055_v54, %v4810_v55  ;;  %v976_v7 = vpop.xlane.xlu1 %975  ;;  %v1119_v8 = vpop.xlane.xlu2 %1118 }
 0x342   : > { %4058 = vrcp.f32 %v1119_v8  ;;  %v4057_v15 = vpop.eup %4056 }
 0x343   : > { %v989_v20 = vpack.c.bf16 %v985_v6, %v985_v6  ;;  %4060 = vrcp.f32 %v976_v7  ;;  %v1130_v55 = vmul.f32 %v4057_v15, %v4805_v45 }
 0x345   : > { %v995_v11 = vunpack.c.l.b16 %v989_v20  ;;  %v1134_v23 = vpack.c.bf16 %v1130_v55, %v1130_v55 }
 0x347   : > { %v996_v14 = vpack.c.b16 %v995_v11, %v994_v3  ;;  %v1140_v33 = vunpack.c.l.b16 %v1134_v23 }
 0x348   : > { %v4059_v16 = vpop.eup %4058 }
 0x349   : > { %3441 = vmatmul.msk.bf16.vlgmr.msrb.gmra.mxu2 %vm791_vm1, %v996_v14  ;;  %v979_v17 = vpop.xlane.xlu2 %978  ;;  %v4061_v18 = vpop.eup %4060  ;;  %v1131_v35 = vmul.f32 %v4059_v16, %v4815_v63 }
 0x34a   : > { %4062 = vrcp.f32 %v979_v17  ;;  %v986_v24 = vmul.f32 %v4061_v18, %v4818_v51  ;;  %v1125_v29 = vpop.xlane.xlu0 %1124 }
 0x34b   : > { %v1135_v25 = vpack.c.bf16 %v1131_v35, %v1131_v35 }
 0x34c   : > { %v990_v26 = vpack.c.bf16 %v986_v24, %v986_v24 }
 0x34d   : > { %v1141_v31 = vunpack.c.l.b16 %v1135_v25 }
 0x34e   : > { %v1019_v36 = vunpack.c.l.b16 %v990_v26  ;;  %v3827_v26 = vld [vmem:[%s4587_s24 + $0x38] sm:$0xff] }
 0x34f   : > { %v1142_v63 = vpack.c.b16 %v1141_v31, %v1140_v33  ;;  %1463 = vmatpush.bf16.msrb.mxu0 %v3827_v26  ;;  %v3825_v33 = vld [vmem:[%s4587_s24 + $0x28] sm:$0xff] }
 0x350   : > { %v4063_v61 = vpop.eup %4062 }
 0x351   : > { %v987_v4 = vmul.f32 %v4063_v61, %v4824_v9  ;;  %v1122_v30 = vpop.xlane.xlu2 %1121 }
 0x352   : > { %4064 = vrcp.f32 %v1122_v30  ;;  %v1271_v60 = vpop.xlane.xlu0 %1270 }
 0x353   : > { %v991_v1 = vpack.c.bf16 %v987_v4, %v987_v4  ;;  %4066 = vrcp.f32 %v1125_v29 }
 0x355   : > { %v1020_v37 = vunpack.c.l.b16 %v991_v1  ;;  %v3826_v1 = vld [vmem:[%s4587_s24 + $0x30] sm:$0xff] }
 0x356   : > { %1464 = vmatpush.bf16.msrb.mxu0 %v3826_v1 }
 0x357   : > { %v1021_v38 = vpack.c.b16 %v1020_v37, %v1019_v36  ;;  %v3824_v36 = vld [vmem:[%s4587_s24 + $0x20] sm:$0xff]  ;;  %v3823_v37 = vld [vmem:[%s4587_s24 + $0x18] sm:$0xff] }
 0x358   : > { %v4065_v45 = vpop.eup %4064 }
 0x359   : > { %v1169_v39 = vpop.permute.xlu1 %1168  ;;  %3442 = vmatmul.msk.bf16.vlgmr.msra.gmra.mxu3 %vm791_vm1, %v1021_v38  ;;  %3445 = vmatmul.msk.bf16.vlgmr.msra.gmra.mxu2 %vm791_vm1, %v1142_v63  ;;  %v1262_v51 = vpop.xlane.xlu2 %1261  ;;  %v1132_v9 = vmul.f32 %v4065_v45, %v4837_v32  ;;  %v3822_v63 = vld [vmem:[%s4587_s24 + $0x10] sm:$0xff]  ;;  %v3821_v38 = vld [vmem:[%s4587_s24 + $0x8] sm:$0xff]  ;;  %v3820_v45 = vld [vmem:[%s4587_s24] sm:$0xff] }
 0x35a   : > { %v4067_v22 = vpop.eup %4066  ;;  %1181 = vmatpush.bf16.msrb.mxu3 %v1169_v39  ;;  %4068 = vrcp.f32 %v1262_v51  ;;  %1465 = vmatpush.bf16.msrb.mxu0 %v3825_v33 }
 0x35b   : > { %v1133_v40 = vmul.f32 %v4067_v22, %v4829_v21  ;;  %v1136_v41 = vpack.c.bf16 %v1132_v9, %v1132_v9 }
 0x35d   : > { %v1137_v42 = vpack.c.bf16 %v1133_v40, %v1133_v40  ;;  %v1165_v46 = vunpack.c.l.b16 %v1136_v41 }
 0x35e   : > { %1466 = vmatpush.bf16.msrb.mxu0 %v3824_v36 }
 0x35f   : > { %v1166_v47 = vunpack.c.l.b16 %v1137_v42 }
 0x360   : > { %v4069_v44 = vpop.eup %4068 }
 0x361   : > { %v1265_v12 = vpop.xlane.xlu2 %1264  ;;  %v1276_v48 = vmul.f32 %v4069_v44, %v4846_v43  ;;  %v1167_v52 = vpack.c.b16 %v1166_v47, %v1165_v46 }
 0x362   : > { %4070 = vrcp.f32 %v1265_v12  ;;  %1467 = vmatpush.bf16.msrb.mxu0 %v3823_v37 }
 0x363   : > { %v1280_v50 = vpack.c.bf16 %v1276_v48, %v1276_v48  ;;  %4072 = vrcp.f32 %v1271_v60 }
 0x365   : > { %v1286_v21 = vunpack.c.l.b16 %v1280_v50  ;;  %v863_v7 = vpop.f32.mrf.mxu3 }
 0x366   : > { %1468 = vmatpush.bf16.msrb.mxu0 %v3822_v63 }
 0x368   : > { %v4071_v53 = vpop.eup %4070 }
 0x369   : > { %v1277_v58 = vmul.f32 %v4071_v53, %v4856_v49  ;;  %3446 = vmatmul.msk.bf16.vlgmr.msrb.gmra.mxu3 %vm791_vm1, %v1167_v52  ;;  %v1290_v32 = vpop.permute.xlu2 %1289  ;;  %v4073_v62 = vpop.eup %4072 }
 0x36a   : > { %1302 = vmatpush.bf16.msrb.mxu2 %v1290_v32  ;;  %v1279_v0 = vmul.f32 %v4073_v62, %v4840_v34  ;;  %1469 = vmatpush.bf16.msrb.mxu0 %v3821_v38 }
 0x36b   : > { %v1281_v27 = vpack.c.bf16 %v1277_v58, %v1277_v58 }
 0x36c   : > { %v1283_v2 = vpack.c.bf16 %v1279_v0, %v1279_v0 }
 0x36d   : > { %v1287_v28 = vunpack.c.l.b16 %v1281_v27  ;;  %v865_v8 = vpop.f32.mrf.mxu3 }
 0x36e   : > { %v1312_v54 = vunpack.c.l.b16 %v1283_v2  ;;  %1470 = vmatpush.bf16.msrb.mxu0 %v3820_v45 }
 0x36f   : > { %v1288_v56 = vpack.c.b16 %v1287_v28, %v1286_v21 }
 0x371   : > { %3449 = vmatmul.msk.bf16.vlgmr.msrb.gmra.mxu2 %vm791_vm1, %v1288_v56  ;;  %v1315_v57 = vpop.permute.xlu2 %1314 }
 0x372   : > { %1327 = vmatpush.bf16.msra.mxu3 %v1315_v57 }
 0x375   : > { %v4888_v20 = vpop.f32.mrf.mxu3 }
 0x37d   : > { %v4890_v11 = vpop.f32.mrf.mxu3 }
 0x384   : > { %v1268_v43 = vpop.xlane.xlu1 %1267 }
 0x385   : > { %4074 = vrcp.f32 %v1268_v43 }
 0x38b   : > { %v4075_v49 = vpop.eup %4074 }
 0x38c   : > { %v1278_v5 = vmul.f32 %v4075_v49, %v4864_v59 }
 0x38e   : > { %v1282_v13 = vpack.c.bf16 %v1278_v5, %v1278_v5 }
 0x390   : > { %v1311_v10 = vunpack.c.l.b16 %v1282_v13 }
 0x392   : > { %v1313_v6 = vpack.c.b16 %v1312_v54, %v1311_v10 }
 0x394   : > { %3450 = vmatmul.msk.bf16.vlgmr.msra.gmra.mxu3 %vm791_vm1, %v1313_v6  ;;  %v1414_v6 = vperm.slane %v4683_v19, 1  ;;  %v4379_v19 = vmov 128.0  }
 0x395   : > { %4076 = vrcp.f32 %v4379_v19  ;;  %v3557_v19 = vld [vmem:[%s4594_s18 + $0x88] sm:$0xf] }
 0x3cc   : > { %v1012_v3 = vpop.f32.mrf.mxu2 }
 0x3d4   : > { %v1014_v14 = vpop.f32.mrf.mxu2 }
 0x3d5   : > { %v3982_v15 = vpack.i.bf16 %v1014_v14, %v1012_v3  ;;  %v4126_v3 = vld [vmem:[#allocation2 + $0x10] sm:$0xff] }
 0x3d7   : > { %3983 = vrot.lane.b32.xlu0 %v3982_v15, %s4378_s26  ;;  %v4127_v15 = vld [vmem:[#allocation2] sm:$0xff] }
 0x3dc   : > { %v1037_v34 = vpop.f32.mrf.mxu3  ;;  %v1158_v59 = vpop.f32.mrf.mxu2 }
 0x3e4   : > { %v1039_v16 = vpop.f32.mrf.mxu3  ;;  %v1160_v17 = vpop.f32.mrf.mxu2 }
 0x3e5   : > { %v3997_v18 = vpack.i.bf16 %v1039_v16, %v1037_v34  ;;  %v3987_v35 = vpack.i.bf16 %v1160_v17, %v1158_v59  ;;  %v4128_v17 = vld [vmem:[#allocation2 + $0x18] sm:$0xff] }
 0x3e7   : > { %3988 = vrot.lane.b32.xlu2 %v3987_v35, %s4377_s15  ;;  %3998 = vrot.lane.b32.xlu1 %v3997_v18, %s4378_s26 }
 0x3ec   : > { %v1183_v24 = vpop.f32.mrf.mxu3 }
 0x3f4   : > { %v1304_v55 = vpop.f32.mrf.mxu2  ;;  %v1185_v23 = vpop.f32.mrf.mxu3 }
 0x3f5   : > { %v4002_v29 = vpack.i.bf16 %v1185_v23, %v1183_v24  ;;  %v4129_v24 = vld [vmem:[#allocation2 + $0x8] sm:$0xff] }
 0x3fc   : > { %v1306_v25 = vpop.f32.mrf.mxu2 }
 0x3fd   : > { %v3992_v61 = vpack.i.bf16 %v1306_v25, %v1304_v55 }
 0x3ff   : > { %3993 = vrot.lane.b32.xlu2 %v3992_v61, %s4376_s12  ;;  %v4077_v61 = vpop.eup %4076 }
 0x400   : > { %v1495_v23 = vmul.f32 128.0, %v4077_v61  ;;  %vm1499_vm4 = vweird.f32 %v4077_v61 }
 0x402   : > { %v1496_v26 = vsub.f32 1.0, %v1495_v23 }
 0x407   : > { %4003 = vrot.lane.b32.xlu2 %v4002_v29, %s4377_s15  ;;  %v1497_v29 = vmul.f32 %v4077_v61, %v1496_v26 }
 0x417   : > { %v1329_v4 = vpop.f32.mrf.mxu3 }
 0x41f   : > { %v1331_v30 = vpop.f32.mrf.mxu3 }
 0x420   : > { %v4007_v31 = vpack.i.bf16 %v1331_v30, %v1329_v4  ;;  %v1498_v4 = vadd.f32 %v4077_v61, %v1497_v29  ;;  %v3845_v29 = vld [vmem:[%s4594_s18 + $0x8c] sm:$0xf] }
 0x422   : > { %4008 = vrot.lane.b32.xlu0 %v4007_v31, %s4376_s12  ;;  %v4921_v30 = vsel %vm1499_vm4, %v4077_v61, %v1498_v4  ;;  %v3847_v61 = vld [vmem:[%s4594_s18 + $0x94] sm:$0xf0]  ;;  %v3559_v4 = vld [vmem:[%s4594_s18 + $0x98] sm:$0xf0] }
 0x423   : > { %v3558_v26 = vor.u32 %v3847_v61, %v3557_v19 }
 0x441   : > { %v3989_v39 = vpop.permute.xlu2 %3988 }
 0x442   : > { %v3991_v42 = vunpack.i.h.bf16 %v3989_v39  ;;  %v3990_v12 = vunpack.i.l.bf16 %v3989_v39 }
 0x449   : > { %v3984_v51 = vpop.permute.xlu0 %3983 }
 0x44a   : > { %v3986_v22 = vunpack.i.h.bf16 %v3984_v51  ;;  %v3985_v9 = vunpack.i.l.bf16 %v3984_v51 }
 0x44c   : > { %v1383_v40 = vsel %vm740_vm0, %v865_v8, %v3986_v22  ;;  %v1382_v41 = vsel %vm740_vm0, %v863_v7, %v3985_v9 }
 0x44d   : > { %v1387_v48 = vsel %vm1386_vm2, %v1382_v41, %v3990_v12  ;;  %v1388_v52 = vsel %vm1386_vm2, %v1383_v40, %v3991_v42 }
 0x459   : > { %v3994_v44 = vpop.permute.xlu2 %3993  ;;  %v3999_v32 = vpop.permute.xlu1 %3998 }
 0x45a   : > { %v3996_v46 = vunpack.i.h.bf16 %v3994_v44  ;;  %v3995_v47 = vunpack.i.l.bf16 %v3994_v44  ;;  %v4001_v21 = vunpack.i.h.bf16 %v3999_v32  ;;  %v4000_v28 = vunpack.i.l.bf16 %v3999_v32  ;;  %v3597_v44 = vld [vmem:[%s4594_s18 + $0xe0] sm:$0xf] }
 0x45c   : > { %v1392_v53 = vsel %vm1391_vm3, %v1387_v48, %v3995_v47  ;;  %v1393_v50 = vsel %vm1391_vm3, %v1388_v52, %v3996_v46  ;;  %v1385_v43 = vsel %vm740_vm0, %v4890_v11, %v4001_v21  ;;  %v1384_v62 = vsel %vm740_vm0, %v4888_v20, %v4000_v28  ;;  %v3858_v46 = vld [vmem:[%s4594_s18 + $0xec] sm:$0xf0]  ;;  %v3856_v47 = vld [vmem:[%s4594_s18 + $0xe4] sm:$0xf]  ;;  %v3599_v52 = vld [vmem:[%s4594_s18 + $0xf0] sm:$0xf0] }
 0x45d   : > { %v1412_v58 = vpack.c.bf16 %v1393_v50, %v1392_v53  ;;  %v3598_v48 = vor.u32 %v3858_v46, %v3597_v44  ;;  %v3605_v53 = vld [vmem:[%s4594_s18 + $0xe8] sm:$0xf]  ;;  %v3859_v50 = vld [vmem:[%s4594_s18 + $0xf4] sm:$0xf0]  ;;  %v3607_v21 = vld [vmem:[%s4594_s18 + $0xf8] sm:$0xf0] }
 0x45e   : > { %v3606_v32 = vor.u32 %v3859_v50, %v3605_v53  ;;  %v3517_v46 = vld [vmem:[%s4594_s18 + $0x40] sm:$0xf]  ;;  %v3519_v53 = vld [vmem:[%s4594_s18 + $0x50] sm:$0xf0]  ;;  %v3525_v50 = vld [vmem:[%s4594_s18 + $0x48] sm:$0xf] }
 0x45f   : > { %1471 = vmatmul.bf16.vlgmr.msrb.gmra.mxu0 %v1412_v58  ;;  %v3602_v58 = vor.u32 %v3856_v47, %v3599_v52  ;;  %1781 = vmatpush.bf16.msrb.mxu1 %v3598_v48  ;;  %v3838_v47 = vld [vmem:[%s4594_s18 + $0x4c] sm:$0xf0]  ;;  %v3836_v48 = vld [vmem:[%s4594_s18 + $0x44] sm:$0xf] }
 0x460   : > { %1819 = vmatpush.bf16.msrb.mxu3 %v3606_v32  ;;  %v3518_v52 = vor.u32 %v3838_v47, %v3517_v46  ;;  %v3522_v32 = vor.u32 %v3836_v48, %v3519_v53 }
 0x461   : > { %v4004_v27 = vpop.permute.xlu2 %4003  ;;  %1800 = vmatpush.bf16.msra.mxu2 %v3602_v58  ;;  %v3839_v58 = vld [vmem:[%s4594_s18 + $0x54] sm:$0xf0] }
 0x462   : > { %v4006_v56 = vunpack.i.h.bf16 %v4004_v27  ;;  %v4005_v57 = vunpack.i.l.bf16 %v4004_v27  ;;  %v3857_v27 = vld [vmem:[%s4594_s18 + $0xec] sm:$0xf] }
 0x463   : > { %v3610_v28 = vor.u32 %v3857_v27, %v3607_v21  ;;  %v3526_v27 = vor.u32 %v3839_v58, %v3525_v50  ;;  %v3837_v21 = vld [vmem:[%s4594_s18 + $0x4c] sm:$0xf] }
 0x464   : > { %v1389_v2 = vsel %vm1386_vm2, %v1384_v62, %v4005_v57  ;;  %v1390_v5 = vsel %vm1386_vm2, %v1385_v43, %v4006_v56  ;;  %v3581_v56 = vld [vmem:[%s4594_s18 + $0xc0] sm:$0xf]  ;;  %v3854_v57 = vld [vmem:[%s4594_s18 + $0xcc] sm:$0xf0]  ;;  %v3583_v62 = vld [vmem:[%s4594_s18 + $0xd0] sm:$0xf0] }
 0x465   : > { %1838 = vmatpush.bf16.msra.mxu0 %v3610_v28  ;;  %v3582_v43 = vor.u32 %v3854_v57, %v3581_v56  ;;  %v3527_v28 = vld [vmem:[%s4594_s18 + $0x58] sm:$0xf0]  ;;  %v3501_v57 = vld [vmem:[%s4594_s18 + $0x20] sm:$0xf] }
 0x466   : > { %v3530_v56 = vor.u32 %v3837_v21, %v3527_v28 }
 0x467   : > { %1782 = vmatpush.bf16.msrb.mxu1 %v3582_v43  ;;  %v3832_v43 = vld [vmem:[%s4594_s18 + $0x24] sm:$0xf] }
 0x494   : > { %v4009_v60 = vpop.permute.xlu0 %4008 }
 0x495   : > { %v4011_v0 = vunpack.i.h.bf16 %v4009_v60  ;;  %v4010_v49 = vunpack.i.l.bf16 %v4009_v60  ;;  %v3852_v60 = vld [vmem:[%s4594_s18 + $0xc4] sm:$0xf] }
 0x497   : > { %v1394_v13 = vsel %vm1391_vm3, %v1389_v2, %v4010_v49  ;;  %v1395_v54 = vsel %vm1391_vm3, %v1390_v5, %v4011_v0  ;;  %v3589_v0 = vld [vmem:[%s4594_s18 + $0xc8] sm:$0xf]  ;;  %v3855_v49 = vld [vmem:[%s4594_s18 + $0xd4] sm:$0xf0]  ;;  %v3586_v2 = vor.u32 %v3852_v60, %v3583_v62  ;;  %v3834_v60 = vld [vmem:[%s4594_s18 + $0x2c] sm:$0xf0] }
 0x498   : > { %v1413_v10 = vpack.c.bf16 %v1395_v54, %v1394_v13  ;;  %v3590_v5 = vor.u32 %v3855_v49, %v3589_v0  ;;  %v3853_v13 = vld [vmem:[%s4594_s18 + $0xcc] sm:$0xf]  ;;  %v3591_v54 = vld [vmem:[%s4594_s18 + $0xd8] sm:$0xf0]  ;;  %v3502_v0 = vor.u32 %v3834_v60, %v3501_v57  ;;  %v3503_v49 = vld [vmem:[%s4594_s18 + $0x30] sm:$0xf0] }
 0x499   : > { %1801 = vmatpush.bf16.msra.mxu2 %v3586_v2  ;;  %v3509_v2 = vld [vmem:[%s4594_s18 + $0x28] sm:$0xf] }
 0x49a   : > { %1476 = vmatmul.bf16.gmra.mxu0 %v1413_v10  ;;  %v3594_v10 = vor.u32 %v3853_v13, %v3591_v54  ;;  %1820 = vmatpush.bf16.msrb.mxu3 %v3590_v5  ;;  %v3835_v5 = vld [vmem:[%s4594_s18 + $0x34] sm:$0xf0]  ;;  %v3506_v54 = vor.u32 %v3832_v43, %v3503_v49 }
 0x49c   : > { %1839 = vmatpush.bf16.msra.mxu0 %v3594_v10  ;;  %v3510_v10 = vor.u32 %v3835_v5, %v3509_v2 }
 0x4dc   : > { %v1472_v7 = vpop.f32.mrf.mxu0 }
 0x4dd   : > { %v1473_v8 = vadd.f32 %v1472_v7, %v1414_v6  ;;  %v3850_v7 = vld [vmem:[%s4594_s18 + $0xac] sm:$0xf0] }
 0x4df   : > { %v1482_v11 = vadd.f32 %v4126_v3, %v1473_v8  ;;  %v3848_v8 = vld [vmem:[%s4594_s18 + $0xa4] sm:$0xf] }
 0x4e1   : > { %1486 = vadd.xlane.f32.xlu2 %v1482_v11 }
 0x4e4   : > { %v1474_v20 = vpop.f32.mrf.mxu0 }
 0x4e5   : > { %v1475_v14 = vadd.f32 %v1474_v20, %v1414_v6  ;;  %v3573_v20 = vld [vmem:[%s4594_s18 + $0xa8] sm:$0xf] }
 0x4e7   : > { %v1483_v34 = vadd.f32 %v4127_v15, %v1475_v14  ;;  %v3851_v14 = vld [vmem:[%s4594_s18 + $0xb4] sm:$0xf0] }
 0x4e9   : > { %1488 = vadd.xlane.f32.xlu0 %v1483_v34 }
 0x517   : > { %v1477_v59 = vpop.f32.mrf.mxu0 }
 0x518   : > { %v1478_v16 = vadd.f32 %v1477_v59, %v1414_v6  ;;  %v3849_v59 = vld [vmem:[%s4594_s18 + $0xac] sm:$0xf] }
 0x51a   : > { %v1484_v18 = vadd.f32 %v4128_v17, %v1478_v16  ;;  %v3575_v16 = vld [vmem:[%s4594_s18 + $0xb8] sm:$0xf0] }
 0x51b   : > { %v3578_v17 = vor.u32 %v3849_v59, %v3575_v16  ;;  %v3493_v16 = vld [vmem:[%s4594_s18 + $0x8] sm:$0xf] }
 0x51c   : > { %1490 = vadd.xlane.f32.xlu1 %v1484_v18 }
 0x51d   : > { %1840 = vmatpush.bf16.msra.mxu0 %v3578_v17  ;;  %v3831_v17 = vld [vmem:[%s4594_s18 + $0x14] sm:$0xf0] }
 0x51f   : > { %v1479_v35 = vpop.f32.mrf.mxu0 }
 0x520   : > { %v1480_v55 = vadd.f32 %v1479_v35, %v1414_v6  ;;  %v3565_v6 = vld [vmem:[%s4594_s18 + $0xa0] sm:$0xf]  ;;  %v3846_v35 = vld [vmem:[%s4594_s18 + $0x8c] sm:$0xf0] }
 0x521   : > { %v3566_v3 = vor.u32 %v3850_v7, %v3565_v6  ;;  %v3833_v6 = vld [vmem:[%s4594_s18 + $0x2c] sm:$0xf]  ;;  %v3511_v7 = vld [vmem:[%s4594_s18 + $0x38] sm:$0xf0] }
 0x522   : > { %v1485_v25 = vadd.f32 %v4129_v24, %v1480_v55  ;;  %v3844_v55 = vld [vmem:[%s4594_s18 + $0x84] sm:$0xf] }
 0x523   : > { %1783 = vmatpush.bf16.msrb.mxu1 %v3566_v3  ;;  %v3514_v3 = vor.u32 %v3833_v6, %v3511_v7 }
 0x524   : > { %1492 = vadd.xlane.f32.xlu2 %v1485_v25 }
 0x554   : > { %v1487_v31 = vpop.xlane.xlu2 %1486 }
 0x555   : > { %v1501_v1 = vmul.f32 %v4921_v30, %v1487_v31  ;;  %v3562_v31 = vor.u32 %v3845_v29, %v3559_v4 }
 0x557   : > { %v4924_v33 = vsub.f32 %v1482_v11, %v1501_v1  ;;  %v3567_v11 = vld [vmem:[%s4594_s18 + $0xb0] sm:$0xf0]  ;;  %v3533_v1 = vld [vmem:[%s4594_s18 + $0x60] sm:$0xf]  ;;  %1841 = vmatpush.bf16.msra.mxu0 %v3562_v31 }
 0x558   : > { %v3570_v15 = vor.u32 %v3848_v8, %v3567_v11  ;;  %v3485_v8 = vld [vmem:[%s4594_s18] sm:$0xf]  ;;  %v3830_v11 = vld [vmem:[%s4594_s18 + $0xc] sm:$0xf0] }
 0x559   : > { %v1509_v36 = vmul.f32 %v4924_v33, %v4924_v33 }
 0x55a   : > { %1802 = vmatpush.bf16.msra.mxu2 %v3570_v15 }
 0x55b   : > { %1513 = vadd.xlane.f32.xlu0 %v1509_v36  ;;  %v3842_v36 = vld [vmem:[%s4594_s18 + $0x6c] sm:$0xf0] }
 0x55c   : > { %v1489_v37 = vpop.xlane.xlu0 %1488 }
 0x55d   : > { %v1502_v63 = vmul.f32 %v4921_v30, %v1489_v37  ;;  %v3840_v37 = vld [vmem:[%s4594_s18 + $0x64] sm:$0xf] }
 0x55f   : > { %v4929_v38 = vsub.f32 %v1483_v34, %v1502_v63  ;;  %v3574_v34 = vor.u32 %v3851_v14, %v3573_v20  ;;  %v3534_v63 = vor.u32 %v3842_v36, %v3533_v1  ;;  %v3828_v20 = vld [vmem:[%s4594_s18 + $0x4] sm:$0xf]  ;;  %v3487_v14 = vld [vmem:[%s4594_s18 + $0x10] sm:$0xf0] }
 0x560   : > { %v3490_v59 = vor.u32 %v3828_v20, %v3487_v14 }
 0x561   : > { %v1510_v45 = vmul.f32 %v4929_v38, %v4929_v38  ;;  %1821 = vmatpush.bf16.msrb.mxu3 %v3574_v34  ;;  %v3486_v34 = vor.u32 %v3830_v11, %v3485_v8 }
 0x563   : > { %1515 = vadd.xlane.f32.xlu2 %v1510_v45  ;;  %v3535_v45 = vld [vmem:[%s4594_s18 + $0x70] sm:$0xf0] }
 0x565   : > { %1822 = vmatpush.bf16.msrb.mxu3 %v3558_v26 }
 0x58f   : > { %v1491_v39 = vpop.xlane.xlu1 %1490 }
 0x590   : > { %v1503_v51 = vmul.f32 %v4921_v30, %v1491_v39  ;;  %v3541_v39 = vld [vmem:[%s4594_s18 + $0x68] sm:$0xf] }
 0x592   : > { %v4934_v22 = vsub.f32 %v1484_v18, %v1503_v51  ;;  %v3549_v18 = vld [vmem:[%s4594_s18 + $0x80] sm:$0xf]  ;;  %v3843_v51 = vld [vmem:[%s4594_s18 + $0x74] sm:$0xf0] }
 0x593   : > { %v3550_v24 = vor.u32 %v3846_v35, %v3549_v18  ;;  %v3494_v18 = vor.u32 %v3831_v17, %v3493_v16  ;;  %v3829_v35 = vld [vmem:[%s4594_s18 + $0xc] sm:$0xf] }
 0x594   : > { %v1511_v9 = vmul.f32 %v4934_v22, %v4934_v22 }
 0x595   : > { %1784 = vmatpush.bf16.msrb.mxu1 %v3550_v24 }
 0x596   : > { %1517 = vadd.xlane.f32.xlu0 %v1511_v9  ;;  %v3538_v9 = vor.u32 %v3840_v37, %v3535_v45 }
 0x597   : > { %v1493_v40 = vpop.xlane.xlu2 %1492 }
 0x598   : > { %v1504_v41 = vmul.f32 %v4921_v30, %v1493_v40  ;;  %v3542_v40 = vor.u32 %v3843_v51, %v3541_v39 }
 0x599   : > { %1785 = vmatpush.bf16.msrb.mxu1 %v3534_v63 }
 0x59a   : > { %v4939_v42 = vsub.f32 %v1485_v25, %v1504_v41  ;;  %v3551_v25 = vld [vmem:[%s4594_s18 + $0x90] sm:$0xf0]  ;;  %v3841_v41 = vld [vmem:[%s4594_s18 + $0x6c] sm:$0xf]  ;;  %1823 = vmatpush.bf16.msrb.mxu3 %v3542_v40  ;;  %v4130_v40 = vld [vmem:[%s4602_s19] sm:$0xff] }
 0x59b   : > { %v3554_v23 = vor.u32 %v3844_v55, %v3551_v25  ;;  %v3495_v55 = vld [vmem:[%s4594_s18 + $0x18] sm:$0xf0]  ;;  %v1578_v48 = vperm.slane %v4130_v40, 3 }
 0x59c   : > { %v1512_v12 = vmul.f32 %v4939_v42, %v4939_v42  ;;  %v3498_v24 = vor.u32 %v3829_v35, %v3495_v55 }
 0x59d   : > { %1803 = vmatpush.bf16.msra.mxu2 %v3554_v23  ;;  %1786 = vmatpush.bf16.msrb.mxu1 %v3518_v52 }
 0x59e   : > { %1519 = vadd.xlane.f32.xlu1 %v1512_v12  ;;  %v3543_v12 = vld [vmem:[%s4594_s18 + $0x78] sm:$0xf0]  ;;  %1824 = vmatpush.bf16.msrb.mxu3 %v3526_v27 }
 0x59f   : > { %v3546_v44 = vor.u32 %v3841_v41, %v3543_v12  ;;  %v1573_v41 = vperm.slane %v4130_v40, 2 }
 0x5a1   : > { %1804 = vmatpush.bf16.msra.mxu2 %v3538_v9  ;;  %1842 = vmatpush.bf16.msra.mxu0 %v3546_v44 }
 0x5a2   : > { %1787 = vmatpush.bf16.msrb.mxu1 %v3502_v0  ;;  %1825 = vmatpush.bf16.msrb.mxu3 %v3510_v10 }
 0x5a5   : > { %1805 = vmatpush.bf16.msra.mxu2 %v3522_v32  ;;  %1843 = vmatpush.bf16.msra.mxu0 %v3530_v56 }
 0x5a6   : > { %1788 = vmatpush.bf16.msrb.mxu1 %v3486_v34  ;;  %1826 = vmatpush.bf16.msrb.mxu3 %v3494_v18 }
 0x5a9   : > { %1806 = vmatpush.bf16.msra.mxu2 %v3506_v54  ;;  %1844 = vmatpush.bf16.msra.mxu0 %v3514_v3 }
 0x5ad   : > { %1807 = vmatpush.bf16.msra.mxu2 %v3490_v59  ;;  %1845 = vmatpush.bf16.msra.mxu0 %v3498_v24  ;;  %v5029_v59 = vperm.slane %v4130_v40, 4  ;;  %v4131_v24 = vld [vmem:[%s4602_s19 + $0x8] sm:$0xff] }
 0x5ce   : > { %v1514_v62 = vpop.xlane.xlu0 %1513 }
 0x5cf   : > { %v1521_v13 = vmul.f32 %v1514_v62, %v4921_v30 }
 0x5d1   : > { %v1525_v15 = vadd.f32 1e-05, %v1521_v13 }
 0x5d3   : > { %4078 = vrsqrt.f32 %v1525_v15  ;;  %vm1535_vm6 = vweird.f32 %v1525_v15 }
 0x5d6   : > { %v1516_v25 = vpop.xlane.xlu2 %1515 }
 0x5d7   : > { %v1522_v19 = vmul.f32 %v1516_v25, %v4921_v30  ;;  %v5043_v25 = vperm.slane %v4131_v24, 4 }
 0x5d9   : > { %v4079_v61 = vpop.eup %4078  ;;  %v1526_v23 = vadd.f32 1e-05, %v1522_v19 }
 0x5da   : > { %v1530_v26 = vmul.f32 %v4079_v61, %v1525_v15  ;;  %vm1536_vm5 = vweird.f32 %v4079_v61 }
 0x5db   : > { %4080 = vrsqrt.f32 %v1526_v23  ;;  %vm1537_vm7 = vmor %vm1535_vm6, %vm1536_vm5  ;;  %vm1545_vm9 = vweird.f32 %v1526_v23 }
 0x5dc   : > { %v1531_v29 = vmul.f32 %v4079_v61, %v1530_v26 }
 0x5de   : > { %v1532_v4 = vmul.f32 0.5, %v1531_v29 }
 0x5e0   : > { %v1533_v31 = vsub.f32 1.5, %v1532_v4 }
 0x5e1   : > { %v4081_v1 = vpop.eup %4080 }
 0x5e2   : > { %v1534_v36 = vmul.f32 %v4079_v61, %v1533_v31  ;;  %v1540_v37 = vmul.f32 %v4081_v1, %v1526_v23  ;;  %vm1546_vm8 = vweird.f32 %v4081_v1 }
 0x5e3   : > { %vm1547_vm10 = vmor %vm1545_vm9, %vm1546_vm8 }
 0x5e4   : > { %v1541_v63 = vmul.f32 %v4081_v1, %v1540_v37  ;;  %v1538_v45 = vsel %vm1537_vm7, %v4079_v61, %v1534_v36  ;;  %v4132_v61 = vld [vmem:[%s4602_s19 + $0x10] sm:$0xff] }
 0x5e5   : > { %v1569_v9 = vmul.f32 %v1538_v45, %v4924_v33  ;;  %v5049_v23 = vperm.slane %v4132_v61, 4 }
 0x5e6   : > { %v1542_v39 = vmul.f32 0.5, %v1541_v63 }
 0x5e7   : > { %v1574_v47 = vmul.f32 %v1573_v41, %v1569_v9 }
 0x5e8   : > { %v1543_v51 = vsub.f32 1.5, %v1542_v39 }
 0x5e9   : > { %v5012_v53 = vadd.f32 %v1578_v48, %v1574_v47 }
 0x5ea   : > { %v1544_v12 = vmul.f32 %v4081_v1, %v1543_v51 }
 0x5ec   : > { %v1548_v44 = vsel %vm1547_vm10, %v4081_v1, %v1544_v12 }
 0x5ed   : > { %v1570_v46 = vmul.f32 %v1548_v44, %v4929_v38 }
 0x5ef   : > { %v1575_v52 = vmul.f32 %v1573_v41, %v1570_v46 }
 0x5f1   : > { %v5014_v50 = vadd.f32 %v1578_v48, %v1575_v52 }
 0x5f3   : > { %v1615_v58 = vpack.c.bf16 %v5014_v50, %v5012_v53 }
 0x5f5   : > { %1789 = vmatmul.bf16.vlgmr.msrb.gmra.mxu1 %v1615_v58  ;;  %1808 = vmatmul.bf16.vlgmr.msra.gmra.mxu2 %v1615_v58 }
 0x5f6   : > { %1827 = vmatmul.bf16.vlgmr.msrb.gmra.mxu3 %v1615_v58  ;;  %1846 = vmatmul.bf16.vlgmr.msra.gmra.mxu0 %v1615_v58 }
 0x609   : > { %v1518_v33 = vpop.xlane.xlu0 %1517 }
 0x60a   : > { %v1523_v32 = vmul.f32 %v1518_v33, %v4921_v30 }
 0x60c   : > { %v1527_v27 = vadd.f32 1e-05, %v1523_v32 }
 0x60e   : > { %4082 = vrsqrt.f32 %v1527_v27  ;;  %vm1555_vm12 = vweird.f32 %v1527_v27 }
 0x611   : > { %v1520_v38 = vpop.xlane.xlu1 %1519 }
 0x612   : > { %v1524_v21 = vmul.f32 %v1520_v38, %v4921_v30 }
 0x614   : > { %v4083_v28 = vpop.eup %4082  ;;  %v1528_v56 = vadd.f32 1e-05, %v1524_v21 }
 0x615   : > { %v1550_v57 = vmul.f32 %v4083_v28, %v1527_v27  ;;  %vm1556_vm11 = vweird.f32 %v4083_v28 }
 0x616   : > { %4084 = vrsqrt.f32 %v1528_v56  ;;  %vm1557_vm13 = vmor %vm1555_vm12, %vm1556_vm11  ;;  %vm1565_vm15 = vweird.f32 %v1528_v56 }
 0x617   : > { %v1551_v60 = vmul.f32 %v4083_v28, %v1550_v57 }
 0x619   : > { %v1552_v43 = vmul.f32 0.5, %v1551_v60 }
 0x61b   : > { %v1553_v62 = vsub.f32 1.5, %v1552_v43 }
 0x61c   : > { %v4085_v0 = vpop.eup %4084 }
 0x61d   : > { %v1554_v49 = vmul.f32 %v4083_v28, %v1553_v62  ;;  %v1560_v2 = vmul.f32 %v4085_v0, %v1528_v56  ;;  %vm1566_vm14 = vweird.f32 %v4085_v0 }
 0x61e   : > { %vm1567_vm0 = vmor %vm1565_vm15, %vm1566_vm14 }
 0x61f   : > { %v1561_v5 = vmul.f32 %v4085_v0, %v1560_v2  ;;  %v1558_v13 = vsel %vm1557_vm13, %v4083_v28, %v1554_v49 }
 0x620   : > { %v1571_v6 = vmul.f32 %v1558_v13, %v4934_v22  ;;  %v491_v22 = vld [vmem:[%s4602_s19 + $0x18] sm:$0xff] }
 0x621   : > { %v1562_v54 = vmul.f32 0.5, %v1561_v5  ;;  %v5031_v16 = vperm.slane %v491_v22, 4 }
 0x622   : > { %v1576_v11 = vmul.f32 %v1573_v41, %v1571_v6 }
 0x623   : > { %v1563_v10 = vsub.f32 1.5, %v1562_v54 }
 0x624   : > { %v5022_v14 = vadd.f32 %v1578_v48, %v1576_v11 }
 0x625   : > { %v1564_v7 = vmul.f32 %v4085_v0, %v1563_v10 }
 0x627   : > { %v1568_v8 = vsel %vm1567_vm0, %v4085_v0, %v1564_v7 }
 0x628   : > { %v1572_v3 = vmul.f32 %v1568_v8, %v4939_v42 }
 0x62a   : > { %v1577_v20 = vmul.f32 %v1573_v41, %v1572_v3 }
 0x62c   : > { %v5024_v15 = vadd.f32 %v1578_v48, %v1577_v20 }
 0x62e   : > { %v1616_v34 = vpack.c.bf16 %v5024_v15, %v5022_v14 }
 0x630   : > { %1794 = vmatmul.bf16.gmra.mxu1 %v1616_v34  ;;  %1813 = vmatmul.bf16.gmra.mxu2 %v1616_v34 }
 0x631   : > { %1832 = vmatmul.bf16.gmra.mxu3 %v1616_v34  ;;  %1851 = vmatmul.bf16.gmra.mxu0 %v1616_v34 }
 0x672   : > { %v1790_v42 = vpop.f32.mrf.mxu1 }
 0x673   : > { %v5034_v17 = vadd.f32 %v1790_v42, %v5029_v59  ;;  %v1847_v18 = vpop.f32.mrf.mxu0 }
 0x674   : > { %v5037_v35 = vadd.f32 %v1847_v18, %v5031_v16 }
 0x675   : > { %v5040_v55 = vmul.f32 0.70710677, %v5034_v17 }
 0x676   : > { %v5046_v19 = vmul.f32 0.70710677, %v5037_v35 }
 0x677   : > { %v1889_v26 = vmul.f32 %v5040_v55, %v5040_v55 }
 0x678   : > { %v2009_v29 = vmul.f32 %v5046_v19, %v5046_v19  ;;  %v1809_v4 = vpop.f32.mrf.mxu2 }
 0x679   : > { %v5055_v31 = vmin.f32 %v1889_v26, 16.0  ;;  %v5058_v1 = vadd.f32 %v1809_v4, %v5043_v25  ;;  %v1828_v36 = vpop.f32.mrf.mxu3 }
 0x67a   : > { %v5060_v37 = vmin.f32 %v2009_v29, 16.0  ;;  %v5063_v63 = vadd.f32 %v1828_v36, %v5049_v23  ;;  %v1792_v52 = vpop.f32.mrf.mxu1 }
 0x67b   : > { %v1891_v45 = vmul.f32 2.1237322e-06, %v5055_v31  ;;  %v1902_v39 = vmul.f32 3.8918573e-05, %v5055_v31  ;;  %v5070_v40 = vmul.f32 0.70710677, %v5058_v1  ;;  %v5085_v28 = vadd.f32 %v1792_v52, %v5029_v59  ;;  %v1849_v24 = vpop.f32.mrf.mxu0 }
 0x67c   : > { %v2011_v51 = vmul.f32 2.1237322e-06, %v5060_v37  ;;  %v2022_v9 = vmul.f32 3.8918573e-05, %v5060_v37  ;;  %v5075_v48 = vmul.f32 0.70710677, %v5063_v63 }
 0x67d   : > { %v1892_v41 = vadd.f32 0.00028619796, %v1891_v45  ;;  %v1903_v12 = vadd.f32 0.001143296, %v1902_v39  ;;  %v1929_v47 = vmul.f32 %v5070_v40, %v5070_v40  ;;  %v5095_v54 = vmul.f32 0.70710677, %v5085_v28 }
 0x67e   : > { %v2012_v44 = vadd.f32 0.00028619796, %v2011_v51  ;;  %v2023_v46 = vadd.f32 0.001143296, %v2022_v9  ;;  %v1969_v38 = vmul.f32 %v5075_v48, %v5075_v48 }
 0x67f   : > { %v1904_v58 = vmul.f32 %v1903_v12, %v5055_v31  ;;  %v1893_v33 = vmul.f32 %v1892_v41, %v5055_v31  ;;  %v5080_v27 = vmin.f32 %v1929_v47, 16.0  ;;  %v2049_v4 = vmul.f32 %v5095_v54, %v5095_v54 }
 0x680   : > { %v2024_v32 = vmul.f32 %v2023_v46, %v5060_v37  ;;  %v2013_v56 = vmul.f32 %v2012_v44, %v5060_v37  ;;  %v5091_v0 = vmin.f32 %v1969_v38, 16.0  ;;  %v1850_v12 = vadd.f32 %v1849_v24, %v5031_v16 }
 0x681   : > { %v1905_v21 = vadd.f32 0.014752088, %v1904_v58  ;;  %v1931_v60 = vmul.f32 2.1237322e-06, %v5080_v27  ;;  %v1942_v62 = vmul.f32 3.8918573e-05, %v5080_v27 }
 0x682   : > { %v2025_v57 = vadd.f32 0.014752088, %v2024_v32  ;;  %v1894_v49 = vadd.f32 0.0036580483, %v1893_v33  ;;  %v2014_v10 = vadd.f32 0.0036580483, %v2013_v56 }
 0x683   : > { %v1906_v43 = vmul.f32 %v1905_v21, %v5055_v31  ;;  %v1943_v13 = vadd.f32 0.001143296, %v1942_v62  ;;  %v1932_v7 = vadd.f32 0.00028619796, %v1931_v60  ;;  %v1971_v11 = vmul.f32 2.1237322e-06, %v5091_v0 }
 0x684   : > { %v2026_v2 = vmul.f32 %v2025_v57, %v5060_v37  ;;  %v1982_v20 = vmul.f32 3.8918573e-05, %v5091_v0  ;;  %v1895_v34 = vmul.f32 %v1894_v49, %v5055_v31  ;;  %v2015_v61 = vmul.f32 %v2014_v10, %v5060_v37 }
 0x685   : > { %v1907_v5 = vadd.f32 0.112945676, %v1906_v43  ;;  %v1944_v3 = vmul.f32 %v1943_v13, %v5080_v27  ;;  %v1933_v29 = vmul.f32 %v1932_v7, %v5080_v27  ;;  %v1972_v39 = vadd.f32 0.00028619796, %v1971_v11 }
 0x686   : > { %v2027_v6 = vadd.f32 0.112945676, %v2026_v2  ;;  %v1983_v51 = vadd.f32 0.001143296, %v1982_v20  ;;  %v1896_v9 = vadd.f32 0.05243302, %v1895_v34 }
 0x687   : > { %v1908_v8 = vmul.f32 %v1907_v5, %v5055_v31  ;;  %v1945_v18 = vadd.f32 0.014752088, %v1944_v3  ;;  %v2016_v46 = vadd.f32 0.05243302, %v2015_v61  ;;  %v5115_v58 = vmin.f32 %v2049_v4, 16.0 }
 0x688   : > { %v2028_v22 = vmul.f32 %v2027_v6, %v5060_v37  ;;  %v1934_v33 = vadd.f32 0.0036580483, %v1933_v29  ;;  %v1973_v32 = vmul.f32 %v1972_v39, %v5091_v0  ;;  %v1984_v38 = vmul.f32 %v1983_v51, %v5091_v0 }
 0x689   : > { %v1909_v42 = vadd.f32 0.4994258, %v1908_v8  ;;  %v1946_v45 = vmul.f32 %v1945_v18, %v5080_v27  ;;  %v1897_v21 = vmul.f32 %v1896_v9, %v5055_v31  ;;  %v5122_v56 = vmul.f32 0.70710677, %v1850_v12 }
 0x68a   : > { %v2029_v26 = vadd.f32 0.4994258, %v2028_v22  ;;  %v2017_v57 = vmul.f32 %v2016_v46, %v5060_v37  ;;  %v1935_v43 = vmul.f32 %v1934_v33, %v5080_v27  ;;  %v1974_v62 = vadd.f32 0.0036580483, %v1973_v32  ;;  %v1811_v46 = vpop.f32.mrf.mxu2 }
 0x68b   : > { %v1910_v36 = vmul.f32 %v1909_v42, %v5055_v31  ;;  %v1947_v52 = vadd.f32 0.112945676, %v1946_v45  ;;  %v1985_v49 = vadd.f32 0.014752088, %v1984_v38  ;;  %v2051_v2 = vmul.f32 2.1237322e-06, %v5115_v58 }
 0x68c   : > { %v2030_v41 = vmul.f32 %v2029_v26, %v5060_v37  ;;  %v1898_v5 = vadd.f32 0.18741608, %v1897_v21  ;;  %v2169_v10 = vmul.f32 %v5122_v56, %v5122_v56  ;;  %v2062_v8 = vmul.f32 3.8918573e-05, %v5115_v58 }
 0x68d   : > { %v5111_v44 = vadd.f32 1.0, %v1910_v36  ;;  %v1948_v60 = vmul.f32 %v1947_v52, %v5080_v27  ;;  %v2052_v7 = vadd.f32 0.00028619796, %v2051_v2  ;;  %v2018_v11 = vadd.f32 0.18741608, %v2017_v57 }
 0x68e   : > { %v5113_v47 = vadd.f32 1.0, %v2030_v41  ;;  %v1936_v20 = vadd.f32 0.05243302, %v1935_v43  ;;  %v1975_v22 = vmul.f32 %v1974_v62, %v5091_v0  ;;  %v1986_v42 = vmul.f32 %v1985_v49, %v5091_v0 }
 0x68f   : > { %4086 = vrcp.f32 %v5111_v44  ;;  %v1949_v13 = vadd.f32 0.4994258, %v1948_v60  ;;  %v1899_v18 = vmul.f32 %v1898_v5, %v5055_v31  ;;  %v5141_v61 = vmin.f32 %v2169_v10, 16.0 }
 0x690   : > { %4088 = vrcp.f32 %v5113_v47  ;;  %v2053_v29 = vmul.f32 %v2052_v7, %v5115_v58  ;;  %v2063_v4 = vadd.f32 0.001143296, %v2062_v8  ;;  %v5147_v36 = vmul.f32 0.5, %v5034_v17 }
 0x691   : > { %v1950_v34 = vmul.f32 %v1949_v13, %v5080_v27  ;;  %v5150_v45 = vmul.f32 0.5, %v5037_v35  ;;  %v2019_v39 = vmul.f32 %v2018_v11, %v5060_v37  ;;  %v1937_v31 = vmul.f32 %v1936_v20, %v5080_v27  ;;  %v1830_v20 = vpop.f32.mrf.mxu3 }
 0x692   : > { %v1976_v9 = vadd.f32 0.05243302, %v1975_v22  ;;  %v1987_v41 = vadd.f32 0.112945676, %v1986_v42  ;;  %v1900_v52 = vadd.f32 1.1283791, %v1899_v18  ;;  %v2064_v32 = vmul.f32 %v2063_v4, %v5115_v58 }
 0x693   : > { %v5154_v51 = vadd.f32 1.0, %v1950_v34  ;;  %v2171_v38 = vmul.f32 2.1237322e-06, %v5141_v61  ;;  %v5159_v21 = vmul.f32 0.5, %v5085_v28  ;;  %v2054_v35 = vadd.f32 0.0036580483, %v2053_v29 }
 0x694   : > { %v5161_v57 = vmul.f32 0.5, %v1850_v12  ;;  %v1921_v37 = vand.u32 2147483647, %v5111_v44  ;;  %v2020_v60 = vadd.f32 1.1283791, %v2019_v39  ;;  %v5165_v62 = vadd.f32 %v1811_v46, %v5043_v25 }
 0x695   : > { %v5130_v6 = vpop.eup %4086  ;;  %v2065_v43 = vadd.f32 0.014752088, %v2064_v32  ;;  %v1938_v49 = vadd.f32 0.18741608, %v1937_v31  ;;  %4090 = vrcp.f32 %v5154_v51  ;;  %v1977_v2 = vmul.f32 %v1976_v9, %v5091_v0  ;;  %v3867_v9 = vld [vmem:[%s4600_s29 + $0x38] sm:$0xff] }
 0x696   : > { %v5133_v3 = vpop.eup %4088  ;;  %v1913_v24 = vmul.f32 %v5130_v6, %v5111_v44  ;;  %v1988_v5 = vmul.f32 %v1987_v41, %v5091_v0  ;;  %v5171_v28 = vmul.f32 %v1900_v52, %v5040_v55  ;;  %v2172_v10 = vadd.f32 0.00028619796, %v2171_v38  ;;  %v3891_v41 = vld [vmem:[%s4600_s29 + $0xf8] sm:$0xff]  ;;  %2826 = vmatpush.bf16.msra.mxu1 %v3867_v9 }
 0x697   : > { %v2033_v26 = vmul.f32 %v5133_v3, %v5113_v47  ;;  %v2066_v13 = vmul.f32 %v2065_v43, %v5115_v58  ;;  %vm1917_vm1 = vweird.f32 %v5111_v44  ;;  %v1923_v7 = vand.u32 2147483648, %v5111_v44  ;;  %2883 = vmatpush.bf16.msrb.mxu0 %v3891_v41  ;;  %v3865_v41 = vld [vmem:[%s4600_s29 + $0x28] sm:$0xff]  ;;  %v3874_v44 = vld [vmem:[%s4600_s29 + $0x70] sm:$0xff] }
 0x698   : > { %v1914_v33 = vsub.f32 1.0, %v1913_v24  ;;  %v2055_v11 = vmul.f32 %v2054_v35, %v5115_v58  ;;  %vm5179_vm2 = vcmp.eq.f32.partialorder %v1921_v37, 8.507059e+37  ;;  %v5184_v55 = vmul.f32 %v2020_v60, %v5046_v19 }
 0x699   : > { %v2034_v17 = vsub.f32 1.0, %v2033_v26  ;;  %vm2037_vm3 = vweird.f32 %v5113_v47  ;;  %v2182_v34 = vmul.f32 3.8918573e-05, %v5141_v61  ;;  %v1939_v22 = vmul.f32 %v1938_v49, %v5080_v27 }
 0x69a   : > { %v1915_v12 = vmul.f32 %v5130_v6, %v1914_v33  ;;  %v1978_v42 = vadd.f32 0.18741608, %v1977_v2  ;;  %v1989_v18 = vadd.f32 0.4994258, %v1988_v5  ;;  %v2067_v24 = vadd.f32 0.112945676, %v2066_v13 }
 0x69b   : > { %v2035_v8 = vmul.f32 %v5133_v3, %v2034_v17  ;;  %vm1918_vm4 = vweird.f32 %v5130_v6  ;;  %v2041_v29 = vand.u32 2147483647, %v5113_v47  ;;  %v2173_v19 = vmul.f32 %v2172_v10, %v5141_v61  ;;  %v5193_v4 = vpop.eup %4090  ;;  %v3866_v13 = vld [vmem:[%s4600_s29 + $0x30] sm:$0xff] }
 0x69c   : > { %v1916_v26 = vadd.f32 %v5130_v6, %v1915_v12  ;;  %vm2038_vm5 = vweird.f32 %v5133_v3  ;;  %v2056_v31 = vadd.f32 0.05243302, %v2055_v11  ;;  %v2068_v27 = vmul.f32 %v2067_v24, %v5115_v58  ;;  %vm5206_vm6 = vmor %vm1917_vm1, %vm1918_vm4  ;;  %v3890_v10 = vld [vmem:[%s4600_s29 + $0xf0] sm:$0xff]  ;;  %2827 = vmatpush.bf16.msra.mxu1 %v3866_v13  ;;  %v3883_v24 = vld [vmem:[%s4600_s29 + $0xb8] sm:$0xff] }
 0x69d   : > { %v2036_v39 = vadd.f32 %v5133_v3, %v2035_v8  ;;  %v1924_v46 = vor.u32 1.1754944e-38, %v1923_v7  ;;  %v2043_v52 = vand.u32 2147483648, %v5113_v47  ;;  %v2183_v33 = vadd.f32 0.001143296, %v2182_v34  ;;  %vm5219_vm7 = vmor %vm2037_vm3, %vm2038_vm5  ;;  %2884 = vmatpush.bf16.msrb.mxu0 %v3890_v10  ;;  %2864 = vmatpush.bf16.msra.mxu3 %v3883_v24  ;;  %v3881_v24 = vld [vmem:[%s4600_s29 + $0xa8] sm:$0xff] }
 0x69e   : > { %v5202_v32 = vmul.f32 0.70710677, %v5165_v62  ;;  %v1940_v17 = vadd.f32 1.1283791, %v1939_v22  ;;  %v1979_v35 = vmul.f32 %v1978_v42, %v5091_v0  ;;  %v1990_v37 = vmul.f32 %v1989_v18, %v5091_v0  ;;  %v3875_v18 = vld [vmem:[%s4600_s29 + $0x78] sm:$0xff] }
 0x69f   : > { %v2069_v60 = vadd.f32 0.4994258, %v2068_v27  ;;  %v1920_v43 = vsel %vm5206_vm6, %v5130_v6, %v1916_v26  ;;  %v1953_v49 = vmul.f32 %v5193_v4, %v5154_v51  ;;  %v2174_v2 = vadd.f32 0.0036580483, %v2173_v19  ;;  %2845 = vmatpush.bf16.msrb.mxu2 %v3875_v18  ;;  %v3873_v18 = vld [vmem:[%s4600_s29 + $0x68] sm:$0xff] }
 0x6a0   : > { %v2184_v0 = vmul.f32 %v2183_v33, %v5141_v61  ;;  %v2040_v5 = vsel %vm5219_vm7, %v5133_v3, %v2036_v39  ;;  %v2057_v6 = vmul.f32 %v2056_v31, %v5115_v58  ;;  %v2089_v12 = vmul.f32 %v5202_v32, %v5202_v32  ;;  %2828 = vmatpush.bf16.msra.mxu1 %v3865_v41 }
 0x6a1   : > { %v2070_v47 = vmul.f32 %v2069_v60, %v5115_v58  ;;  %vm2042_vm8 = vcmp.eq.f32.partialorder %v2041_v29, 8.507059e+37  ;;  %v2044_v7 = vor.u32 1.1754944e-38, %v2043_v52  ;;  %v1963_v8 = vand.u32 2147483648, %v5154_v51 }
 0x6a2   : > { %v2185_v11 = vadd.f32 0.014752088, %v2184_v0  ;;  %v1925_v34 = vsel %vm5179_vm2, %v1924_v46, %v1920_v43  ;;  %v5238_v3 = vadd.f32 1.0, %v1990_v37  ;;  %v5242_v42 = vmin.f32 %v2089_v12, 16.0  ;;  %v3889_v46 = vld [vmem:[%s4600_s29 + $0xe8] sm:$0xff]  ;;  %v3888_v12 = vld [vmem:[%s4600_s29 + $0xe0] sm:$0xff] }
 0x6a3   : > { %v5240_v22 = vadd.f32 1.0, %v2070_v47  ;;  %v2045_v26 = vsel %vm2042_vm8, %v2044_v7, %v2040_v5  ;;  %v1954_v29 = vsub.f32 1.0, %v1953_v49  ;;  %v2175_v19 = vmul.f32 %v2174_v2, %v5141_v61  ;;  %2885 = vmatpush.bf16.msrb.mxu0 %v3889_v46  ;;  %v3882_v49 = vld [vmem:[%s4600_s29 + $0xb0] sm:$0xff]  ;;  %v3864_v47 = vld [vmem:[%s4600_s29 + $0x20] sm:$0xff]  ;;  %2846 = vmatpush.bf16.msrb.mxu2 %v3874_v44  ;;  %v3863_v46 = vld [vmem:[%s4600_s29 + $0x18] sm:$0xff] }
 0x6a4   : > { %v2186_v39 = vmul.f32 %v2185_v11, %v5141_v61  ;;  %v5249_v31 = vmul.f32 %v1940_v17, %v5070_v40  ;;  %v1980_v27 = vadd.f32 1.1283791, %v1979_v35  ;;  %v2058_v9 = vadd.f32 0.18741608, %v2057_v6  ;;  %2865 = vmatpush.bf16.msra.mxu3 %v3882_v49  ;;  %2829 = vmatpush.bf16.msra.mxu1 %v3864_v47 }
 0x6a5   : > { %4092 = vrcp.f32 %v5240_v22  ;;  %v1926_v52 = vmul.f32 %v1925_v34, %v5171_v28  ;;  %v1961_v33 = vand.u32 2147483647, %v5154_v51  ;;  %v5256_v38 = vor.u32 1.1754944e-38, %v1963_v8 }
 0x6a6   : > { %v2187_v37 = vadd.f32 0.112945676, %v2186_v39  ;;  %v5259_v40 = vmul.f32 %v2045_v26, %v5184_v55  ;;  %vm1957_vm9 = vweird.f32 %v5154_v51  ;;  %v2091_v17 = vmul.f32 2.1237322e-06, %v5242_v42  ;;  %v3862_v51 = vld [vmem:[%s4600_s29 + $0x10] sm:$0xff] }
 0x6a7   : > { %v2102_v35 = vmul.f32 3.8918573e-05, %v5242_v42  ;;  %v5265_v60 = vadd.f32 %v1830_v20, %v5049_v23  ;;  %v1955_v28 = vmul.f32 %v5193_v4, %v1954_v29  ;;  %4094 = vrcp.f32 %v5238_v3  ;;  %2886 = vmatpush.bf16.msrb.mxu0 %v3888_v12  ;;  %2847 = vmatpush.bf16.msrb.mxu2 %v3873_v18 }
 0x6a8   : > { %v2176_v43 = vadd.f32 0.05243302, %v2175_v19  ;;  %v2188_v55 = vmul.f32 %v2187_v37, %v5141_v61  ;;  %v5273_v2 = vmul.f32 %v1980_v27, %v5075_v48  ;;  %v2059_v0 = vmul.f32 %v2058_v9, %v5115_v58  ;;  %2866 = vmatpush.bf16.msra.mxu3 %v3881_v24  ;;  %2830 = vmatpush.bf16.msra.mxu1 %v3863_v46 }
 0x6a9   : > { %v2092_v5 = vadd.f32 0.00028619796, %v2091_v17  ;;  %v2103_v6 = vadd.f32 0.001143296, %v2102_v35  ;;  %v3611_v13 = vclamps-f32 %v1926_v52, 1.0  ;;  %vm1958_vm10 = vweird.f32 %v5193_v4  ;;  %v3887_v52 = vld [vmem:[%s4600_s29 + $0xd8] sm:$0xff] }
 0x6aa   : > { %v2001_v10 = vand.u32 2147483647, %v5238_v3  ;;  %v2189_v7 = vadd.f32 0.4994258, %v2188_v55  ;;  %v2003_v48 = vand.u32 2147483648, %v5238_v3  ;;  %v3614_v26 = vclamps-f32 %v5259_v40, 1.0  ;;  %vm5321_vm12 = vmor %vm1957_vm9, %vm1958_vm10 }
 0x6ab   : > { %v5280_v8 = vpop.eup %4092  ;;  %v2093_v58 = vmul.f32 %v2092_v5, %v5242_v42  ;;  %v2104_v11 = vmul.f32 %v2103_v6, %v5242_v42  ;;  %v5286_v34 = vmul.f32 0.70710677, %v5265_v60  ;;  %v5292_v29 = vadd.f32 %v5193_v4, %v1955_v28  ;;  %2887 = vmatpush.bf16.msrb.mxu0 %v3887_v52  ;;  %v3880_v5 = vld [vmem:[%s4600_s29 + $0xa0] sm:$0xff] }
 0x6ac   : > { %v2073_v19 = vmul.f32 %v5280_v8, %v5240_v22  ;;  %v2177_v39 = vmul.f32 %v2176_v43, %v5141_v61  ;;  %v2060_v20 = vadd.f32 1.1283791, %v2059_v0  ;;  %v2190_v27 = vmul.f32 %v2189_v7, %v5141_v61  ;;  %2867 = vmatpush.bf16.msra.mxu3 %v3880_v5  ;;  %2831 = vmatpush.bf16.msra.mxu1 %v3862_v51 }
 0x6ad   : > { %v2105_v9 = vadd.f32 0.014752088, %v2104_v11  ;;  %v2129_v41 = vmul.f32 %v5286_v34, %v5286_v34  ;;  %v5302_v37 = vpop.eup %4094  ;;  %v2529_v40 = vadd.f32 1.0, %v3611_v13  ;;  %vm5304_vm11 = vcmp.eq.f32.partialorder %v1961_v33, 8.507059e+37  ;;  %v3872_v33 = vld [vmem:[%s4600_s29 + $0x60] sm:$0xff] }
 0x6ae   : > { %v2074_v35 = vsub.f32 1.0, %v2073_v19  ;;  %v2081_v28 = vand.u32 2147483647, %v5240_v22  ;;  %v2094_v43 = vadd.f32 0.0036580483, %v2093_v58  ;;  %v2083_v55 = vand.u32 2147483648, %v5240_v22  ;;  %2848 = vmatpush.bf16.msrb.mxu2 %v3872_v33 }
 0x6af   : > { %v5310_v44 = vadd.f32 1.0, %v2190_v27  ;;  %v2106_v49 = vmul.f32 %v2105_v9, %v5242_v42  ;;  %v5313_v0 = vmin.f32 %v2129_v41, 16.0  ;;  %v5325_v47 = vor.u32 1.1754944e-38, %v2003_v48  ;;  %v3886_v48 = vld [vmem:[%s4600_s29 + $0xd0] sm:$0xff]  ;;  %v3879_v27 = vld [vmem:[%s4600_s29 + $0x98] sm:$0xff] }
 0x6b0   : > { %v2075_v12 = vmul.f32 %v5280_v8, %v2074_v35  ;;  %vm2078_vm13 = vweird.f32 %v5280_v8  ;;  %v2178_v13 = vadd.f32 0.18741608, %v2177_v39  ;;  %v1960_v7 = vsel %vm5321_vm12, %v5193_v4, %v5292_v29  ;;  %2888 = vmatpush.bf16.msrb.mxu0 %v3886_v48  ;;  %v3871_v39 = vld [vmem:[%s4600_s29 + $0x58] sm:$0xff]  ;;  %2868 = vmatpush.bf16.msra.mxu3 %v3879_v27 }
 0x6b1   : > { %v1993_v58 = vmul.f32 %v5302_v37, %v5238_v3  ;;  %vm2077_vm14 = vweird.f32 %v5240_v22  ;;  %4096 = vrcp.f32 %v5310_v44  ;;  %v2095_v18 = vmul.f32 %v2094_v43, %v5242_v42  ;;  %v3861_v43 = vld [vmem:[%s4600_s29 + $0x8] sm:$0xff] }
 0x6b2   : > { %v2076_v11 = vadd.f32 %v5280_v8, %v2075_v12  ;;  %v2107_v24 = vadd.f32 0.112945676, %v2106_v49  ;;  %v2131_v19 = vmul.f32 2.1237322e-06, %v5313_v0  ;;  %v2061_v4 = vmul.f32 %v2060_v20, %v5095_v54  ;;  %vm2079_vm15 = vmor %vm2077_vm14, %vm2078_vm13  ;;  %2849 = vmatpush.bf16.msrb.mxu2 %v3871_v39  ;;  %2832 = vmatpush.bf16.msra.mxu1 %v3861_v43 }
 0x6b3   : > { %vm2082_vm0 = vcmp.eq.f32.partialorder %v2081_v28, 8.507059e+37  ;;  %v2084_v22 = vor.u32 1.1754944e-38, %v2083_v55  ;;  %v2142_v29 = vmul.f32 3.8918573e-05, %v5313_v0  ;;  %v2179_v41 = vmul.f32 %v2178_v13, %v5141_v61  ;;  %v3885_v55 = vld [vmem:[%s4600_s29 + $0xc8] sm:$0xff]  ;;  %v3870_v13 = vld [vmem:[%s4600_s29 + $0x50] sm:$0xff] }
 0x6b4   : > { %v2080_v9 = vsel %vm2079_vm15, %v5280_v8, %v2076_v11  ;;  %v2108_v46 = vmul.f32 %v2107_v24, %v5242_v42  ;;  %v2132_v54 = vadd.f32 0.00028619796, %v2131_v19  ;;  %v5351_v20 = vadd.f32 1.0, %v3614_v26  ;;  %2889 = vmatpush.bf16.msrb.mxu0 %v3885_v55  ;;  %v1852_v24 = vpop.f32.mrf.mxu0  ;;  %v3860_v19 = vld [vmem:[%s4600_s29] sm:$0xff] }
 0x6b5   : > { %v1994_v52 = vsub.f32 1.0, %v1993_v58  ;;  %v2085_v35 = vsel %vm2082_vm0, %v2084_v22, %v2080_v9  ;;  %v2143_v28 = vadd.f32 0.001143296, %v2142_v29  ;;  %v2096_v33 = vadd.f32 0.05243302, %v2095_v18  ;;  %v3878_v58 = vld [vmem:[%s4600_s29 + $0x90] sm:$0xff]  ;;  %v1795_v18 = vpop.f32.mrf.mxu1 }
 0x6b6   : > { %v2086_v49 = vmul.f32 %v2085_v35, %v2061_v4  ;;  %v2109_v5 = vadd.f32 0.4994258, %v2108_v46  ;;  %v2133_v6 = vmul.f32 %v2132_v54, %v5313_v0  ;;  %v2545_v8 = vmul.f32 %v2529_v40, %v5147_v36  ;;  %v3884_v4 = vld [vmem:[%s4600_s29 + $0xc0] sm:$0xff]  ;;  %2850 = vmatpush.bf16.msrb.mxu2 %v3870_v13  ;;  %2869 = vmatpush.bf16.msra.mxu3 %v3878_v58  ;;  %v3869_v54 = vld [vmem:[%s4600_s29 + $0x48] sm:$0xff] }
 0x6b7   : > { %v5356_v61 = vpop.eup %4096  ;;  %v1965_v26 = vsel %vm5304_vm11, %v5256_v38, %v1960_v7  ;;  %vm1998_vm1 = vweird.f32 %v5302_v37  ;;  %v2144_v12 = vmul.f32 %v2143_v28, %v5313_v0  ;;  %v2180_v48 = vadd.f32 1.1283791, %v2179_v41  ;;  %2833 = vmatpush.bf16.msra.mxu1 %v3860_v19  ;;  %v3868_v58 = vld [vmem:[%s4600_s29 + $0x40] sm:$0xff] }
 0x6b8   : > { %v3615_v51 = vclamps-f32 %v2086_v49, 1.0  ;;  %v2193_v11 = vmul.f32 %v5356_v61, %v5310_v44  ;;  %v2201_v36 = vand.u32 2147483647, %v5310_v44  ;;  %v1995_v40 = vmul.f32 %v5302_v37, %v1994_v52  ;;  %2890 = vmatpush.bf16.msrb.mxu0 %v3884_v4  ;;  %v3877_v52 = vld [vmem:[%s4600_s29 + $0x88] sm:$0xff] }
 0x6b9   : > { %vm1997_vm2 = vweird.f32 %v5238_v3  ;;  %v2110_v38 = vmul.f32 %v2109_v5, %v5242_v42  ;;  %v2134_v17 = vadd.f32 0.0036580483, %v2133_v6  ;;  %v2145_v7 = vadd.f32 0.014752088, %v2144_v12 }
 0x6ba   : > { %v2533_v22 = vadd.f32 1.0, %v3615_v51  ;;  %v2194_v29 = vsub.f32 1.0, %v2193_v11  ;;  %v2203_v39 = vand.u32 2147483648, %v5310_v44  ;;  %v2097_v27 = vmul.f32 %v2096_v33, %v5242_v42  ;;  %2851 = vmatpush.bf16.msrb.mxu2 %v3869_v54  ;;  %2870 = vmatpush.bf16.msra.mxu3 %v3877_v52  ;;  %vm5428_vm8 = vmor %vm1997_vm2, %vm1998_vm1 }
 0x6bb   : > { %vm2198_vm3 = vweird.f32 %v5356_v61  ;;  %v5377_v9 = vadd.f32 1.0, %v2110_v38  ;;  %v2146_v41 = vmul.f32 %v2145_v7, %v5313_v0  ;;  %v5381_v46 = vadd.f32 %v1795_v18, %v5029_v59 }
 0x6bc   : > { %v2549_v35 = vmul.f32 %v2533_v22, %v5159_v21  ;;  %v2195_v28 = vmul.f32 %v5356_v61, %v2194_v29  ;;  %v2135_v43 = vmul.f32 %v2134_v17, %v5313_v0  ;;  %v5389_v55 = vadd.f32 %v1852_v24, %v5031_v16 }
 0x6bd   : > { %v5392_v49 = vmul.f32 %v1965_v26, %v5249_v31  ;;  %v1996_v33 = vadd.f32 %v5302_v37, %v1995_v40  ;;  %vm5397_vm4 = vcmp.eq.f32.partialorder %v2001_v10, 8.507059e+37  ;;  %vm2197_vm5 = vweird.f32 %v5310_v44  ;;  %v1814_v44 = vpop.f32.mrf.mxu2 }
 0x6be   : > { %4098 = vrcp.f32 %v5377_v9  ;;  %v2625_v21 = vpack.c.bf16 %v2549_v35, %v2545_v8  ;;  %v2196_v6 = vadd.f32 %v5356_v61, %v2195_v28  ;;  %v2098_v12 = vadd.f32 0.18741608, %v2097_v27  ;;  %vm2199_vm6 = vmor %vm2197_vm5, %vm2198_vm3  ;;  %2852 = vmatpush.bf16.msrb.mxu2 %v3868_v58 }
 0x6bf   : > { %v2147_v13 = vadd.f32 0.112945676, %v2146_v41  ;;  %v2181_v31 = vmul.f32 %v2180_v48, %v5122_v56  ;;  %vm2202_vm7 = vcmp.eq.f32.partialorder %v2201_v36, 8.507059e+37  ;;  %v2204_v10 = vor.u32 1.1754944e-38, %v2203_v39  ;;  %v1833_v56 = vpop.f32.mrf.mxu3  ;;  %v3876_v48 = vld [vmem:[%s4600_s29 + $0x80] sm:$0xff] }
 0x6c0   : > { %v5408_v26 = vmul.f32 0.70710677, %v5381_v46  ;;  %v2200_v8 = vsel %vm2199_vm6, %v5356_v61, %v2196_v6  ;;  %v2136_v51 = vadd.f32 0.05243302, %v2135_v43  ;;  %v5414_v40 = vmul.f32 0.70710677, %v5389_v55  ;;  %2834 = vmatmul.bf16.vlgmr.msra.gmra.mxu1 %v2625_v21  ;;  %2871 = vmatpush.bf16.msra.mxu3 %v3876_v48  ;;  %v1854_v61 = vpop.f32.mrf.mxu0 }
 0x6c1   : > { %v2148_v11 = vmul.f32 %v2147_v13, %v5313_v0  ;;  %v2548_v36 = vmul.f32 %v5351_v20, %v5150_v45  ;;  %v2205_v38 = vsel %vm2202_vm7, %v2204_v10, %v2200_v8  ;;  %v5422_v7 = vadd.f32 %v1814_v44, %v5043_v25  ;;  %v1797_v8 = vpop.f32.mrf.mxu1 }
 0x6c2   : > { %v2209_v17 = vmul.f32 %v5408_v26, %v5408_v26  ;;  %v2206_v18 = vmul.f32 %v2205_v38, %v2181_v31  ;;  %v2099_v24 = vmul.f32 %v2098_v12, %v5242_v42  ;;  %v2329_v45 = vmul.f32 %v5414_v40, %v5414_v40 }
 0x6c3   : > { %v2149_v19 = vadd.f32 0.4994258, %v2148_v11  ;;  %v2000_v4 = vsel %vm5428_vm8, %v5302_v37, %v1996_v33  ;;  %v5441_v3 = vmul.f32 0.70710677, %v5422_v7  ;;  %v5444_v29 = vadd.f32 %v1833_v56, %v5049_v23 }
 0x6c4   : > { %v4099_v20 = vpop.eup %4098  ;;  %v5438_v22 = vmin.f32 %v2209_v17, 16.0  ;;  %v3612_v42 = vclamps-f32 %v5392_v49, 1.0  ;;  %v3618_v39 = vclamps-f32 %v2206_v18, 1.0  ;;  %v2137_v41 = vmul.f32 %v2136_v51, %v5313_v0 }
 0x6c5   : > { %v2113_v27 = vmul.f32 %v4099_v20, %v5377_v9  ;;  %v2150_v54 = vmul.f32 %v2149_v19, %v5313_v0  ;;  %v5451_v37 = vmin.f32 %v2329_v45, 16.0  ;;  %v2249_v35 = vmul.f32 %v5441_v3, %v5441_v3 }
 0x6c6   : > { %v2211_v52 = vmul.f32 2.1237322e-06, %v5438_v22  ;;  %v2005_v28 = vsel %vm5397_vm4, %v5325_v47, %v2000_v4  ;;  %v2536_v43 = vadd.f32 1.0, %v3618_v39  ;;  %v2100_v49 = vadd.f32 1.1283791, %v2099_v24 }
 0x6c7   : > { %v2114_v33 = vsub.f32 1.0, %v2113_v27  ;;  %v2123_v21 = vand.u32 2147483648, %v5377_v9  ;;  %v5459_v6 = vadd.f32 1.0, %v2150_v54  ;;  %v5462_v13 = vmul.f32 0.70710677, %v5444_v29 }
 0x6c8   : > { %v2212_v12 = vadd.f32 0.00028619796, %v2211_v52  ;;  %v2552_v31 = vmul.f32 %v2536_v43, %v5161_v57  ;;  %vm2118_vm9 = vweird.f32 %v4099_v20  ;;  %v2121_v44 = vand.u32 2147483647, %v5377_v9 }
 0x6c9   : > { %v2115_v10 = vmul.f32 %v4099_v20, %v2114_v33  ;;  %v2138_v58 = vadd.f32 0.18741608, %v2137_v41  ;;  %4100 = vrcp.f32 %v5459_v6  ;;  %v2331_v47 = vmul.f32 2.1237322e-06, %v5451_v37 }
 0x6ca   : > { %v5468_v5 = vmin.f32 %v2249_v35, 16.0  ;;  %v2530_v51 = vadd.f32 1.0, %v3612_v42  ;;  %v2628_v11 = vpack.c.bf16 %v2552_v31, %v2548_v36  ;;  %vm2117_vm10 = vweird.f32 %v5377_v9 }
 0x6cb   : > { %v2116_v56 = vadd.f32 %v4099_v20, %v2115_v10  ;;  %v2006_v48 = vmul.f32 %v2005_v28, %v5273_v2  ;;  %vm2119_vm11 = vmor %vm2117_vm10, %vm2118_vm9  ;;  %v2124_v57 = vor.u32 1.1754944e-38, %v2123_v21  ;;  %v2213_v38 = vmul.f32 %v2212_v12, %v5438_v22 }
 0x6cc   : > { %v2289_v17 = vmul.f32 %v5462_v13, %v5462_v13  ;;  %v2101_v18 = vmul.f32 %v2100_v49, %v5202_v32  ;;  %vm2122_vm12 = vcmp.eq.f32.partialorder %v2121_v44, 8.507059e+37  ;;  %2891 = vmatmul.bf16.vlgmr.msrb.gmra.mxu0 %v2628_v11  ;;  %v5477_v36 = vadd.f32 %v1797_v8, %v5029_v59 }
 0x6cd   : > { %v2120_v24 = vsel %vm2119_vm11, %v4099_v20, %v2116_v56  ;;  %v2139_v9 = vmul.f32 %v2138_v58, %v5313_v0  ;;  %v2332_v2 = vadd.f32 0.00028619796, %v2331_v47  ;;  %v2251_v45 = vmul.f32 2.1237322e-06, %v5468_v5 }
 0x6ce   : > { %v2125_v19 = vsel %vm2122_vm12, %v2124_v57, %v2120_v24  ;;  %v1858_v4 = vmul.f32 0.5, %v5058_v1  ;;  %v5483_v39 = vadd.f32 %v1854_v61, %v5031_v16  ;;  %v1862_v32 = vmul.f32 0.5, %v5165_v62 }
 0x6cf   : > { %v2126_v42 = vmul.f32 %v2125_v19, %v2101_v18  ;;  %v4101_v27 = vpop.eup %4100  ;;  %v2214_v20 = vadd.f32 0.0036580483, %v2213_v38  ;;  %v5486_v41 = vmin.f32 %v2289_v17, 16.0  ;;  %v5489_v59 = vmul.f32 0.70710677, %v5477_v36 }
 0x6d0   : > { %v2546_v54 = vmul.f32 %v2530_v51, %v1858_v4  ;;  %v3613_v0 = vclamps-f32 %v2006_v48, 1.0  ;;  %v2153_v35 = vmul.f32 %v4101_v27, %v5459_v6  ;;  %v2140_v28 = vadd.f32 1.1283791, %v2139_v9  ;;  %v1816_v48 = vpop.f32.mrf.mxu2 }
 0x6d1   : > { %v3616_v52 = vclamps-f32 %v2126_v42, 1.0  ;;  %v2333_v1 = vmul.f32 %v2332_v2, %v5451_v37  ;;  %v2252_v43 = vadd.f32 0.00028619796, %v2251_v45  ;;  %v2369_v16 = vmul.f32 %v5489_v59, %v5489_v59 }
 0x6d2   : > { %v2154_v62 = vsub.f32 1.0, %v2153_v35  ;;  %v2163_v33 = vand.u32 2147483648, %v5459_v6  ;;  %v5497_v21 = vmul.f32 0.70710677, %v5483_v39  ;;  %v2161_v12 = vand.u32 2147483647, %v5459_v6  ;;  %v1835_v35 = vpop.f32.mrf.mxu3 }
 0x6d3   : > { %v2534_v49 = vadd.f32 1.0, %v3616_v52  ;;  %v2215_v31 = vmul.f32 %v2214_v20, %v5438_v22  ;;  %v2291_v10 = vmul.f32 2.1237322e-06, %v5486_v41  ;;  %v5502_v44 = vmin.f32 %v2369_v16, 16.0 }
 0x6d4   : > { %v2155_v47 = vmul.f32 %v4101_v27, %v2154_v62  ;;  %vm2158_vm13 = vweird.f32 %v4101_v27  ;;  %v2489_v8 = vmul.f32 %v5497_v21, %v5497_v21  ;;  %vm2157_vm14 = vweird.f32 %v5459_v6 }
 0x6d5   : > { %v2550_v58 = vmul.f32 %v2534_v49, %v1862_v32  ;;  %v2334_v51 = vadd.f32 0.0036580483, %v2333_v1  ;;  %v2253_v11 = vmul.f32 %v2252_v43, %v5468_v5  ;;  %v2371_v56 = vmul.f32 2.1237322e-06, %v5502_v44  ;;  %vm2159_vm15 = vmor %vm2157_vm14, %vm2158_vm13 }
 0x6d6   : > { %v2156_v38 = vadd.f32 %v4101_v27, %v2155_v47  ;;  %v2164_v17 = vor.u32 1.1754944e-38, %v2163_v33  ;;  %v5509_v61 = vmin.f32 %v2489_v8, 16.0  ;;  %v2141_v18 = vmul.f32 %v2140_v28, %v5286_v34 }
 0x6d7   : > { %v2626_v57 = vpack.c.bf16 %v2550_v58, %v2546_v54  ;;  %v2216_v24 = vadd.f32 0.05243302, %v2215_v31  ;;  %v2292_v19 = vadd.f32 0.00028619796, %v2291_v10  ;;  %v2372_v9 = vadd.f32 0.00028619796, %v2371_v56 }
 0x6d8   : > { %v2160_v2 = vsel %vm2159_vm15, %v4101_v27, %v2156_v38  ;;  %vm2162_vm0 = vcmp.eq.f32.partialorder %v2161_v12, 8.507059e+37  ;;  %v2491_v6 = vmul.f32 2.1237322e-06, %v5509_v61  ;;  %v5514_v45 = vadd.f32 %v1816_v48, %v5043_v25 }
 0x6d9   : > { %2853 = vmatmul.bf16.vlgmr.msrb.gmra.mxu2 %v2626_v57  ;;  %v2531_v4 = vadd.f32 1.0, %v3613_v0  ;;  %v2165_v42 = vsel %vm2162_vm0, %v2164_v17, %v2160_v2  ;;  %v2335_v32 = vmul.f32 %v2334_v51, %v5451_v37  ;;  %v2254_v20 = vadd.f32 0.0036580483, %v2253_v11 }
 0x6da   : > { %v2166_v54 = vmul.f32 %v2165_v42, %v2141_v18  ;;  %v2373_v34 = vmul.f32 %v2372_v9, %v5502_v44  ;;  %v2492_v52 = vadd.f32 0.00028619796, %v2491_v6  ;;  %v1859_v28 = vmul.f32 0.5, %v5063_v63 }
 0x6db   : > { %v1863_v27 = vmul.f32 0.5, %v5265_v60  ;;  %v2217_v1 = vmul.f32 %v2216_v24, %v5438_v22  ;;  %v2293_v43 = vmul.f32 %v2292_v19, %v5486_v41  ;;  %v5524_v49 = vmul.f32 0.70710677, %v5514_v45 }
 0x6dc   : > { %v3617_v25 = vclamps-f32 %v2166_v54, 1.0  ;;  %v2374_v16 = vadd.f32 0.0036580483, %v2373_v34  ;;  %v2493_v0 = vmul.f32 %v2492_v52, %v5509_v61  ;;  %v2547_v62 = vmul.f32 %v2531_v4, %v1859_v28 }
 0x6dd   : > { %v2336_v33 = vadd.f32 0.05243302, %v2335_v32  ;;  %v2255_v12 = vmul.f32 %v2254_v20, %v5468_v5  ;;  %v5528_v31 = vadd.f32 %v1835_v35, %v5049_v23  ;;  %v2409_v58 = vmul.f32 %v5524_v49, %v5524_v49 }
 0x6de   : > { %v2535_v63 = vadd.f32 1.0, %v3617_v25  ;;  %v2375_v60 = vmul.f32 %v2374_v16, %v5502_v44  ;;  %v2494_v10 = vadd.f32 0.0036580483, %v2493_v0  ;;  %v5534_v47 = vmul.f32 0.5, %v5381_v46 }
 0x6df   : > { %v5537_v8 = vmul.f32 0.5, %v5389_v55  ;;  %v2294_v51 = vadd.f32 0.0036580483, %v2293_v43  ;;  %v5540_v11 = vmul.f32 0.70710677, %v5528_v31  ;;  %v5543_v57 = vmin.f32 %v2409_v58, 16.0 }
 0x6e0   : > { %v2551_v56 = vmul.f32 %v2535_v63, %v1863_v27  ;;  %v2218_v23 = vadd.f32 0.18741608, %v2217_v1  ;;  %v2495_v48 = vmul.f32 %v2494_v10, %v5509_v61  ;;  %v2337_v38 = vmul.f32 %v2336_v33, %v5451_v37 }
 0x6e1   : > { %v2449_v17 = vmul.f32 %v5540_v11, %v5540_v11  ;;  %v2222_v46 = vmul.f32 3.8918573e-05, %v5438_v22  ;;  %v2382_v55 = vmul.f32 3.8918573e-05, %v5502_v44  ;;  %v2256_v24 = vadd.f32 0.05243302, %v2255_v12 }
 0x6e2   : > { %v2627_v18 = vpack.c.bf16 %v2551_v56, %v2547_v62  ;;  %v2376_v19 = vadd.f32 0.05243302, %v2375_v60  ;;  %v2411_v9 = vmul.f32 2.1237322e-06, %v5543_v57  ;;  %v2496_v2 = vadd.f32 0.05243302, %v2495_v48 }
 0x6e3   : > { %v2223_v6 = vadd.f32 0.001143296, %v2222_v46  ;;  %v2383_v4 = vadd.f32 0.001143296, %v2382_v55  ;;  %v5552_v42 = vmul.f32 0.5, %v5477_v36  ;;  %v5554_v20 = vmin.f32 %v2449_v17, 16.0 }
 0x6e4   : > { %2872 = vmatmul.bf16.vlgmr.msra.gmra.mxu3 %v2627_v18  ;;  %v2412_v32 = vadd.f32 0.00028619796, %v2411_v9  ;;  %v2342_v54 = vmul.f32 3.8918573e-05, %v5451_v37  ;;  %v2219_v34 = vmul.f32 %v2218_v23, %v5438_v22  ;;  %v2502_v28 = vmul.f32 3.8918573e-05, %v5509_v61 }
 0x6e5   : > { %v2224_v52 = vmul.f32 %v2223_v6, %v5438_v22  ;;  %v2384_v35 = vmul.f32 %v2383_v4, %v5502_v44  ;;  %v2338_v27 = vadd.f32 0.18741608, %v2337_v38  ;;  %v2257_v1 = vmul.f32 %v2256_v24, %v5468_v5 }
 0x6e6   : > { %v2413_v36 = vmul.f32 %v2412_v32, %v5543_v57  ;;  %v2343_v43 = vadd.f32 0.001143296, %v2342_v54  ;;  %v2295_v25 = vmul.f32 %v2294_v51, %v5486_v41  ;;  %v2377_v16 = vmul.f32 %v2376_v19, %v5502_v44 }
 0x6e7   : > { %v2225_v0 = vadd.f32 0.014752088, %v2224_v52  ;;  %v2385_v62 = vadd.f32 0.014752088, %v2384_v35  ;;  %v2497_v33 = vmul.f32 %v2496_v2, %v5509_v61  ;;  %v2451_v63 = vmul.f32 2.1237322e-06, %v5554_v20 }
 0x6e8   : > { %v2414_v12 = vadd.f32 0.0036580483, %v2413_v36  ;;  %v2344_v60 = vmul.f32 %v2343_v43, %v5451_v37  ;;  %v2220_v10 = vadd.f32 1.1283791, %v2219_v34  ;;  %v2503_v23 = vadd.f32 0.001143296, %v2502_v28 }
 0x6e9   : > { %v2226_v58 = vmul.f32 %v2225_v0, %v5438_v22  ;;  %v2386_v56 = vmul.f32 %v2385_v62, %v5502_v44  ;;  %v2339_v48 = vmul.f32 %v2338_v27, %v5451_v37  ;;  %v2258_v51 = vadd.f32 0.18741608, %v2257_v1 }
 0x6ea   : > { %v2415_v38 = vmul.f32 %v2414_v12, %v5543_v57  ;;  %v2345_v17 = vadd.f32 0.014752088, %v2344_v60  ;;  %v2378_v46 = vadd.f32 0.18741608, %v2377_v16  ;;  %v2504_v24 = vmul.f32 %v2503_v23, %v5509_v61 }
 0x6eb   : > { %v2227_v55 = vadd.f32 0.112945676, %v2226_v58  ;;  %v2387_v18 = vadd.f32 0.112945676, %v2386_v56  ;;  %v2498_v19 = vadd.f32 0.18741608, %v2497_v33  ;;  %v2259_v52 = vmul.f32 %v2258_v51, %v5468_v5 }
 0x6ec   : > { %v2452_v9 = vadd.f32 0.00028619796, %v2451_v63  ;;  %v2346_v2 = vmul.f32 %v2345_v17, %v5451_v37  ;;  %v2262_v6 = vmul.f32 3.8918573e-05, %v5468_v5  ;;  %v2416_v4 = vadd.f32 0.05243302, %v2415_v38 }
 0x6ed   : > { %v2228_v32 = vmul.f32 %v2227_v55, %v5438_v22  ;;  %v2388_v54 = vmul.f32 %v2387_v18, %v5502_v44  ;;  %v2505_v34 = vadd.f32 0.014752088, %v2504_v24  ;;  %v2422_v27 = vmul.f32 3.8918573e-05, %v5543_v57 }
 0x6ee   : > { %v2347_v35 = vadd.f32 0.112945676, %v2346_v2  ;;  %v2263_v28 = vadd.f32 0.001143296, %v2262_v6  ;;  %v2379_v1 = vmul.f32 %v2378_v46, %v5502_v44  ;;  %v2499_v0 = vmul.f32 %v2498_v19, %v5509_v61 }
 0x6ef   : > { %v2229_v36 = vadd.f32 0.4994258, %v2228_v32  ;;  %v2389_v43 = vadd.f32 0.4994258, %v2388_v54  ;;  %v2506_v16 = vmul.f32 %v2505_v34, %v5509_v61  ;;  %v2423_v12 = vadd.f32 0.001143296, %v2422_v27 }
 0x6f0   : > { %v2348_v62 = vmul.f32 %v2347_v35, %v5451_v37  ;;  %v2264_v33 = vmul.f32 %v2263_v28, %v5468_v5  ;;  %v2453_v63 = vmul.f32 %v2452_v9, %v5554_v20  ;;  %v2417_v23 = vmul.f32 %v2416_v4, %v5543_v57 }
 0x6f1   : > { %v2230_v60 = vmul.f32 %v2229_v36, %v5438_v22  ;;  %v2390_v58 = vmul.f32 %v2389_v43, %v5502_v44  ;;  %v2507_v56 = vadd.f32 0.112945676, %v2506_v16  ;;  %v2424_v17 = vmul.f32 %v2423_v12, %v5543_v57 }
 0x6f2   : > { %v2349_v51 = vadd.f32 0.4994258, %v2348_v62  ;;  %v2265_v38 = vadd.f32 0.014752088, %v2264_v33  ;;  %v2340_v46 = vadd.f32 1.1283791, %v2339_v48  ;;  %v5604_v34 = vmul.f32 %v2220_v10, %v5408_v26 }
 0x6f3   : > { %v2260_v55 = vadd.f32 1.1283791, %v2259_v52  ;;  %v5589_v18 = vadd.f32 1.0, %v2230_v60  ;;  %v5591_v24 = vadd.f32 1.0, %v2390_v58  ;;  %v2380_v19 = vadd.f32 1.1283791, %v2379_v1 }
 0x6f4   : > { %v2350_v9 = vmul.f32 %v2349_v51, %v5451_v37  ;;  %v2508_v22 = vmul.f32 %v2507_v56, %v5509_v61  ;;  %v2266_v44 = vmul.f32 %v2265_v38, %v5468_v5  ;;  %v2500_v2 = vadd.f32 1.1283791, %v2499_v0 }
 0x6f5   : > { %v2454_v6 = vadd.f32 0.0036580483, %v2453_v63  ;;  %4102 = vrcp.f32 %v5589_v18  ;;  %v2425_v4 = vadd.f32 0.014752088, %v2424_v17  ;;  %v5597_v32 = vadd.f32 0.05243302, %v2295_v25 }
 0x6f6   : > { %v5600_v48 = vmul.f32 0.5, %v5483_v39  ;;  %v2418_v54 = vadd.f32 0.18741608, %v2417_v23  ;;  %4104 = vrcp.f32 %v5591_v24  ;;  %v5607_v37 = vmul.f32 %v2340_v46, %v5414_v40 }
 0x6f7   : > { %v5610_v52 = vmul.f32 %v2260_v55, %v5441_v3  ;;  %v2241_v35 = vand.u32 2147483647, %v5589_v18  ;;  %v5614_v25 = vmul.f32 %v2380_v19, %v5489_v59  ;;  %v5616_v28 = vadd.f32 1.0, %v2350_v9 }
 0x6f8   : > { %v2509_v39 = vadd.f32 0.4994258, %v2508_v22  ;;  %v2267_v27 = vadd.f32 0.112945676, %v2266_v44  ;;  %v5619_v1 = vmul.f32 %v2500_v2, %v5497_v21  ;;  %v5622_v26 = vmul.f32 %v2454_v6, %v5554_v20 }
 0x6f9   : > { %v2243_v40 = vand.u32 2147483648, %v5589_v18  ;;  %v2426_v3 = vmul.f32 %v2425_v4, %v5543_v57  ;;  %v5627_v10 = vmul.f32 %v2418_v54, %v5543_v57  ;;  %v2401_v59 = vand.u32 2147483647, %v5591_v24 }
 0x6fa   : > { %v2403_v36 = vand.u32 2147483648, %v5591_v24  ;;  %4106 = vrcp.f32 %v5616_v28  ;;  %vm2237_vm1 = vweird.f32 %v5589_v18  ;;  %v2510_v21 = vmul.f32 %v2509_v39, %v5509_v61 }
 0x6fb   : > { %v4103_v43 = vpop.eup %4102  ;;  %v2268_v16 = vmul.f32 %v2267_v27, %v5468_v5  ;;  %v2427_v0 = vadd.f32 0.112945676, %v2426_v3  ;;  %vm5636_vm2 = vcmp.eq.f32.partialorder %v2241_v35, 8.507059e+37  ;;  %vm2397_vm3 = vweird.f32 %v5591_v24 }
 0x6fc   : > { %v4105_v62 = vpop.eup %4104  ;;  %v2233_v33 = vmul.f32 %v4103_v43, %v5589_v18  ;;  %v2302_v63 = vmul.f32 3.8918573e-05, %v5486_v41  ;;  %v2244_v60 = vor.u32 1.1754944e-38, %v2243_v40  ;;  %v5643_v56 = vadd.f32 1.0, %v2510_v21 }
 0x6fd   : > { %v2393_v58 = vmul.f32 %v4105_v62, %v5591_v24  ;;  %v2269_v61 = vadd.f32 0.4994258, %v2268_v16  ;;  %vm5645_vm4 = vcmp.eq.f32.partialorder %v2401_v59, 8.507059e+37  ;;  %v2404_v38 = vor.u32 1.1754944e-38, %v2403_v36 }
 0x6fe   : > { %v2234_v23 = vsub.f32 1.0, %v2233_v33  ;;  %v2428_v17 = vmul.f32 %v2427_v0, %v5543_v57  ;;  %vm2238_vm5 = vweird.f32 %v4103_v43  ;;  %v2361_v55 = vand.u32 2147483647, %v5616_v28 }
 0x6ff   : > { %v2394_v46 = vsub.f32 1.0, %v2393_v58  ;;  %4108 = vrcp.f32 %v5643_v56  ;;  %v2270_v22 = vmul.f32 %v2269_v61, %v5468_v5  ;;  %v2303_v2 = vadd.f32 0.001143296, %v2302_v63  ;;  %vm2239_vm8 = vmor %vm2237_vm1, %vm2238_vm5 }
 0x700   : > { %v4107_v19 = vpop.eup %4106  ;;  %v2235_v9 = vmul.f32 %v4103_v43, %v2234_v23  ;;  %v2429_v44 = vadd.f32 0.4994258, %v2428_v17  ;;  %vm2398_vm6 = vweird.f32 %v4105_v62  ;;  %v2462_v54 = vmul.f32 3.8918573e-05, %v5554_v20 }
 0x701   : > { %v2395_v6 = vmul.f32 %v4105_v62, %v2394_v46  ;;  %v2353_v4 = vmul.f32 %v4107_v19, %v5616_v28  ;;  %vm2357_vm7 = vweird.f32 %v5616_v28  ;;  %v2363_v39 = vand.u32 2147483648, %v5616_v28  ;;  %vm2399_vm11 = vmor %vm2397_vm3, %vm2398_vm6 }
 0x702   : > { %v2236_v35 = vadd.f32 %v4103_v43, %v2235_v9  ;;  %v5657_v27 = vadd.f32 1.0, %v2270_v22  ;;  %vm2358_vm9 = vweird.f32 %v4107_v19  ;;  %vm5662_vm10 = vcmp.eq.f32.partialorder %v2361_v55, 8.507059e+37 }
 0x703   : > { %v2396_v5 = vadd.f32 %v4105_v62, %v2395_v6  ;;  %v2354_v40 = vsub.f32 1.0, %v2353_v4  ;;  %v2430_v36 = vmul.f32 %v2429_v44, %v5543_v57  ;;  %v2304_v21 = vmul.f32 %v2303_v2, %v5486_v41  ;;  %vm2359_vm12 = vmor %vm2357_vm7, %vm2358_vm9 }
 0x704   : > { %v2240_v59 = vsel %vm2239_vm8, %v4103_v43, %v2236_v35  ;;  %4110 = vrcp.f32 %v5657_v27  ;;  %v2463_v63 = vadd.f32 0.001143296, %v2462_v54  ;;  %v2364_v24 = vor.u32 1.1754944e-38, %v2363_v39 }
 0x705   : > { %v4109_v16 = vpop.eup %4108  ;;  %v2245_v18 = vsel %vm5636_vm2, %v2244_v60, %v2240_v59  ;;  %v2400_v0 = vsel %vm2399_vm11, %v4105_v62, %v2396_v5  ;;  %v2355_v33 = vmul.f32 %v4107_v19, %v2354_v40  ;;  %v2521_v17 = vand.u32 2147483647, %v5643_v56 }
 0x706   : > { %v2246_v58 = vmul.f32 %v2245_v18, %v5604_v34  ;;  %v2405_v43 = vsel %vm5645_vm4, %v2404_v38, %v2400_v0  ;;  %v2513_v61 = vmul.f32 %v4109_v16, %v5643_v56  ;;  %v2523_v46 = vand.u32 2147483648, %v5643_v56 }
 0x707   : > { %v2406_v23 = vmul.f32 %v2405_v43, %v5614_v25  ;;  %v2356_v57 = vadd.f32 %v4107_v19, %v2355_v33  ;;  %vm2518_vm13 = vweird.f32 %v4109_v16  ;;  %v5683_v34 = vadd.f32 1.0, %v2430_v36 }
 0x708   : > { %v3619_v12 = vclamps-f32 %v2246_v58, 1.0  ;;  %v2514_v62 = vsub.f32 1.0, %v2513_v61  ;;  %v2305_v38 = vadd.f32 0.014752088, %v2304_v21  ;;  %v2464_v55 = vmul.f32 %v2463_v63, %v5554_v20 }
 0x709   : > { %v3623_v60 = vclamps-f32 %v2406_v23, 1.0  ;;  %v2360_v51 = vsel %vm2359_vm12, %v4107_v19, %v2356_v57  ;;  %4112 = vrcp.f32 %v5683_v34  ;;  %vm2517_vm14 = vweird.f32 %v5643_v56 }
 0x70a   : > { %v4111_v25 = vpop.eup %4110  ;;  %v2537_v9 = vadd.f32 1.0, %v3619_v12  ;;  %v2365_v22 = vsel %vm5662_vm10, %v2364_v24, %v2360_v51  ;;  %v2515_v44 = vmul.f32 %v4109_v16, %v2514_v62  ;;  %vm2522_vm15 = vcmp.eq.f32.partialorder %v2521_v17, 8.507059e+37  ;;  %vm2519_vm0 = vmor %vm2517_vm14, %vm2518_vm13 }
 0x70b   : > { %v2541_v2 = vadd.f32 1.0, %v3623_v60  ;;  %v2366_v28 = vmul.f32 %v2365_v22, %v5607_v37  ;;  %v2273_v6 = vmul.f32 %v4111_v25, %v5657_v27  ;;  %v2524_v19 = vor.u32 1.1754944e-38, %v2523_v46 }
 0x70c   : > { %v2516_v4 = vadd.f32 %v4109_v16, %v2515_v44  ;;  %v2281_v54 = vand.u32 2147483647, %v5657_v27  ;;  %v2553_v35 = vmul.f32 %v2537_v9, %v5534_v47  ;;  %v2283_v40 = vand.u32 2147483648, %v5657_v27 }
 0x70d   : > { %v2557_v39 = vmul.f32 %v2541_v2, %v5552_v42  ;;  %v2274_v5 = vsub.f32 1.0, %v2273_v6  ;;  %v3622_v3 = vclamps-f32 %v2366_v28, 1.0  ;;  %v2306_v56 = vmul.f32 %v2305_v38, %v5486_v41 }
 0x70e   : > { %v2520_v37 = vsel %vm2519_vm0, %v4109_v16, %v2516_v4  ;;  %v2465_v59 = vadd.f32 0.014752088, %v2464_v55  ;;  %vm2278_vm1 = vweird.f32 %v4111_v25  ;;  %v2420_v33 = vadd.f32 1.1283791, %v5627_v10 }
 0x70f   : > { %v2629_v36 = vpack.c.bf16 %v2557_v39, %v2553_v35  ;;  %v2525_v21 = vsel %vm2522_vm15, %v2524_v19, %v2520_v37  ;;  %v2275_v18 = vmul.f32 %v4111_v25, %v2274_v5  ;;  %v4113_v0 = vpop.eup %4112  ;;  %v2307_v42 = vadd.f32 0.112945676, %v2306_v56 }
 0x710   : > { %v2526_v47 = vmul.f32 %v2525_v21, %v5619_v1  ;;  %v2466_v63 = vmul.f32 %v2465_v59, %v5554_v20  ;;  %vm2277_vm2 = vweird.f32 %v5657_v27  ;;  %v2284_v16 = vor.u32 1.1754944e-38, %v2283_v40 }
 0x711   : > { %2839 = vmatmul.bf16.gmra.mxu1 %v2629_v36  ;;  %v2276_v58 = vadd.f32 %v4111_v25, %v2275_v18  ;;  %v2433_v43 = vmul.f32 %v4113_v0, %v5683_v34  ;;  %v2540_v61 = vadd.f32 1.0, %v3622_v3  ;;  %vm2279_vm3 = vmor %vm2277_vm2, %vm2278_vm1  ;;  %v2308_v23 = vmul.f32 %v2307_v42, %v5486_v41 }
 0x712   : > { %v3626_v24 = vclamps-f32 %v2526_v47, 1.0  ;;  %v2467_v57 = vadd.f32 0.112945676, %v2466_v63  ;;  %vm2282_vm4 = vcmp.eq.f32.partialorder %v2281_v54, 8.507059e+37  ;;  %v2443_v1 = vand.u32 2147483648, %v5683_v34 }
 0x713   : > { %v2280_v17 = vsel %vm2279_vm3, %v4111_v25, %v2276_v58  ;;  %v2434_v10 = vsub.f32 1.0, %v2433_v43  ;;  %v2309_v62 = vadd.f32 0.4994258, %v2308_v23  ;;  %vm2438_vm5 = vweird.f32 %v4113_v0 }
 0x714   : > { %v2544_v46 = vadd.f32 1.0, %v3626_v24  ;;  %v2285_v12 = vsel %vm2282_vm4, %v2284_v16, %v2280_v17  ;;  %v2468_v60 = vmul.f32 %v2467_v57, %v5554_v20  ;;  %v2441_v38 = vand.u32 2147483647, %v5683_v34 }
 0x715   : > { %v2286_v27 = vmul.f32 %v2285_v12, %v5610_v52  ;;  %v2435_v51 = vmul.f32 %v4113_v0, %v2434_v10  ;;  %v2556_v55 = vmul.f32 %v2540_v61, %v5537_v8  ;;  %v2310_v25 = vmul.f32 %v2309_v62, %v5486_v41 }
 0x716   : > { %v2560_v9 = vmul.f32 %v2544_v46, %v5600_v48  ;;  %v2469_v22 = vadd.f32 0.4994258, %v2468_v60  ;;  %v2297_v44 = vmul.f32 %v5597_v32, %v5486_v41  ;;  %v2456_v2 = vadd.f32 0.05243302, %v5622_v26 }
 0x717   : > { %v2436_v28 = vadd.f32 %v4113_v0, %v2435_v51  ;;  %vm2437_vm6 = vweird.f32 %v5683_v34  ;;  %v2444_v6 = vor.u32 1.1754944e-38, %v2443_v1  ;;  %v2311_v4 = vadd.f32 1.0, %v2310_v25 }
 0x718   : > { %v2632_v52 = vpack.c.bf16 %v2560_v9, %v2556_v55  ;;  %vm2439_vm7 = vmor %vm2437_vm6, %vm2438_vm5  ;;  %v2470_v19 = vmul.f32 %v2469_v22, %v5554_v20  ;;  %v2421_v8 = vmul.f32 %v2420_v33, %v5524_v49  ;;  %v3620_v48 = vclamps-f32 %v2286_v27, 1.0 }
 0x719   : > { %v2440_v54 = vsel %vm2439_vm7, %v4113_v0, %v2436_v28  ;;  %vm2442_vm8 = vcmp.eq.f32.partialorder %v2441_v38, 8.507059e+37  ;;  %4114 = vrcp.f32 %v2311_v4  ;;  %v2457_v32 = vmul.f32 %v2456_v2, %v5554_v20 }
 0x71a   : > { %2896 = vmatmul.bf16.gmra.mxu0 %v2632_v52  ;;  %v2445_v35 = vsel %vm2442_vm8, %v2444_v6, %v2440_v54  ;;  %v2471_v39 = vadd.f32 1.0, %v2470_v19  ;;  %v2298_v5 = vadd.f32 0.18741608, %v2297_v44  ;;  %v2538_v40 = vadd.f32 1.0, %v3620_v48  ;;  %v5727_v19 = vld [vmem:[%s4602_s19] sm:$0xff] }
 0x71b   : > { %v2446_v26 = vmul.f32 %v2445_v35, %v2421_v8  ;;  %v1866_v3 = vmul.f32 0.5, %v5422_v7  ;;  %v1870_v37 = vmul.f32 0.5, %v5514_v45  ;;  %v2458_v56 = vadd.f32 0.18741608, %v2457_v32 }
 0x71c   : > { %4116 = vrcp.f32 %v2471_v39  ;;  %v2299_v36 = vmul.f32 %v2298_v5, %v5486_v41  ;;  %v2323_v58 = vand.u32 2147483648, %v2311_v4  ;;  %v2321_v45 = vand.u32 2147483647, %v2311_v4 }
 0x71d   : > { %v3624_v34 = vclamps-f32 %v2446_v26, 1.0  ;;  %v2554_v21 = vmul.f32 %v2538_v40, %v1866_v3  ;;  %v2459_v47 = vmul.f32 %v2458_v56, %v5554_v20  ;;  %vm2317_vm10 = vweird.f32 %v2311_v4 }
 0x71e   : > { %v2300_v43 = vadd.f32 1.1283791, %v2299_v36  ;;  %v2483_v41 = vand.u32 2147483648, %v2471_v39  ;;  %v2324_v57 = vor.u32 1.1754944e-38, %v2323_v58  ;;  %v2481_v10 = vand.u32 2147483647, %v2471_v39 }
 0x71f   : > { %v2542_v49 = vadd.f32 1.0, %v3624_v34  ;;  %v4115_v59 = vpop.eup %4114  ;;  %v2460_v61 = vadd.f32 1.1283791, %v2459_v47  ;;  %vm2322_vm13 = vcmp.eq.f32.partialorder %v2321_v45, 8.507059e+37  ;;  %vm2477_vm14 = vweird.f32 %v2471_v39 }
 0x720   : > { %v2313_v0 = vmul.f32 %v4115_v59, %v2311_v4  ;;  %vm2318_vm9 = vweird.f32 %v4115_v59  ;;  %v2301_v20 = vmul.f32 %v2300_v43, %v5462_v13  ;;  %v2484_v60 = vor.u32 1.1754944e-38, %v2483_v41 }
 0x721   : > { %v2558_v18 = vmul.f32 %v2542_v49, %v1870_v37  ;;  %vm2319_vm11 = vmor %vm2317_vm10, %vm2318_vm9  ;;  %v2461_v27 = vmul.f32 %v2460_v61, %v5540_v11  ;;  %vm2482_vm0 = vcmp.eq.f32.partialorder %v2481_v10, 8.507059e+37  ;;  %v1867_v13 = vmul.f32 0.5, %v5444_v29 }
 0x722   : > { %v4117_v33 = vpop.eup %4116  ;;  %v2314_v63 = vsub.f32 1.0, %v2313_v0  ;;  %v1871_v44 = vmul.f32 0.5, %v5528_v31  ;;  %v2633_v11 = vperm.slane %v5727_v19, 5 }
 0x723   : > { %v2630_v42 = vpack.c.bf16 %v2558_v18, %v2554_v21  ;;  %v2473_v16 = vmul.f32 %v4117_v33, %v2471_v39  ;;  %vm2478_vm12 = vweird.f32 %v4117_v33 }
 0x724   : > { %v2315_v7 = vmul.f32 %v4115_v59, %v2314_v63  ;;  %vm2479_vm15 = vmor %vm2477_vm14, %vm2478_vm12 }
 0x725   : > { %2858 = vmatmul.bf16.gmra.mxu2 %v2630_v42  ;;  %v2474_v24 = vsub.f32 1.0, %v2473_v16 }
 0x726   : > { %v2316_v23 = vadd.f32 %v4115_v59, %v2315_v7 }
 0x727   : > { %v2475_v17 = vmul.f32 %v4117_v33, %v2474_v24 }
 0x728   : > { %v2320_v1 = vsel %vm2319_vm11, %v4115_v59, %v2316_v23 }
 0x729   : > { %v2325_v46 = vsel %vm2322_vm13, %v2324_v57, %v2320_v1  ;;  %v2476_v12 = vadd.f32 %v4117_v33, %v2475_v17 }
 0x72a   : > { %v2326_v62 = vmul.f32 %v2325_v46, %v2301_v20 }
 0x72b   : > { %v2480_v51 = vsel %vm2479_vm15, %v4117_v33, %v2476_v12 }
 0x72c   : > { %v3621_v38 = vclamps-f32 %v2326_v62, 1.0  ;;  %v2485_v55 = vsel %vm2482_vm0, %v2484_v60, %v2480_v51 }
 0x72d   : > { %v2486_v9 = vmul.f32 %v2485_v55, %v2461_v27 }
 0x72e   : > { %v2539_v22 = vadd.f32 1.0, %v3621_v38 }
 0x72f   : > { %v3625_v25 = vclamps-f32 %v2486_v9, 1.0 }
 0x730   : > { %v2555_v28 = vmul.f32 %v2539_v22, %v1867_v13 }
 0x731   : > { %v2543_v2 = vadd.f32 1.0, %v3625_v25 }
 0x733   : > { %v2559_v52 = vmul.f32 %v2543_v2, %v1871_v44 }
 0x735   : > { %v2631_v6 = vpack.c.bf16 %v2559_v52, %v2555_v28 }
 0x737   : > { %2877 = vmatmul.bf16.gmra.mxu3 %v2631_v6 }
 0x73d   : > { %v2835_v4 = vpop.f32.mrf.mxu1 }
 0x73e   : > { %v2836_v48 = vadd.f32 %v2835_v4, %v2633_v11 }
 0x745   : > { %v2837_v35 = vpop.f32.mrf.mxu1 }
 0x746   : > { %v2838_v5 = vadd.f32 %v2837_v35, %v2633_v11  ;;  %v2986_v35 = vperm.slane %v5727_v19, 6 }
 0x749   : > { %v2892_v32 = vpop.f32.mrf.mxu0 }
 0x751   : > { %v2894_v56 = vpop.f32.mrf.mxu0 }
 0x75c   : > { %v2854_v8 = vpop.f32.mrf.mxu2 }
 0x75d   : > { %v2855_v54 = vadd.f32 %v2854_v8, %v2836_v48 }
 0x764   : > { %v2856_v29 = vpop.f32.mrf.mxu2 }
 0x765   : > { %v2857_v34 = vadd.f32 %v2856_v29, %v2838_v5 }
 0x767   : > { %v2873_v26 = vpop.f32.mrf.mxu3 }
 0x768   : > { %v2874_v39 = vadd.f32 %v2873_v26, %v2855_v54 }
 0x76a   : > { %v2893_v31 = vadd.f32 %v2892_v32, %v2874_v39  ;;  %v2991_v39 = vperm.slane %v5727_v19, 7 }
 0x76c   : > { %v2902_v40 = vadd.f32 %v2893_v31, %v5012_v53 }
 0x76e   : > { %2906 = vadd.xlane.f32.xlu2 %v2902_v40 }
 0x76f   : > { %v2875_v3 = vpop.f32.mrf.mxu3 }
 0x770   : > { %v2876_v37 = vadd.f32 %v2875_v3, %v2857_v34 }
 0x772   : > { %v2895_v49 = vadd.f32 %v2894_v56, %v2876_v37 }
 0x774   : > { %v2903_v59 = vadd.f32 %v2895_v49, %v5014_v50 }
 0x776   : > { %2908 = vadd.xlane.f32.xlu0 %v2903_v59 }
 0x78e   : > { %v2840_v36 = vpop.f32.mrf.mxu1 }
 0x78f   : > { %v2841_v18 = vadd.f32 %v2840_v36, %v2633_v11 }
 0x796   : > { %v2842_v33 = vpop.f32.mrf.mxu1 }
 0x797   : > { %v2897_v47 = vpop.f32.mrf.mxu0  ;;  %v2843_v16 = vadd.f32 %v2842_v33, %v2633_v11 }
 0x79f   : > { %v2899_v61 = vpop.f32.mrf.mxu0 }
 0x7a8   : > { %v2859_v21 = vpop.f32.mrf.mxu2 }
 0x7a9   : > { %v2860_v0 = vadd.f32 %v2859_v21, %v2841_v18 }
 0x7b0   : > { %v2861_v58 = vpop.f32.mrf.mxu2 }
 0x7b1   : > { %v2862_v53 = vadd.f32 %v2861_v58, %v2843_v16 }
 0x7ba   : > { %v2878_v42 = vpop.f32.mrf.mxu3 }
 0x7bb   : > { %v2879_v63 = vadd.f32 %v2878_v42, %v2860_v0 }
 0x7bd   : > { %v2898_v43 = vadd.f32 %v2897_v47, %v2879_v63 }
 0x7bf   : > { %v2904_v7 = vadd.f32 %v2898_v43, %v5022_v14 }
 0x7c1   : > { %2910 = vadd.xlane.f32.xlu1 %v2904_v7 }
 0x7c2   : > { %v2880_v45 = vpop.f32.mrf.mxu3 }
 0x7c3   : > { %v2881_v24 = vadd.f32 %v2880_v45, %v2862_v53 }
 0x7c5   : > { %v2900_v50 = vadd.f32 %v2899_v61, %v2881_v24 }
 0x7c7   : > { %v2905_v23 = vadd.f32 %v2900_v50, %v5024_v15 }
 0x7c9   : > { %2912 = vadd.xlane.f32.xlu2 %v2905_v23 }
 0x7e1   : > { %v2907_v41 = vpop.xlane.xlu2 %2906 }
 0x7e2   : > { %v2914_v57 = vmul.f32 %v2907_v41, %v4921_v30 }
 0x7e4   : > { %v2918_v17 = vsub.f32 %v2902_v40, %v2914_v57 }
 0x7e6   : > { %v2922_v10 = vmul.f32 %v2918_v17, %v2918_v17 }
 0x7e8   : > { %2926 = vadd.xlane.f32.xlu0 %v2922_v10 }
 0x7e9   : > { %v2909_v20 = vpop.xlane.xlu0 %2908 }
 0x7ea   : > { %v2915_v1 = vmul.f32 %v2909_v20, %v4921_v30 }
 0x7ec   : > { %v2919_v46 = vsub.f32 %v2903_v59, %v2915_v1 }
 0x7ee   : > { %v2923_v12 = vmul.f32 %v2919_v46, %v2919_v46 }
 0x7f0   : > { %2928 = vadd.xlane.f32.xlu1 %v2923_v12 }
 0x834   : > { %v2911_v14 = vpop.xlane.xlu1 %2910 }
 0x835   : > { %v2916_v62 = vmul.f32 %v2911_v14, %v4921_v30 }
 0x837   : > { %v5737_v60 = vsub.f32 %v2904_v7, %v2916_v62 }
 0x839   : > { %v2924_v15 = vmul.f32 %v5737_v60, %v5737_v60 }
 0x83b   : > { %2930 = vadd.xlane.f32.xlu2 %v2924_v15 }
 0x83c   : > { %v2913_v27 = vpop.xlane.xlu2 %2912 }
 0x83d   : > { %v2917_v51 = vmul.f32 %v2913_v27, %v4921_v30 }
 0x83f   : > { %v5742_v38 = vsub.f32 %v2905_v23, %v2917_v51 }
 0x841   : > { %v2925_v55 = vmul.f32 %v5742_v38, %v5742_v38 }
 0x843   : > { %2932 = vadd.xlane.f32.xlu0 %v2925_v55 }
 0x85b   : > { %v2927_v9 = vpop.xlane.xlu0 %2926 }
 0x85c   : > { %v2934_v25 = vmul.f32 %v2927_v9, %v4921_v30 }
 0x85e   : > { %v2938_v22 = vadd.f32 1e-05, %v2934_v25 }
 0x860   : > { %4118 = vrsqrt.f32 %v2938_v22  ;;  %vm2948_vm2 = vweird.f32 %v2938_v22 }
 0x863   : > { %v2929_v13 = vpop.xlane.xlu1 %2928 }
 0x864   : > { %v2935_v44 = vmul.f32 %v2929_v13, %v4921_v30 }
 0x866   : > { %v4119_v2 = vpop.eup %4118  ;;  %v2939_v28 = vadd.f32 1e-05, %v2935_v44 }
 0x867   : > { %v2943_v52 = vmul.f32 %v4119_v2, %v2938_v22  ;;  %vm2949_vm1 = vweird.f32 %v4119_v2 }
 0x868   : > { %4120 = vrsqrt.f32 %v2939_v28  ;;  %vm2950_vm3 = vmor %vm2948_vm2, %vm2949_vm1  ;;  %vm2958_vm5 = vweird.f32 %v2939_v28 }
 0x869   : > { %v2944_v6 = vmul.f32 %v4119_v2, %v2943_v52 }
 0x86b   : > { %v2945_v4 = vmul.f32 0.5, %v2944_v6 }
 0x86d   : > { %v2946_v11 = vsub.f32 1.5, %v2945_v4 }
 0x86e   : > { %v4121_v8 = vpop.eup %4120 }
 0x86f   : > { %v2947_v48 = vmul.f32 %v4119_v2, %v2946_v11  ;;  %v2953_v54 = vmul.f32 %v4121_v8, %v2939_v28  ;;  %vm2959_vm4 = vweird.f32 %v4121_v8 }
 0x870   : > { %vm2960_vm6 = vmor %vm2958_vm5, %vm2959_vm4 }
 0x871   : > { %v2951_v32 = vsel %vm2950_vm3, %v4119_v2, %v2947_v48  ;;  %v2954_v26 = vmul.f32 %v4121_v8, %v2953_v54 }
 0x872   : > { %v2982_v29 = vmul.f32 %v2951_v32, %v2918_v17 }
 0x873   : > { %v2955_v5 = vmul.f32 0.5, %v2954_v26 }
 0x874   : > { %v2987_v31 = vmul.f32 %v2986_v35, %v2982_v29 }
 0x875   : > { %v2956_v34 = vsub.f32 1.5, %v2955_v5 }
 0x876   : > { %v2992_v40 = vadd.f32 %v2991_v39, %v2987_v31 }
 0x877   : > { %v2957_v3 = vmul.f32 %v4121_v8, %v2956_v34 }
 0x878   : > { %2996 = vst [vmem:[#allocation2 + $0x10] sm:$0xff] %v2992_v40 }
 0x879   : > { %v2961_v37 = vsel %vm2960_vm6, %v4121_v8, %v2957_v3 }
 0x87a   : > { %v2983_v56 = vmul.f32 %v2961_v37, %v2919_v46 }
 0x87c   : > { %v2988_v49 = vmul.f32 %v2986_v35, %v2983_v56 }
 0x87e   : > { %v2993_v59 = vadd.f32 %v2991_v39, %v2988_v49 }
 0x880   : > { %2997 = vst [vmem:[#allocation2] sm:$0xff] %v2993_v59 }
 0x8ae   : > { %v2931_v36 = vpop.xlane.xlu2 %2930 }
 0x8af   : > { %v2936_v21 = vmul.f32 %v2931_v36, %v4921_v30 }
 0x8b1   : > { %v2940_v18 = vadd.f32 1e-05, %v2936_v21 }
 0x8b3   : > { %4122 = vrsqrt.f32 %v2940_v18  ;;  %vm2968_vm8 = vweird.f32 %v2940_v18 }
 0x8b6   : > { %v2933_v19 = vpop.xlane.xlu0 %2932 }
 0x8b7   : > { %v2937_v0 = vmul.f32 %v2933_v19, %v4921_v30 }
 0x8b9   : > { %v4123_v33 = vpop.eup %4122  ;;  %v2941_v47 = vadd.f32 1e-05, %v2937_v0 }
 0x8ba   : > { %v2963_v42 = vmul.f32 %v4123_v33, %v2940_v18  ;;  %vm2969_vm7 = vweird.f32 %v4123_v33 }
 0x8bb   : > { %4124 = vrsqrt.f32 %v2941_v47  ;;  %vm2970_vm9 = vmor %vm2968_vm8, %vm2969_vm7  ;;  %vm2978_vm11 = vweird.f32 %v2941_v47 }
 0x8bc   : > { %v2964_v63 = vmul.f32 %v4123_v33, %v2963_v42 }
 0x8be   : > { %v2965_v58 = vmul.f32 0.5, %v2964_v63 }
 0x8c0   : > { %v2966_v16 = vsub.f32 1.5, %v2965_v58 }
 0x8c1   : > { %v4125_v43 = vpop.eup %4124 }
 0x8c2   : > { %v2967_v53 = vmul.f32 %v4123_v33, %v2966_v16  ;;  %v2973_v7 = vmul.f32 %v4125_v43, %v2941_v47  ;;  %vm2979_vm10 = vweird.f32 %v4125_v43 }
 0x8c3   : > { %vm2980_vm12 = vmor %vm2978_vm11, %vm2979_vm10 }
 0x8c4   : > { %v2971_v45 = vsel %vm2970_vm9, %v4123_v33, %v2967_v53  ;;  %v2974_v24 = vmul.f32 %v4125_v43, %v2973_v7 }
 0x8c5   : > { %v2984_v61 = vmul.f32 %v2971_v45, %v5737_v60 }
 0x8c6   : > { %v2975_v50 = vmul.f32 0.5, %v2974_v24 }
 0x8c7   : > { %v2989_v23 = vmul.f32 %v2986_v35, %v2984_v61 }
 0x8c8   : > { %v2976_v41 = vsub.f32 1.5, %v2975_v50 }
 0x8c9   : > { %v2994_v57 = vadd.f32 %v2991_v39, %v2989_v23 }
 0x8ca   : > { %v2977_v17 = vmul.f32 %v4125_v43, %v2976_v41 }
 0x8cb   : > { %2998 = vst [vmem:[#allocation2 + $0x18] sm:$0xff] %v2994_v57 }
 0x8cc   : > { %v2981_v10 = vsel %vm2980_vm12, %v4125_v43, %v2977_v17 }
 0x8cd   : > { %v2985_v20 = vmul.f32 %v2981_v10, %v5742_v38 }
 0x8cf   : > { %v2990_v1 = vmul.f32 %v2986_v35, %v2985_v20  ;;  %3003 = sbr.rel (%p3755_p1) target bundleno = 2698 (0xa8a), region = 80 }
 0x8d1   : > { %v2995_v46 = vadd.f32 %v2991_v39, %v2990_v1 }
 0x8d3   : > { %2999 = vst [vmem:[#allocation2 + $0x8] sm:$0xff] %v2995_v46 }
 0x8d4   : > { %v3004_v12 = vadd.f32 %v2993_v59, %v2992_v40  ;;  %v3011_v14 = vadd.f32 %v2995_v46, %v2994_v57  ;;  %v4380_v62 = vmov 16.0   ;;  %vm3031_vm14 = vcmask 1041409   ;;  %v3899_v49 = vld [vmem:[#allocation11 + $0x38] sm:$0xff]  ;;  %v3898_v59 = vld [vmem:[#allocation11 + $0x30] sm:$0xff]  ;;  %v3897_v36 = vld [vmem:[#allocation11 + $0x28] sm:$0xff] }
 0x8d5   : > { %4137 = vrcp.f32 %v4380_v62  ;;  %vm3034_vm15 = vcmask 1041408   ;;  %3155 = vmatpush.bf16.msra.mxu0 %v3899_v49  ;;  %v3896_v21 = vld [vmem:[#allocation11 + $0x20] sm:$0xff]  ;;  %v3895_v18 = vld [vmem:[#allocation11 + $0x18] sm:$0xff]  ;;  %v3894_v19 = vld [vmem:[#allocation11 + $0x10] sm:$0xff] }
 0x8d6   : > { %v3005_v60 = vrot.slane %v3004_v12, 4  ;;  %v3012_v15 = vrot.slane %v3011_v14, 4  ;;  %v3893_v0 = vld [vmem:[#allocation11 + $0x8] sm:$0xff]  ;;  %v3892_v42 = vld [vmem:[#allocation11] sm:$0xff] }
 0x8d7   : > { %v4134_v24 = vld [vmem:[%s5793_s7] ss:$0 sm:$0xff]  ;;  %v4135_v23 = vld [vmem:[%s5793_s7 + $0x1] ss:$0 sm:$0xff] }
 0x8d8   : > { %v3006_v27 = vadd.f32 %v3005_v60, %v3004_v12  ;;  %v3013_v51 = vadd.f32 %v3012_v15, %v3011_v14 }
 0x8d9   : > { %3156 = vmatpush.bf16.msra.mxu0 %v3898_v59 }
 0x8da   : > { %v3007_v55 = vrot.slane %v3006_v27, 2  ;;  %v3014_v9 = vrot.slane %v3013_v51, 2 }
 0x8db   : > { %v4138_v25 = vpop.eup %4137 }
 0x8dc   : > { %v3008_v22 = vadd.f32 %v3007_v55, %v3006_v27  ;;  %v3015_v13 = vadd.f32 %v3014_v9, %v3013_v51  ;;  %v3019_v38 = vmul.f32 16.0, %v4138_v25  ;;  %vm3023_vm13 = vweird.f32 %v4138_v25  ;;  %v4136_v27 = vld [vmem:[%s5793_s7 + $0x2] ss:$0 sm:$0xff] }
 0x8dd   : > { %3157 = vmatpush.bf16.msra.mxu0 %v3897_v36 }
 0x8de   : > { %v3009_v44 = vrot.slane %v3008_v22, 1  ;;  %v3016_v2 = vrot.slane %v3015_v13, 1  ;;  %v3020_v28 = vsub.f32 1.0, %v3019_v38 }
 0x8e0   : > { %v3021_v52 = vmul.f32 %v4138_v25, %v3020_v28  ;;  %v3010_v6 = vadd.f32 %v3009_v44, %v3008_v22  ;;  %v3017_v4 = vadd.f32 %v3016_v2, %v3015_v13 }
 0x8e1   : > { %3158 = vmatpush.bf16.msra.mxu0 %v3896_v21 }
 0x8e2   : > { %v3022_v11 = vadd.f32 %v4138_v25, %v3021_v52 }
 0x8e4   : > { %v3024_v8 = vsel %vm3023_vm13, %v4138_v25, %v3022_v11 }
 0x8e5   : > { %v3025_v48 = vmul.f32 %v3024_v8, %v3010_v6  ;;  %v3026_v54 = vmul.f32 %v3024_v8, %v3017_v4  ;;  %3159 = vmatpush.bf16.msra.mxu0 %v3895_v18 }
 0x8e7   : > { %v3032_v35 = vsel %vm3031_vm14, %v3026_v54, %v3025_v48 }
 0x8e8   : > { %v3035_v32 = vsel %vm3034_vm15, %v3032_v35, 0.0 }
 0x8e9   : > { %3036 = vadd.xlane.f32.xlu0 %v3035_v32  ;;  %3160 = vmatpush.bf16.msra.mxu0 %v3894_v19 }
 0x8ed   : > { %3161 = vmatpush.bf16.msra.mxu0 %v3893_v0 }
 0x8f1   : > { %3162 = vmatpush.bf16.msra.mxu0 %v3892_v42 }
 0x95c   : > { %v3037_v26 = vpop.xlane.xlu0 %3036 }
 0x95d   : > { %v3038_v39 = vmul.f32 %v3037_v26, %v4921_v30 }
 0x95f   : > { %v3040_v29 = vrot.slane %v3038_v39, 1  ;;  %v3043_v5 = vsub.f32 %v3025_v48, %v3038_v39 }
 0x961   : > { %v3044_v31 = vsub.f32 %v3026_v54, %v3040_v29  ;;  %v3045_v40 = vmul.f32 %v3043_v5, %v3043_v5 }
 0x963   : > { %v3046_v34 = vmul.f32 %v3044_v31, %v3044_v31 }
 0x965   : > { %v3049_v3 = vrot.slane %v3046_v34, 7 }
 0x967   : > { %v3050_v37 = vsel %vm3031_vm14, %v3049_v3, %v3045_v40 }
 0x968   : > { %v3052_v56 = vsel %vm3034_vm15, %v3050_v37, 0.0 }
 0x969   : > { %3053 = vadd.xlane.f32.xlu0 %v3052_v56 }
 0x9dc   : > { %v3054_v33 = vpop.xlane.xlu0 %3053 }
 0x9dd   : > { %v3055_v47 = vmul.f32 %v3054_v33, %v4921_v30 }
 0x9df   : > { %v3056_v63 = vadd.f32 1e-05, %v3055_v47 }
 0x9e1   : > { %4139 = vrsqrt.f32 %v3056_v63  ;;  %vm3063_vm1 = vweird.f32 %v3056_v63 }
 0x9e7   : > { %v4140_v58 = vpop.eup %4139 }
 0x9e8   : > { %v3058_v16 = vmul.f32 %v4140_v58, %v3056_v63  ;;  %vm3064_vm0 = vweird.f32 %v4140_v58 }
 0x9e9   : > { %vm3065_vm2 = vmor %vm3063_vm1, %vm3064_vm0 }
 0x9ea   : > { %v3059_v43 = vmul.f32 %v4140_v58, %v3058_v16 }
 0x9ec   : > { %v3060_v53 = vmul.f32 0.5, %v3059_v43 }
 0x9ee   : > { %v3061_v7 = vsub.f32 1.5, %v3060_v53 }
 0x9f0   : > { %v3062_v45 = vmul.f32 %v4140_v58, %v3061_v7 }
 0x9f2   : > { %v3066_v61 = vsel %vm3065_vm2, %v4140_v58, %v3062_v45 }
 0x9f3   : > { %v3068_v30 = vrot.slane %v3066_v61, 1  ;;  %v3071_v50 = vmul.f32 %v3066_v61, %v3043_v5 }
 0x9f5   : > { %v3072_v41 = vmul.f32 %v3068_v30, %v3044_v31  ;;  %v3074_v57 = vmul.f32 %v4134_v24, %v3071_v50 }
 0x9f7   : > { %v3075_v17 = vmul.f32 %v4134_v24, %v3072_v41  ;;  %v3077_v10 = vadd.f32 %v4135_v23, %v3074_v57 }
 0x9f9   : > { %v3078_v20 = vadd.f32 %v4135_v23, %v3075_v17  ;;  %v3095_v1 = vpack.c.bf16 %v3077_v10, %v3077_v10 }
 0x9fb   : > { %v3096_v46 = vpack.c.bf16 %v3078_v20, %v3078_v20  ;;  %v3101_v14 = vunpack.c.l.b16 %v3095_v1 }
 0x9fd   : > { %v3102_v12 = vunpack.c.l.b16 %v3096_v46 }
 0x9ff   : > { %v3103_v62 = vrot.slane %v3102_v12, 7 }
 0xa01   : > { %v3104_v60 = vsel %vm3031_vm14, %v3103_v62, %v3101_v14 }
 0xa02   : > { %v3105_v15 = vpack.c.b16 %v3104_v60, %v3104_v60 }
 0xa04   : > { %3163 = vmatmul.bf16.vlgmr.msra.gmra.mxu0 %v3105_v15 }
 0xa81   : > { %v3164_v51 = vpop.f32.mrf.mxu0 }
 0xa82   : > { %v3165_v55 = vadd.f32 %v4136_v27, %v3164_v51 }
 0xa84   : > { %3168 = vst [vmem:[#allocation12] sm:$0x3] %v3165_v55 }
 0xa89   : > { %v3166_v9 = vpop.f32.mrf.mxu0 }
 0xa8a PF: > { %p3937_p4 = scmp.eq.s32.totalorder %s4446_s9, 1  ;;  %s4381_s19 = smov [#allocation12]  }
 0xa8b   : > { %s3175_s16 = sshll.u32 %s4381_s19, 4  ;;  %s5839_s20 = sld [smem:[#allocation23_spill]]  ;;  %s3176_s16 = int_to_ptr.vmem [resolvable:$true] %s3175_s16 }
 0xa91   : > { %s3177_s11 = sshll.u32 %s5839_s20, 4  ;;  %s3178_s11 = int_to_ptr.hbm [resolvable:$true] %s3177_s11 }
 0xa92   : > { %3914 = dma.vmem_to_hbm [thread:$0]  (%p3937_p4), %s3176_s16, 32, %s3178_s11, [#allocation5]  }
 0xa93   : > { %4352 = dma.done.wait (%p3937_p4), [#allocation5], 32  }
 0xa94   : > { %4354 = vsyncadd (%p3937_p4), [#allocation5], 4294967264 }
 0xa95 PF: > { %s5840_s30 = sld [smem:[#allocation19_spill]]  ;;  %s5843_s27 = smov %s4361_s28 }
 0xa96   : > { %s5841_s10 = sld [smem:[#allocation18_spill]] }
 0xa97   : > { %s5842_s29 = sld [smem:[#allocation20_spill]] }
 0xa9b   : > { %p25_p5 = scmp.ge.s32.totalorder %s5840_s30, 4  }
 0xa9c   : > { %s5844_s28 = smov %s5841_s10 }
 0xa9d   :  { %27 = sbr.rel (!%p25_p5) target bundleno = 12 (0xc), region = 141 }
 0xaa2   :  { %3191 = vsyncpa [#allocation4], 1 }
 0xaa3   :  { %3193 = vsyncpa [#allocation4 + $0x1], 1 }
 0xaa4   :  { %3194 = vsyncpa [#allocation7], 1 }
 0xaa5   :  { %3196 = vsyncpa [#allocation7 + $0x1], 1 }
 0xaa6   :  { %3197 = vsyncpa [#allocation10], 1 }
 0xaa7   :  { %3199 = vsyncpa [#allocation10 + $0x1], 1 }
 0xaa8   :  { %3200 = vsyncpa [#allocation5], 1 }
 0xaa9   :  { %3202 = vsyncpa [#allocation5 + $0x1], 1 }

</bundles_post_ra>
